<compile_context>
chip_gen: v7x
topology: tpu7x:2x2x1
jax: 0.10.0
libtpu: 0.0.40
codegen_flags: <defaults>
</compile_context>

<pallas_src>
import math

import jax
import jax.numpy as jnp
from jax.experimental import pallas as pl
from jax.experimental.pallas import tpu as pltpu

NEG_SLOPE = 0.01   # nn.LeakyReLU default
BN_EPS = 1e-5      # nn.BatchNorm1d default


def _leaky(x):
    return jnp.where(x > 0, x, NEG_SLOPE * x)


# --------------------------- fused forward kernel ---------------------------
def fused_vae_kernel(
    # ---- SMEM (scalar-access) layer-wise weights ----
    elw_w, elw_b,            # [L, nc], [nc]   encoder layer-wise Linear
    dlw_w1, dlw_b1,          # [nc, nc], [nc]  decoder layer-wise Linear 1
    dlw_w2, dlw_b2,          # [nc, L], [L]    decoder layer-wise Linear 2
    dlw_w3, dlw_b3,          # [L, L], [L]     decoder layer-wise Linear 3
    # ---- VMEM tensors (weights BN-folded, loaded once, resident) ----
    x_ref,                   # [L, B, W]
    eps_ref,                 # [nc, B, cd]
    ew1, eb1, ew2, eb2, ew3, eb3,   # grouped encoder feature layers
    ewc, ebc,                # grouped concept classifier
    ewmu, ebmu, ewv, ebv,    # grouped mu / log_var heads
    dw1a, dw1b, db1,         # decoder layer 1, split into class-part / z-part
    dw2, db2, dw3, db3, dw4, db4, dw5, db5, dw6, db6,
    # ---- outputs ----
    recons_ref,              # [L, B, W]
    mu_ref, lv_ref, cls_ref, # [nc, B, cd] each
):
    L, B, W = x_ref.shape
    nc = eps_ref.shape[0]

    def dot(a, b):
        return jnp.dot(a, b, preferred_element_type=jnp.float32)

    # Hoist the per-layer [B, W] slabs of the input (reused by every concept).
    x_slabs = [x_ref[l] for l in range(L)]

    concept_feats = []
    for i in range(nc):
        # ---- encoder layer-wise Linear(L -> nc)[:, :, i] + LeakyReLU ----
        acc = x_slabs[0] * elw_w[0, i]
        for l in range(1, L):
            acc = acc + x_slabs[l] * elw_w[l, i]
        feat = _leaky(acc + elw_b[i])                         # [B, W]

        # ---- grouped encoder feature MLP (Linear+BN+LeakyReLU x3, BN folded)
        h = _leaky(dot(feat, ew1[i]) + eb1[i])                # [B, h1]
        h = _leaky(dot(h, ew2[i]) + eb2[i])                   # [B, h2]
        h = _leaky(dot(h, ew3[i]) + eb3[i])                   # [B, h2]

        # ---- classifier / mu / log_var heads ----
        c = _leaky(dot(h, ewc[i]) + ebc[i])                   # [B, cd]
        mu = _leaky(dot(h, ewmu[i]) + ebmu[i])                # [B, cd]
        lv = _leaky(dot(h, ewv[i]) + ebv[i])                  # [B, cd]

        # ---- reparameterize: eps * exp(0.5*logvar) + mu ----
        z = eps_ref[i] * jnp.exp(0.5 * lv) + mu

        # ---- softmax over the concept-class dim ----
        cmax = jnp.max(c, axis=-1, keepdims=True)
        e = jnp.exp(c - cmax)
        sm = e / jnp.sum(e, axis=-1, keepdims=True)

        mu_ref[i] = mu
        lv_ref[i] = lv
        cls_ref[i] = sm

        # ---- grouped decoder branch ----
        # cat([sm, z]) @ W1  ==  sm @ W1[:cd] + z @ W1[cd:]  (no in-kernel concat)
        hd = _leaky(dot(sm, dw1a[i]) + dot(z, dw1b[i]) + db1[i])
        hd = _leaky(dot(hd, dw2[i]) + db2[i])
        hd = _leaky(dot(hd, dw3[i]) + db3[i])
        hd = _leaky(dot(hd, dw4[i]) + db4[i])
        hd = _leaky(dot(hd, dw5[i]) + db5[i])
        hd = _leaky(dot(hd, dw6[i]) + db6[i])                 # [B, W]
        concept_feats.append(hd)

    # ---- decoder layer-wise MLP over the concept axis (stack is implicit) ----
    # Linear(nc -> nc) + LeakyReLU
    t1 = []
    for j in range(nc):
        acc = concept_feats[0] * dlw_w1[0, j]
        for i in range(1, nc):
            acc = acc + concept_feats[i] * dlw_w1[i, j]
        t1.append(_leaky(acc + dlw_b1[j]))
    # Linear(nc -> L) + LeakyReLU
    t2 = []
    for m in range(L):
        acc = t1[0] * dlw_w2[0, m]
        for j in range(1, nc):
            acc = acc + t1[j] * dlw_w2[j, m]
        t2.append(_leaky(acc + dlw_b2[m]))
    # Linear(L -> L) + Tanh, write reconstruction as [L, B, W]
    for l in range(L):
        acc = t2[0] * dlw_w3[0, l]
        for m in range(1, L):
            acc = acc + t2[m] * dlw_w3[m, l]
        recons_ref[l] = jnp.tanh(acc + dlw_b3[l])


# ------------------ parameter construction (PyTorch-like init) ------------------
class _KeyGen:
    def __init__(self, key):
        self.key = key

    def __call__(self):
        self.key, sub = jax.random.split(self.key)
        return sub


def init_params(key, W, L, concept_dims):
    assert len(set(concept_dims)) == 1, "stacked-concept kernel assumes uniform concept dims"
    nc = len(concept_dims)
    cd = concept_dims[0]
    h1 = int((W + cd) / 2)
    h2 = int(W / 4 + 3 * cd / 4)
    d1 = int(W / 4 + 3 * cd / 2)
    d2 = int(W / 2 + cd)

    kg = _KeyGen(key)

    def lin(fan_in, fan_out):
        bound = 1.0 / math.sqrt(fan_in)
        w = jax.random.uniform(kg(), (fan_in, fan_out), jnp.float32, -bound, bound)
        b = jax.random.uniform(kg(), (fan_out,), jnp.float32, -bound, bound)
        return w, b

    def lin_bn_folded(fan_in, fan_out,
                      running_mean=0.0, running_var=1.0, gamma=1.0, beta=0.0):
        # Eval-mode BatchNorm folded into the Linear (identity stats by default).
        w, b = lin(fan_in, fan_out)
        scale = gamma / math.sqrt(running_var + BN_EPS)
        return w * scale, (b - running_mean) * scale + beta

    def stack_bn(fan_in, fan_out):
        ws, bs = [], []
        for _ in range(nc):
            w, b = lin_bn_folded(fan_in, fan_out)
            ws.append(w)
            bs.append(b.reshape(1, fan_out))
        return jnp.stack(ws), jnp.stack(bs)

    def stack_plain(fan_in, fan_out):
        ws, bs = [], []
        for _ in range(nc):
            w, b = lin(fan_in, fan_out)
            ws.append(w)
            bs.append(b.reshape(1, fan_out))
        return jnp.stack(ws), jnp.stack(bs)

    p = {}

    # encoder layer-wise Linear(L -> nc)  (SMEM scalars in the kernel)
    w, b = lin(L, nc)
    p['enc_lw_w'] = w                  # [L, nc]
    p['enc_lw_b'] = b                  # [nc]

    # grouped encoder (BN folded where the reference has BatchNorm1d)
    p['enc_w1'], p['enc_b1'] = stack_bn(W, h1)
    p['enc_w2'], p['enc_b2'] = stack_bn(h1, h2)
    p['enc_w3'], p['enc_b3'] = stack_bn(h2, h2)
    p['enc_wc'], p['enc_bc'] = stack_bn(h2, cd)
    p['enc_wmu'], p['enc_bmu'] = stack_plain(h2, cd)
    p['enc_wvar'], p['enc_bvar'] = stack_plain(h2, cd)

    # grouped decoder
    dec_dims = [(2 * cd, 2 * cd), (2 * cd, d1), (d1, d1), (d1, d2), (d2, d2), (d2, W)]
    for li, (fi, fo) in enumerate(dec_dims):
        ws, bs = stack_bn(fi, fo)
        if li == 0:
            # split the first layer's input rows so the kernel can skip
            # cat([softmax_class, z]) and feed the two halves separately
            p['dec_w1a'] = ws[:, :cd, :]    # rows hit by the class part
            p['dec_w1b'] = ws[:, cd:, :]    # rows hit by z
            p['dec_b1'] = bs
        else:
            p[f'dec_w{li + 1}'] = ws
            p[f'dec_b{li + 1}'] = bs

    # decoder layer-wise MLP (no BN)  (SMEM scalars in the kernel)
    w, b = lin(nc, nc); p['dec_lw_w1'] = w; p['dec_lw_b1'] = b
    w, b = lin(nc, L);  p['dec_lw_w2'] = w; p['dec_lw_b2'] = b
    w, b = lin(L, L);   p['dec_lw_w3'] = w; p['dec_lw_b3'] = b
    return p


# ------------------------------- forward wrapper -------------------------------
def forward(params, x, eps):
    B, W, L = x.shape
    nc, _, cd = eps.shape

    # Single tiny XLA transpose so the kernel can slice [B, W] slabs along the
    # leading axis (no in-kernel lane-axis reshapes/transposes needed).
    x_lbw = jnp.transpose(x, (2, 0, 1))    # [L, B, W]

    smem_spec = pl.BlockSpec(memory_space=pltpu.MemorySpace.SMEM)
    vmem_spec = pl.BlockSpec(memory_space=pltpu.MemorySpace.VMEM)

    smem_args = [params['enc_lw_w'], params['enc_lw_b'],
                 params['dec_lw_w1'], params['dec_lw_b1'],
                 params['dec_lw_w2'], params['dec_lw_b2'],
                 params['dec_lw_w3'], params['dec_lw_b3']]
    vmem_args = [x_lbw, eps,
                 params['enc_w1'], params['enc_b1'],
                 params['enc_w2'], params['enc_b2'],
                 params['enc_w3'], params['enc_b3'],
                 params['enc_wc'], params['enc_bc'],
                 params['enc_wmu'], params['enc_bmu'],
                 params['enc_wvar'], params['enc_bvar'],
                 params['dec_w1a'], params['dec_w1b'], params['dec_b1'],
                 params['dec_w2'], params['dec_b2'],
                 params['dec_w3'], params['dec_b3'],
                 params['dec_w4'], params['dec_b4'],
                 params['dec_w5'], params['dec_b5'],
                 params['dec_w6'], params['dec_b6']]

    out_shape = [
        jax.ShapeDtypeStruct((L, B, W), jnp.float32),    # recons (as [L, B, W])
        jax.ShapeDtypeStruct((nc, B, cd), jnp.float32),  # mu (stacked)
        jax.ShapeDtypeStruct((nc, B, cd), jnp.float32),  # log_var (stacked)
        jax.ShapeDtypeStruct((nc, B, cd), jnp.float32),  # softmaxed classes (stacked)
    ]

    recons_lbw, mu, log_var, cls_sm = pl.pallas_call(
        fused_vae_kernel,
        in_specs=[smem_spec] * len(smem_args) + [vmem_spec] * len(vmem_args),
        out_specs=[vmem_spec] * 4,
        out_shape=out_shape,
    )(*smem_args, *vmem_args)

    recons = jnp.transpose(recons_lbw, (1, 2, 0))        # back to [B, W, L]
    # mu / log_var / cls_sm are stacked [nc, B, cd]; index [i] for the PyTorch lists.
    return [recons, x, mu, log_var, cls_sm]


if __name__ == "__main__":
    # input_shape = [W, L] = [32, 8]; concept_dims = [10, 10, 10, 10]; batch = 8
    B, Wd, L = 8, 32, 8
    concept_dims = [10, 10, 10, 10]
    nc, cd = len(concept_dims), concept_dims[0]

    key = jax.random.PRNGKey(0)
    kp, kx, ke = jax.random.split(key, 3)
    params = init_params(kp, Wd, L, concept_dims)
    x = jax.random.normal(kx, (B, Wd, L), dtype=jnp.float32)
    eps = jax.random.normal(ke, (nc, B, cd), dtype=jnp.float32)

    fwd = jax.jit(forward)
    outs = fwd(params, x, eps)
    recons = jax.block_until_ready(outs[0])

    assert recons.shape == (B, Wd, L)
    assert outs[2].shape == (nc, B, cd)                  # stacked mu
    assert outs[3].shape == (nc, B, cd)                  # stacked log_var
    assert outs[4].shape == (nc, B, cd)                  # stacked softmaxed classes
    assert outs[2][0].shape == (B, cd)                   # per-concept slice (list element)
    assert bool(jnp.all(jnp.isfinite(recons)))
    assert bool(jnp.allclose(jnp.sum(outs[4], axis=-1), 1.0, atol=1e-3))
    print("KERNEL_OK")
</pallas_src>

<mosaic_0001>
module attributes {stable_mosaic.version = 11 : i64} {
  func.func @fused_vae_kernel(%arg0: memref<8x4xf32, #tpu.memory_space<smem>>, %arg1: memref<4xf32, #tpu.memory_space<smem>>, %arg2: memref<4x4xf32, #tpu.memory_space<smem>>, %arg3: memref<4xf32, #tpu.memory_space<smem>>, %arg4: memref<4x8xf32, #tpu.memory_space<smem>>, %arg5: memref<8xf32, #tpu.memory_space<smem>>, %arg6: memref<8x8xf32, #tpu.memory_space<smem>>, %arg7: memref<8xf32, #tpu.memory_space<smem>>, %arg8: memref<8x8x32xf32, #tpu.memory_space<vmem>>, %arg9: memref<4x8x10xf32, #tpu.memory_space<vmem>>, %arg10: memref<4x32x21xf32, #tpu.memory_space<vmem>>, %arg11: memref<4x1x21xf32, #tpu.memory_space<vmem>>, %arg12: memref<4x21x15xf32, #tpu.memory_space<vmem>>, %arg13: memref<4x1x15xf32, #tpu.memory_space<vmem>>, %arg14: memref<4x15x15xf32, #tpu.memory_space<vmem>>, %arg15: memref<4x1x15xf32, #tpu.memory_space<vmem>>, %arg16: memref<4x15x10xf32, #tpu.memory_space<vmem>>, %arg17: memref<4x1x10xf32, #tpu.memory_space<vmem>>, %arg18: memref<4x15x10xf32, #tpu.memory_space<vmem>>, %arg19: memref<4x1x10xf32, #tpu.memory_space<vmem>>, %arg20: memref<4x15x10xf32, #tpu.memory_space<vmem>>, %arg21: memref<4x1x10xf32, #tpu.memory_space<vmem>>, %arg22: memref<4x10x20xf32, #tpu.memory_space<vmem>>, %arg23: memref<4x10x20xf32, #tpu.memory_space<vmem>>, %arg24: memref<4x1x20xf32, #tpu.memory_space<vmem>>, %arg25: memref<4x20x23xf32, #tpu.memory_space<vmem>>, %arg26: memref<4x1x23xf32, #tpu.memory_space<vmem>>, %arg27: memref<4x23x23xf32, #tpu.memory_space<vmem>>, %arg28: memref<4x1x23xf32, #tpu.memory_space<vmem>>, %arg29: memref<4x23x26xf32, #tpu.memory_space<vmem>>, %arg30: memref<4x1x26xf32, #tpu.memory_space<vmem>>, %arg31: memref<4x26x26xf32, #tpu.memory_space<vmem>>, %arg32: memref<4x1x26xf32, #tpu.memory_space<vmem>>, %arg33: memref<4x26x32xf32, #tpu.memory_space<vmem>>, %arg34: memref<4x1x32xf32, #tpu.memory_space<vmem>>, %arg35: memref<8x8x32xf32, #tpu.memory_space<vmem>>, %arg36: memref<4x8x10xf32, #tpu.memory_space<vmem>>, %arg37: memref<4x8x10xf32, #tpu.memory_space<vmem>>, %arg38: memref<4x8x10xf32, #tpu.memory_space<vmem>>) attributes {dimension_semantics = [], scalar_prefetch = 0 : i64, scratch_operands = 0 : i64, tpu.core_type = #tpu.core_type<tc>} {
    %c0 = arith.constant 0 : index
    %c0_0 = arith.constant 0 : index
    %c0_1 = arith.constant 0 : index
    %0 = vector.load %arg8[%c0, %c0_0, %c0_1] : memref<8x8x32xf32, #tpu.memory_space<vmem>>, vector<1x8x32xf32>
    %1 = vector.shape_cast %0 : vector<1x8x32xf32> to vector<8x32xf32>
    %c1 = arith.constant 1 : index
    %c0_2 = arith.constant 0 : index
    %c0_3 = arith.constant 0 : index
    %2 = vector.load %arg8[%c1, %c0_2, %c0_3] : memref<8x8x32xf32, #tpu.memory_space<vmem>>, vector<1x8x32xf32>
    %3 = vector.shape_cast %2 : vector<1x8x32xf32> to vector<8x32xf32>
    %c2 = arith.constant 2 : index
    %c0_4 = arith.constant 0 : index
    %c0_5 = arith.constant 0 : index
    %4 = vector.load %arg8[%c2, %c0_4, %c0_5] : memref<8x8x32xf32, #tpu.memory_space<vmem>>, vector<1x8x32xf32>
    %5 = vector.shape_cast %4 : vector<1x8x32xf32> to vector<8x32xf32>
    %c3 = arith.constant 3 : index
    %c0_6 = arith.constant 0 : index
    %c0_7 = arith.constant 0 : index
    %6 = vector.load %arg8[%c3, %c0_6, %c0_7] : memref<8x8x32xf32, #tpu.memory_space<vmem>>, vector<1x8x32xf32>
    %7 = vector.shape_cast %6 : vector<1x8x32xf32> to vector<8x32xf32>
    %c4 = arith.constant 4 : index
    %c0_8 = arith.constant 0 : index
    %c0_9 = arith.constant 0 : index
    %8 = vector.load %arg8[%c4, %c0_8, %c0_9] : memref<8x8x32xf32, #tpu.memory_space<vmem>>, vector<1x8x32xf32>
    %9 = vector.shape_cast %8 : vector<1x8x32xf32> to vector<8x32xf32>
    %c5 = arith.constant 5 : index
    %c0_10 = arith.constant 0 : index
    %c0_11 = arith.constant 0 : index
    %10 = vector.load %arg8[%c5, %c0_10, %c0_11] : memref<8x8x32xf32, #tpu.memory_space<vmem>>, vector<1x8x32xf32>
    %11 = vector.shape_cast %10 : vector<1x8x32xf32> to vector<8x32xf32>
    %c6 = arith.constant 6 : index
    %c0_12 = arith.constant 0 : index
    %c0_13 = arith.constant 0 : index
    %12 = vector.load %arg8[%c6, %c0_12, %c0_13] : memref<8x8x32xf32, #tpu.memory_space<vmem>>, vector<1x8x32xf32>
    %13 = vector.shape_cast %12 : vector<1x8x32xf32> to vector<8x32xf32>
    %c7 = arith.constant 7 : index
    %c0_14 = arith.constant 0 : index
    %c0_15 = arith.constant 0 : index
    %14 = vector.load %arg8[%c7, %c0_14, %c0_15] : memref<8x8x32xf32, #tpu.memory_space<vmem>>, vector<1x8x32xf32>
    %15 = vector.shape_cast %14 : vector<1x8x32xf32> to vector<8x32xf32>
    %c0_16 = arith.constant 0 : index
    %c0_17 = arith.constant 0 : index
    %16 = memref.load %arg0[%c0_16, %c0_17] : memref<8x4xf32, #tpu.memory_space<smem>>
    %17 = vector.broadcast %16 : f32 to vector<8x32xf32>
    %18 = arith.mulf %1, %17 : vector<8x32xf32>
    %c1_18 = arith.constant 1 : index
    %c0_19 = arith.constant 0 : index
    %19 = memref.load %arg0[%c1_18, %c0_19] : memref<8x4xf32, #tpu.memory_space<smem>>
    %20 = vector.broadcast %19 : f32 to vector<8x32xf32>
    %21 = arith.mulf %3, %20 : vector<8x32xf32>
    %22 = arith.addf %18, %21 : vector<8x32xf32>
    %c2_20 = arith.constant 2 : index
    %c0_21 = arith.constant 0 : index
    %23 = memref.load %arg0[%c2_20, %c0_21] : memref<8x4xf32, #tpu.memory_space<smem>>
    %24 = vector.broadcast %23 : f32 to vector<8x32xf32>
    %25 = arith.mulf %5, %24 : vector<8x32xf32>
    %26 = arith.addf %22, %25 : vector<8x32xf32>
    %c3_22 = arith.constant 3 : index
    %c0_23 = arith.constant 0 : index
    %27 = memref.load %arg0[%c3_22, %c0_23] : memref<8x4xf32, #tpu.memory_space<smem>>
    %28 = vector.broadcast %27 : f32 to vector<8x32xf32>
    %29 = arith.mulf %7, %28 : vector<8x32xf32>
    %30 = arith.addf %26, %29 : vector<8x32xf32>
    %c4_24 = arith.constant 4 : index
    %c0_25 = arith.constant 0 : index
    %31 = memref.load %arg0[%c4_24, %c0_25] : memref<8x4xf32, #tpu.memory_space<smem>>
    %32 = vector.broadcast %31 : f32 to vector<8x32xf32>
    %33 = arith.mulf %9, %32 : vector<8x32xf32>
    %34 = arith.addf %30, %33 : vector<8x32xf32>
    %c5_26 = arith.constant 5 : index
    %c0_27 = arith.constant 0 : index
    %35 = memref.load %arg0[%c5_26, %c0_27] : memref<8x4xf32, #tpu.memory_space<smem>>
    %36 = vector.broadcast %35 : f32 to vector<8x32xf32>
    %37 = arith.mulf %11, %36 : vector<8x32xf32>
    %38 = arith.addf %34, %37 : vector<8x32xf32>
    %c6_28 = arith.constant 6 : index
    %c0_29 = arith.constant 0 : index
    %39 = memref.load %arg0[%c6_28, %c0_29] : memref<8x4xf32, #tpu.memory_space<smem>>
    %40 = vector.broadcast %39 : f32 to vector<8x32xf32>
    %41 = arith.mulf %13, %40 : vector<8x32xf32>
    %42 = arith.addf %38, %41 : vector<8x32xf32>
    %c7_30 = arith.constant 7 : index
    %c0_31 = arith.constant 0 : index
    %43 = memref.load %arg0[%c7_30, %c0_31] : memref<8x4xf32, #tpu.memory_space<smem>>
    %44 = vector.broadcast %43 : f32 to vector<8x32xf32>
    %45 = arith.mulf %15, %44 : vector<8x32xf32>
    %46 = arith.addf %42, %45 : vector<8x32xf32>
    %c0_32 = arith.constant 0 : index
    %47 = memref.load %arg1[%c0_32] : memref<4xf32, #tpu.memory_space<smem>>
    %48 = vector.broadcast %47 : f32 to vector<8x32xf32>
    %49 = arith.addf %46, %48 : vector<8x32xf32>
    %cst = arith.constant 0.000000e+00 : f32
    %50 = vector.broadcast %cst : f32 to vector<8x32xf32>
    %51 = arith.cmpf ogt, %49, %50 : vector<8x32xf32>
    %cst_33 = arith.constant 0.00999999977 : f32
    %52 = vector.broadcast %cst_33 : f32 to vector<8x32xf32>
    %53 = arith.mulf %52, %49 : vector<8x32xf32>
    %54 = arith.select %51, %49, %53 : vector<8x32xi1>, vector<8x32xf32>
    %c0_34 = arith.constant 0 : index
    %c0_35 = arith.constant 0 : index
    %c0_36 = arith.constant 0 : index
    %55 = vector.load %arg10[%c0_34, %c0_35, %c0_36] : memref<4x32x21xf32, #tpu.memory_space<vmem>>, vector<1x32x21xf32>
    %56 = vector.shape_cast %55 : vector<1x32x21xf32> to vector<32x21xf32>
    %cst_37 = arith.constant dense<0.000000e+00> : vector<8x21xf32>
    %57 = tpu.matmul %54, %56, %cst_37 {dimension_numbers = #tpu.dot_dimension_numbers<[1], [0], [0], [1], [0, 0, 1, 1], [], []>} : vector<8x32xf32>, vector<32x21xf32>, vector<8x21xf32> -> vector<8x21xf32>
    %c0_38 = arith.constant 0 : index
    %c0_39 = arith.constant 0 : index
    %c0_40 = arith.constant 0 : index
    %58 = vector.load %arg11[%c0_38, %c0_39, %c0_40] : memref<4x1x21xf32, #tpu.memory_space<vmem>>, vector<1x1x21xf32>
    %59 = vector.shape_cast %58 : vector<1x1x21xf32> to vector<1x21xf32>
    %60 = vector.broadcast %59 : vector<1x21xf32> to vector<8x21xf32>
    %61 = arith.addf %57, %60 : vector<8x21xf32>
    %cst_41 = arith.constant 0.000000e+00 : f32
    %62 = vector.broadcast %cst_41 : f32 to vector<8x21xf32>
    %63 = arith.cmpf ogt, %61, %62 : vector<8x21xf32>
    %cst_42 = arith.constant 0.00999999977 : f32
    %64 = vector.broadcast %cst_42 : f32 to vector<8x21xf32>
    %65 = arith.mulf %64, %61 : vector<8x21xf32>
    %66 = arith.select %63, %61, %65 : vector<8x21xi1>, vector<8x21xf32>
    %c0_43 = arith.constant 0 : index
    %c0_44 = arith.constant 0 : index
    %c0_45 = arith.constant 0 : index
    %67 = vector.load %arg12[%c0_43, %c0_44, %c0_45] : memref<4x21x15xf32, #tpu.memory_space<vmem>>, vector<1x21x15xf32>
    %68 = vector.shape_cast %67 : vector<1x21x15xf32> to vector<21x15xf32>
    %cst_46 = arith.constant dense<0.000000e+00> : vector<8x15xf32>
    %69 = tpu.matmul %66, %68, %cst_46 {dimension_numbers = #tpu.dot_dimension_numbers<[1], [0], [0], [1], [0, 0, 1, 1], [], []>} : vector<8x21xf32>, vector<21x15xf32>, vector<8x15xf32> -> vector<8x15xf32>
    %c0_47 = arith.constant 0 : index
    %c0_48 = arith.constant 0 : index
    %c0_49 = arith.constant 0 : index
    %70 = vector.load %arg13[%c0_47, %c0_48, %c0_49] : memref<4x1x15xf32, #tpu.memory_space<vmem>>, vector<1x1x15xf32>
    %71 = vector.shape_cast %70 : vector<1x1x15xf32> to vector<1x15xf32>
    %72 = vector.broadcast %71 : vector<1x15xf32> to vector<8x15xf32>
    %73 = arith.addf %69, %72 : vector<8x15xf32>
    %cst_50 = arith.constant 0.000000e+00 : f32
    %74 = vector.broadcast %cst_50 : f32 to vector<8x15xf32>
    %75 = arith.cmpf ogt, %73, %74 : vector<8x15xf32>
    %cst_51 = arith.constant 0.00999999977 : f32
    %76 = vector.broadcast %cst_51 : f32 to vector<8x15xf32>
    %77 = arith.mulf %76, %73 : vector<8x15xf32>
    %78 = arith.select %75, %73, %77 : vector<8x15xi1>, vector<8x15xf32>
    %c0_52 = arith.constant 0 : index
    %c0_53 = arith.constant 0 : index
    %c0_54 = arith.constant 0 : index
    %79 = vector.load %arg14[%c0_52, %c0_53, %c0_54] : memref<4x15x15xf32, #tpu.memory_space<vmem>>, vector<1x15x15xf32>
    %80 = vector.shape_cast %79 : vector<1x15x15xf32> to vector<15x15xf32>
    %cst_55 = arith.constant dense<0.000000e+00> : vector<8x15xf32>
    %81 = tpu.matmul %78, %80, %cst_55 {dimension_numbers = #tpu.dot_dimension_numbers<[1], [0], [0], [1], [0, 0, 1, 1], [], []>} : vector<8x15xf32>, vector<15x15xf32>, vector<8x15xf32> -> vector<8x15xf32>
    %c0_56 = arith.constant 0 : index
    %c0_57 = arith.constant 0 : index
    %c0_58 = arith.constant 0 : index
    %82 = vector.load %arg15[%c0_56, %c0_57, %c0_58] : memref<4x1x15xf32, #tpu.memory_space<vmem>>, vector<1x1x15xf32>
    %83 = vector.shape_cast %82 : vector<1x1x15xf32> to vector<1x15xf32>
    %84 = vector.broadcast %83 : vector<1x15xf32> to vector<8x15xf32>
    %85 = arith.addf %81, %84 : vector<8x15xf32>
    %cst_59 = arith.constant 0.000000e+00 : f32
    %86 = vector.broadcast %cst_59 : f32 to vector<8x15xf32>
    %87 = arith.cmpf ogt, %85, %86 : vector<8x15xf32>
    %cst_60 = arith.constant 0.00999999977 : f32
    %88 = vector.broadcast %cst_60 : f32 to vector<8x15xf32>
    %89 = arith.mulf %88, %85 : vector<8x15xf32>
    %90 = arith.select %87, %85, %89 : vector<8x15xi1>, vector<8x15xf32>
    %c0_61 = arith.constant 0 : index
    %c0_62 = arith.constant 0 : index
    %c0_63 = arith.constant 0 : index
    %91 = vector.load %arg16[%c0_61, %c0_62, %c0_63] : memref<4x15x10xf32, #tpu.memory_space<vmem>>, vector<1x15x10xf32>
    %92 = vector.shape_cast %91 : vector<1x15x10xf32> to vector<15x10xf32>
    %cst_64 = arith.constant dense<0.000000e+00> : vector<8x10xf32>
    %93 = tpu.matmul %90, %92, %cst_64 {dimension_numbers = #tpu.dot_dimension_numbers<[1], [0], [0], [1], [0, 0, 1, 1], [], []>} : vector<8x15xf32>, vector<15x10xf32>, vector<8x10xf32> -> vector<8x10xf32>
    %c0_65 = arith.constant 0 : index
    %c0_66 = arith.constant 0 : index
    %c0_67 = arith.constant 0 : index
    %94 = vector.load %arg17[%c0_65, %c0_66, %c0_67] : memref<4x1x10xf32, #tpu.memory_space<vmem>>, vector<1x1x10xf32>
    %95 = vector.shape_cast %94 : vector<1x1x10xf32> to vector<1x10xf32>
    %96 = vector.broadcast %95 : vector<1x10xf32> to vector<8x10xf32>
    %97 = arith.addf %93, %96 : vector<8x10xf32>
    %cst_68 = arith.constant 0.000000e+00 : f32
    %98 = vector.broadcast %cst_68 : f32 to vector<8x10xf32>
    %99 = arith.cmpf ogt, %97, %98 : vector<8x10xf32>
    %cst_69 = arith.constant 0.00999999977 : f32
    %100 = vector.broadcast %cst_69 : f32 to vector<8x10xf32>
    %101 = arith.mulf %100, %97 : vector<8x10xf32>
    %102 = arith.select %99, %97, %101 : vector<8x10xi1>, vector<8x10xf32>
    %c0_70 = arith.constant 0 : index
    %c0_71 = arith.constant 0 : index
    %c0_72 = arith.constant 0 : index
    %103 = vector.load %arg18[%c0_70, %c0_71, %c0_72] : memref<4x15x10xf32, #tpu.memory_space<vmem>>, vector<1x15x10xf32>
    %104 = vector.shape_cast %103 : vector<1x15x10xf32> to vector<15x10xf32>
    %cst_73 = arith.constant dense<0.000000e+00> : vector<8x10xf32>
    %105 = tpu.matmul %90, %104, %cst_73 {dimension_numbers = #tpu.dot_dimension_numbers<[1], [0], [0], [1], [0, 0, 1, 1], [], []>} : vector<8x15xf32>, vector<15x10xf32>, vector<8x10xf32> -> vector<8x10xf32>
    %c0_74 = arith.constant 0 : index
    %c0_75 = arith.constant 0 : index
    %c0_76 = arith.constant 0 : index
    %106 = vector.load %arg19[%c0_74, %c0_75, %c0_76] : memref<4x1x10xf32, #tpu.memory_space<vmem>>, vector<1x1x10xf32>
    %107 = vector.shape_cast %106 : vector<1x1x10xf32> to vector<1x10xf32>
    %108 = vector.broadcast %107 : vector<1x10xf32> to vector<8x10xf32>
    %109 = arith.addf %105, %108 : vector<8x10xf32>
    %cst_77 = arith.constant 0.000000e+00 : f32
    %110 = vector.broadcast %cst_77 : f32 to vector<8x10xf32>
    %111 = arith.cmpf ogt, %109, %110 : vector<8x10xf32>
    %cst_78 = arith.constant 0.00999999977 : f32
    %112 = vector.broadcast %cst_78 : f32 to vector<8x10xf32>
    %113 = arith.mulf %112, %109 : vector<8x10xf32>
    %114 = arith.select %111, %109, %113 : vector<8x10xi1>, vector<8x10xf32>
    %c0_79 = arith.constant 0 : index
    %c0_80 = arith.constant 0 : index
    %c0_81 = arith.constant 0 : index
    %115 = vector.load %arg20[%c0_79, %c0_80, %c0_81] : memref<4x15x10xf32, #tpu.memory_space<vmem>>, vector<1x15x10xf32>
    %116 = vector.shape_cast %115 : vector<1x15x10xf32> to vector<15x10xf32>
    %cst_82 = arith.constant dense<0.000000e+00> : vector<8x10xf32>
    %117 = tpu.matmul %90, %116, %cst_82 {dimension_numbers = #tpu.dot_dimension_numbers<[1], [0], [0], [1], [0, 0, 1, 1], [], []>} : vector<8x15xf32>, vector<15x10xf32>, vector<8x10xf32> -> vector<8x10xf32>
    %c0_83 = arith.constant 0 : index
    %c0_84 = arith.constant 0 : index
    %c0_85 = arith.constant 0 : index
    %118 = vector.load %arg21[%c0_83, %c0_84, %c0_85] : memref<4x1x10xf32, #tpu.memory_space<vmem>>, vector<1x1x10xf32>
    %119 = vector.shape_cast %118 : vector<1x1x10xf32> to vector<1x10xf32>
    %120 = vector.broadcast %119 : vector<1x10xf32> to vector<8x10xf32>
    %121 = arith.addf %117, %120 : vector<8x10xf32>
    %cst_86 = arith.constant 0.000000e+00 : f32
    %122 = vector.broadcast %cst_86 : f32 to vector<8x10xf32>
    %123 = arith.cmpf ogt, %121, %122 : vector<8x10xf32>
    %cst_87 = arith.constant 0.00999999977 : f32
    %124 = vector.broadcast %cst_87 : f32 to vector<8x10xf32>
    %125 = arith.mulf %124, %121 : vector<8x10xf32>
    %126 = arith.select %123, %121, %125 : vector<8x10xi1>, vector<8x10xf32>
    %c0_88 = arith.constant 0 : index
    %c0_89 = arith.constant 0 : index
    %c0_90 = arith.constant 0 : index
    %127 = vector.load %arg9[%c0_88, %c0_89, %c0_90] : memref<4x8x10xf32, #tpu.memory_space<vmem>>, vector<1x8x10xf32>
    %128 = vector.shape_cast %127 : vector<1x8x10xf32> to vector<8x10xf32>
    %cst_91 = arith.constant 5.000000e-01 : f32
    %129 = vector.broadcast %cst_91 : f32 to vector<8x10xf32>
    %130 = arith.mulf %129, %126 : vector<8x10xf32>
    %131 = math.exp %130 : vector<8x10xf32>
    %132 = arith.mulf %128, %131 : vector<8x10xf32>
    %133 = arith.addf %132, %114 : vector<8x10xf32>
    %cst_92 = arith.constant dense<0xFF800000> : vector<8xf32>
    %134 = vector.multi_reduction <maximumf>, %102, %cst_92 [1] : vector<8x10xf32> to vector<8xf32>
    %135 = vector.shape_cast %134 : vector<8xf32> to vector<8x1xf32>
    %136 = vector.broadcast %135 : vector<8x1xf32> to vector<8x10xf32>
    %137 = arith.subf %102, %136 : vector<8x10xf32>
    %138 = math.exp %137 : vector<8x10xf32>
    %cst_93 = arith.constant dense<0.000000e+00> : vector<8xf32>
    %139 = vector.multi_reduction <add>, %138, %cst_93 [1] : vector<8x10xf32> to vector<8xf32>
    %140 = vector.shape_cast %139 : vector<8xf32> to vector<8x1xf32>
    %141 = vector.broadcast %140 : vector<8x1xf32> to vector<8x10xf32>
    %142 = arith.divf %138, %141 : vector<8x10xf32>
    %c0_94 = arith.constant 0 : index
    %c0_95 = arith.constant 0 : index
    %c0_96 = arith.constant 0 : index
    %143 = vector.load %arg36[%c0_94, %c0_95, %c0_96] : memref<4x8x10xf32, #tpu.memory_space<vmem>>, vector<1x8x10xf32>
    %144 = vector.shape_cast %143 : vector<1x8x10xf32> to vector<8x10xf32>
    %145 = vector.shape_cast %114 : vector<8x10xf32> to vector<1x8x10xf32>
    tpu.vector_store %arg36[%c0_94, %c0_95, %c0_96], %145 {strides = array<i32>} : memref<4x8x10xf32, #tpu.memory_space<vmem>>, vector<1x8x10xf32>,
    %c0_97 = arith.constant 0 : index
    %c0_98 = arith.constant 0 : index
    %c0_99 = arith.constant 0 : index
    %146 = vector.load %arg37[%c0_97, %c0_98, %c0_99] : memref<4x8x10xf32, #tpu.memory_space<vmem>>, vector<1x8x10xf32>
    %147 = vector.shape_cast %146 : vector<1x8x10xf32> to vector<8x10xf32>
    %148 = vector.shape_cast %126 : vector<8x10xf32> to vector<1x8x10xf32>
    tpu.vector_store %arg37[%c0_97, %c0_98, %c0_99], %148 {strides = array<i32>} : memref<4x8x10xf32, #tpu.memory_space<vmem>>, vector<1x8x10xf32>,
    %c0_100 = arith.constant 0 : index
    %c0_101 = arith.constant 0 : index
    %c0_102 = arith.constant 0 : index
    %149 = vector.load %arg38[%c0_100, %c0_101, %c0_102] : memref<4x8x10xf32, #tpu.memory_space<vmem>>, vector<1x8x10xf32>
    %150 = vector.shape_cast %149 : vector<1x8x10xf32> to vector<8x10xf32>
    %151 = vector.shape_cast %142 : vector<8x10xf32> to vector<1x8x10xf32>
    tpu.vector_store %arg38[%c0_100, %c0_101, %c0_102], %151 {strides = array<i32>} : memref<4x8x10xf32, #tpu.memory_space<vmem>>, vector<1x8x10xf32>,
    %c0_103 = arith.constant 0 : index
    %c0_104 = arith.constant 0 : index
    %c0_105 = arith.constant 0 : index
    %152 = vector.load %arg22[%c0_103, %c0_104, %c0_105] : memref<4x10x20xf32, #tpu.memory_space<vmem>>, vector<1x10x20xf32>
    %153 = vector.shape_cast %152 : vector<1x10x20xf32> to vector<10x20xf32>
    %cst_106 = arith.constant dense<0.000000e+00> : vector<8x20xf32>
    %154 = tpu.matmul %142, %153, %cst_106 {dimension_numbers = #tpu.dot_dimension_numbers<[1], [0], [0], [1], [0, 0, 1, 1], [], []>} : vector<8x10xf32>, vector<10x20xf32>, vector<8x20xf32> -> vector<8x20xf32>
    %c0_107 = arith.constant 0 : index
    %c0_108 = arith.constant 0 : index
    %c0_109 = arith.constant 0 : index
    %155 = vector.load %arg23[%c0_107, %c0_108, %c0_109] : memref<4x10x20xf32, #tpu.memory_space<vmem>>, vector<1x10x20xf32>
    %156 = vector.shape_cast %155 : vector<1x10x20xf32> to vector<10x20xf32>
    %cst_110 = arith.constant dense<0.000000e+00> : vector<8x20xf32>
    %157 = tpu.matmul %133, %156, %cst_110 {dimension_numbers = #tpu.dot_dimension_numbers<[1], [0], [0], [1], [0, 0, 1, 1], [], []>} : vector<8x10xf32>, vector<10x20xf32>, vector<8x20xf32> -> vector<8x20xf32>
    %158 = arith.addf %154, %157 : vector<8x20xf32>
    %c0_111 = arith.constant 0 : index
    %c0_112 = arith.constant 0 : index
    %c0_113 = arith.constant 0 : index
    %159 = vector.load %arg24[%c0_111, %c0_112, %c0_113] : memref<4x1x20xf32, #tpu.memory_space<vmem>>, vector<1x1x20xf32>
    %160 = vector.shape_cast %159 : vector<1x1x20xf32> to vector<1x20xf32>
    %161 = vector.broadcast %160 : vector<1x20xf32> to vector<8x20xf32>
    %162 = arith.addf %158, %161 : vector<8x20xf32>
    %cst_114 = arith.constant 0.000000e+00 : f32
    %163 = vector.broadcast %cst_114 : f32 to vector<8x20xf32>
    %164 = arith.cmpf ogt, %162, %163 : vector<8x20xf32>
    %cst_115 = arith.constant 0.00999999977 : f32
    %165 = vector.broadcast %cst_115 : f32 to vector<8x20xf32>
    %166 = arith.mulf %165, %162 : vector<8x20xf32>
    %167 = arith.select %164, %162, %166 : vector<8x20xi1>, vector<8x20xf32>
    %c0_116 = arith.constant 0 : index
    %c0_117 = arith.constant 0 : index
    %c0_118 = arith.constant 0 : index
    %168 = vector.load %arg25[%c0_116, %c0_117, %c0_118] : memref<4x20x23xf32, #tpu.memory_space<vmem>>, vector<1x20x23xf32>
    %169 = vector.shape_cast %168 : vector<1x20x23xf32> to vector<20x23xf32>
    %cst_119 = arith.constant dense<0.000000e+00> : vector<8x23xf32>
    %170 = tpu.matmul %167, %169, %cst_119 {dimension_numbers = #tpu.dot_dimension_numbers<[1], [0], [0], [1], [0, 0, 1, 1], [], []>} : vector<8x20xf32>, vector<20x23xf32>, vector<8x23xf32> -> vector<8x23xf32>
    %c0_120 = arith.constant 0 : index
    %c0_121 = arith.constant 0 : index
    %c0_122 = arith.constant 0 : index
    %171 = vector.load %arg26[%c0_120, %c0_121, %c0_122] : memref<4x1x23xf32, #tpu.memory_space<vmem>>, vector<1x1x23xf32>
    %172 = vector.shape_cast %171 : vector<1x1x23xf32> to vector<1x23xf32>
    %173 = vector.broadcast %172 : vector<1x23xf32> to vector<8x23xf32>
    %174 = arith.addf %170, %173 : vector<8x23xf32>
    %cst_123 = arith.constant 0.000000e+00 : f32
    %175 = vector.broadcast %cst_123 : f32 to vector<8x23xf32>
    %176 = arith.cmpf ogt, %174, %175 : vector<8x23xf32>
    %cst_124 = arith.constant 0.00999999977 : f32
    %177 = vector.broadcast %cst_124 : f32 to vector<8x23xf32>
    %178 = arith.mulf %177, %174 : vector<8x23xf32>
    %179 = arith.select %176, %174, %178 : vector<8x23xi1>, vector<8x23xf32>
    %c0_125 = arith.constant 0 : index
    %c0_126 = arith.constant 0 : index
    %c0_127 = arith.constant 0 : index
    %180 = vector.load %arg27[%c0_125, %c0_126, %c0_127] : memref<4x23x23xf32, #tpu.memory_space<vmem>>, vector<1x23x23xf32>
    %181 = vector.shape_cast %180 : vector<1x23x23xf32> to vector<23x23xf32>
    %cst_128 = arith.constant dense<0.000000e+00> : vector<8x23xf32>
    %182 = tpu.matmul %179, %181, %cst_128 {dimension_numbers = #tpu.dot_dimension_numbers<[1], [0], [0], [1], [0, 0, 1, 1], [], []>} : vector<8x23xf32>, vector<23x23xf32>, vector<8x23xf32> -> vector<8x23xf32>
    %c0_129 = arith.constant 0 : index
    %c0_130 = arith.constant 0 : index
    %c0_131 = arith.constant 0 : index
    %183 = vector.load %arg28[%c0_129, %c0_130, %c0_131] : memref<4x1x23xf32, #tpu.memory_space<vmem>>, vector<1x1x23xf32>
    %184 = vector.shape_cast %183 : vector<1x1x23xf32> to vector<1x23xf32>
    %185 = vector.broadcast %184 : vector<1x23xf32> to vector<8x23xf32>
    %186 = arith.addf %182, %185 : vector<8x23xf32>
    %cst_132 = arith.constant 0.000000e+00 : f32
    %187 = vector.broadcast %cst_132 : f32 to vector<8x23xf32>
    %188 = arith.cmpf ogt, %186, %187 : vector<8x23xf32>
    %cst_133 = arith.constant 0.00999999977 : f32
    %189 = vector.broadcast %cst_133 : f32 to vector<8x23xf32>
    %190 = arith.mulf %189, %186 : vector<8x23xf32>
    %191 = arith.select %188, %186, %190 : vector<8x23xi1>, vector<8x23xf32>
    %c0_134 = arith.constant 0 : index
    %c0_135 = arith.constant 0 : index
    %c0_136 = arith.constant 0 : index
    %192 = vector.load %arg29[%c0_134, %c0_135, %c0_136] : memref<4x23x26xf32, #tpu.memory_space<vmem>>, vector<1x23x26xf32>
    %193 = vector.shape_cast %192 : vector<1x23x26xf32> to vector<23x26xf32>
    %cst_137 = arith.constant dense<0.000000e+00> : vector<8x26xf32>
    %194 = tpu.matmul %191, %193, %cst_137 {dimension_numbers = #tpu.dot_dimension_numbers<[1], [0], [0], [1], [0, 0, 1, 1], [], []>} : vector<8x23xf32>, vector<23x26xf32>, vector<8x26xf32> -> vector<8x26xf32>
    %c0_138 = arith.constant 0 : index
    %c0_139 = arith.constant 0 : index
    %c0_140 = arith.constant 0 : index
    %195 = vector.load %arg30[%c0_138, %c0_139, %c0_140] : memref<4x1x26xf32, #tpu.memory_space<vmem>>, vector<1x1x26xf32>
    %196 = vector.shape_cast %195 : vector<1x1x26xf32> to vector<1x26xf32>
    %197 = vector.broadcast %196 : vector<1x26xf32> to vector<8x26xf32>
    %198 = arith.addf %194, %197 : vector<8x26xf32>
    %cst_141 = arith.constant 0.000000e+00 : f32
    %199 = vector.broadcast %cst_141 : f32 to vector<8x26xf32>
    %200 = arith.cmpf ogt, %198, %199 : vector<8x26xf32>
    %cst_142 = arith.constant 0.00999999977 : f32
    %201 = vector.broadcast %cst_142 : f32 to vector<8x26xf32>
    %202 = arith.mulf %201, %198 : vector<8x26xf32>
    %203 = arith.select %200, %198, %202 : vector<8x26xi1>, vector<8x26xf32>
    %c0_143 = arith.constant 0 : index
    %c0_144 = arith.constant 0 : index
    %c0_145 = arith.constant 0 : index
    %204 = vector.load %arg31[%c0_143, %c0_144, %c0_145] : memref<4x26x26xf32, #tpu.memory_space<vmem>>, vector<1x26x26xf32>
    %205 = vector.shape_cast %204 : vector<1x26x26xf32> to vector<26x26xf32>
    %cst_146 = arith.constant dense<0.000000e+00> : vector<8x26xf32>
    %206 = tpu.matmul %203, %205, %cst_146 {dimension_numbers = #tpu.dot_dimension_numbers<[1], [0], [0], [1], [0, 0, 1, 1], [], []>} : vector<8x26xf32>, vector<26x26xf32>, vector<8x26xf32> -> vector<8x26xf32>
    %c0_147 = arith.constant 0 : index
    %c0_148 = arith.constant 0 : index
    %c0_149 = arith.constant 0 : index
    %207 = vector.load %arg32[%c0_147, %c0_148, %c0_149] : memref<4x1x26xf32, #tpu.memory_space<vmem>>, vector<1x1x26xf32>
    %208 = vector.shape_cast %207 : vector<1x1x26xf32> to vector<1x26xf32>
    %209 = vector.broadcast %208 : vector<1x26xf32> to vector<8x26xf32>
    %210 = arith.addf %206, %209 : vector<8x26xf32>
    %cst_150 = arith.constant 0.000000e+00 : f32
    %211 = vector.broadcast %cst_150 : f32 to vector<8x26xf32>
    %212 = arith.cmpf ogt, %210, %211 : vector<8x26xf32>
    %cst_151 = arith.constant 0.00999999977 : f32
    %213 = vector.broadcast %cst_151 : f32 to vector<8x26xf32>
    %214 = arith.mulf %213, %210 : vector<8x26xf32>
    %215 = arith.select %212, %210, %214 : vector<8x26xi1>, vector<8x26xf32>
    %c0_152 = arith.constant 0 : index
    %c0_153 = arith.constant 0 : index
    %c0_154 = arith.constant 0 : index
    %216 = vector.load %arg33[%c0_152, %c0_153, %c0_154] : memref<4x26x32xf32, #tpu.memory_space<vmem>>, vector<1x26x32xf32>
    %217 = vector.shape_cast %216 : vector<1x26x32xf32> to vector<26x32xf32>
    %cst_155 = arith.constant dense<0.000000e+00> : vector<8x32xf32>
    %218 = tpu.matmul %215, %217, %cst_155 {dimension_numbers = #tpu.dot_dimension_numbers<[1], [0], [0], [1], [0, 0, 1, 1], [], []>} : vector<8x26xf32>, vector<26x32xf32>, vector<8x32xf32> -> vector<8x32xf32>
    %c0_156 = arith.constant 0 : index
    %c0_157 = arith.constant 0 : index
    %c0_158 = arith.constant 0 : index
    %219 = vector.load %arg34[%c0_156, %c0_157, %c0_158] : memref<4x1x32xf32, #tpu.memory_space<vmem>>, vector<1x1x32xf32>
    %220 = vector.shape_cast %219 : vector<1x1x32xf32> to vector<1x32xf32>
    %221 = vector.broadcast %220 : vector<1x32xf32> to vector<8x32xf32>
    %222 = arith.addf %218, %221 : vector<8x32xf32>
    %cst_159 = arith.constant 0.000000e+00 : f32
    %223 = vector.broadcast %cst_159 : f32 to vector<8x32xf32>
    %224 = arith.cmpf ogt, %222, %223 : vector<8x32xf32>
    %cst_160 = arith.constant 0.00999999977 : f32
    %225 = vector.broadcast %cst_160 : f32 to vector<8x32xf32>
    %226 = arith.mulf %225, %222 : vector<8x32xf32>
    %227 = arith.select %224, %222, %226 : vector<8x32xi1>, vector<8x32xf32>
    %c0_161 = arith.constant 0 : index
    %c1_162 = arith.constant 1 : index
    %228 = memref.load %arg0[%c0_161, %c1_162] : memref<8x4xf32, #tpu.memory_space<smem>>
    %229 = vector.broadcast %228 : f32 to vector<8x32xf32>
    %230 = arith.mulf %1, %229 : vector<8x32xf32>
    %c1_163 = arith.constant 1 : index
    %c1_164 = arith.constant 1 : index
    %231 = memref.load %arg0[%c1_163, %c1_164] : memref<8x4xf32, #tpu.memory_space<smem>>
    %232 = vector.broadcast %231 : f32 to vector<8x32xf32>
    %233 = arith.mulf %3, %232 : vector<8x32xf32>
    %234 = arith.addf %230, %233 : vector<8x32xf32>
    %c2_165 = arith.constant 2 : index
    %c1_166 = arith.constant 1 : index
    %235 = memref.load %arg0[%c2_165, %c1_166] : memref<8x4xf32, #tpu.memory_space<smem>>
    %236 = vector.broadcast %235 : f32 to vector<8x32xf32>
    %237 = arith.mulf %5, %236 : vector<8x32xf32>
    %238 = arith.addf %234, %237 : vector<8x32xf32>
    %c3_167 = arith.constant 3 : index
    %c1_168 = arith.constant 1 : index
    %239 = memref.load %arg0[%c3_167, %c1_168] : memref<8x4xf32, #tpu.memory_space<smem>>
    %240 = vector.broadcast %239 : f32 to vector<8x32xf32>
    %241 = arith.mulf %7, %240 : vector<8x32xf32>
    %242 = arith.addf %238, %241 : vector<8x32xf32>
    %c4_169 = arith.constant 4 : index
    %c1_170 = arith.constant 1 : index
    %243 = memref.load %arg0[%c4_169, %c1_170] : memref<8x4xf32, #tpu.memory_space<smem>>
    %244 = vector.broadcast %243 : f32 to vector<8x32xf32>
    %245 = arith.mulf %9, %244 : vector<8x32xf32>
    %246 = arith.addf %242, %245 : vector<8x32xf32>
    %c5_171 = arith.constant 5 : index
    %c1_172 = arith.constant 1 : index
    %247 = memref.load %arg0[%c5_171, %c1_172] : memref<8x4xf32, #tpu.memory_space<smem>>
    %248 = vector.broadcast %247 : f32 to vector<8x32xf32>
    %249 = arith.mulf %11, %248 : vector<8x32xf32>
    %250 = arith.addf %246, %249 : vector<8x32xf32>
    %c6_173 = arith.constant 6 : index
    %c1_174 = arith.constant 1 : index
    %251 = memref.load %arg0[%c6_173, %c1_174] : memref<8x4xf32, #tpu.memory_space<smem>>
    %252 = vector.broadcast %251 : f32 to vector<8x32xf32>
    %253 = arith.mulf %13, %252 : vector<8x32xf32>
    %254 = arith.addf %250, %253 : vector<8x32xf32>
    %c7_175 = arith.constant 7 : index
    %c1_176 = arith.constant 1 : index
    %255 = memref.load %arg0[%c7_175, %c1_176] : memref<8x4xf32, #tpu.memory_space<smem>>
    %256 = vector.broadcast %255 : f32 to vector<8x32xf32>
    %257 = arith.mulf %15, %256 : vector<8x32xf32>
    %258 = arith.addf %254, %257 : vector<8x32xf32>
    %c1_177 = arith.constant 1 : index
    %259 = memref.load %arg1[%c1_177] : memref<4xf32, #tpu.memory_space<smem>>
    %260 = vector.broadcast %259 : f32 to vector<8x32xf32>
    %261 = arith.addf %258, %260 : vector<8x32xf32>
    %cst_178 = arith.constant 0.000000e+00 : f32
    %262 = vector.broadcast %cst_178 : f32 to vector<8x32xf32>
    %263 = arith.cmpf ogt, %261, %262 : vector<8x32xf32>
    %cst_179 = arith.constant 0.00999999977 : f32
    %264 = vector.broadcast %cst_179 : f32 to vector<8x32xf32>
    %265 = arith.mulf %264, %261 : vector<8x32xf32>
    %266 = arith.select %263, %261, %265 : vector<8x32xi1>, vector<8x32xf32>
    %c1_180 = arith.constant 1 : index
    %c0_181 = arith.constant 0 : index
    %c0_182 = arith.constant 0 : index
    %267 = vector.load %arg10[%c1_180, %c0_181, %c0_182] : memref<4x32x21xf32, #tpu.memory_space<vmem>>, vector<1x32x21xf32>
    %268 = vector.shape_cast %267 : vector<1x32x21xf32> to vector<32x21xf32>
    %cst_183 = arith.constant dense<0.000000e+00> : vector<8x21xf32>
    %269 = tpu.matmul %266, %268, %cst_183 {dimension_numbers = #tpu.dot_dimension_numbers<[1], [0], [0], [1], [0, 0, 1, 1], [], []>} : vector<8x32xf32>, vector<32x21xf32>, vector<8x21xf32> -> vector<8x21xf32>
    %c1_184 = arith.constant 1 : index
    %c0_185 = arith.constant 0 : index
    %c0_186 = arith.constant 0 : index
    %270 = vector.load %arg11[%c1_184, %c0_185, %c0_186] : memref<4x1x21xf32, #tpu.memory_space<vmem>>, vector<1x1x21xf32>
    %271 = vector.shape_cast %270 : vector<1x1x21xf32> to vector<1x21xf32>
    %272 = vector.broadcast %271 : vector<1x21xf32> to vector<8x21xf32>
    %273 = arith.addf %269, %272 : vector<8x21xf32>
    %cst_187 = arith.constant 0.000000e+00 : f32
    %274 = vector.broadcast %cst_187 : f32 to vector<8x21xf32>
    %275 = arith.cmpf ogt, %273, %274 : vector<8x21xf32>
    %cst_188 = arith.constant 0.00999999977 : f32
    %276 = vector.broadcast %cst_188 : f32 to vector<8x21xf32>
    %277 = arith.mulf %276, %273 : vector<8x21xf32>
    %278 = arith.select %275, %273, %277 : vector<8x21xi1>, vector<8x21xf32>
    %c1_189 = arith.constant 1 : index
    %c0_190 = arith.constant 0 : index
    %c0_191 = arith.constant 0 : index
    %279 = vector.load %arg12[%c1_189, %c0_190, %c0_191] : memref<4x21x15xf32, #tpu.memory_space<vmem>>, vector<1x21x15xf32>
    %280 = vector.shape_cast %279 : vector<1x21x15xf32> to vector<21x15xf32>
    %cst_192 = arith.constant dense<0.000000e+00> : vector<8x15xf32>
    %281 = tpu.matmul %278, %280, %cst_192 {dimension_numbers = #tpu.dot_dimension_numbers<[1], [0], [0], [1], [0, 0, 1, 1], [], []>} : vector<8x21xf32>, vector<21x15xf32>, vector<8x15xf32> -> vector<8x15xf32>
    %c1_193 = arith.constant 1 : index
    %c0_194 = arith.constant 0 : index
    %c0_195 = arith.constant 0 : index
    %282 = vector.load %arg13[%c1_193, %c0_194, %c0_195] : memref<4x1x15xf32, #tpu.memory_space<vmem>>, vector<1x1x15xf32>
    %283 = vector.shape_cast %282 : vector<1x1x15xf32> to vector<1x15xf32>
    %284 = vector.broadcast %283 : vector<1x15xf32> to vector<8x15xf32>
    %285 = arith.addf %281, %284 : vector<8x15xf32>
    %cst_196 = arith.constant 0.000000e+00 : f32
    %286 = vector.broadcast %cst_196 : f32 to vector<8x15xf32>
    %287 = arith.cmpf ogt, %285, %286 : vector<8x15xf32>
    %cst_197 = arith.constant 0.00999999977 : f32
    %288 = vector.broadcast %cst_197 : f32 to vector<8x15xf32>
    %289 = arith.mulf %288, %285 : vector<8x15xf32>
    %290 = arith.select %287, %285, %289 : vector<8x15xi1>, vector<8x15xf32>
    %c1_198 = arith.constant 1 : index
    %c0_199 = arith.constant 0 : index
    %c0_200 = arith.constant 0 : index
    %291 = vector.load %arg14[%c1_198, %c0_199, %c0_200] : memref<4x15x15xf32, #tpu.memory_space<vmem>>, vector<1x15x15xf32>
    %292 = vector.shape_cast %291 : vector<1x15x15xf32> to vector<15x15xf32>
    %cst_201 = arith.constant dense<0.000000e+00> : vector<8x15xf32>
    %293 = tpu.matmul %290, %292, %cst_201 {dimension_numbers = #tpu.dot_dimension_numbers<[1], [0], [0], [1], [0, 0, 1, 1], [], []>} : vector<8x15xf32>, vector<15x15xf32>, vector<8x15xf32> -> vector<8x15xf32>
    %c1_202 = arith.constant 1 : index
    %c0_203 = arith.constant 0 : index
    %c0_204 = arith.constant 0 : index
    %294 = vector.load %arg15[%c1_202, %c0_203, %c0_204] : memref<4x1x15xf32, #tpu.memory_space<vmem>>, vector<1x1x15xf32>
    %295 = vector.shape_cast %294 : vector<1x1x15xf32> to vector<1x15xf32>
    %296 = vector.broadcast %295 : vector<1x15xf32> to vector<8x15xf32>
    %297 = arith.addf %293, %296 : vector<8x15xf32>
    %cst_205 = arith.constant 0.000000e+00 : f32
    %298 = vector.broadcast %cst_205 : f32 to vector<8x15xf32>
    %299 = arith.cmpf ogt, %297, %298 : vector<8x15xf32>
    %cst_206 = arith.constant 0.00999999977 : f32
    %300 = vector.broadcast %cst_206 : f32 to vector<8x15xf32>
    %301 = arith.mulf %300, %297 : vector<8x15xf32>
    %302 = arith.select %299, %297, %301 : vector<8x15xi1>, vector<8x15xf32>
    %c1_207 = arith.constant 1 : index
    %c0_208 = arith.constant 0 : index
    %c0_209 = arith.constant 0 : index
    %303 = vector.load %arg16[%c1_207, %c0_208, %c0_209] : memref<4x15x10xf32, #tpu.memory_space<vmem>>, vector<1x15x10xf32>
    %304 = vector.shape_cast %303 : vector<1x15x10xf32> to vector<15x10xf32>
    %cst_210 = arith.constant dense<0.000000e+00> : vector<8x10xf32>
    %305 = tpu.matmul %302, %304, %cst_210 {dimension_numbers = #tpu.dot_dimension_numbers<[1], [0], [0], [1], [0, 0, 1, 1], [], []>} : vector<8x15xf32>, vector<15x10xf32>, vector<8x10xf32> -> vector<8x10xf32>
    %c1_211 = arith.constant 1 : index
    %c0_212 = arith.constant 0 : index
    %c0_213 = arith.constant 0 : index
    %306 = vector.load %arg17[%c1_211, %c0_212, %c0_213] : memref<4x1x10xf32, #tpu.memory_space<vmem>>, vector<1x1x10xf32>
    %307 = vector.shape_cast %306 : vector<1x1x10xf32> to vector<1x10xf32>
    %308 = vector.broadcast %307 : vector<1x10xf32> to vector<8x10xf32>
    %309 = arith.addf %305, %308 : vector<8x10xf32>
    %cst_214 = arith.constant 0.000000e+00 : f32
    %310 = vector.broadcast %cst_214 : f32 to vector<8x10xf32>
    %311 = arith.cmpf ogt, %309, %310 : vector<8x10xf32>
    %cst_215 = arith.constant 0.00999999977 : f32
    %312 = vector.broadcast %cst_215 : f32 to vector<8x10xf32>
    %313 = arith.mulf %312, %309 : vector<8x10xf32>
    %314 = arith.select %311, %309, %313 : vector<8x10xi1>, vector<8x10xf32>
    %c1_216 = arith.constant 1 : index
    %c0_217 = arith.constant 0 : index
    %c0_218 = arith.constant 0 : index
    %315 = vector.load %arg18[%c1_216, %c0_217, %c0_218] : memref<4x15x10xf32, #tpu.memory_space<vmem>>, vector<1x15x10xf32>
    %316 = vector.shape_cast %315 : vector<1x15x10xf32> to vector<15x10xf32>
    %cst_219 = arith.constant dense<0.000000e+00> : vector<8x10xf32>
    %317 = tpu.matmul %302, %316, %cst_219 {dimension_numbers = #tpu.dot_dimension_numbers<[1], [0], [0], [1], [0, 0, 1, 1], [], []>} : vector<8x15xf32>, vector<15x10xf32>, vector<8x10xf32> -> vector<8x10xf32>
    %c1_220 = arith.constant 1 : index
    %c0_221 = arith.constant 0 : index
    %c0_222 = arith.constant 0 : index
    %318 = vector.load %arg19[%c1_220, %c0_221, %c0_222] : memref<4x1x10xf32, #tpu.memory_space<vmem>>, vector<1x1x10xf32>
    %319 = vector.shape_cast %318 : vector<1x1x10xf32> to vector<1x10xf32>
    %320 = vector.broadcast %319 : vector<1x10xf32> to vector<8x10xf32>
    %321 = arith.addf %317, %320 : vector<8x10xf32>
    %cst_223 = arith.constant 0.000000e+00 : f32
    %322 = vector.broadcast %cst_223 : f32 to vector<8x10xf32>
    %323 = arith.cmpf ogt, %321, %322 : vector<8x10xf32>
    %cst_224 = arith.constant 0.00999999977 : f32
    %324 = vector.broadcast %cst_224 : f32 to vector<8x10xf32>
    %325 = arith.mulf %324, %321 : vector<8x10xf32>
    %326 = arith.select %323, %321, %325 : vector<8x10xi1>, vector<8x10xf32>
    %c1_225 = arith.constant 1 : index
    %c0_226 = arith.constant 0 : index
    %c0_227 = arith.constant 0 : index
    %327 = vector.load %arg20[%c1_225, %c0_226, %c0_227] : memref<4x15x10xf32, #tpu.memory_space<vmem>>, vector<1x15x10xf32>
    %328 = vector.shape_cast %327 : vector<1x15x10xf32> to vector<15x10xf32>
    %cst_228 = arith.constant dense<0.000000e+00> : vector<8x10xf32>
    %329 = tpu.matmul %302, %328, %cst_228 {dimension_numbers = #tpu.dot_dimension_numbers<[1], [0], [0], [1], [0, 0, 1, 1], [], []>} : vector<8x15xf32>, vector<15x10xf32>, vector<8x10xf32> -> vector<8x10xf32>
    %c1_229 = arith.constant 1 : index
    %c0_230 = arith.constant 0 : index
    %c0_231 = arith.constant 0 : index
    %330 = vector.load %arg21[%c1_229, %c0_230, %c0_231] : memref<4x1x10xf32, #tpu.memory_space<vmem>>, vector<1x1x10xf32>
    %331 = vector.shape_cast %330 : vector<1x1x10xf32> to vector<1x10xf32>
    %332 = vector.broadcast %331 : vector<1x10xf32> to vector<8x10xf32>
    %333 = arith.addf %329, %332 : vector<8x10xf32>
    %cst_232 = arith.constant 0.000000e+00 : f32
    %334 = vector.broadcast %cst_232 : f32 to vector<8x10xf32>
    %335 = arith.cmpf ogt, %333, %334 : vector<8x10xf32>
    %cst_233 = arith.constant 0.00999999977 : f32
    %336 = vector.broadcast %cst_233 : f32 to vector<8x10xf32>
    %337 = arith.mulf %336, %333 : vector<8x10xf32>
    %338 = arith.select %335, %333, %337 : vector<8x10xi1>, vector<8x10xf32>
    %c1_234 = arith.constant 1 : index
    %c0_235 = arith.constant 0 : index
    %c0_236 = arith.constant 0 : index
    %339 = vector.load %arg9[%c1_234, %c0_235, %c0_236] : memref<4x8x10xf32, #tpu.memory_space<vmem>>, vector<1x8x10xf32>
    %340 = vector.shape_cast %339 : vector<1x8x10xf32> to vector<8x10xf32>
    %cst_237 = arith.constant 5.000000e-01 : f32
    %341 = vector.broadcast %cst_237 : f32 to vector<8x10xf32>
    %342 = arith.mulf %341, %338 : vector<8x10xf32>
    %343 = math.exp %342 : vector<8x10xf32>
    %344 = arith.mulf %340, %343 : vector<8x10xf32>
    %345 = arith.addf %344, %326 : vector<8x10xf32>
    %cst_238 = arith.constant dense<0xFF800000> : vector<8xf32>
    %346 = vector.multi_reduction <maximumf>, %314, %cst_238 [1] : vector<8x10xf32> to vector<8xf32>
    %347 = vector.shape_cast %346 : vector<8xf32> to vector<8x1xf32>
    %348 = vector.broadcast %347 : vector<8x1xf32> to vector<8x10xf32>
    %349 = arith.subf %314, %348 : vector<8x10xf32>
    %350 = math.exp %349 : vector<8x10xf32>
    %cst_239 = arith.constant dense<0.000000e+00> : vector<8xf32>
    %351 = vector.multi_reduction <add>, %350, %cst_239 [1] : vector<8x10xf32> to vector<8xf32>
    %352 = vector.shape_cast %351 : vector<8xf32> to vector<8x1xf32>
    %353 = vector.broadcast %352 : vector<8x1xf32> to vector<8x10xf32>
    %354 = arith.divf %350, %353 : vector<8x10xf32>
    %c1_240 = arith.constant 1 : index
    %c0_241 = arith.constant 0 : index
    %c0_242 = arith.constant 0 : index
    %355 = vector.load %arg36[%c1_240, %c0_241, %c0_242] : memref<4x8x10xf32, #tpu.memory_space<vmem>>, vector<1x8x10xf32>
    %356 = vector.shape_cast %355 : vector<1x8x10xf32> to vector<8x10xf32>
    %357 = vector.shape_cast %326 : vector<8x10xf32> to vector<1x8x10xf32>
    tpu.vector_store %arg36[%c1_240, %c0_241, %c0_242], %357 {strides = array<i32>} : memref<4x8x10xf32, #tpu.memory_space<vmem>>, vector<1x8x10xf32>,
    %c1_243 = arith.constant 1 : index
    %c0_244 = arith.constant 0 : index
    %c0_245 = arith.constant 0 : index
    %358 = vector.load %arg37[%c1_243, %c0_244, %c0_245] : memref<4x8x10xf32, #tpu.memory_space<vmem>>, vector<1x8x10xf32>
    %359 = vector.shape_cast %358 : vector<1x8x10xf32> to vector<8x10xf32>
    %360 = vector.shape_cast %338 : vector<8x10xf32> to vector<1x8x10xf32>
    tpu.vector_store %arg37[%c1_243, %c0_244, %c0_245], %360 {strides = array<i32>} : memref<4x8x10xf32, #tpu.memory_space<vmem>>, vector<1x8x10xf32>,
    %c1_246 = arith.constant 1 : index
    %c0_247 = arith.constant 0 : index
    %c0_248 = arith.constant 0 : index
    %361 = vector.load %arg38[%c1_246, %c0_247, %c0_248] : memref<4x8x10xf32, #tpu.memory_space<vmem>>, vector<1x8x10xf32>
    %362 = vector.shape_cast %361 : vector<1x8x10xf32> to vector<8x10xf32>
    %363 = vector.shape_cast %354 : vector<8x10xf32> to vector<1x8x10xf32>
    tpu.vector_store %arg38[%c1_246, %c0_247, %c0_248], %363 {strides = array<i32>} : memref<4x8x10xf32, #tpu.memory_space<vmem>>, vector<1x8x10xf32>,
    %c1_249 = arith.constant 1 : index
    %c0_250 = arith.constant 0 : index
    %c0_251 = arith.constant 0 : index
    %364 = vector.load %arg22[%c1_249, %c0_250, %c0_251] : memref<4x10x20xf32, #tpu.memory_space<vmem>>, vector<1x10x20xf32>
    %365 = vector.shape_cast %364 : vector<1x10x20xf32> to vector<10x20xf32>
    %cst_252 = arith.constant dense<0.000000e+00> : vector<8x20xf32>
    %366 = tpu.matmul %354, %365, %cst_252 {dimension_numbers = #tpu.dot_dimension_numbers<[1], [0], [0], [1], [0, 0, 1, 1], [], []>} : vector<8x10xf32>, vector<10x20xf32>, vector<8x20xf32> -> vector<8x20xf32>
    %c1_253 = arith.constant 1 : index
    %c0_254 = arith.constant 0 : index
    %c0_255 = arith.constant 0 : index
    %367 = vector.load %arg23[%c1_253, %c0_254, %c0_255] : memref<4x10x20xf32, #tpu.memory_space<vmem>>, vector<1x10x20xf32>
    %368 = vector.shape_cast %367 : vector<1x10x20xf32> to vector<10x20xf32>
    %cst_256 = arith.constant dense<0.000000e+00> : vector<8x20xf32>
    %369 = tpu.matmul %345, %368, %cst_256 {dimension_numbers = #tpu.dot_dimension_numbers<[1], [0], [0], [1], [0, 0, 1, 1], [], []>} : vector<8x10xf32>, vector<10x20xf32>, vector<8x20xf32> -> vector<8x20xf32>
    %370 = arith.addf %366, %369 : vector<8x20xf32>
    %c1_257 = arith.constant 1 : index
    %c0_258 = arith.constant 0 : index
    %c0_259 = arith.constant 0 : index
    %371 = vector.load %arg24[%c1_257, %c0_258, %c0_259] : memref<4x1x20xf32, #tpu.memory_space<vmem>>, vector<1x1x20xf32>
    %372 = vector.shape_cast %371 : vector<1x1x20xf32> to vector<1x20xf32>
    %373 = vector.broadcast %372 : vector<1x20xf32> to vector<8x20xf32>
    %374 = arith.addf %370, %373 : vector<8x20xf32>
    %cst_260 = arith.constant 0.000000e+00 : f32
    %375 = vector.broadcast %cst_260 : f32 to vector<8x20xf32>
    %376 = arith.cmpf ogt, %374, %375 : vector<8x20xf32>
    %cst_261 = arith.constant 0.00999999977 : f32
    %377 = vector.broadcast %cst_261 : f32 to vector<8x20xf32>
    %378 = arith.mulf %377, %374 : vector<8x20xf32>
    %379 = arith.select %376, %374, %378 : vector<8x20xi1>, vector<8x20xf32>
    %c1_262 = arith.constant 1 : index
    %c0_263 = arith.constant 0 : index
    %c0_264 = arith.constant 0 : index
    %380 = vector.load %arg25[%c1_262, %c0_263, %c0_264] : memref<4x20x23xf32, #tpu.memory_space<vmem>>, vector<1x20x23xf32>
    %381 = vector.shape_cast %380 : vector<1x20x23xf32> to vector<20x23xf32>
    %cst_265 = arith.constant dense<0.000000e+00> : vector<8x23xf32>
    %382 = tpu.matmul %379, %381, %cst_265 {dimension_numbers = #tpu.dot_dimension_numbers<[1], [0], [0], [1], [0, 0, 1, 1], [], []>} : vector<8x20xf32>, vector<20x23xf32>, vector<8x23xf32> -> vector<8x23xf32>
    %c1_266 = arith.constant 1 : index
    %c0_267 = arith.constant 0 : index
    %c0_268 = arith.constant 0 : index
    %383 = vector.load %arg26[%c1_266, %c0_267, %c0_268] : memref<4x1x23xf32, #tpu.memory_space<vmem>>, vector<1x1x23xf32>
    %384 = vector.shape_cast %383 : vector<1x1x23xf32> to vector<1x23xf32>
    %385 = vector.broadcast %384 : vector<1x23xf32> to vector<8x23xf32>
    %386 = arith.addf %382, %385 : vector<8x23xf32>
    %cst_269 = arith.constant 0.000000e+00 : f32
    %387 = vector.broadcast %cst_269 : f32 to vector<8x23xf32>
    %388 = arith.cmpf ogt, %386, %387 : vector<8x23xf32>
    %cst_270 = arith.constant 0.00999999977 : f32
    %389 = vector.broadcast %cst_270 : f32 to vector<8x23xf32>
    %390 = arith.mulf %389, %386 : vector<8x23xf32>
    %391 = arith.select %388, %386, %390 : vector<8x23xi1>, vector<8x23xf32>
    %c1_271 = arith.constant 1 : index
    %c0_272 = arith.constant 0 : index
    %c0_273 = arith.constant 0 : index
    %392 = vector.load %arg27[%c1_271, %c0_272, %c0_273] : memref<4x23x23xf32, #tpu.memory_space<vmem>>, vector<1x23x23xf32>
    %393 = vector.shape_cast %392 : vector<1x23x23xf32> to vector<23x23xf32>
    %cst_274 = arith.constant dense<0.000000e+00> : vector<8x23xf32>
    %394 = tpu.matmul %391, %393, %cst_274 {dimension_numbers = #tpu.dot_dimension_numbers<[1], [0], [0], [1], [0, 0, 1, 1], [], []>} : vector<8x23xf32>, vector<23x23xf32>, vector<8x23xf32> -> vector<8x23xf32>
    %c1_275 = arith.constant 1 : index
    %c0_276 = arith.constant 0 : index
    %c0_277 = arith.constant 0 : index
    %395 = vector.load %arg28[%c1_275, %c0_276, %c0_277] : memref<4x1x23xf32, #tpu.memory_space<vmem>>, vector<1x1x23xf32>
    %396 = vector.shape_cast %395 : vector<1x1x23xf32> to vector<1x23xf32>
    %397 = vector.broadcast %396 : vector<1x23xf32> to vector<8x23xf32>
    %398 = arith.addf %394, %397 : vector<8x23xf32>
    %cst_278 = arith.constant 0.000000e+00 : f32
    %399 = vector.broadcast %cst_278 : f32 to vector<8x23xf32>
    %400 = arith.cmpf ogt, %398, %399 : vector<8x23xf32>
    %cst_279 = arith.constant 0.00999999977 : f32
    %401 = vector.broadcast %cst_279 : f32 to vector<8x23xf32>
    %402 = arith.mulf %401, %398 : vector<8x23xf32>
    %403 = arith.select %400, %398, %402 : vector<8x23xi1>, vector<8x23xf32>
    %c1_280 = arith.constant 1 : index
    %c0_281 = arith.constant 0 : index
    %c0_282 = arith.constant 0 : index
    %404 = vector.load %arg29[%c1_280, %c0_281, %c0_282] : memref<4x23x26xf32, #tpu.memory_space<vmem>>, vector<1x23x26xf32>
    %405 = vector.shape_cast %404 : vector<1x23x26xf32> to vector<23x26xf32>
    %cst_283 = arith.constant dense<0.000000e+00> : vector<8x26xf32>
    %406 = tpu.matmul %403, %405, %cst_283 {dimension_numbers = #tpu.dot_dimension_numbers<[1], [0], [0], [1], [0, 0, 1, 1], [], []>} : vector<8x23xf32>, vector<23x26xf32>, vector<8x26xf32> -> vector<8x26xf32>
    %c1_284 = arith.constant 1 : index
    %c0_285 = arith.constant 0 : index
    %c0_286 = arith.constant 0 : index
    %407 = vector.load %arg30[%c1_284, %c0_285, %c0_286] : memref<4x1x26xf32, #tpu.memory_space<vmem>>, vector<1x1x26xf32>
    %408 = vector.shape_cast %407 : vector<1x1x26xf32> to vector<1x26xf32>
    %409 = vector.broadcast %408 : vector<1x26xf32> to vector<8x26xf32>
    %410 = arith.addf %406, %409 : vector<8x26xf32>
    %cst_287 = arith.constant 0.000000e+00 : f32
    %411 = vector.broadcast %cst_287 : f32 to vector<8x26xf32>
    %412 = arith.cmpf ogt, %410, %411 : vector<8x26xf32>
    %cst_288 = arith.constant 0.00999999977 : f32
    %413 = vector.broadcast %cst_288 : f32 to vector<8x26xf32>
    %414 = arith.mulf %413, %410 : vector<8x26xf32>
    %415 = arith.select %412, %410, %414 : vector<8x26xi1>, vector<8x26xf32>
    %c1_289 = arith.constant 1 : index
    %c0_290 = arith.constant 0 : index
    %c0_291 = arith.constant 0 : index
    %416 = vector.load %arg31[%c1_289, %c0_290, %c0_291] : memref<4x26x26xf32, #tpu.memory_space<vmem>>, vector<1x26x26xf32>
    %417 = vector.shape_cast %416 : vector<1x26x26xf32> to vector<26x26xf32>
    %cst_292 = arith.constant dense<0.000000e+00> : vector<8x26xf32>
    %418 = tpu.matmul %415, %417, %cst_292 {dimension_numbers = #tpu.dot_dimension_numbers<[1], [0], [0], [1], [0, 0, 1, 1], [], []>} : vector<8x26xf32>, vector<26x26xf32>, vector<8x26xf32> -> vector<8x26xf32>
    %c1_293 = arith.constant 1 : index
    %c0_294 = arith.constant 0 : index
    %c0_295 = arith.constant 0 : index
    %419 = vector.load %arg32[%c1_293, %c0_294, %c0_295] : memref<4x1x26xf32, #tpu.memory_space<vmem>>, vector<1x1x26xf32>
    %420 = vector.shape_cast %419 : vector<1x1x26xf32> to vector<1x26xf32>
    %421 = vector.broadcast %420 : vector<1x26xf32> to vector<8x26xf32>
    %422 = arith.addf %418, %421 : vector<8x26xf32>
    %cst_296 = arith.constant 0.000000e+00 : f32
    %423 = vector.broadcast %cst_296 : f32 to vector<8x26xf32>
    %424 = arith.cmpf ogt, %422, %423 : vector<8x26xf32>
    %cst_297 = arith.constant 0.00999999977 : f32
    %425 = vector.broadcast %cst_297 : f32 to vector<8x26xf32>
    %426 = arith.mulf %425, %422 : vector<8x26xf32>
    %427 = arith.select %424, %422, %426 : vector<8x26xi1>, vector<8x26xf32>
    %c1_298 = arith.constant 1 : index
    %c0_299 = arith.constant 0 : index
    %c0_300 = arith.constant 0 : index
    %428 = vector.load %arg33[%c1_298, %c0_299, %c0_300] : memref<4x26x32xf32, #tpu.memory_space<vmem>>, vector<1x26x32xf32>
    %429 = vector.shape_cast %428 : vector<1x26x32xf32> to vector<26x32xf32>
    %cst_301 = arith.constant dense<0.000000e+00> : vector<8x32xf32>
    %430 = tpu.matmul %427, %429, %cst_301 {dimension_numbers = #tpu.dot_dimension_numbers<[1], [0], [0], [1], [0, 0, 1, 1], [], []>} : vector<8x26xf32>, vector<26x32xf32>, vector<8x32xf32> -> vector<8x32xf32>
    %c1_302 = arith.constant 1 : index
    %c0_303 = arith.constant 0 : index
    %c0_304 = arith.constant 0 : index
    %431 = vector.load %arg34[%c1_302, %c0_303, %c0_304] : memref<4x1x32xf32, #tpu.memory_space<vmem>>, vector<1x1x32xf32>
    %432 = vector.shape_cast %431 : vector<1x1x32xf32> to vector<1x32xf32>
    %433 = vector.broadcast %432 : vector<1x32xf32> to vector<8x32xf32>
    %434 = arith.addf %430, %433 : vector<8x32xf32>
    %cst_305 = arith.constant 0.000000e+00 : f32
    %435 = vector.broadcast %cst_305 : f32 to vector<8x32xf32>
    %436 = arith.cmpf ogt, %434, %435 : vector<8x32xf32>
    %cst_306 = arith.constant 0.00999999977 : f32
    %437 = vector.broadcast %cst_306 : f32 to vector<8x32xf32>
    %438 = arith.mulf %437, %434 : vector<8x32xf32>
    %439 = arith.select %436, %434, %438 : vector<8x32xi1>, vector<8x32xf32>
    %c0_307 = arith.constant 0 : index
    %c2_308 = arith.constant 2 : index
    %440 = memref.load %arg0[%c0_307, %c2_308] : memref<8x4xf32, #tpu.memory_space<smem>>
    %441 = vector.broadcast %440 : f32 to vector<8x32xf32>
    %442 = arith.mulf %1, %441 : vector<8x32xf32>
    %c1_309 = arith.constant 1 : index
    %c2_310 = arith.constant 2 : index
    %443 = memref.load %arg0[%c1_309, %c2_310] : memref<8x4xf32, #tpu.memory_space<smem>>
    %444 = vector.broadcast %443 : f32 to vector<8x32xf32>
    %445 = arith.mulf %3, %444 : vector<8x32xf32>
    %446 = arith.addf %442, %445 : vector<8x32xf32>
    %c2_311 = arith.constant 2 : index
    %c2_312 = arith.constant 2 : index
    %447 = memref.load %arg0[%c2_311, %c2_312] : memref<8x4xf32, #tpu.memory_space<smem>>
    %448 = vector.broadcast %447 : f32 to vector<8x32xf32>
    %449 = arith.mulf %5, %448 : vector<8x32xf32>
    %450 = arith.addf %446, %449 : vector<8x32xf32>
    %c3_313 = arith.constant 3 : index
    %c2_314 = arith.constant 2 : index
    %451 = memref.load %arg0[%c3_313, %c2_314] : memref<8x4xf32, #tpu.memory_space<smem>>
    %452 = vector.broadcast %451 : f32 to vector<8x32xf32>
    %453 = arith.mulf %7, %452 : vector<8x32xf32>
    %454 = arith.addf %450, %453 : vector<8x32xf32>
    %c4_315 = arith.constant 4 : index
    %c2_316 = arith.constant 2 : index
    %455 = memref.load %arg0[%c4_315, %c2_316] : memref<8x4xf32, #tpu.memory_space<smem>>
    %456 = vector.broadcast %455 : f32 to vector<8x32xf32>
    %457 = arith.mulf %9, %456 : vector<8x32xf32>
    %458 = arith.addf %454, %457 : vector<8x32xf32>
    %c5_317 = arith.constant 5 : index
    %c2_318 = arith.constant 2 : index
    %459 = memref.load %arg0[%c5_317, %c2_318] : memref<8x4xf32, #tpu.memory_space<smem>>
    %460 = vector.broadcast %459 : f32 to vector<8x32xf32>
    %461 = arith.mulf %11, %460 : vector<8x32xf32>
    %462 = arith.addf %458, %461 : vector<8x32xf32>
    %c6_319 = arith.constant 6 : index
    %c2_320 = arith.constant 2 : index
    %463 = memref.load %arg0[%c6_319, %c2_320] : memref<8x4xf32, #tpu.memory_space<smem>>
    %464 = vector.broadcast %463 : f32 to vector<8x32xf32>
    %465 = arith.mulf %13, %464 : vector<8x32xf32>
    %466 = arith.addf %462, %465 : vector<8x32xf32>
    %c7_321 = arith.constant 7 : index
    %c2_322 = arith.constant 2 : index
    %467 = memref.load %arg0[%c7_321, %c2_322] : memref<8x4xf32, #tpu.memory_space<smem>>
    %468 = vector.broadcast %467 : f32 to vector<8x32xf32>
    %469 = arith.mulf %15, %468 : vector<8x32xf32>
    %470 = arith.addf %466, %469 : vector<8x32xf32>
    %c2_323 = arith.constant 2 : index
    %471 = memref.load %arg1[%c2_323] : memref<4xf32, #tpu.memory_space<smem>>
    %472 = vector.broadcast %471 : f32 to vector<8x32xf32>
    %473 = arith.addf %470, %472 : vector<8x32xf32>
    %cst_324 = arith.constant 0.000000e+00 : f32
    %474 = vector.broadcast %cst_324 : f32 to vector<8x32xf32>
    %475 = arith.cmpf ogt, %473, %474 : vector<8x32xf32>
    %cst_325 = arith.constant 0.00999999977 : f32
    %476 = vector.broadcast %cst_325 : f32 to vector<8x32xf32>
    %477 = arith.mulf %476, %473 : vector<8x32xf32>
    %478 = arith.select %475, %473, %477 : vector<8x32xi1>, vector<8x32xf32>
    %c2_326 = arith.constant 2 : index
    %c0_327 = arith.constant 0 : index
    %c0_328 = arith.constant 0 : index
    %479 = vector.load %arg10[%c2_326, %c0_327, %c0_328] : memref<4x32x21xf32, #tpu.memory_space<vmem>>, vector<1x32x21xf32>
    %480 = vector.shape_cast %479 : vector<1x32x21xf32> to vector<32x21xf32>
    %cst_329 = arith.constant dense<0.000000e+00> : vector<8x21xf32>
    %481 = tpu.matmul %478, %480, %cst_329 {dimension_numbers = #tpu.dot_dimension_numbers<[1], [0], [0], [1], [0, 0, 1, 1], [], []>} : vector<8x32xf32>, vector<32x21xf32>, vector<8x21xf32> -> vector<8x21xf32>
    %c2_330 = arith.constant 2 : index
    %c0_331 = arith.constant 0 : index
    %c0_332 = arith.constant 0 : index
    %482 = vector.load %arg11[%c2_330, %c0_331, %c0_332] : memref<4x1x21xf32, #tpu.memory_space<vmem>>, vector<1x1x21xf32>
    %483 = vector.shape_cast %482 : vector<1x1x21xf32> to vector<1x21xf32>
    %484 = vector.broadcast %483 : vector<1x21xf32> to vector<8x21xf32>
    %485 = arith.addf %481, %484 : vector<8x21xf32>
    %cst_333 = arith.constant 0.000000e+00 : f32
    %486 = vector.broadcast %cst_333 : f32 to vector<8x21xf32>
    %487 = arith.cmpf ogt, %485, %486 : vector<8x21xf32>
    %cst_334 = arith.constant 0.00999999977 : f32
    %488 = vector.broadcast %cst_334 : f32 to vector<8x21xf32>
    %489 = arith.mulf %488, %485 : vector<8x21xf32>
    %490 = arith.select %487, %485, %489 : vector<8x21xi1>, vector<8x21xf32>
    %c2_335 = arith.constant 2 : index
    %c0_336 = arith.constant 0 : index
    %c0_337 = arith.constant 0 : index
    %491 = vector.load %arg12[%c2_335, %c0_336, %c0_337] : memref<4x21x15xf32, #tpu.memory_space<vmem>>, vector<1x21x15xf32>
    %492 = vector.shape_cast %491 : vector<1x21x15xf32> to vector<21x15xf32>
    %cst_338 = arith.constant dense<0.000000e+00> : vector<8x15xf32>
    %493 = tpu.matmul %490, %492, %cst_338 {dimension_numbers = #tpu.dot_dimension_numbers<[1], [0], [0], [1], [0, 0, 1, 1], [], []>} : vector<8x21xf32>, vector<21x15xf32>, vector<8x15xf32> -> vector<8x15xf32>
    %c2_339 = arith.constant 2 : index
    %c0_340 = arith.constant 0 : index
    %c0_341 = arith.constant 0 : index
    %494 = vector.load %arg13[%c2_339, %c0_340, %c0_341] : memref<4x1x15xf32, #tpu.memory_space<vmem>>, vector<1x1x15xf32>
    %495 = vector.shape_cast %494 : vector<1x1x15xf32> to vector<1x15xf32>
    %496 = vector.broadcast %495 : vector<1x15xf32> to vector<8x15xf32>
    %497 = arith.addf %493, %496 : vector<8x15xf32>
    %cst_342 = arith.constant 0.000000e+00 : f32
    %498 = vector.broadcast %cst_342 : f32 to vector<8x15xf32>
    %499 = arith.cmpf ogt, %497, %498 : vector<8x15xf32>
    %cst_343 = arith.constant 0.00999999977 : f32
    %500 = vector.broadcast %cst_343 : f32 to vector<8x15xf32>
    %501 = arith.mulf %500, %497 : vector<8x15xf32>
    %502 = arith.select %499, %497, %501 : vector<8x15xi1>, vector<8x15xf32>
    %c2_344 = arith.constant 2 : index
    %c0_345 = arith.constant 0 : index
    %c0_346 = arith.constant 0 : index
    %503 = vector.load %arg14[%c2_344, %c0_345, %c0_346] : memref<4x15x15xf32, #tpu.memory_space<vmem>>, vector<1x15x15xf32>
    %504 = vector.shape_cast %503 : vector<1x15x15xf32> to vector<15x15xf32>
    %cst_347 = arith.constant dense<0.000000e+00> : vector<8x15xf32>
    %505 = tpu.matmul %502, %504, %cst_347 {dimension_numbers = #tpu.dot_dimension_numbers<[1], [0], [0], [1], [0, 0, 1, 1], [], []>} : vector<8x15xf32>, vector<15x15xf32>, vector<8x15xf32> -> vector<8x15xf32>
    %c2_348 = arith.constant 2 : index
    %c0_349 = arith.constant 0 : index
    %c0_350 = arith.constant 0 : index
    %506 = vector.load %arg15[%c2_348, %c0_349, %c0_350] : memref<4x1x15xf32, #tpu.memory_space<vmem>>, vector<1x1x15xf32>
    %507 = vector.shape_cast %506 : vector<1x1x15xf32> to vector<1x15xf32>
    %508 = vector.broadcast %507 : vector<1x15xf32> to vector<8x15xf32>
    %509 = arith.addf %505, %508 : vector<8x15xf32>
    %cst_351 = arith.constant 0.000000e+00 : f32
    %510 = vector.broadcast %cst_351 : f32 to vector<8x15xf32>
    %511 = arith.cmpf ogt, %509, %510 : vector<8x15xf32>
    %cst_352 = arith.constant 0.00999999977 : f32
    %512 = vector.broadcast %cst_352 : f32 to vector<8x15xf32>
    %513 = arith.mulf %512, %509 : vector<8x15xf32>
    %514 = arith.select %511, %509, %513 : vector<8x15xi1>, vector<8x15xf32>
    %c2_353 = arith.constant 2 : index
    %c0_354 = arith.constant 0 : index
    %c0_355 = arith.constant 0 : index
    %515 = vector.load %arg16[%c2_353, %c0_354, %c0_355] : memref<4x15x10xf32, #tpu.memory_space<vmem>>, vector<1x15x10xf32>
    %516 = vector.shape_cast %515 : vector<1x15x10xf32> to vector<15x10xf32>
    %cst_356 = arith.constant dense<0.000000e+00> : vector<8x10xf32>
    %517 = tpu.matmul %514, %516, %cst_356 {dimension_numbers = #tpu.dot_dimension_numbers<[1], [0], [0], [1], [0, 0, 1, 1], [], []>} : vector<8x15xf32>, vector<15x10xf32>, vector<8x10xf32> -> vector<8x10xf32>
    %c2_357 = arith.constant 2 : index
    %c0_358 = arith.constant 0 : index
    %c0_359 = arith.constant 0 : index
    %518 = vector.load %arg17[%c2_357, %c0_358, %c0_359] : memref<4x1x10xf32, #tpu.memory_space<vmem>>, vector<1x1x10xf32>
    %519 = vector.shape_cast %518 : vector<1x1x10xf32> to vector<1x10xf32>
    %520 = vector.broadcast %519 : vector<1x10xf32> to vector<8x10xf32>
    %521 = arith.addf %517, %520 : vector<8x10xf32>
    %cst_360 = arith.constant 0.000000e+00 : f32
    %522 = vector.broadcast %cst_360 : f32 to vector<8x10xf32>
    %523 = arith.cmpf ogt, %521, %522 : vector<8x10xf32>
    %cst_361 = arith.constant 0.00999999977 : f32
    %524 = vector.broadcast %cst_361 : f32 to vector<8x10xf32>
    %525 = arith.mulf %524, %521 : vector<8x10xf32>
    %526 = arith.select %523, %521, %525 : vector<8x10xi1>, vector<8x10xf32>
    %c2_362 = arith.constant 2 : index
    %c0_363 = arith.constant 0 : index
    %c0_364 = arith.constant 0 : index
    %527 = vector.load %arg18[%c2_362, %c0_363, %c0_364] : memref<4x15x10xf32, #tpu.memory_space<vmem>>, vector<1x15x10xf32>
    %528 = vector.shape_cast %527 : vector<1x15x10xf32> to vector<15x10xf32>
    %cst_365 = arith.constant dense<0.000000e+00> : vector<8x10xf32>
    %529 = tpu.matmul %514, %528, %cst_365 {dimension_numbers = #tpu.dot_dimension_numbers<[1], [0], [0], [1], [0, 0, 1, 1], [], []>} : vector<8x15xf32>, vector<15x10xf32>, vector<8x10xf32> -> vector<8x10xf32>
    %c2_366 = arith.constant 2 : index
    %c0_367 = arith.constant 0 : index
    %c0_368 = arith.constant 0 : index
    %530 = vector.load %arg19[%c2_366, %c0_367, %c0_368] : memref<4x1x10xf32, #tpu.memory_space<vmem>>, vector<1x1x10xf32>
    %531 = vector.shape_cast %530 : vector<1x1x10xf32> to vector<1x10xf32>
    %532 = vector.broadcast %531 : vector<1x10xf32> to vector<8x10xf32>
    %533 = arith.addf %529, %532 : vector<8x10xf32>
    %cst_369 = arith.constant 0.000000e+00 : f32
    %534 = vector.broadcast %cst_369 : f32 to vector<8x10xf32>
    %535 = arith.cmpf ogt, %533, %534 : vector<8x10xf32>
    %cst_370 = arith.constant 0.00999999977 : f32
    %536 = vector.broadcast %cst_370 : f32 to vector<8x10xf32>
    %537 = arith.mulf %536, %533 : vector<8x10xf32>
    %538 = arith.select %535, %533, %537 : vector<8x10xi1>, vector<8x10xf32>
    %c2_371 = arith.constant 2 : index
    %c0_372 = arith.constant 0 : index
    %c0_373 = arith.constant 0 : index
    %539 = vector.load %arg20[%c2_371, %c0_372, %c0_373] : memref<4x15x10xf32, #tpu.memory_space<vmem>>, vector<1x15x10xf32>
    %540 = vector.shape_cast %539 : vector<1x15x10xf32> to vector<15x10xf32>
    %cst_374 = arith.constant dense<0.000000e+00> : vector<8x10xf32>
    %541 = tpu.matmul %514, %540, %cst_374 {dimension_numbers = #tpu.dot_dimension_numbers<[1], [0], [0], [1], [0, 0, 1, 1], [], []>} : vector<8x15xf32>, vector<15x10xf32>, vector<8x10xf32> -> vector<8x10xf32>
    %c2_375 = arith.constant 2 : index
    %c0_376 = arith.constant 0 : index
    %c0_377 = arith.constant 0 : index
    %542 = vector.load %arg21[%c2_375, %c0_376, %c0_377] : memref<4x1x10xf32, #tpu.memory_space<vmem>>, vector<1x1x10xf32>
    %543 = vector.shape_cast %542 : vector<1x1x10xf32> to vector<1x10xf32>
    %544 = vector.broadcast %543 : vector<1x10xf32> to vector<8x10xf32>
    %545 = arith.addf %541, %544 : vector<8x10xf32>
    %cst_378 = arith.constant 0.000000e+00 : f32
    %546 = vector.broadcast %cst_378 : f32 to vector<8x10xf32>
    %547 = arith.cmpf ogt, %545, %546 : vector<8x10xf32>
    %cst_379 = arith.constant 0.00999999977 : f32
    %548 = vector.broadcast %cst_379 : f32 to vector<8x10xf32>
    %549 = arith.mulf %548, %545 : vector<8x10xf32>
    %550 = arith.select %547, %545, %549 : vector<8x10xi1>, vector<8x10xf32>
    %c2_380 = arith.constant 2 : index
    %c0_381 = arith.constant 0 : index
    %c0_382 = arith.constant 0 : index
    %551 = vector.load %arg9[%c2_380, %c0_381, %c0_382] : memref<4x8x10xf32, #tpu.memory_space<vmem>>, vector<1x8x10xf32>
    %552 = vector.shape_cast %551 : vector<1x8x10xf32> to vector<8x10xf32>
    %cst_383 = arith.constant 5.000000e-01 : f32
    %553 = vector.broadcast %cst_383 : f32 to vector<8x10xf32>
    %554 = arith.mulf %553, %550 : vector<8x10xf32>
    %555 = math.exp %554 : vector<8x10xf32>
    %556 = arith.mulf %552, %555 : vector<8x10xf32>
    %557 = arith.addf %556, %538 : vector<8x10xf32>
    %cst_384 = arith.constant dense<0xFF800000> : vector<8xf32>
    %558 = vector.multi_reduction <maximumf>, %526, %cst_384 [1] : vector<8x10xf32> to vector<8xf32>
    %559 = vector.shape_cast %558 : vector<8xf32> to vector<8x1xf32>
    %560 = vector.broadcast %559 : vector<8x1xf32> to vector<8x10xf32>
    %561 = arith.subf %526, %560 : vector<8x10xf32>
    %562 = math.exp %561 : vector<8x10xf32>
    %cst_385 = arith.constant dense<0.000000e+00> : vector<8xf32>
    %563 = vector.multi_reduction <add>, %562, %cst_385 [1] : vector<8x10xf32> to vector<8xf32>
    %564 = vector.shape_cast %563 : vector<8xf32> to vector<8x1xf32>
    %565 = vector.broadcast %564 : vector<8x1xf32> to vector<8x10xf32>
    %566 = arith.divf %562, %565 : vector<8x10xf32>
    %c2_386 = arith.constant 2 : index
    %c0_387 = arith.constant 0 : index
    %c0_388 = arith.constant 0 : index
    %567 = vector.load %arg36[%c2_386, %c0_387, %c0_388] : memref<4x8x10xf32, #tpu.memory_space<vmem>>, vector<1x8x10xf32>
    %568 = vector.shape_cast %567 : vector<1x8x10xf32> to vector<8x10xf32>
    %569 = vector.shape_cast %538 : vector<8x10xf32> to vector<1x8x10xf32>
    tpu.vector_store %arg36[%c2_386, %c0_387, %c0_388], %569 {strides = array<i32>} : memref<4x8x10xf32, #tpu.memory_space<vmem>>, vector<1x8x10xf32>,
    %c2_389 = arith.constant 2 : index
    %c0_390 = arith.constant 0 : index
    %c0_391 = arith.constant 0 : index
    %570 = vector.load %arg37[%c2_389, %c0_390, %c0_391] : memref<4x8x10xf32, #tpu.memory_space<vmem>>, vector<1x8x10xf32>
    %571 = vector.shape_cast %570 : vector<1x8x10xf32> to vector<8x10xf32>
    %572 = vector.shape_cast %550 : vector<8x10xf32> to vector<1x8x10xf32>
    tpu.vector_store %arg37[%c2_389, %c0_390, %c0_391], %572 {strides = array<i32>} : memref<4x8x10xf32, #tpu.memory_space<vmem>>, vector<1x8x10xf32>,
    %c2_392 = arith.constant 2 : index
    %c0_393 = arith.constant 0 : index
    %c0_394 = arith.constant 0 : index
    %573 = vector.load %arg38[%c2_392, %c0_393, %c0_394] : memref<4x8x10xf32, #tpu.memory_space<vmem>>, vector<1x8x10xf32>
    %574 = vector.shape_cast %573 : vector<1x8x10xf32> to vector<8x10xf32>
    %575 = vector.shape_cast %566 : vector<8x10xf32> to vector<1x8x10xf32>
    tpu.vector_store %arg38[%c2_392, %c0_393, %c0_394], %575 {strides = array<i32>} : memref<4x8x10xf32, #tpu.memory_space<vmem>>, vector<1x8x10xf32>,
    %c2_395 = arith.constant 2 : index
    %c0_396 = arith.constant 0 : index
    %c0_397 = arith.constant 0 : index
    %576 = vector.load %arg22[%c2_395, %c0_396, %c0_397] : memref<4x10x20xf32, #tpu.memory_space<vmem>>, vector<1x10x20xf32>
    %577 = vector.shape_cast %576 : vector<1x10x20xf32> to vector<10x20xf32>
    %cst_398 = arith.constant dense<0.000000e+00> : vector<8x20xf32>
    %578 = tpu.matmul %566, %577, %cst_398 {dimension_numbers = #tpu.dot_dimension_numbers<[1], [0], [0], [1], [0, 0, 1, 1], [], []>} : vector<8x10xf32>, vector<10x20xf32>, vector<8x20xf32> -> vector<8x20xf32>
    %c2_399 = arith.constant 2 : index
    %c0_400 = arith.constant 0 : index
    %c0_401 = arith.constant 0 : index
    %579 = vector.load %arg23[%c2_399, %c0_400, %c0_401] : memref<4x10x20xf32, #tpu.memory_space<vmem>>, vector<1x10x20xf32>
    %580 = vector.shape_cast %579 : vector<1x10x20xf32> to vector<10x20xf32>
    %cst_402 = arith.constant dense<0.000000e+00> : vector<8x20xf32>
    %581 = tpu.matmul %557, %580, %cst_402 {dimension_numbers = #tpu.dot_dimension_numbers<[1], [0], [0], [1], [0, 0, 1, 1], [], []>} : vector<8x10xf32>, vector<10x20xf32>, vector<8x20xf32> -> vector<8x20xf32>
    %582 = arith.addf %578, %581 : vector<8x20xf32>
    %c2_403 = arith.constant 2 : index
    %c0_404 = arith.constant 0 : index
    %c0_405 = arith.constant 0 : index
    %583 = vector.load %arg24[%c2_403, %c0_404, %c0_405] : memref<4x1x20xf32, #tpu.memory_space<vmem>>, vector<1x1x20xf32>
    %584 = vector.shape_cast %583 : vector<1x1x20xf32> to vector<1x20xf32>
    %585 = vector.broadcast %584 : vector<1x20xf32> to vector<8x20xf32>
    %586 = arith.addf %582, %585 : vector<8x20xf32>
    %cst_406 = arith.constant 0.000000e+00 : f32
    %587 = vector.broadcast %cst_406 : f32 to vector<8x20xf32>
    %588 = arith.cmpf ogt, %586, %587 : vector<8x20xf32>
    %cst_407 = arith.constant 0.00999999977 : f32
    %589 = vector.broadcast %cst_407 : f32 to vector<8x20xf32>
    %590 = arith.mulf %589, %586 : vector<8x20xf32>
    %591 = arith.select %588, %586, %590 : vector<8x20xi1>, vector<8x20xf32>
    %c2_408 = arith.constant 2 : index
    %c0_409 = arith.constant 0 : index
    %c0_410 = arith.constant 0 : index
    %592 = vector.load %arg25[%c2_408, %c0_409, %c0_410] : memref<4x20x23xf32, #tpu.memory_space<vmem>>, vector<1x20x23xf32>
    %593 = vector.shape_cast %592 : vector<1x20x23xf32> to vector<20x23xf32>
    %cst_411 = arith.constant dense<0.000000e+00> : vector<8x23xf32>
    %594 = tpu.matmul %591, %593, %cst_411 {dimension_numbers = #tpu.dot_dimension_numbers<[1], [0], [0], [1], [0, 0, 1, 1], [], []>} : vector<8x20xf32>, vector<20x23xf32>, vector<8x23xf32> -> vector<8x23xf32>
    %c2_412 = arith.constant 2 : index
    %c0_413 = arith.constant 0 : index
    %c0_414 = arith.constant 0 : index
    %595 = vector.load %arg26[%c2_412, %c0_413, %c0_414] : memref<4x1x23xf32, #tpu.memory_space<vmem>>, vector<1x1x23xf32>
    %596 = vector.shape_cast %595 : vector<1x1x23xf32> to vector<1x23xf32>
    %597 = vector.broadcast %596 : vector<1x23xf32> to vector<8x23xf32>
    %598 = arith.addf %594, %597 : vector<8x23xf32>
    %cst_415 = arith.constant 0.000000e+00 : f32
    %599 = vector.broadcast %cst_415 : f32 to vector<8x23xf32>
    %600 = arith.cmpf ogt, %598, %599 : vector<8x23xf32>
    %cst_416 = arith.constant 0.00999999977 : f32
    %601 = vector.broadcast %cst_416 : f32 to vector<8x23xf32>
    %602 = arith.mulf %601, %598 : vector<8x23xf32>
    %603 = arith.select %600, %598, %602 : vector<8x23xi1>, vector<8x23xf32>
    %c2_417 = arith.constant 2 : index
    %c0_418 = arith.constant 0 : index
    %c0_419 = arith.constant 0 : index
    %604 = vector.load %arg27[%c2_417, %c0_418, %c0_419] : memref<4x23x23xf32, #tpu.memory_space<vmem>>, vector<1x23x23xf32>
    %605 = vector.shape_cast %604 : vector<1x23x23xf32> to vector<23x23xf32>
    %cst_420 = arith.constant dense<0.000000e+00> : vector<8x23xf32>
    %606 = tpu.matmul %603, %605, %cst_420 {dimension_numbers = #tpu.dot_dimension_numbers<[1], [0], [0], [1], [0, 0, 1, 1], [], []>} : vector<8x23xf32>, vector<23x23xf32>, vector<8x23xf32> -> vector<8x23xf32>
    %c2_421 = arith.constant 2 : index
    %c0_422 = arith.constant 0 : index
    %c0_423 = arith.constant 0 : index
    %607 = vector.load %arg28[%c2_421, %c0_422, %c0_423] : memref<4x1x23xf32, #tpu.memory_space<vmem>>, vector<1x1x23xf32>
    %608 = vector.shape_cast %607 : vector<1x1x23xf32> to vector<1x23xf32>
    %609 = vector.broadcast %608 : vector<1x23xf32> to vector<8x23xf32>
    %610 = arith.addf %606, %609 : vector<8x23xf32>
    %cst_424 = arith.constant 0.000000e+00 : f32
    %611 = vector.broadcast %cst_424 : f32 to vector<8x23xf32>
    %612 = arith.cmpf ogt, %610, %611 : vector<8x23xf32>
    %cst_425 = arith.constant 0.00999999977 : f32
    %613 = vector.broadcast %cst_425 : f32 to vector<8x23xf32>
    %614 = arith.mulf %613, %610 : vector<8x23xf32>
    %615 = arith.select %612, %610, %614 : vector<8x23xi1>, vector<8x23xf32>
    %c2_426 = arith.constant 2 : index
    %c0_427 = arith.constant 0 : index
    %c0_428 = arith.constant 0 : index
    %616 = vector.load %arg29[%c2_426, %c0_427, %c0_428] : memref<4x23x26xf32, #tpu.memory_space<vmem>>, vector<1x23x26xf32>
    %617 = vector.shape_cast %616 : vector<1x23x26xf32> to vector<23x26xf32>
    %cst_429 = arith.constant dense<0.000000e+00> : vector<8x26xf32>
    %618 = tpu.matmul %615, %617, %cst_429 {dimension_numbers = #tpu.dot_dimension_numbers<[1], [0], [0], [1], [0, 0, 1, 1], [], []>} : vector<8x23xf32>, vector<23x26xf32>, vector<8x26xf32> -> vector<8x26xf32>
    %c2_430 = arith.constant 2 : index
    %c0_431 = arith.constant 0 : index
    %c0_432 = arith.constant 0 : index
    %619 = vector.load %arg30[%c2_430, %c0_431, %c0_432] : memref<4x1x26xf32, #tpu.memory_space<vmem>>, vector<1x1x26xf32>
    %620 = vector.shape_cast %619 : vector<1x1x26xf32> to vector<1x26xf32>
    %621 = vector.broadcast %620 : vector<1x26xf32> to vector<8x26xf32>
    %622 = arith.addf %618, %621 : vector<8x26xf32>
    %cst_433 = arith.constant 0.000000e+00 : f32
    %623 = vector.broadcast %cst_433 : f32 to vector<8x26xf32>
    %624 = arith.cmpf ogt, %622, %623 : vector<8x26xf32>
    %cst_434 = arith.constant 0.00999999977 : f32
    %625 = vector.broadcast %cst_434 : f32 to vector<8x26xf32>
    %626 = arith.mulf %625, %622 : vector<8x26xf32>
    %627 = arith.select %624, %622, %626 : vector<8x26xi1>, vector<8x26xf32>
    %c2_435 = arith.constant 2 : index
    %c0_436 = arith.constant 0 : index
    %c0_437 = arith.constant 0 : index
    %628 = vector.load %arg31[%c2_435, %c0_436, %c0_437] : memref<4x26x26xf32, #tpu.memory_space<vmem>>, vector<1x26x26xf32>
    %629 = vector.shape_cast %628 : vector<1x26x26xf32> to vector<26x26xf32>
    %cst_438 = arith.constant dense<0.000000e+00> : vector<8x26xf32>
    %630 = tpu.matmul %627, %629, %cst_438 {dimension_numbers = #tpu.dot_dimension_numbers<[1], [0], [0], [1], [0, 0, 1, 1], [], []>} : vector<8x26xf32>, vector<26x26xf32>, vector<8x26xf32> -> vector<8x26xf32>
    %c2_439 = arith.constant 2 : index
    %c0_440 = arith.constant 0 : index
    %c0_441 = arith.constant 0 : index
    %631 = vector.load %arg32[%c2_439, %c0_440, %c0_441] : memref<4x1x26xf32, #tpu.memory_space<vmem>>, vector<1x1x26xf32>
    %632 = vector.shape_cast %631 : vector<1x1x26xf32> to vector<1x26xf32>
    %633 = vector.broadcast %632 : vector<1x26xf32> to vector<8x26xf32>
    %634 = arith.addf %630, %633 : vector<8x26xf32>
    %cst_442 = arith.constant 0.000000e+00 : f32
    %635 = vector.broadcast %cst_442 : f32 to vector<8x26xf32>
    %636 = arith.cmpf ogt, %634, %635 : vector<8x26xf32>
    %cst_443 = arith.constant 0.00999999977 : f32
    %637 = vector.broadcast %cst_443 : f32 to vector<8x26xf32>
    %638 = arith.mulf %637, %634 : vector<8x26xf32>
    %639 = arith.select %636, %634, %638 : vector<8x26xi1>, vector<8x26xf32>
    %c2_444 = arith.constant 2 : index
    %c0_445 = arith.constant 0 : index
    %c0_446 = arith.constant 0 : index
    %640 = vector.load %arg33[%c2_444, %c0_445, %c0_446] : memref<4x26x32xf32, #tpu.memory_space<vmem>>, vector<1x26x32xf32>
    %641 = vector.shape_cast %640 : vector<1x26x32xf32> to vector<26x32xf32>
    %cst_447 = arith.constant dense<0.000000e+00> : vector<8x32xf32>
    %642 = tpu.matmul %639, %641, %cst_447 {dimension_numbers = #tpu.dot_dimension_numbers<[1], [0], [0], [1], [0, 0, 1, 1], [], []>} : vector<8x26xf32>, vector<26x32xf32>, vector<8x32xf32> -> vector<8x32xf32>
    %c2_448 = arith.constant 2 : index
    %c0_449 = arith.constant 0 : index
    %c0_450 = arith.constant 0 : index
    %643 = vector.load %arg34[%c2_448, %c0_449, %c0_450] : memref<4x1x32xf32, #tpu.memory_space<vmem>>, vector<1x1x32xf32>
    %644 = vector.shape_cast %643 : vector<1x1x32xf32> to vector<1x32xf32>
    %645 = vector.broadcast %644 : vector<1x32xf32> to vector<8x32xf32>
    %646 = arith.addf %642, %645 : vector<8x32xf32>
    %cst_451 = arith.constant 0.000000e+00 : f32
    %647 = vector.broadcast %cst_451 : f32 to vector<8x32xf32>
    %648 = arith.cmpf ogt, %646, %647 : vector<8x32xf32>
    %cst_452 = arith.constant 0.00999999977 : f32
    %649 = vector.broadcast %cst_452 : f32 to vector<8x32xf32>
    %650 = arith.mulf %649, %646 : vector<8x32xf32>
    %651 = arith.select %648, %646, %650 : vector<8x32xi1>, vector<8x32xf32>
    %c0_453 = arith.constant 0 : index
    %c3_454 = arith.constant 3 : index
    %652 = memref.load %arg0[%c0_453, %c3_454] : memref<8x4xf32, #tpu.memory_space<smem>>
    %653 = vector.broadcast %652 : f32 to vector<8x32xf32>
    %654 = arith.mulf %1, %653 : vector<8x32xf32>
    %c1_455 = arith.constant 1 : index
    %c3_456 = arith.constant 3 : index
    %655 = memref.load %arg0[%c1_455, %c3_456] : memref<8x4xf32, #tpu.memory_space<smem>>
    %656 = vector.broadcast %655 : f32 to vector<8x32xf32>
    %657 = arith.mulf %3, %656 : vector<8x32xf32>
    %658 = arith.addf %654, %657 : vector<8x32xf32>
    %c2_457 = arith.constant 2 : index
    %c3_458 = arith.constant 3 : index
    %659 = memref.load %arg0[%c2_457, %c3_458] : memref<8x4xf32, #tpu.memory_space<smem>>
    %660 = vector.broadcast %659 : f32 to vector<8x32xf32>
    %661 = arith.mulf %5, %660 : vector<8x32xf32>
    %662 = arith.addf %658, %661 : vector<8x32xf32>
    %c3_459 = arith.constant 3 : index
    %c3_460 = arith.constant 3 : index
    %663 = memref.load %arg0[%c3_459, %c3_460] : memref<8x4xf32, #tpu.memory_space<smem>>
    %664 = vector.broadcast %663 : f32 to vector<8x32xf32>
    %665 = arith.mulf %7, %664 : vector<8x32xf32>
    %666 = arith.addf %662, %665 : vector<8x32xf32>
    %c4_461 = arith.constant 4 : index
    %c3_462 = arith.constant 3 : index
    %667 = memref.load %arg0[%c4_461, %c3_462] : memref<8x4xf32, #tpu.memory_space<smem>>
    %668 = vector.broadcast %667 : f32 to vector<8x32xf32>
    %669 = arith.mulf %9, %668 : vector<8x32xf32>
    %670 = arith.addf %666, %669 : vector<8x32xf32>
    %c5_463 = arith.constant 5 : index
    %c3_464 = arith.constant 3 : index
    %671 = memref.load %arg0[%c5_463, %c3_464] : memref<8x4xf32, #tpu.memory_space<smem>>
    %672 = vector.broadcast %671 : f32 to vector<8x32xf32>
    %673 = arith.mulf %11, %672 : vector<8x32xf32>
    %674 = arith.addf %670, %673 : vector<8x32xf32>
    %c6_465 = arith.constant 6 : index
    %c3_466 = arith.constant 3 : index
    %675 = memref.load %arg0[%c6_465, %c3_466] : memref<8x4xf32, #tpu.memory_space<smem>>
    %676 = vector.broadcast %675 : f32 to vector<8x32xf32>
    %677 = arith.mulf %13, %676 : vector<8x32xf32>
    %678 = arith.addf %674, %677 : vector<8x32xf32>
    %c7_467 = arith.constant 7 : index
    %c3_468 = arith.constant 3 : index
    %679 = memref.load %arg0[%c7_467, %c3_468] : memref<8x4xf32, #tpu.memory_space<smem>>
    %680 = vector.broadcast %679 : f32 to vector<8x32xf32>
    %681 = arith.mulf %15, %680 : vector<8x32xf32>
    %682 = arith.addf %678, %681 : vector<8x32xf32>
    %c3_469 = arith.constant 3 : index
    %683 = memref.load %arg1[%c3_469] : memref<4xf32, #tpu.memory_space<smem>>
    %684 = vector.broadcast %683 : f32 to vector<8x32xf32>
    %685 = arith.addf %682, %684 : vector<8x32xf32>
    %cst_470 = arith.constant 0.000000e+00 : f32
    %686 = vector.broadcast %cst_470 : f32 to vector<8x32xf32>
    %687 = arith.cmpf ogt, %685, %686 : vector<8x32xf32>
    %cst_471 = arith.constant 0.00999999977 : f32
    %688 = vector.broadcast %cst_471 : f32 to vector<8x32xf32>
    %689 = arith.mulf %688, %685 : vector<8x32xf32>
    %690 = arith.select %687, %685, %689 : vector<8x32xi1>, vector<8x32xf32>
    %c3_472 = arith.constant 3 : index
    %c0_473 = arith.constant 0 : index
    %c0_474 = arith.constant 0 : index
    %691 = vector.load %arg10[%c3_472, %c0_473, %c0_474] : memref<4x32x21xf32, #tpu.memory_space<vmem>>, vector<1x32x21xf32>
    %692 = vector.shape_cast %691 : vector<1x32x21xf32> to vector<32x21xf32>
    %cst_475 = arith.constant dense<0.000000e+00> : vector<8x21xf32>
    %693 = tpu.matmul %690, %692, %cst_475 {dimension_numbers = #tpu.dot_dimension_numbers<[1], [0], [0], [1], [0, 0, 1, 1], [], []>} : vector<8x32xf32>, vector<32x21xf32>, vector<8x21xf32> -> vector<8x21xf32>
    %c3_476 = arith.constant 3 : index
    %c0_477 = arith.constant 0 : index
    %c0_478 = arith.constant 0 : index
    %694 = vector.load %arg11[%c3_476, %c0_477, %c0_478] : memref<4x1x21xf32, #tpu.memory_space<vmem>>, vector<1x1x21xf32>
    %695 = vector.shape_cast %694 : vector<1x1x21xf32> to vector<1x21xf32>
    %696 = vector.broadcast %695 : vector<1x21xf32> to vector<8x21xf32>
    %697 = arith.addf %693, %696 : vector<8x21xf32>
    %cst_479 = arith.constant 0.000000e+00 : f32
    %698 = vector.broadcast %cst_479 : f32 to vector<8x21xf32>
    %699 = arith.cmpf ogt, %697, %698 : vector<8x21xf32>
    %cst_480 = arith.constant 0.00999999977 : f32
    %700 = vector.broadcast %cst_480 : f32 to vector<8x21xf32>
    %701 = arith.mulf %700, %697 : vector<8x21xf32>
    %702 = arith.select %699, %697, %701 : vector<8x21xi1>, vector<8x21xf32>
    %c3_481 = arith.constant 3 : index
    %c0_482 = arith.constant 0 : index
    %c0_483 = arith.constant 0 : index
    %703 = vector.load %arg12[%c3_481, %c0_482, %c0_483] : memref<4x21x15xf32, #tpu.memory_space<vmem>>, vector<1x21x15xf32>
    %704 = vector.shape_cast %703 : vector<1x21x15xf32> to vector<21x15xf32>
    %cst_484 = arith.constant dense<0.000000e+00> : vector<8x15xf32>
    %705 = tpu.matmul %702, %704, %cst_484 {dimension_numbers = #tpu.dot_dimension_numbers<[1], [0], [0], [1], [0, 0, 1, 1], [], []>} : vector<8x21xf32>, vector<21x15xf32>, vector<8x15xf32> -> vector<8x15xf32>
    %c3_485 = arith.constant 3 : index
    %c0_486 = arith.constant 0 : index
    %c0_487 = arith.constant 0 : index
    %706 = vector.load %arg13[%c3_485, %c0_486, %c0_487] : memref<4x1x15xf32, #tpu.memory_space<vmem>>, vector<1x1x15xf32>
    %707 = vector.shape_cast %706 : vector<1x1x15xf32> to vector<1x15xf32>
    %708 = vector.broadcast %707 : vector<1x15xf32> to vector<8x15xf32>
    %709 = arith.addf %705, %708 : vector<8x15xf32>
    %cst_488 = arith.constant 0.000000e+00 : f32
    %710 = vector.broadcast %cst_488 : f32 to vector<8x15xf32>
    %711 = arith.cmpf ogt, %709, %710 : vector<8x15xf32>
    %cst_489 = arith.constant 0.00999999977 : f32
    %712 = vector.broadcast %cst_489 : f32 to vector<8x15xf32>
    %713 = arith.mulf %712, %709 : vector<8x15xf32>
    %714 = arith.select %711, %709, %713 : vector<8x15xi1>, vector<8x15xf32>
    %c3_490 = arith.constant 3 : index
    %c0_491 = arith.constant 0 : index
    %c0_492 = arith.constant 0 : index
    %715 = vector.load %arg14[%c3_490, %c0_491, %c0_492] : memref<4x15x15xf32, #tpu.memory_space<vmem>>, vector<1x15x15xf32>
    %716 = vector.shape_cast %715 : vector<1x15x15xf32> to vector<15x15xf32>
    %cst_493 = arith.constant dense<0.000000e+00> : vector<8x15xf32>
    %717 = tpu.matmul %714, %716, %cst_493 {dimension_numbers = #tpu.dot_dimension_numbers<[1], [0], [0], [1], [0, 0, 1, 1], [], []>} : vector<8x15xf32>, vector<15x15xf32>, vector<8x15xf32> -> vector<8x15xf32>
    %c3_494 = arith.constant 3 : index
    %c0_495 = arith.constant 0 : index
    %c0_496 = arith.constant 0 : index
    %718 = vector.load %arg15[%c3_494, %c0_495, %c0_496] : memref<4x1x15xf32, #tpu.memory_space<vmem>>, vector<1x1x15xf32>
    %719 = vector.shape_cast %718 : vector<1x1x15xf32> to vector<1x15xf32>
    %720 = vector.broadcast %719 : vector<1x15xf32> to vector<8x15xf32>
    %721 = arith.addf %717, %720 : vector<8x15xf32>
    %cst_497 = arith.constant 0.000000e+00 : f32
    %722 = vector.broadcast %cst_497 : f32 to vector<8x15xf32>
    %723 = arith.cmpf ogt, %721, %722 : vector<8x15xf32>
    %cst_498 = arith.constant 0.00999999977 : f32
    %724 = vector.broadcast %cst_498 : f32 to vector<8x15xf32>
    %725 = arith.mulf %724, %721 : vector<8x15xf32>
    %726 = arith.select %723, %721, %725 : vector<8x15xi1>, vector<8x15xf32>
    %c3_499 = arith.constant 3 : index
    %c0_500 = arith.constant 0 : index
    %c0_501 = arith.constant 0 : index
    %727 = vector.load %arg16[%c3_499, %c0_500, %c0_501] : memref<4x15x10xf32, #tpu.memory_space<vmem>>, vector<1x15x10xf32>
    %728 = vector.shape_cast %727 : vector<1x15x10xf32> to vector<15x10xf32>
    %cst_502 = arith.constant dense<0.000000e+00> : vector<8x10xf32>
    %729 = tpu.matmul %726, %728, %cst_502 {dimension_numbers = #tpu.dot_dimension_numbers<[1], [0], [0], [1], [0, 0, 1, 1], [], []>} : vector<8x15xf32>, vector<15x10xf32>, vector<8x10xf32> -> vector<8x10xf32>
    %c3_503 = arith.constant 3 : index
    %c0_504 = arith.constant 0 : index
    %c0_505 = arith.constant 0 : index
    %730 = vector.load %arg17[%c3_503, %c0_504, %c0_505] : memref<4x1x10xf32, #tpu.memory_space<vmem>>, vector<1x1x10xf32>
    %731 = vector.shape_cast %730 : vector<1x1x10xf32> to vector<1x10xf32>
    %732 = vector.broadcast %731 : vector<1x10xf32> to vector<8x10xf32>
    %733 = arith.addf %729, %732 : vector<8x10xf32>
    %cst_506 = arith.constant 0.000000e+00 : f32
    %734 = vector.broadcast %cst_506 : f32 to vector<8x10xf32>
    %735 = arith.cmpf ogt, %733, %734 : vector<8x10xf32>
    %cst_507 = arith.constant 0.00999999977 : f32
    %736 = vector.broadcast %cst_507 : f32 to vector<8x10xf32>
    %737 = arith.mulf %736, %733 : vector<8x10xf32>
    %738 = arith.select %735, %733, %737 : vector<8x10xi1>, vector<8x10xf32>
    %c3_508 = arith.constant 3 : index
    %c0_509 = arith.constant 0 : index
    %c0_510 = arith.constant 0 : index
    %739 = vector.load %arg18[%c3_508, %c0_509, %c0_510] : memref<4x15x10xf32, #tpu.memory_space<vmem>>, vector<1x15x10xf32>
    %740 = vector.shape_cast %739 : vector<1x15x10xf32> to vector<15x10xf32>
    %cst_511 = arith.constant dense<0.000000e+00> : vector<8x10xf32>
    %741 = tpu.matmul %726, %740, %cst_511 {dimension_numbers = #tpu.dot_dimension_numbers<[1], [0], [0], [1], [0, 0, 1, 1], [], []>} : vector<8x15xf32>, vector<15x10xf32>, vector<8x10xf32> -> vector<8x10xf32>
    %c3_512 = arith.constant 3 : index
    %c0_513 = arith.constant 0 : index
    %c0_514 = arith.constant 0 : index
    %742 = vector.load %arg19[%c3_512, %c0_513, %c0_514] : memref<4x1x10xf32, #tpu.memory_space<vmem>>, vector<1x1x10xf32>
    %743 = vector.shape_cast %742 : vector<1x1x10xf32> to vector<1x10xf32>
    %744 = vector.broadcast %743 : vector<1x10xf32> to vector<8x10xf32>
    %745 = arith.addf %741, %744 : vector<8x10xf32>
    %cst_515 = arith.constant 0.000000e+00 : f32
    %746 = vector.broadcast %cst_515 : f32 to vector<8x10xf32>
    %747 = arith.cmpf ogt, %745, %746 : vector<8x10xf32>
    %cst_516 = arith.constant 0.00999999977 : f32
    %748 = vector.broadcast %cst_516 : f32 to vector<8x10xf32>
    %749 = arith.mulf %748, %745 : vector<8x10xf32>
    %750 = arith.select %747, %745, %749 : vector<8x10xi1>, vector<8x10xf32>
    %c3_517 = arith.constant 3 : index
    %c0_518 = arith.constant 0 : index
    %c0_519 = arith.constant 0 : index
    %751 = vector.load %arg20[%c3_517, %c0_518, %c0_519] : memref<4x15x10xf32, #tpu.memory_space<vmem>>, vector<1x15x10xf32>
    %752 = vector.shape_cast %751 : vector<1x15x10xf32> to vector<15x10xf32>
    %cst_520 = arith.constant dense<0.000000e+00> : vector<8x10xf32>
    %753 = tpu.matmul %726, %752, %cst_520 {dimension_numbers = #tpu.dot_dimension_numbers<[1], [0], [0], [1], [0, 0, 1, 1], [], []>} : vector<8x15xf32>, vector<15x10xf32>, vector<8x10xf32> -> vector<8x10xf32>
    %c3_521 = arith.constant 3 : index
    %c0_522 = arith.constant 0 : index
    %c0_523 = arith.constant 0 : index
    %754 = vector.load %arg21[%c3_521, %c0_522, %c0_523] : memref<4x1x10xf32, #tpu.memory_space<vmem>>, vector<1x1x10xf32>
    %755 = vector.shape_cast %754 : vector<1x1x10xf32> to vector<1x10xf32>
    %756 = vector.broadcast %755 : vector<1x10xf32> to vector<8x10xf32>
    %757 = arith.addf %753, %756 : vector<8x10xf32>
    %cst_524 = arith.constant 0.000000e+00 : f32
    %758 = vector.broadcast %cst_524 : f32 to vector<8x10xf32>
    %759 = arith.cmpf ogt, %757, %758 : vector<8x10xf32>
    %cst_525 = arith.constant 0.00999999977 : f32
    %760 = vector.broadcast %cst_525 : f32 to vector<8x10xf32>
    %761 = arith.mulf %760, %757 : vector<8x10xf32>
    %762 = arith.select %759, %757, %761 : vector<8x10xi1>, vector<8x10xf32>
    %c3_526 = arith.constant 3 : index
    %c0_527 = arith.constant 0 : index
    %c0_528 = arith.constant 0 : index
    %763 = vector.load %arg9[%c3_526, %c0_527, %c0_528] : memref<4x8x10xf32, #tpu.memory_space<vmem>>, vector<1x8x10xf32>
    %764 = vector.shape_cast %763 : vector<1x8x10xf32> to vector<8x10xf32>
    %cst_529 = arith.constant 5.000000e-01 : f32
    %765 = vector.broadcast %cst_529 : f32 to vector<8x10xf32>
    %766 = arith.mulf %765, %762 : vector<8x10xf32>
    %767 = math.exp %766 : vector<8x10xf32>
    %768 = arith.mulf %764, %767 : vector<8x10xf32>
    %769 = arith.addf %768, %750 : vector<8x10xf32>
    %cst_530 = arith.constant dense<0xFF800000> : vector<8xf32>
    %770 = vector.multi_reduction <maximumf>, %738, %cst_530 [1] : vector<8x10xf32> to vector<8xf32>
    %771 = vector.shape_cast %770 : vector<8xf32> to vector<8x1xf32>
    %772 = vector.broadcast %771 : vector<8x1xf32> to vector<8x10xf32>
    %773 = arith.subf %738, %772 : vector<8x10xf32>
    %774 = math.exp %773 : vector<8x10xf32>
    %cst_531 = arith.constant dense<0.000000e+00> : vector<8xf32>
    %775 = vector.multi_reduction <add>, %774, %cst_531 [1] : vector<8x10xf32> to vector<8xf32>
    %776 = vector.shape_cast %775 : vector<8xf32> to vector<8x1xf32>
    %777 = vector.broadcast %776 : vector<8x1xf32> to vector<8x10xf32>
    %778 = arith.divf %774, %777 : vector<8x10xf32>
    %c3_532 = arith.constant 3 : index
    %c0_533 = arith.constant 0 : index
    %c0_534 = arith.constant 0 : index
    %779 = vector.load %arg36[%c3_532, %c0_533, %c0_534] : memref<4x8x10xf32, #tpu.memory_space<vmem>>, vector<1x8x10xf32>
    %780 = vector.shape_cast %779 : vector<1x8x10xf32> to vector<8x10xf32>
    %781 = vector.shape_cast %750 : vector<8x10xf32> to vector<1x8x10xf32>
    tpu.vector_store %arg36[%c3_532, %c0_533, %c0_534], %781 {strides = array<i32>} : memref<4x8x10xf32, #tpu.memory_space<vmem>>, vector<1x8x10xf32>,
    %c3_535 = arith.constant 3 : index
    %c0_536 = arith.constant 0 : index
    %c0_537 = arith.constant 0 : index
    %782 = vector.load %arg37[%c3_535, %c0_536, %c0_537] : memref<4x8x10xf32, #tpu.memory_space<vmem>>, vector<1x8x10xf32>
    %783 = vector.shape_cast %782 : vector<1x8x10xf32> to vector<8x10xf32>
    %784 = vector.shape_cast %762 : vector<8x10xf32> to vector<1x8x10xf32>
    tpu.vector_store %arg37[%c3_535, %c0_536, %c0_537], %784 {strides = array<i32>} : memref<4x8x10xf32, #tpu.memory_space<vmem>>, vector<1x8x10xf32>,
    %c3_538 = arith.constant 3 : index
    %c0_539 = arith.constant 0 : index
    %c0_540 = arith.constant 0 : index
    %785 = vector.load %arg38[%c3_538, %c0_539, %c0_540] : memref<4x8x10xf32, #tpu.memory_space<vmem>>, vector<1x8x10xf32>
    %786 = vector.shape_cast %785 : vector<1x8x10xf32> to vector<8x10xf32>
    %787 = vector.shape_cast %778 : vector<8x10xf32> to vector<1x8x10xf32>
    tpu.vector_store %arg38[%c3_538, %c0_539, %c0_540], %787 {strides = array<i32>} : memref<4x8x10xf32, #tpu.memory_space<vmem>>, vector<1x8x10xf32>,
    %c3_541 = arith.constant 3 : index
    %c0_542 = arith.constant 0 : index
    %c0_543 = arith.constant 0 : index
    %788 = vector.load %arg22[%c3_541, %c0_542, %c0_543] : memref<4x10x20xf32, #tpu.memory_space<vmem>>, vector<1x10x20xf32>
    %789 = vector.shape_cast %788 : vector<1x10x20xf32> to vector<10x20xf32>
    %cst_544 = arith.constant dense<0.000000e+00> : vector<8x20xf32>
    %790 = tpu.matmul %778, %789, %cst_544 {dimension_numbers = #tpu.dot_dimension_numbers<[1], [0], [0], [1], [0, 0, 1, 1], [], []>} : vector<8x10xf32>, vector<10x20xf32>, vector<8x20xf32> -> vector<8x20xf32>
    %c3_545 = arith.constant 3 : index
    %c0_546 = arith.constant 0 : index
    %c0_547 = arith.constant 0 : index
    %791 = vector.load %arg23[%c3_545, %c0_546, %c0_547] : memref<4x10x20xf32, #tpu.memory_space<vmem>>, vector<1x10x20xf32>
    %792 = vector.shape_cast %791 : vector<1x10x20xf32> to vector<10x20xf32>
    %cst_548 = arith.constant dense<0.000000e+00> : vector<8x20xf32>
    %793 = tpu.matmul %769, %792, %cst_548 {dimension_numbers = #tpu.dot_dimension_numbers<[1], [0], [0], [1], [0, 0, 1, 1], [], []>} : vector<8x10xf32>, vector<10x20xf32>, vector<8x20xf32> -> vector<8x20xf32>
    %794 = arith.addf %790, %793 : vector<8x20xf32>
    %c3_549 = arith.constant 3 : index
    %c0_550 = arith.constant 0 : index
    %c0_551 = arith.constant 0 : index
    %795 = vector.load %arg24[%c3_549, %c0_550, %c0_551] : memref<4x1x20xf32, #tpu.memory_space<vmem>>, vector<1x1x20xf32>
    %796 = vector.shape_cast %795 : vector<1x1x20xf32> to vector<1x20xf32>
    %797 = vector.broadcast %796 : vector<1x20xf32> to vector<8x20xf32>
    %798 = arith.addf %794, %797 : vector<8x20xf32>
    %cst_552 = arith.constant 0.000000e+00 : f32
    %799 = vector.broadcast %cst_552 : f32 to vector<8x20xf32>
    %800 = arith.cmpf ogt, %798, %799 : vector<8x20xf32>
    %cst_553 = arith.constant 0.00999999977 : f32
    %801 = vector.broadcast %cst_553 : f32 to vector<8x20xf32>
    %802 = arith.mulf %801, %798 : vector<8x20xf32>
    %803 = arith.select %800, %798, %802 : vector<8x20xi1>, vector<8x20xf32>
    %c3_554 = arith.constant 3 : index
    %c0_555 = arith.constant 0 : index
    %c0_556 = arith.constant 0 : index
    %804 = vector.load %arg25[%c3_554, %c0_555, %c0_556] : memref<4x20x23xf32, #tpu.memory_space<vmem>>, vector<1x20x23xf32>
    %805 = vector.shape_cast %804 : vector<1x20x23xf32> to vector<20x23xf32>
    %cst_557 = arith.constant dense<0.000000e+00> : vector<8x23xf32>
    %806 = tpu.matmul %803, %805, %cst_557 {dimension_numbers = #tpu.dot_dimension_numbers<[1], [0], [0], [1], [0, 0, 1, 1], [], []>} : vector<8x20xf32>, vector<20x23xf32>, vector<8x23xf32> -> vector<8x23xf32>
    %c3_558 = arith.constant 3 : index
    %c0_559 = arith.constant 0 : index
    %c0_560 = arith.constant 0 : index
    %807 = vector.load %arg26[%c3_558, %c0_559, %c0_560] : memref<4x1x23xf32, #tpu.memory_space<vmem>>, vector<1x1x23xf32>
    %808 = vector.shape_cast %807 : vector<1x1x23xf32> to vector<1x23xf32>
    %809 = vector.broadcast %808 : vector<1x23xf32> to vector<8x23xf32>
    %810 = arith.addf %806, %809 : vector<8x23xf32>
    %cst_561 = arith.constant 0.000000e+00 : f32
    %811 = vector.broadcast %cst_561 : f32 to vector<8x23xf32>
    %812 = arith.cmpf ogt, %810, %811 : vector<8x23xf32>
    %cst_562 = arith.constant 0.00999999977 : f32
    %813 = vector.broadcast %cst_562 : f32 to vector<8x23xf32>
    %814 = arith.mulf %813, %810 : vector<8x23xf32>
    %815 = arith.select %812, %810, %814 : vector<8x23xi1>, vector<8x23xf32>
    %c3_563 = arith.constant 3 : index
    %c0_564 = arith.constant 0 : index
    %c0_565 = arith.constant 0 : index
    %816 = vector.load %arg27[%c3_563, %c0_564, %c0_565] : memref<4x23x23xf32, #tpu.memory_space<vmem>>, vector<1x23x23xf32>
    %817 = vector.shape_cast %816 : vector<1x23x23xf32> to vector<23x23xf32>
    %cst_566 = arith.constant dense<0.000000e+00> : vector<8x23xf32>
    %818 = tpu.matmul %815, %817, %cst_566 {dimension_numbers = #tpu.dot_dimension_numbers<[1], [0], [0], [1], [0, 0, 1, 1], [], []>} : vector<8x23xf32>, vector<23x23xf32>, vector<8x23xf32> -> vector<8x23xf32>
    %c3_567 = arith.constant 3 : index
    %c0_568 = arith.constant 0 : index
    %c0_569 = arith.constant 0 : index
    %819 = vector.load %arg28[%c3_567, %c0_568, %c0_569] : memref<4x1x23xf32, #tpu.memory_space<vmem>>, vector<1x1x23xf32>
    %820 = vector.shape_cast %819 : vector<1x1x23xf32> to vector<1x23xf32>
    %821 = vector.broadcast %820 : vector<1x23xf32> to vector<8x23xf32>
    %822 = arith.addf %818, %821 : vector<8x23xf32>
    %cst_570 = arith.constant 0.000000e+00 : f32
    %823 = vector.broadcast %cst_570 : f32 to vector<8x23xf32>
    %824 = arith.cmpf ogt, %822, %823 : vector<8x23xf32>
    %cst_571 = arith.constant 0.00999999977 : f32
    %825 = vector.broadcast %cst_571 : f32 to vector<8x23xf32>
    %826 = arith.mulf %825, %822 : vector<8x23xf32>
    %827 = arith.select %824, %822, %826 : vector<8x23xi1>, vector<8x23xf32>
    %c3_572 = arith.constant 3 : index
    %c0_573 = arith.constant 0 : index
    %c0_574 = arith.constant 0 : index
    %828 = vector.load %arg29[%c3_572, %c0_573, %c0_574] : memref<4x23x26xf32, #tpu.memory_space<vmem>>, vector<1x23x26xf32>
    %829 = vector.shape_cast %828 : vector<1x23x26xf32> to vector<23x26xf32>
    %cst_575 = arith.constant dense<0.000000e+00> : vector<8x26xf32>
    %830 = tpu.matmul %827, %829, %cst_575 {dimension_numbers = #tpu.dot_dimension_numbers<[1], [0], [0], [1], [0, 0, 1, 1], [], []>} : vector<8x23xf32>, vector<23x26xf32>, vector<8x26xf32> -> vector<8x26xf32>
    %c3_576 = arith.constant 3 : index
    %c0_577 = arith.constant 0 : index
    %c0_578 = arith.constant 0 : index
    %831 = vector.load %arg30[%c3_576, %c0_577, %c0_578] : memref<4x1x26xf32, #tpu.memory_space<vmem>>, vector<1x1x26xf32>
    %832 = vector.shape_cast %831 : vector<1x1x26xf32> to vector<1x26xf32>
    %833 = vector.broadcast %832 : vector<1x26xf32> to vector<8x26xf32>
    %834 = arith.addf %830, %833 : vector<8x26xf32>
    %cst_579 = arith.constant 0.000000e+00 : f32
    %835 = vector.broadcast %cst_579 : f32 to vector<8x26xf32>
    %836 = arith.cmpf ogt, %834, %835 : vector<8x26xf32>
    %cst_580 = arith.constant 0.00999999977 : f32
    %837 = vector.broadcast %cst_580 : f32 to vector<8x26xf32>
    %838 = arith.mulf %837, %834 : vector<8x26xf32>
    %839 = arith.select %836, %834, %838 : vector<8x26xi1>, vector<8x26xf32>
    %c3_581 = arith.constant 3 : index
    %c0_582 = arith.constant 0 : index
    %c0_583 = arith.constant 0 : index
    %840 = vector.load %arg31[%c3_581, %c0_582, %c0_583] : memref<4x26x26xf32, #tpu.memory_space<vmem>>, vector<1x26x26xf32>
    %841 = vector.shape_cast %840 : vector<1x26x26xf32> to vector<26x26xf32>
    %cst_584 = arith.constant dense<0.000000e+00> : vector<8x26xf32>
    %842 = tpu.matmul %839, %841, %cst_584 {dimension_numbers = #tpu.dot_dimension_numbers<[1], [0], [0], [1], [0, 0, 1, 1], [], []>} : vector<8x26xf32>, vector<26x26xf32>, vector<8x26xf32> -> vector<8x26xf32>
    %c3_585 = arith.constant 3 : index
    %c0_586 = arith.constant 0 : index
    %c0_587 = arith.constant 0 : index
    %843 = vector.load %arg32[%c3_585, %c0_586, %c0_587] : memref<4x1x26xf32, #tpu.memory_space<vmem>>, vector<1x1x26xf32>
    %844 = vector.shape_cast %843 : vector<1x1x26xf32> to vector<1x26xf32>
    %845 = vector.broadcast %844 : vector<1x26xf32> to vector<8x26xf32>
    %846 = arith.addf %842, %845 : vector<8x26xf32>
    %cst_588 = arith.constant 0.000000e+00 : f32
    %847 = vector.broadcast %cst_588 : f32 to vector<8x26xf32>
    %848 = arith.cmpf ogt, %846, %847 : vector<8x26xf32>
    %cst_589 = arith.constant 0.00999999977 : f32
    %849 = vector.broadcast %cst_589 : f32 to vector<8x26xf32>
    %850 = arith.mulf %849, %846 : vector<8x26xf32>
    %851 = arith.select %848, %846, %850 : vector<8x26xi1>, vector<8x26xf32>
    %c3_590 = arith.constant 3 : index
    %c0_591 = arith.constant 0 : index
    %c0_592 = arith.constant 0 : index
    %852 = vector.load %arg33[%c3_590, %c0_591, %c0_592] : memref<4x26x32xf32, #tpu.memory_space<vmem>>, vector<1x26x32xf32>
    %853 = vector.shape_cast %852 : vector<1x26x32xf32> to vector<26x32xf32>
    %cst_593 = arith.constant dense<0.000000e+00> : vector<8x32xf32>
    %854 = tpu.matmul %851, %853, %cst_593 {dimension_numbers = #tpu.dot_dimension_numbers<[1], [0], [0], [1], [0, 0, 1, 1], [], []>} : vector<8x26xf32>, vector<26x32xf32>, vector<8x32xf32> -> vector<8x32xf32>
    %c3_594 = arith.constant 3 : index
    %c0_595 = arith.constant 0 : index
    %c0_596 = arith.constant 0 : index
    %855 = vector.load %arg34[%c3_594, %c0_595, %c0_596] : memref<4x1x32xf32, #tpu.memory_space<vmem>>, vector<1x1x32xf32>
    %856 = vector.shape_cast %855 : vector<1x1x32xf32> to vector<1x32xf32>
    %857 = vector.broadcast %856 : vector<1x32xf32> to vector<8x32xf32>
    %858 = arith.addf %854, %857 : vector<8x32xf32>
    %cst_597 = arith.constant 0.000000e+00 : f32
    %859 = vector.broadcast %cst_597 : f32 to vector<8x32xf32>
    %860 = arith.cmpf ogt, %858, %859 : vector<8x32xf32>
    %cst_598 = arith.constant 0.00999999977 : f32
    %861 = vector.broadcast %cst_598 : f32 to vector<8x32xf32>
    %862 = arith.mulf %861, %858 : vector<8x32xf32>
    %863 = arith.select %860, %858, %862 : vector<8x32xi1>, vector<8x32xf32>
    %c0_599 = arith.constant 0 : index
    %c0_600 = arith.constant 0 : index
    %864 = memref.load %arg2[%c0_599, %c0_600] : memref<4x4xf32, #tpu.memory_space<smem>>
    %865 = vector.broadcast %864 : f32 to vector<8x32xf32>
    %866 = arith.mulf %227, %865 : vector<8x32xf32>
    %c1_601 = arith.constant 1 : index
    %c0_602 = arith.constant 0 : index
    %867 = memref.load %arg2[%c1_601, %c0_602] : memref<4x4xf32, #tpu.memory_space<smem>>
    %868 = vector.broadcast %867 : f32 to vector<8x32xf32>
    %869 = arith.mulf %439, %868 : vector<8x32xf32>
    %870 = arith.addf %866, %869 : vector<8x32xf32>
    %c2_603 = arith.constant 2 : index
    %c0_604 = arith.constant 0 : index
    %871 = memref.load %arg2[%c2_603, %c0_604] : memref<4x4xf32, #tpu.memory_space<smem>>
    %872 = vector.broadcast %871 : f32 to vector<8x32xf32>
    %873 = arith.mulf %651, %872 : vector<8x32xf32>
    %874 = arith.addf %870, %873 : vector<8x32xf32>
    %c3_605 = arith.constant 3 : index
    %c0_606 = arith.constant 0 : index
    %875 = memref.load %arg2[%c3_605, %c0_606] : memref<4x4xf32, #tpu.memory_space<smem>>
    %876 = vector.broadcast %875 : f32 to vector<8x32xf32>
    %877 = arith.mulf %863, %876 : vector<8x32xf32>
    %878 = arith.addf %874, %877 : vector<8x32xf32>
    %c0_607 = arith.constant 0 : index
    %879 = memref.load %arg3[%c0_607] : memref<4xf32, #tpu.memory_space<smem>>
    %880 = vector.broadcast %879 : f32 to vector<8x32xf32>
    %881 = arith.addf %878, %880 : vector<8x32xf32>
    %cst_608 = arith.constant 0.000000e+00 : f32
    %882 = vector.broadcast %cst_608 : f32 to vector<8x32xf32>
    %883 = arith.cmpf ogt, %881, %882 : vector<8x32xf32>
    %cst_609 = arith.constant 0.00999999977 : f32
    %884 = vector.broadcast %cst_609 : f32 to vector<8x32xf32>
    %885 = arith.mulf %884, %881 : vector<8x32xf32>
    %886 = arith.select %883, %881, %885 : vector<8x32xi1>, vector<8x32xf32>
    %c0_610 = arith.constant 0 : index
    %c1_611 = arith.constant 1 : index
    %887 = memref.load %arg2[%c0_610, %c1_611] : memref<4x4xf32, #tpu.memory_space<smem>>
    %888 = vector.broadcast %887 : f32 to vector<8x32xf32>
    %889 = arith.mulf %227, %888 : vector<8x32xf32>
    %c1_612 = arith.constant 1 : index
    %c1_613 = arith.constant 1 : index
    %890 = memref.load %arg2[%c1_612, %c1_613] : memref<4x4xf32, #tpu.memory_space<smem>>
    %891 = vector.broadcast %890 : f32 to vector<8x32xf32>
    %892 = arith.mulf %439, %891 : vector<8x32xf32>
    %893 = arith.addf %889, %892 : vector<8x32xf32>
    %c2_614 = arith.constant 2 : index
    %c1_615 = arith.constant 1 : index
    %894 = memref.load %arg2[%c2_614, %c1_615] : memref<4x4xf32, #tpu.memory_space<smem>>
    %895 = vector.broadcast %894 : f32 to vector<8x32xf32>
    %896 = arith.mulf %651, %895 : vector<8x32xf32>
    %897 = arith.addf %893, %896 : vector<8x32xf32>
    %c3_616 = arith.constant 3 : index
    %c1_617 = arith.constant 1 : index
    %898 = memref.load %arg2[%c3_616, %c1_617] : memref<4x4xf32, #tpu.memory_space<smem>>
    %899 = vector.broadcast %898 : f32 to vector<8x32xf32>
    %900 = arith.mulf %863, %899 : vector<8x32xf32>
    %901 = arith.addf %897, %900 : vector<8x32xf32>
    %c1_618 = arith.constant 1 : index
    %902 = memref.load %arg3[%c1_618] : memref<4xf32, #tpu.memory_space<smem>>
    %903 = vector.broadcast %902 : f32 to vector<8x32xf32>
    %904 = arith.addf %901, %903 : vector<8x32xf32>
    %cst_619 = arith.constant 0.000000e+00 : f32
    %905 = vector.broadcast %cst_619 : f32 to vector<8x32xf32>
    %906 = arith.cmpf ogt, %904, %905 : vector<8x32xf32>
    %cst_620 = arith.constant 0.00999999977 : f32
    %907 = vector.broadcast %cst_620 : f32 to vector<8x32xf32>
    %908 = arith.mulf %907, %904 : vector<8x32xf32>
    %909 = arith.select %906, %904, %908 : vector<8x32xi1>, vector<8x32xf32>
    %c0_621 = arith.constant 0 : index
    %c2_622 = arith.constant 2 : index
    %910 = memref.load %arg2[%c0_621, %c2_622] : memref<4x4xf32, #tpu.memory_space<smem>>
    %911 = vector.broadcast %910 : f32 to vector<8x32xf32>
    %912 = arith.mulf %227, %911 : vector<8x32xf32>
    %c1_623 = arith.constant 1 : index
    %c2_624 = arith.constant 2 : index
    %913 = memref.load %arg2[%c1_623, %c2_624] : memref<4x4xf32, #tpu.memory_space<smem>>
    %914 = vector.broadcast %913 : f32 to vector<8x32xf32>
    %915 = arith.mulf %439, %914 : vector<8x32xf32>
    %916 = arith.addf %912, %915 : vector<8x32xf32>
    %c2_625 = arith.constant 2 : index
    %c2_626 = arith.constant 2 : index
    %917 = memref.load %arg2[%c2_625, %c2_626] : memref<4x4xf32, #tpu.memory_space<smem>>
    %918 = vector.broadcast %917 : f32 to vector<8x32xf32>
    %919 = arith.mulf %651, %918 : vector<8x32xf32>
    %920 = arith.addf %916, %919 : vector<8x32xf32>
    %c3_627 = arith.constant 3 : index
    %c2_628 = arith.constant 2 : index
    %921 = memref.load %arg2[%c3_627, %c2_628] : memref<4x4xf32, #tpu.memory_space<smem>>
    %922 = vector.broadcast %921 : f32 to vector<8x32xf32>
    %923 = arith.mulf %863, %922 : vector<8x32xf32>
    %924 = arith.addf %920, %923 : vector<8x32xf32>
    %c2_629 = arith.constant 2 : index
    %925 = memref.load %arg3[%c2_629] : memref<4xf32, #tpu.memory_space<smem>>
    %926 = vector.broadcast %925 : f32 to vector<8x32xf32>
    %927 = arith.addf %924, %926 : vector<8x32xf32>
    %cst_630 = arith.constant 0.000000e+00 : f32
    %928 = vector.broadcast %cst_630 : f32 to vector<8x32xf32>
    %929 = arith.cmpf ogt, %927, %928 : vector<8x32xf32>
    %cst_631 = arith.constant 0.00999999977 : f32
    %930 = vector.broadcast %cst_631 : f32 to vector<8x32xf32>
    %931 = arith.mulf %930, %927 : vector<8x32xf32>
    %932 = arith.select %929, %927, %931 : vector<8x32xi1>, vector<8x32xf32>
    %c0_632 = arith.constant 0 : index
    %c3_633 = arith.constant 3 : index
    %933 = memref.load %arg2[%c0_632, %c3_633] : memref<4x4xf32, #tpu.memory_space<smem>>
    %934 = vector.broadcast %933 : f32 to vector<8x32xf32>
    %935 = arith.mulf %227, %934 : vector<8x32xf32>
    %c1_634 = arith.constant 1 : index
    %c3_635 = arith.constant 3 : index
    %936 = memref.load %arg2[%c1_634, %c3_635] : memref<4x4xf32, #tpu.memory_space<smem>>
    %937 = vector.broadcast %936 : f32 to vector<8x32xf32>
    %938 = arith.mulf %439, %937 : vector<8x32xf32>
    %939 = arith.addf %935, %938 : vector<8x32xf32>
    %c2_636 = arith.constant 2 : index
    %c3_637 = arith.constant 3 : index
    %940 = memref.load %arg2[%c2_636, %c3_637] : memref<4x4xf32, #tpu.memory_space<smem>>
    %941 = vector.broadcast %940 : f32 to vector<8x32xf32>
    %942 = arith.mulf %651, %941 : vector<8x32xf32>
    %943 = arith.addf %939, %942 : vector<8x32xf32>
    %c3_638 = arith.constant 3 : index
    %c3_639 = arith.constant 3 : index
    %944 = memref.load %arg2[%c3_638, %c3_639] : memref<4x4xf32, #tpu.memory_space<smem>>
    %945 = vector.broadcast %944 : f32 to vector<8x32xf32>
    %946 = arith.mulf %863, %945 : vector<8x32xf32>
    %947 = arith.addf %943, %946 : vector<8x32xf32>
    %c3_640 = arith.constant 3 : index
    %948 = memref.load %arg3[%c3_640] : memref<4xf32, #tpu.memory_space<smem>>
    %949 = vector.broadcast %948 : f32 to vector<8x32xf32>
    %950 = arith.addf %947, %949 : vector<8x32xf32>
    %cst_641 = arith.constant 0.000000e+00 : f32
    %951 = vector.broadcast %cst_641 : f32 to vector<8x32xf32>
    %952 = arith.cmpf ogt, %950, %951 : vector<8x32xf32>
    %cst_642 = arith.constant 0.00999999977 : f32
    %953 = vector.broadcast %cst_642 : f32 to vector<8x32xf32>
    %954 = arith.mulf %953, %950 : vector<8x32xf32>
    %955 = arith.select %952, %950, %954 : vector<8x32xi1>, vector<8x32xf32>
    %c0_643 = arith.constant 0 : index
    %c0_644 = arith.constant 0 : index
    %956 = memref.load %arg4[%c0_643, %c0_644] : memref<4x8xf32, #tpu.memory_space<smem>>
    %957 = vector.broadcast %956 : f32 to vector<8x32xf32>
    %958 = arith.mulf %886, %957 : vector<8x32xf32>
    %c1_645 = arith.constant 1 : index
    %c0_646 = arith.constant 0 : index
    %959 = memref.load %arg4[%c1_645, %c0_646] : memref<4x8xf32, #tpu.memory_space<smem>>
    %960 = vector.broadcast %959 : f32 to vector<8x32xf32>
    %961 = arith.mulf %909, %960 : vector<8x32xf32>
    %962 = arith.addf %958, %961 : vector<8x32xf32>
    %c2_647 = arith.constant 2 : index
    %c0_648 = arith.constant 0 : index
    %963 = memref.load %arg4[%c2_647, %c0_648] : memref<4x8xf32, #tpu.memory_space<smem>>
    %964 = vector.broadcast %963 : f32 to vector<8x32xf32>
    %965 = arith.mulf %932, %964 : vector<8x32xf32>
    %966 = arith.addf %962, %965 : vector<8x32xf32>
    %c3_649 = arith.constant 3 : index
    %c0_650 = arith.constant 0 : index
    %967 = memref.load %arg4[%c3_649, %c0_650] : memref<4x8xf32, #tpu.memory_space<smem>>
    %968 = vector.broadcast %967 : f32 to vector<8x32xf32>
    %969 = arith.mulf %955, %968 : vector<8x32xf32>
    %970 = arith.addf %966, %969 : vector<8x32xf32>
    %c0_651 = arith.constant 0 : index
    %971 = memref.load %arg5[%c0_651] : memref<8xf32, #tpu.memory_space<smem>>
    %972 = vector.broadcast %971 : f32 to vector<8x32xf32>
    %973 = arith.addf %970, %972 : vector<8x32xf32>
    %cst_652 = arith.constant 0.000000e+00 : f32
    %974 = vector.broadcast %cst_652 : f32 to vector<8x32xf32>
    %975 = arith.cmpf ogt, %973, %974 : vector<8x32xf32>
    %cst_653 = arith.constant 0.00999999977 : f32
    %976 = vector.broadcast %cst_653 : f32 to vector<8x32xf32>
    %977 = arith.mulf %976, %973 : vector<8x32xf32>
    %978 = arith.select %975, %973, %977 : vector<8x32xi1>, vector<8x32xf32>
    %c0_654 = arith.constant 0 : index
    %c1_655 = arith.constant 1 : index
    %979 = memref.load %arg4[%c0_654, %c1_655] : memref<4x8xf32, #tpu.memory_space<smem>>
    %980 = vector.broadcast %979 : f32 to vector<8x32xf32>
    %981 = arith.mulf %886, %980 : vector<8x32xf32>
    %c1_656 = arith.constant 1 : index
    %c1_657 = arith.constant 1 : index
    %982 = memref.load %arg4[%c1_656, %c1_657] : memref<4x8xf32, #tpu.memory_space<smem>>
    %983 = vector.broadcast %982 : f32 to vector<8x32xf32>
    %984 = arith.mulf %909, %983 : vector<8x32xf32>
    %985 = arith.addf %981, %984 : vector<8x32xf32>
    %c2_658 = arith.constant 2 : index
    %c1_659 = arith.constant 1 : index
    %986 = memref.load %arg4[%c2_658, %c1_659] : memref<4x8xf32, #tpu.memory_space<smem>>
    %987 = vector.broadcast %986 : f32 to vector<8x32xf32>
    %988 = arith.mulf %932, %987 : vector<8x32xf32>
    %989 = arith.addf %985, %988 : vector<8x32xf32>
    %c3_660 = arith.constant 3 : index
    %c1_661 = arith.constant 1 : index
    %990 = memref.load %arg4[%c3_660, %c1_661] : memref<4x8xf32, #tpu.memory_space<smem>>
    %991 = vector.broadcast %990 : f32 to vector<8x32xf32>
    %992 = arith.mulf %955, %991 : vector<8x32xf32>
    %993 = arith.addf %989, %992 : vector<8x32xf32>
    %c1_662 = arith.constant 1 : index
    %994 = memref.load %arg5[%c1_662] : memref<8xf32, #tpu.memory_space<smem>>
    %995 = vector.broadcast %994 : f32 to vector<8x32xf32>
    %996 = arith.addf %993, %995 : vector<8x32xf32>
    %cst_663 = arith.constant 0.000000e+00 : f32
    %997 = vector.broadcast %cst_663 : f32 to vector<8x32xf32>
    %998 = arith.cmpf ogt, %996, %997 : vector<8x32xf32>
    %cst_664 = arith.constant 0.00999999977 : f32
    %999 = vector.broadcast %cst_664 : f32 to vector<8x32xf32>
    %1000 = arith.mulf %999, %996 : vector<8x32xf32>
    %1001 = arith.select %998, %996, %1000 : vector<8x32xi1>, vector<8x32xf32>
    %c0_665 = arith.constant 0 : index
    %c2_666 = arith.constant 2 : index
    %1002 = memref.load %arg4[%c0_665, %c2_666] : memref<4x8xf32, #tpu.memory_space<smem>>
    %1003 = vector.broadcast %1002 : f32 to vector<8x32xf32>
    %1004 = arith.mulf %886, %1003 : vector<8x32xf32>
    %c1_667 = arith.constant 1 : index
    %c2_668 = arith.constant 2 : index
    %1005 = memref.load %arg4[%c1_667, %c2_668] : memref<4x8xf32, #tpu.memory_space<smem>>
    %1006 = vector.broadcast %1005 : f32 to vector<8x32xf32>
    %1007 = arith.mulf %909, %1006 : vector<8x32xf32>
    %1008 = arith.addf %1004, %1007 : vector<8x32xf32>
    %c2_669 = arith.constant 2 : index
    %c2_670 = arith.constant 2 : index
    %1009 = memref.load %arg4[%c2_669, %c2_670] : memref<4x8xf32, #tpu.memory_space<smem>>
    %1010 = vector.broadcast %1009 : f32 to vector<8x32xf32>
    %1011 = arith.mulf %932, %1010 : vector<8x32xf32>
    %1012 = arith.addf %1008, %1011 : vector<8x32xf32>
    %c3_671 = arith.constant 3 : index
    %c2_672 = arith.constant 2 : index
    %1013 = memref.load %arg4[%c3_671, %c2_672] : memref<4x8xf32, #tpu.memory_space<smem>>
    %1014 = vector.broadcast %1013 : f32 to vector<8x32xf32>
    %1015 = arith.mulf %955, %1014 : vector<8x32xf32>
    %1016 = arith.addf %1012, %1015 : vector<8x32xf32>
    %c2_673 = arith.constant 2 : index
    %1017 = memref.load %arg5[%c2_673] : memref<8xf32, #tpu.memory_space<smem>>
    %1018 = vector.broadcast %1017 : f32 to vector<8x32xf32>
    %1019 = arith.addf %1016, %1018 : vector<8x32xf32>
    %cst_674 = arith.constant 0.000000e+00 : f32
    %1020 = vector.broadcast %cst_674 : f32 to vector<8x32xf32>
    %1021 = arith.cmpf ogt, %1019, %1020 : vector<8x32xf32>
    %cst_675 = arith.constant 0.00999999977 : f32
    %1022 = vector.broadcast %cst_675 : f32 to vector<8x32xf32>
    %1023 = arith.mulf %1022, %1019 : vector<8x32xf32>
    %1024 = arith.select %1021, %1019, %1023 : vector<8x32xi1>, vector<8x32xf32>
    %c0_676 = arith.constant 0 : index
    %c3_677 = arith.constant 3 : index
    %1025 = memref.load %arg4[%c0_676, %c3_677] : memref<4x8xf32, #tpu.memory_space<smem>>
    %1026 = vector.broadcast %1025 : f32 to vector<8x32xf32>
    %1027 = arith.mulf %886, %1026 : vector<8x32xf32>
    %c1_678 = arith.constant 1 : index
    %c3_679 = arith.constant 3 : index
    %1028 = memref.load %arg4[%c1_678, %c3_679] : memref<4x8xf32, #tpu.memory_space<smem>>
    %1029 = vector.broadcast %1028 : f32 to vector<8x32xf32>
    %1030 = arith.mulf %909, %1029 : vector<8x32xf32>
    %1031 = arith.addf %1027, %1030 : vector<8x32xf32>
    %c2_680 = arith.constant 2 : index
    %c3_681 = arith.constant 3 : index
    %1032 = memref.load %arg4[%c2_680, %c3_681] : memref<4x8xf32, #tpu.memory_space<smem>>
    %1033 = vector.broadcast %1032 : f32 to vector<8x32xf32>
    %1034 = arith.mulf %932, %1033 : vector<8x32xf32>
    %1035 = arith.addf %1031, %1034 : vector<8x32xf32>
    %c3_682 = arith.constant 3 : index
    %c3_683 = arith.constant 3 : index
    %1036 = memref.load %arg4[%c3_682, %c3_683] : memref<4x8xf32, #tpu.memory_space<smem>>
    %1037 = vector.broadcast %1036 : f32 to vector<8x32xf32>
    %1038 = arith.mulf %955, %1037 : vector<8x32xf32>
    %1039 = arith.addf %1035, %1038 : vector<8x32xf32>
    %c3_684 = arith.constant 3 : index
    %1040 = memref.load %arg5[%c3_684] : memref<8xf32, #tpu.memory_space<smem>>
    %1041 = vector.broadcast %1040 : f32 to vector<8x32xf32>
    %1042 = arith.addf %1039, %1041 : vector<8x32xf32>
    %cst_685 = arith.constant 0.000000e+00 : f32
    %1043 = vector.broadcast %cst_685 : f32 to vector<8x32xf32>
    %1044 = arith.cmpf ogt, %1042, %1043 : vector<8x32xf32>
    %cst_686 = arith.constant 0.00999999977 : f32
    %1045 = vector.broadcast %cst_686 : f32 to vector<8x32xf32>
    %1046 = arith.mulf %1045, %1042 : vector<8x32xf32>
    %1047 = arith.select %1044, %1042, %1046 : vector<8x32xi1>, vector<8x32xf32>
    %c0_687 = arith.constant 0 : index
    %c4_688 = arith.constant 4 : index
    %1048 = memref.load %arg4[%c0_687, %c4_688] : memref<4x8xf32, #tpu.memory_space<smem>>
    %1049 = vector.broadcast %1048 : f32 to vector<8x32xf32>
    %1050 = arith.mulf %886, %1049 : vector<8x32xf32>
    %c1_689 = arith.constant 1 : index
    %c4_690 = arith.constant 4 : index
    %1051 = memref.load %arg4[%c1_689, %c4_690] : memref<4x8xf32, #tpu.memory_space<smem>>
    %1052 = vector.broadcast %1051 : f32 to vector<8x32xf32>
    %1053 = arith.mulf %909, %1052 : vector<8x32xf32>
    %1054 = arith.addf %1050, %1053 : vector<8x32xf32>
    %c2_691 = arith.constant 2 : index
    %c4_692 = arith.constant 4 : index
    %1055 = memref.load %arg4[%c2_691, %c4_692] : memref<4x8xf32, #tpu.memory_space<smem>>
    %1056 = vector.broadcast %1055 : f32 to vector<8x32xf32>
    %1057 = arith.mulf %932, %1056 : vector<8x32xf32>
    %1058 = arith.addf %1054, %1057 : vector<8x32xf32>
    %c3_693 = arith.constant 3 : index
    %c4_694 = arith.constant 4 : index
    %1059 = memref.load %arg4[%c3_693, %c4_694] : memref<4x8xf32, #tpu.memory_space<smem>>
    %1060 = vector.broadcast %1059 : f32 to vector<8x32xf32>
    %1061 = arith.mulf %955, %1060 : vector<8x32xf32>
    %1062 = arith.addf %1058, %1061 : vector<8x32xf32>
    %c4_695 = arith.constant 4 : index
    %1063 = memref.load %arg5[%c4_695] : memref<8xf32, #tpu.memory_space<smem>>
    %1064 = vector.broadcast %1063 : f32 to vector<8x32xf32>
    %1065 = arith.addf %1062, %1064 : vector<8x32xf32>
    %cst_696 = arith.constant 0.000000e+00 : f32
    %1066 = vector.broadcast %cst_696 : f32 to vector<8x32xf32>
    %1067 = arith.cmpf ogt, %1065, %1066 : vector<8x32xf32>
    %cst_697 = arith.constant 0.00999999977 : f32
    %1068 = vector.broadcast %cst_697 : f32 to vector<8x32xf32>
    %1069 = arith.mulf %1068, %1065 : vector<8x32xf32>
    %1070 = arith.select %1067, %1065, %1069 : vector<8x32xi1>, vector<8x32xf32>
    %c0_698 = arith.constant 0 : index
    %c5_699 = arith.constant 5 : index
    %1071 = memref.load %arg4[%c0_698, %c5_699] : memref<4x8xf32, #tpu.memory_space<smem>>
    %1072 = vector.broadcast %1071 : f32 to vector<8x32xf32>
    %1073 = arith.mulf %886, %1072 : vector<8x32xf32>
    %c1_700 = arith.constant 1 : index
    %c5_701 = arith.constant 5 : index
    %1074 = memref.load %arg4[%c1_700, %c5_701] : memref<4x8xf32, #tpu.memory_space<smem>>
    %1075 = vector.broadcast %1074 : f32 to vector<8x32xf32>
    %1076 = arith.mulf %909, %1075 : vector<8x32xf32>
    %1077 = arith.addf %1073, %1076 : vector<8x32xf32>
    %c2_702 = arith.constant 2 : index
    %c5_703 = arith.constant 5 : index
    %1078 = memref.load %arg4[%c2_702, %c5_703] : memref<4x8xf32, #tpu.memory_space<smem>>
    %1079 = vector.broadcast %1078 : f32 to vector<8x32xf32>
    %1080 = arith.mulf %932, %1079 : vector<8x32xf32>
    %1081 = arith.addf %1077, %1080 : vector<8x32xf32>
    %c3_704 = arith.constant 3 : index
    %c5_705 = arith.constant 5 : index
    %1082 = memref.load %arg4[%c3_704, %c5_705] : memref<4x8xf32, #tpu.memory_space<smem>>
    %1083 = vector.broadcast %1082 : f32 to vector<8x32xf32>
    %1084 = arith.mulf %955, %1083 : vector<8x32xf32>
    %1085 = arith.addf %1081, %1084 : vector<8x32xf32>
    %c5_706 = arith.constant 5 : index
    %1086 = memref.load %arg5[%c5_706] : memref<8xf32, #tpu.memory_space<smem>>
    %1087 = vector.broadcast %1086 : f32 to vector<8x32xf32>
    %1088 = arith.addf %1085, %1087 : vector<8x32xf32>
    %cst_707 = arith.constant 0.000000e+00 : f32
    %1089 = vector.broadcast %cst_707 : f32 to vector<8x32xf32>
    %1090 = arith.cmpf ogt, %1088, %1089 : vector<8x32xf32>
    %cst_708 = arith.constant 0.00999999977 : f32
    %1091 = vector.broadcast %cst_708 : f32 to vector<8x32xf32>
    %1092 = arith.mulf %1091, %1088 : vector<8x32xf32>
    %1093 = arith.select %1090, %1088, %1092 : vector<8x32xi1>, vector<8x32xf32>
    %c0_709 = arith.constant 0 : index
    %c6_710 = arith.constant 6 : index
    %1094 = memref.load %arg4[%c0_709, %c6_710] : memref<4x8xf32, #tpu.memory_space<smem>>
    %1095 = vector.broadcast %1094 : f32 to vector<8x32xf32>
    %1096 = arith.mulf %886, %1095 : vector<8x32xf32>
    %c1_711 = arith.constant 1 : index
    %c6_712 = arith.constant 6 : index
    %1097 = memref.load %arg4[%c1_711, %c6_712] : memref<4x8xf32, #tpu.memory_space<smem>>
    %1098 = vector.broadcast %1097 : f32 to vector<8x32xf32>
    %1099 = arith.mulf %909, %1098 : vector<8x32xf32>
    %1100 = arith.addf %1096, %1099 : vector<8x32xf32>
    %c2_713 = arith.constant 2 : index
    %c6_714 = arith.constant 6 : index
    %1101 = memref.load %arg4[%c2_713, %c6_714] : memref<4x8xf32, #tpu.memory_space<smem>>
    %1102 = vector.broadcast %1101 : f32 to vector<8x32xf32>
    %1103 = arith.mulf %932, %1102 : vector<8x32xf32>
    %1104 = arith.addf %1100, %1103 : vector<8x32xf32>
    %c3_715 = arith.constant 3 : index
    %c6_716 = arith.constant 6 : index
    %1105 = memref.load %arg4[%c3_715, %c6_716] : memref<4x8xf32, #tpu.memory_space<smem>>
    %1106 = vector.broadcast %1105 : f32 to vector<8x32xf32>
    %1107 = arith.mulf %955, %1106 : vector<8x32xf32>
    %1108 = arith.addf %1104, %1107 : vector<8x32xf32>
    %c6_717 = arith.constant 6 : index
    %1109 = memref.load %arg5[%c6_717] : memref<8xf32, #tpu.memory_space<smem>>
    %1110 = vector.broadcast %1109 : f32 to vector<8x32xf32>
    %1111 = arith.addf %1108, %1110 : vector<8x32xf32>
    %cst_718 = arith.constant 0.000000e+00 : f32
    %1112 = vector.broadcast %cst_718 : f32 to vector<8x32xf32>
    %1113 = arith.cmpf ogt, %1111, %1112 : vector<8x32xf32>
    %cst_719 = arith.constant 0.00999999977 : f32
    %1114 = vector.broadcast %cst_719 : f32 to vector<8x32xf32>
    %1115 = arith.mulf %1114, %1111 : vector<8x32xf32>
    %1116 = arith.select %1113, %1111, %1115 : vector<8x32xi1>, vector<8x32xf32>
    %c0_720 = arith.constant 0 : index
    %c7_721 = arith.constant 7 : index
    %1117 = memref.load %arg4[%c0_720, %c7_721] : memref<4x8xf32, #tpu.memory_space<smem>>
    %1118 = vector.broadcast %1117 : f32 to vector<8x32xf32>
    %1119 = arith.mulf %886, %1118 : vector<8x32xf32>
    %c1_722 = arith.constant 1 : index
    %c7_723 = arith.constant 7 : index
    %1120 = memref.load %arg4[%c1_722, %c7_723] : memref<4x8xf32, #tpu.memory_space<smem>>
    %1121 = vector.broadcast %1120 : f32 to vector<8x32xf32>
    %1122 = arith.mulf %909, %1121 : vector<8x32xf32>
    %1123 = arith.addf %1119, %1122 : vector<8x32xf32>
    %c2_724 = arith.constant 2 : index
    %c7_725 = arith.constant 7 : index
    %1124 = memref.load %arg4[%c2_724, %c7_725] : memref<4x8xf32, #tpu.memory_space<smem>>
    %1125 = vector.broadcast %1124 : f32 to vector<8x32xf32>
    %1126 = arith.mulf %932, %1125 : vector<8x32xf32>
    %1127 = arith.addf %1123, %1126 : vector<8x32xf32>
    %c3_726 = arith.constant 3 : index
    %c7_727 = arith.constant 7 : index
    %1128 = memref.load %arg4[%c3_726, %c7_727] : memref<4x8xf32, #tpu.memory_space<smem>>
    %1129 = vector.broadcast %1128 : f32 to vector<8x32xf32>
    %1130 = arith.mulf %955, %1129 : vector<8x32xf32>
    %1131 = arith.addf %1127, %1130 : vector<8x32xf32>
    %c7_728 = arith.constant 7 : index
    %1132 = memref.load %arg5[%c7_728] : memref<8xf32, #tpu.memory_space<smem>>
    %1133 = vector.broadcast %1132 : f32 to vector<8x32xf32>
    %1134 = arith.addf %1131, %1133 : vector<8x32xf32>
    %cst_729 = arith.constant 0.000000e+00 : f32
    %1135 = vector.broadcast %cst_729 : f32 to vector<8x32xf32>
    %1136 = arith.cmpf ogt, %1134, %1135 : vector<8x32xf32>
    %cst_730 = arith.constant 0.00999999977 : f32
    %1137 = vector.broadcast %cst_730 : f32 to vector<8x32xf32>
    %1138 = arith.mulf %1137, %1134 : vector<8x32xf32>
    %1139 = arith.select %1136, %1134, %1138 : vector<8x32xi1>, vector<8x32xf32>
    %c0_731 = arith.constant 0 : index
    %c0_732 = arith.constant 0 : index
    %1140 = memref.load %arg6[%c0_731, %c0_732] : memref<8x8xf32, #tpu.memory_space<smem>>
    %1141 = vector.broadcast %1140 : f32 to vector<8x32xf32>
    %1142 = arith.mulf %978, %1141 : vector<8x32xf32>
    %c1_733 = arith.constant 1 : index
    %c0_734 = arith.constant 0 : index
    %1143 = memref.load %arg6[%c1_733, %c0_734] : memref<8x8xf32, #tpu.memory_space<smem>>
    %1144 = vector.broadcast %1143 : f32 to vector<8x32xf32>
    %1145 = arith.mulf %1001, %1144 : vector<8x32xf32>
    %1146 = arith.addf %1142, %1145 : vector<8x32xf32>
    %c2_735 = arith.constant 2 : index
    %c0_736 = arith.constant 0 : index
    %1147 = memref.load %arg6[%c2_735, %c0_736] : memref<8x8xf32, #tpu.memory_space<smem>>
    %1148 = vector.broadcast %1147 : f32 to vector<8x32xf32>
    %1149 = arith.mulf %1024, %1148 : vector<8x32xf32>
    %1150 = arith.addf %1146, %1149 : vector<8x32xf32>
    %c3_737 = arith.constant 3 : index
    %c0_738 = arith.constant 0 : index
    %1151 = memref.load %arg6[%c3_737, %c0_738] : memref<8x8xf32, #tpu.memory_space<smem>>
    %1152 = vector.broadcast %1151 : f32 to vector<8x32xf32>
    %1153 = arith.mulf %1047, %1152 : vector<8x32xf32>
    %1154 = arith.addf %1150, %1153 : vector<8x32xf32>
    %c4_739 = arith.constant 4 : index
    %c0_740 = arith.constant 0 : index
    %1155 = memref.load %arg6[%c4_739, %c0_740] : memref<8x8xf32, #tpu.memory_space<smem>>
    %1156 = vector.broadcast %1155 : f32 to vector<8x32xf32>
    %1157 = arith.mulf %1070, %1156 : vector<8x32xf32>
    %1158 = arith.addf %1154, %1157 : vector<8x32xf32>
    %c5_741 = arith.constant 5 : index
    %c0_742 = arith.constant 0 : index
    %1159 = memref.load %arg6[%c5_741, %c0_742] : memref<8x8xf32, #tpu.memory_space<smem>>
    %1160 = vector.broadcast %1159 : f32 to vector<8x32xf32>
    %1161 = arith.mulf %1093, %1160 : vector<8x32xf32>
    %1162 = arith.addf %1158, %1161 : vector<8x32xf32>
    %c6_743 = arith.constant 6 : index
    %c0_744 = arith.constant 0 : index
    %1163 = memref.load %arg6[%c6_743, %c0_744] : memref<8x8xf32, #tpu.memory_space<smem>>
    %1164 = vector.broadcast %1163 : f32 to vector<8x32xf32>
    %1165 = arith.mulf %1116, %1164 : vector<8x32xf32>
    %1166 = arith.addf %1162, %1165 : vector<8x32xf32>
    %c7_745 = arith.constant 7 : index
    %c0_746 = arith.constant 0 : index
    %1167 = memref.load %arg6[%c7_745, %c0_746] : memref<8x8xf32, #tpu.memory_space<smem>>
    %1168 = vector.broadcast %1167 : f32 to vector<8x32xf32>
    %1169 = arith.mulf %1139, %1168 : vector<8x32xf32>
    %1170 = arith.addf %1166, %1169 : vector<8x32xf32>
    %c0_747 = arith.constant 0 : index
    %1171 = memref.load %arg7[%c0_747] : memref<8xf32, #tpu.memory_space<smem>>
    %1172 = vector.broadcast %1171 : f32 to vector<8x32xf32>
    %1173 = arith.addf %1170, %1172 : vector<8x32xf32>
    %1174 = math.tanh %1173 : vector<8x32xf32>
    %c0_748 = arith.constant 0 : index
    %c0_749 = arith.constant 0 : index
    %c0_750 = arith.constant 0 : index
    %1175 = vector.load %arg35[%c0_748, %c0_749, %c0_750] : memref<8x8x32xf32, #tpu.memory_space<vmem>>, vector<1x8x32xf32>
    %1176 = vector.shape_cast %1175 : vector<1x8x32xf32> to vector<8x32xf32>
    %1177 = vector.shape_cast %1174 : vector<8x32xf32> to vector<1x8x32xf32>
    tpu.vector_store %arg35[%c0_748, %c0_749, %c0_750], %1177 {strides = array<i32>} : memref<8x8x32xf32, #tpu.memory_space<vmem>>, vector<1x8x32xf32>,
    %c0_751 = arith.constant 0 : index
    %c1_752 = arith.constant 1 : index
    %1178 = memref.load %arg6[%c0_751, %c1_752] : memref<8x8xf32, #tpu.memory_space<smem>>
    %1179 = vector.broadcast %1178 : f32 to vector<8x32xf32>
    %1180 = arith.mulf %978, %1179 : vector<8x32xf32>
    %c1_753 = arith.constant 1 : index
    %c1_754 = arith.constant 1 : index
    %1181 = memref.load %arg6[%c1_753, %c1_754] : memref<8x8xf32, #tpu.memory_space<smem>>
    %1182 = vector.broadcast %1181 : f32 to vector<8x32xf32>
    %1183 = arith.mulf %1001, %1182 : vector<8x32xf32>
    %1184 = arith.addf %1180, %1183 : vector<8x32xf32>
    %c2_755 = arith.constant 2 : index
    %c1_756 = arith.constant 1 : index
    %1185 = memref.load %arg6[%c2_755, %c1_756] : memref<8x8xf32, #tpu.memory_space<smem>>
    %1186 = vector.broadcast %1185 : f32 to vector<8x32xf32>
    %1187 = arith.mulf %1024, %1186 : vector<8x32xf32>
    %1188 = arith.addf %1184, %1187 : vector<8x32xf32>
    %c3_757 = arith.constant 3 : index
    %c1_758 = arith.constant 1 : index
    %1189 = memref.load %arg6[%c3_757, %c1_758] : memref<8x8xf32, #tpu.memory_space<smem>>
    %1190 = vector.broadcast %1189 : f32 to vector<8x32xf32>
    %1191 = arith.mulf %1047, %1190 : vector<8x32xf32>
    %1192 = arith.addf %1188, %1191 : vector<8x32xf32>
    %c4_759 = arith.constant 4 : index
    %c1_760 = arith.constant 1 : index
    %1193 = memref.load %arg6[%c4_759, %c1_760] : memref<8x8xf32, #tpu.memory_space<smem>>
    %1194 = vector.broadcast %1193 : f32 to vector<8x32xf32>
    %1195 = arith.mulf %1070, %1194 : vector<8x32xf32>
    %1196 = arith.addf %1192, %1195 : vector<8x32xf32>
    %c5_761 = arith.constant 5 : index
    %c1_762 = arith.constant 1 : index
    %1197 = memref.load %arg6[%c5_761, %c1_762] : memref<8x8xf32, #tpu.memory_space<smem>>
    %1198 = vector.broadcast %1197 : f32 to vector<8x32xf32>
    %1199 = arith.mulf %1093, %1198 : vector<8x32xf32>
    %1200 = arith.addf %1196, %1199 : vector<8x32xf32>
    %c6_763 = arith.constant 6 : index
    %c1_764 = arith.constant 1 : index
    %1201 = memref.load %arg6[%c6_763, %c1_764] : memref<8x8xf32, #tpu.memory_space<smem>>
    %1202 = vector.broadcast %1201 : f32 to vector<8x32xf32>
    %1203 = arith.mulf %1116, %1202 : vector<8x32xf32>
    %1204 = arith.addf %1200, %1203 : vector<8x32xf32>
    %c7_765 = arith.constant 7 : index
    %c1_766 = arith.constant 1 : index
    %1205 = memref.load %arg6[%c7_765, %c1_766] : memref<8x8xf32, #tpu.memory_space<smem>>
    %1206 = vector.broadcast %1205 : f32 to vector<8x32xf32>
    %1207 = arith.mulf %1139, %1206 : vector<8x32xf32>
    %1208 = arith.addf %1204, %1207 : vector<8x32xf32>
    %c1_767 = arith.constant 1 : index
    %1209 = memref.load %arg7[%c1_767] : memref<8xf32, #tpu.memory_space<smem>>
    %1210 = vector.broadcast %1209 : f32 to vector<8x32xf32>
    %1211 = arith.addf %1208, %1210 : vector<8x32xf32>
    %1212 = math.tanh %1211 : vector<8x32xf32>
    %c1_768 = arith.constant 1 : index
    %c0_769 = arith.constant 0 : index
    %c0_770 = arith.constant 0 : index
    %1213 = vector.load %arg35[%c1_768, %c0_769, %c0_770] : memref<8x8x32xf32, #tpu.memory_space<vmem>>, vector<1x8x32xf32>
    %1214 = vector.shape_cast %1213 : vector<1x8x32xf32> to vector<8x32xf32>
    %1215 = vector.shape_cast %1212 : vector<8x32xf32> to vector<1x8x32xf32>
    tpu.vector_store %arg35[%c1_768, %c0_769, %c0_770], %1215 {strides = array<i32>} : memref<8x8x32xf32, #tpu.memory_space<vmem>>, vector<1x8x32xf32>,
    %c0_771 = arith.constant 0 : index
    %c2_772 = arith.constant 2 : index
    %1216 = memref.load %arg6[%c0_771, %c2_772] : memref<8x8xf32, #tpu.memory_space<smem>>
    %1217 = vector.broadcast %1216 : f32 to vector<8x32xf32>
    %1218 = arith.mulf %978, %1217 : vector<8x32xf32>
    %c1_773 = arith.constant 1 : index
    %c2_774 = arith.constant 2 : index
    %1219 = memref.load %arg6[%c1_773, %c2_774] : memref<8x8xf32, #tpu.memory_space<smem>>
    %1220 = vector.broadcast %1219 : f32 to vector<8x32xf32>
    %1221 = arith.mulf %1001, %1220 : vector<8x32xf32>
    %1222 = arith.addf %1218, %1221 : vector<8x32xf32>
    %c2_775 = arith.constant 2 : index
    %c2_776 = arith.constant 2 : index
    %1223 = memref.load %arg6[%c2_775, %c2_776] : memref<8x8xf32, #tpu.memory_space<smem>>
    %1224 = vector.broadcast %1223 : f32 to vector<8x32xf32>
    %1225 = arith.mulf %1024, %1224 : vector<8x32xf32>
    %1226 = arith.addf %1222, %1225 : vector<8x32xf32>
    %c3_777 = arith.constant 3 : index
    %c2_778 = arith.constant 2 : index
    %1227 = memref.load %arg6[%c3_777, %c2_778] : memref<8x8xf32, #tpu.memory_space<smem>>
    %1228 = vector.broadcast %1227 : f32 to vector<8x32xf32>
    %1229 = arith.mulf %1047, %1228 : vector<8x32xf32>
    %1230 = arith.addf %1226, %1229 : vector<8x32xf32>
    %c4_779 = arith.constant 4 : index
    %c2_780 = arith.constant 2 : index
    %1231 = memref.load %arg6[%c4_779, %c2_780] : memref<8x8xf32, #tpu.memory_space<smem>>
    %1232 = vector.broadcast %1231 : f32 to vector<8x32xf32>
    %1233 = arith.mulf %1070, %1232 : vector<8x32xf32>
    %1234 = arith.addf %1230, %1233 : vector<8x32xf32>
    %c5_781 = arith.constant 5 : index
    %c2_782 = arith.constant 2 : index
    %1235 = memref.load %arg6[%c5_781, %c2_782] : memref<8x8xf32, #tpu.memory_space<smem>>
    %1236 = vector.broadcast %1235 : f32 to vector<8x32xf32>
    %1237 = arith.mulf %1093, %1236 : vector<8x32xf32>
    %1238 = arith.addf %1234, %1237 : vector<8x32xf32>
    %c6_783 = arith.constant 6 : index
    %c2_784 = arith.constant 2 : index
    %1239 = memref.load %arg6[%c6_783, %c2_784] : memref<8x8xf32, #tpu.memory_space<smem>>
    %1240 = vector.broadcast %1239 : f32 to vector<8x32xf32>
    %1241 = arith.mulf %1116, %1240 : vector<8x32xf32>
    %1242 = arith.addf %1238, %1241 : vector<8x32xf32>
    %c7_785 = arith.constant 7 : index
    %c2_786 = arith.constant 2 : index
    %1243 = memref.load %arg6[%c7_785, %c2_786] : memref<8x8xf32, #tpu.memory_space<smem>>
    %1244 = vector.broadcast %1243 : f32 to vector<8x32xf32>
    %1245 = arith.mulf %1139, %1244 : vector<8x32xf32>
    %1246 = arith.addf %1242, %1245 : vector<8x32xf32>
    %c2_787 = arith.constant 2 : index
    %1247 = memref.load %arg7[%c2_787] : memref<8xf32, #tpu.memory_space<smem>>
    %1248 = vector.broadcast %1247 : f32 to vector<8x32xf32>
    %1249 = arith.addf %1246, %1248 : vector<8x32xf32>
    %1250 = math.tanh %1249 : vector<8x32xf32>
    %c2_788 = arith.constant 2 : index
    %c0_789 = arith.constant 0 : index
    %c0_790 = arith.constant 0 : index
    %1251 = vector.load %arg35[%c2_788, %c0_789, %c0_790] : memref<8x8x32xf32, #tpu.memory_space<vmem>>, vector<1x8x32xf32>
    %1252 = vector.shape_cast %1251 : vector<1x8x32xf32> to vector<8x32xf32>
    %1253 = vector.shape_cast %1250 : vector<8x32xf32> to vector<1x8x32xf32>
    tpu.vector_store %arg35[%c2_788, %c0_789, %c0_790], %1253 {strides = array<i32>} : memref<8x8x32xf32, #tpu.memory_space<vmem>>, vector<1x8x32xf32>,
    %c0_791 = arith.constant 0 : index
    %c3_792 = arith.constant 3 : index
    %1254 = memref.load %arg6[%c0_791, %c3_792] : memref<8x8xf32, #tpu.memory_space<smem>>
    %1255 = vector.broadcast %1254 : f32 to vector<8x32xf32>
    %1256 = arith.mulf %978, %1255 : vector<8x32xf32>
    %c1_793 = arith.constant 1 : index
    %c3_794 = arith.constant 3 : index
    %1257 = memref.load %arg6[%c1_793, %c3_794] : memref<8x8xf32, #tpu.memory_space<smem>>
    %1258 = vector.broadcast %1257 : f32 to vector<8x32xf32>
    %1259 = arith.mulf %1001, %1258 : vector<8x32xf32>
    %1260 = arith.addf %1256, %1259 : vector<8x32xf32>
    %c2_795 = arith.constant 2 : index
    %c3_796 = arith.constant 3 : index
    %1261 = memref.load %arg6[%c2_795, %c3_796] : memref<8x8xf32, #tpu.memory_space<smem>>
    %1262 = vector.broadcast %1261 : f32 to vector<8x32xf32>
    %1263 = arith.mulf %1024, %1262 : vector<8x32xf32>
    %1264 = arith.addf %1260, %1263 : vector<8x32xf32>
    %c3_797 = arith.constant 3 : index
    %c3_798 = arith.constant 3 : index
    %1265 = memref.load %arg6[%c3_797, %c3_798] : memref<8x8xf32, #tpu.memory_space<smem>>
    %1266 = vector.broadcast %1265 : f32 to vector<8x32xf32>
    %1267 = arith.mulf %1047, %1266 : vector<8x32xf32>
    %1268 = arith.addf %1264, %1267 : vector<8x32xf32>
    %c4_799 = arith.constant 4 : index
    %c3_800 = arith.constant 3 : index
    %1269 = memref.load %arg6[%c4_799, %c3_800] : memref<8x8xf32, #tpu.memory_space<smem>>
    %1270 = vector.broadcast %1269 : f32 to vector<8x32xf32>
    %1271 = arith.mulf %1070, %1270 : vector<8x32xf32>
    %1272 = arith.addf %1268, %1271 : vector<8x32xf32>
    %c5_801 = arith.constant 5 : index
    %c3_802 = arith.constant 3 : index
    %1273 = memref.load %arg6[%c5_801, %c3_802] : memref<8x8xf32, #tpu.memory_space<smem>>
    %1274 = vector.broadcast %1273 : f32 to vector<8x32xf32>
    %1275 = arith.mulf %1093, %1274 : vector<8x32xf32>
    %1276 = arith.addf %1272, %1275 : vector<8x32xf32>
    %c6_803 = arith.constant 6 : index
    %c3_804 = arith.constant 3 : index
    %1277 = memref.load %arg6[%c6_803, %c3_804] : memref<8x8xf32, #tpu.memory_space<smem>>
    %1278 = vector.broadcast %1277 : f32 to vector<8x32xf32>
    %1279 = arith.mulf %1116, %1278 : vector<8x32xf32>
    %1280 = arith.addf %1276, %1279 : vector<8x32xf32>
    %c7_805 = arith.constant 7 : index
    %c3_806 = arith.constant 3 : index
    %1281 = memref.load %arg6[%c7_805, %c3_806] : memref<8x8xf32, #tpu.memory_space<smem>>
    %1282 = vector.broadcast %1281 : f32 to vector<8x32xf32>
    %1283 = arith.mulf %1139, %1282 : vector<8x32xf32>
    %1284 = arith.addf %1280, %1283 : vector<8x32xf32>
    %c3_807 = arith.constant 3 : index
    %1285 = memref.load %arg7[%c3_807] : memref<8xf32, #tpu.memory_space<smem>>
    %1286 = vector.broadcast %1285 : f32 to vector<8x32xf32>
    %1287 = arith.addf %1284, %1286 : vector<8x32xf32>
    %1288 = math.tanh %1287 : vector<8x32xf32>
    %c3_808 = arith.constant 3 : index
    %c0_809 = arith.constant 0 : index
    %c0_810 = arith.constant 0 : index
    %1289 = vector.load %arg35[%c3_808, %c0_809, %c0_810] : memref<8x8x32xf32, #tpu.memory_space<vmem>>, vector<1x8x32xf32>
    %1290 = vector.shape_cast %1289 : vector<1x8x32xf32> to vector<8x32xf32>
    %1291 = vector.shape_cast %1288 : vector<8x32xf32> to vector<1x8x32xf32>
    tpu.vector_store %arg35[%c3_808, %c0_809, %c0_810], %1291 {strides = array<i32>} : memref<8x8x32xf32, #tpu.memory_space<vmem>>, vector<1x8x32xf32>,
    %c0_811 = arith.constant 0 : index
    %c4_812 = arith.constant 4 : index
    %1292 = memref.load %arg6[%c0_811, %c4_812] : memref<8x8xf32, #tpu.memory_space<smem>>
    %1293 = vector.broadcast %1292 : f32 to vector<8x32xf32>
    %1294 = arith.mulf %978, %1293 : vector<8x32xf32>
    %c1_813 = arith.constant 1 : index
    %c4_814 = arith.constant 4 : index
    %1295 = memref.load %arg6[%c1_813, %c4_814] : memref<8x8xf32, #tpu.memory_space<smem>>
    %1296 = vector.broadcast %1295 : f32 to vector<8x32xf32>
    %1297 = arith.mulf %1001, %1296 : vector<8x32xf32>
    %1298 = arith.addf %1294, %1297 : vector<8x32xf32>
    %c2_815 = arith.constant 2 : index
    %c4_816 = arith.constant 4 : index
    %1299 = memref.load %arg6[%c2_815, %c4_816] : memref<8x8xf32, #tpu.memory_space<smem>>
    %1300 = vector.broadcast %1299 : f32 to vector<8x32xf32>
    %1301 = arith.mulf %1024, %1300 : vector<8x32xf32>
    %1302 = arith.addf %1298, %1301 : vector<8x32xf32>
    %c3_817 = arith.constant 3 : index
    %c4_818 = arith.constant 4 : index
    %1303 = memref.load %arg6[%c3_817, %c4_818] : memref<8x8xf32, #tpu.memory_space<smem>>
    %1304 = vector.broadcast %1303 : f32 to vector<8x32xf32>
    %1305 = arith.mulf %1047, %1304 : vector<8x32xf32>
    %1306 = arith.addf %1302, %1305 : vector<8x32xf32>
    %c4_819 = arith.constant 4 : index
    %c4_820 = arith.constant 4 : index
    %1307 = memref.load %arg6[%c4_819, %c4_820] : memref<8x8xf32, #tpu.memory_space<smem>>
    %1308 = vector.broadcast %1307 : f32 to vector<8x32xf32>
    %1309 = arith.mulf %1070, %1308 : vector<8x32xf32>
    %1310 = arith.addf %1306, %1309 : vector<8x32xf32>
    %c5_821 = arith.constant 5 : index
    %c4_822 = arith.constant 4 : index
    %1311 = memref.load %arg6[%c5_821, %c4_822] : memref<8x8xf32, #tpu.memory_space<smem>>
    %1312 = vector.broadcast %1311 : f32 to vector<8x32xf32>
    %1313 = arith.mulf %1093, %1312 : vector<8x32xf32>
    %1314 = arith.addf %1310, %1313 : vector<8x32xf32>
    %c6_823 = arith.constant 6 : index
    %c4_824 = arith.constant 4 : index
    %1315 = memref.load %arg6[%c6_823, %c4_824] : memref<8x8xf32, #tpu.memory_space<smem>>
    %1316 = vector.broadcast %1315 : f32 to vector<8x32xf32>
    %1317 = arith.mulf %1116, %1316 : vector<8x32xf32>
    %1318 = arith.addf %1314, %1317 : vector<8x32xf32>
    %c7_825 = arith.constant 7 : index
    %c4_826 = arith.constant 4 : index
    %1319 = memref.load %arg6[%c7_825, %c4_826] : memref<8x8xf32, #tpu.memory_space<smem>>
    %1320 = vector.broadcast %1319 : f32 to vector<8x32xf32>
    %1321 = arith.mulf %1139, %1320 : vector<8x32xf32>
    %1322 = arith.addf %1318, %1321 : vector<8x32xf32>
    %c4_827 = arith.constant 4 : index
    %1323 = memref.load %arg7[%c4_827] : memref<8xf32, #tpu.memory_space<smem>>
    %1324 = vector.broadcast %1323 : f32 to vector<8x32xf32>
    %1325 = arith.addf %1322, %1324 : vector<8x32xf32>
    %1326 = math.tanh %1325 : vector<8x32xf32>
    %c4_828 = arith.constant 4 : index
    %c0_829 = arith.constant 0 : index
    %c0_830 = arith.constant 0 : index
    %1327 = vector.load %arg35[%c4_828, %c0_829, %c0_830] : memref<8x8x32xf32, #tpu.memory_space<vmem>>, vector<1x8x32xf32>
    %1328 = vector.shape_cast %1327 : vector<1x8x32xf32> to vector<8x32xf32>
    %1329 = vector.shape_cast %1326 : vector<8x32xf32> to vector<1x8x32xf32>
    tpu.vector_store %arg35[%c4_828, %c0_829, %c0_830], %1329 {strides = array<i32>} : memref<8x8x32xf32, #tpu.memory_space<vmem>>, vector<1x8x32xf32>,
    %c0_831 = arith.constant 0 : index
    %c5_832 = arith.constant 5 : index
    %1330 = memref.load %arg6[%c0_831, %c5_832] : memref<8x8xf32, #tpu.memory_space<smem>>
    %1331 = vector.broadcast %1330 : f32 to vector<8x32xf32>
    %1332 = arith.mulf %978, %1331 : vector<8x32xf32>
    %c1_833 = arith.constant 1 : index
    %c5_834 = arith.constant 5 : index
    %1333 = memref.load %arg6[%c1_833, %c5_834] : memref<8x8xf32, #tpu.memory_space<smem>>
    %1334 = vector.broadcast %1333 : f32 to vector<8x32xf32>
    %1335 = arith.mulf %1001, %1334 : vector<8x32xf32>
    %1336 = arith.addf %1332, %1335 : vector<8x32xf32>
    %c2_835 = arith.constant 2 : index
    %c5_836 = arith.constant 5 : index
    %1337 = memref.load %arg6[%c2_835, %c5_836] : memref<8x8xf32, #tpu.memory_space<smem>>
    %1338 = vector.broadcast %1337 : f32 to vector<8x32xf32>
    %1339 = arith.mulf %1024, %1338 : vector<8x32xf32>
    %1340 = arith.addf %1336, %1339 : vector<8x32xf32>
    %c3_837 = arith.constant 3 : index
    %c5_838 = arith.constant 5 : index
    %1341 = memref.load %arg6[%c3_837, %c5_838] : memref<8x8xf32, #tpu.memory_space<smem>>
    %1342 = vector.broadcast %1341 : f32 to vector<8x32xf32>
    %1343 = arith.mulf %1047, %1342 : vector<8x32xf32>
    %1344 = arith.addf %1340, %1343 : vector<8x32xf32>
    %c4_839 = arith.constant 4 : index
    %c5_840 = arith.constant 5 : index
    %1345 = memref.load %arg6[%c4_839, %c5_840] : memref<8x8xf32, #tpu.memory_space<smem>>
    %1346 = vector.broadcast %1345 : f32 to vector<8x32xf32>
    %1347 = arith.mulf %1070, %1346 : vector<8x32xf32>
    %1348 = arith.addf %1344, %1347 : vector<8x32xf32>
    %c5_841 = arith.constant 5 : index
    %c5_842 = arith.constant 5 : index
    %1349 = memref.load %arg6[%c5_841, %c5_842] : memref<8x8xf32, #tpu.memory_space<smem>>
    %1350 = vector.broadcast %1349 : f32 to vector<8x32xf32>
    %1351 = arith.mulf %1093, %1350 : vector<8x32xf32>
    %1352 = arith.addf %1348, %1351 : vector<8x32xf32>
    %c6_843 = arith.constant 6 : index
    %c5_844 = arith.constant 5 : index
    %1353 = memref.load %arg6[%c6_843, %c5_844] : memref<8x8xf32, #tpu.memory_space<smem>>
    %1354 = vector.broadcast %1353 : f32 to vector<8x32xf32>
    %1355 = arith.mulf %1116, %1354 : vector<8x32xf32>
    %1356 = arith.addf %1352, %1355 : vector<8x32xf32>
    %c7_845 = arith.constant 7 : index
    %c5_846 = arith.constant 5 : index
    %1357 = memref.load %arg6[%c7_845, %c5_846] : memref<8x8xf32, #tpu.memory_space<smem>>
    %1358 = vector.broadcast %1357 : f32 to vector<8x32xf32>
    %1359 = arith.mulf %1139, %1358 : vector<8x32xf32>
    %1360 = arith.addf %1356, %1359 : vector<8x32xf32>
    %c5_847 = arith.constant 5 : index
    %1361 = memref.load %arg7[%c5_847] : memref<8xf32, #tpu.memory_space<smem>>
    %1362 = vector.broadcast %1361 : f32 to vector<8x32xf32>
    %1363 = arith.addf %1360, %1362 : vector<8x32xf32>
    %1364 = math.tanh %1363 : vector<8x32xf32>
    %c5_848 = arith.constant 5 : index
    %c0_849 = arith.constant 0 : index
    %c0_850 = arith.constant 0 : index
    %1365 = vector.load %arg35[%c5_848, %c0_849, %c0_850] : memref<8x8x32xf32, #tpu.memory_space<vmem>>, vector<1x8x32xf32>
    %1366 = vector.shape_cast %1365 : vector<1x8x32xf32> to vector<8x32xf32>
    %1367 = vector.shape_cast %1364 : vector<8x32xf32> to vector<1x8x32xf32>
    tpu.vector_store %arg35[%c5_848, %c0_849, %c0_850], %1367 {strides = array<i32>} : memref<8x8x32xf32, #tpu.memory_space<vmem>>, vector<1x8x32xf32>,
    %c0_851 = arith.constant 0 : index
    %c6_852 = arith.constant 6 : index
    %1368 = memref.load %arg6[%c0_851, %c6_852] : memref<8x8xf32, #tpu.memory_space<smem>>
    %1369 = vector.broadcast %1368 : f32 to vector<8x32xf32>
    %1370 = arith.mulf %978, %1369 : vector<8x32xf32>
    %c1_853 = arith.constant 1 : index
    %c6_854 = arith.constant 6 : index
    %1371 = memref.load %arg6[%c1_853, %c6_854] : memref<8x8xf32, #tpu.memory_space<smem>>
    %1372 = vector.broadcast %1371 : f32 to vector<8x32xf32>
    %1373 = arith.mulf %1001, %1372 : vector<8x32xf32>
    %1374 = arith.addf %1370, %1373 : vector<8x32xf32>
    %c2_855 = arith.constant 2 : index
    %c6_856 = arith.constant 6 : index
    %1375 = memref.load %arg6[%c2_855, %c6_856] : memref<8x8xf32, #tpu.memory_space<smem>>
    %1376 = vector.broadcast %1375 : f32 to vector<8x32xf32>
    %1377 = arith.mulf %1024, %1376 : vector<8x32xf32>
    %1378 = arith.addf %1374, %1377 : vector<8x32xf32>
    %c3_857 = arith.constant 3 : index
    %c6_858 = arith.constant 6 : index
    %1379 = memref.load %arg6[%c3_857, %c6_858] : memref<8x8xf32, #tpu.memory_space<smem>>
    %1380 = vector.broadcast %1379 : f32 to vector<8x32xf32>
    %1381 = arith.mulf %1047, %1380 : vector<8x32xf32>
    %1382 = arith.addf %1378, %1381 : vector<8x32xf32>
    %c4_859 = arith.constant 4 : index
    %c6_860 = arith.constant 6 : index
    %1383 = memref.load %arg6[%c4_859, %c6_860] : memref<8x8xf32, #tpu.memory_space<smem>>
    %1384 = vector.broadcast %1383 : f32 to vector<8x32xf32>
    %1385 = arith.mulf %1070, %1384 : vector<8x32xf32>
    %1386 = arith.addf %1382, %1385 : vector<8x32xf32>
    %c5_861 = arith.constant 5 : index
    %c6_862 = arith.constant 6 : index
    %1387 = memref.load %arg6[%c5_861, %c6_862] : memref<8x8xf32, #tpu.memory_space<smem>>
    %1388 = vector.broadcast %1387 : f32 to vector<8x32xf32>
    %1389 = arith.mulf %1093, %1388 : vector<8x32xf32>
    %1390 = arith.addf %1386, %1389 : vector<8x32xf32>
    %c6_863 = arith.constant 6 : index
    %c6_864 = arith.constant 6 : index
    %1391 = memref.load %arg6[%c6_863, %c6_864] : memref<8x8xf32, #tpu.memory_space<smem>>
    %1392 = vector.broadcast %1391 : f32 to vector<8x32xf32>
    %1393 = arith.mulf %1116, %1392 : vector<8x32xf32>
    %1394 = arith.addf %1390, %1393 : vector<8x32xf32>
    %c7_865 = arith.constant 7 : index
    %c6_866 = arith.constant 6 : index
    %1395 = memref.load %arg6[%c7_865, %c6_866] : memref<8x8xf32, #tpu.memory_space<smem>>
    %1396 = vector.broadcast %1395 : f32 to vector<8x32xf32>
    %1397 = arith.mulf %1139, %1396 : vector<8x32xf32>
    %1398 = arith.addf %1394, %1397 : vector<8x32xf32>
    %c6_867 = arith.constant 6 : index
    %1399 = memref.load %arg7[%c6_867] : memref<8xf32, #tpu.memory_space<smem>>
    %1400 = vector.broadcast %1399 : f32 to vector<8x32xf32>
    %1401 = arith.addf %1398, %1400 : vector<8x32xf32>
    %1402 = math.tanh %1401 : vector<8x32xf32>
    %c6_868 = arith.constant 6 : index
    %c0_869 = arith.constant 0 : index
    %c0_870 = arith.constant 0 : index
    %1403 = vector.load %arg35[%c6_868, %c0_869, %c0_870] : memref<8x8x32xf32, #tpu.memory_space<vmem>>, vector<1x8x32xf32>
    %1404 = vector.shape_cast %1403 : vector<1x8x32xf32> to vector<8x32xf32>
    %1405 = vector.shape_cast %1402 : vector<8x32xf32> to vector<1x8x32xf32>
    tpu.vector_store %arg35[%c6_868, %c0_869, %c0_870], %1405 {strides = array<i32>} : memref<8x8x32xf32, #tpu.memory_space<vmem>>, vector<1x8x32xf32>,
    %c0_871 = arith.constant 0 : index
    %c7_872 = arith.constant 7 : index
    %1406 = memref.load %arg6[%c0_871, %c7_872] : memref<8x8xf32, #tpu.memory_space<smem>>
    %1407 = vector.broadcast %1406 : f32 to vector<8x32xf32>
    %1408 = arith.mulf %978, %1407 : vector<8x32xf32>
    %c1_873 = arith.constant 1 : index
    %c7_874 = arith.constant 7 : index
    %1409 = memref.load %arg6[%c1_873, %c7_874] : memref<8x8xf32, #tpu.memory_space<smem>>
    %1410 = vector.broadcast %1409 : f32 to vector<8x32xf32>
    %1411 = arith.mulf %1001, %1410 : vector<8x32xf32>
    %1412 = arith.addf %1408, %1411 : vector<8x32xf32>
    %c2_875 = arith.constant 2 : index
    %c7_876 = arith.constant 7 : index
    %1413 = memref.load %arg6[%c2_875, %c7_876] : memref<8x8xf32, #tpu.memory_space<smem>>
    %1414 = vector.broadcast %1413 : f32 to vector<8x32xf32>
    %1415 = arith.mulf %1024, %1414 : vector<8x32xf32>
    %1416 = arith.addf %1412, %1415 : vector<8x32xf32>
    %c3_877 = arith.constant 3 : index
    %c7_878 = arith.constant 7 : index
    %1417 = memref.load %arg6[%c3_877, %c7_878] : memref<8x8xf32, #tpu.memory_space<smem>>
    %1418 = vector.broadcast %1417 : f32 to vector<8x32xf32>
    %1419 = arith.mulf %1047, %1418 : vector<8x32xf32>
    %1420 = arith.addf %1416, %1419 : vector<8x32xf32>
    %c4_879 = arith.constant 4 : index
    %c7_880 = arith.constant 7 : index
    %1421 = memref.load %arg6[%c4_879, %c7_880] : memref<8x8xf32, #tpu.memory_space<smem>>
    %1422 = vector.broadcast %1421 : f32 to vector<8x32xf32>
    %1423 = arith.mulf %1070, %1422 : vector<8x32xf32>
    %1424 = arith.addf %1420, %1423 : vector<8x32xf32>
    %c5_881 = arith.constant 5 : index
    %c7_882 = arith.constant 7 : index
    %1425 = memref.load %arg6[%c5_881, %c7_882] : memref<8x8xf32, #tpu.memory_space<smem>>
    %1426 = vector.broadcast %1425 : f32 to vector<8x32xf32>
    %1427 = arith.mulf %1093, %1426 : vector<8x32xf32>
    %1428 = arith.addf %1424, %1427 : vector<8x32xf32>
    %c6_883 = arith.constant 6 : index
    %c7_884 = arith.constant 7 : index
    %1429 = memref.load %arg6[%c6_883, %c7_884] : memref<8x8xf32, #tpu.memory_space<smem>>
    %1430 = vector.broadcast %1429 : f32 to vector<8x32xf32>
    %1431 = arith.mulf %1116, %1430 : vector<8x32xf32>
    %1432 = arith.addf %1428, %1431 : vector<8x32xf32>
    %c7_885 = arith.constant 7 : index
    %c7_886 = arith.constant 7 : index
    %1433 = memref.load %arg6[%c7_885, %c7_886] : memref<8x8xf32, #tpu.memory_space<smem>>
    %1434 = vector.broadcast %1433 : f32 to vector<8x32xf32>
    %1435 = arith.mulf %1139, %1434 : vector<8x32xf32>
    %1436 = arith.addf %1432, %1435 : vector<8x32xf32>
    %c7_887 = arith.constant 7 : index
    %1437 = memref.load %arg7[%c7_887] : memref<8xf32, #tpu.memory_space<smem>>
    %1438 = vector.broadcast %1437 : f32 to vector<8x32xf32>
    %1439 = arith.addf %1436, %1438 : vector<8x32xf32>
    %1440 = math.tanh %1439 : vector<8x32xf32>
    %c7_888 = arith.constant 7 : index
    %c0_889 = arith.constant 0 : index
    %c0_890 = arith.constant 0 : index
    %1441 = vector.load %arg35[%c7_888, %c0_889, %c0_890] : memref<8x8x32xf32, #tpu.memory_space<vmem>>, vector<1x8x32xf32>
    %1442 = vector.shape_cast %1441 : vector<1x8x32xf32> to vector<8x32xf32>
    %1443 = vector.shape_cast %1440 : vector<8x32xf32> to vector<1x8x32xf32>
    tpu.vector_store %arg35[%c7_888, %c0_889, %c0_890], %1443 {strides = array<i32>} : memref<8x8x32xf32, #tpu.memory_space<vmem>>, vector<1x8x32xf32>,
    return
  }
}

</mosaic_0001>

<bundles_post_ra>
// kernel: forward.1
= control target key start
LH: loop header
LB: loop body
LE: loop exit
PB: predicated region body
PF: predicated region fallthrough
CT: control target
= control target key end

     0   :  { %s7387_s6 = smov 1   ;;  %s7388_s10 = smov 2   ;;  %s9018_s0 = inlined_call_operand.smem [shape: u32[39], index: -1, kind: input, shape index: {}] }
   0x1   :  { %s7450_s5 = sld [smem:[%s9018_s0]]   ;;  %s7389_s14 = smov 3  }
   0x2   :  { %s7455_s9 = sld [smem:[%s9018_s0 + %s7387_s6]]   ;;  %s7390_s18 = smov 4  }
   0x3   :  { %s7460_s13 = sld [smem:[%s9018_s0 + %s7388_s10]]   ;;  %s7391_s22 = smov 5  }
   0x4   :  { %s7465_s17 = sld [smem:[%s9018_s0 + %s7389_s14]]   ;;  %s7392_s26 = smov 6  }
   0x5   :  { %s7470_s21 = sld [smem:[%s9018_s0 + %s7390_s18]]   ;;  %s7393_s30 = smov 7  }
   0x6   :  { %s7475_s25 = sld [smem:[%s9018_s0 + %s7391_s22]]   ;;  %s7394_s4 = smov 8  }
   0x7   :  { %s7480_s29 = sld [smem:[%s9018_s0 + %s7392_s26]]   ;;  %s7395_s10 = smov 9  }
   0x8   :  { %s7485_s3 = sld [smem:[%s9018_s0 + %s7393_s30]]   ;;  %s7396_s15 = smov 10  }
   0x9   :  { %s7490_s8 = sld [smem:[%s9018_s0 + %s7394_s4]]   ;;  %s7397_s20 = smov 11  }
   0xa   :  { %s7495_s14 = sld [smem:[%s9018_s0 + %s7395_s10]]   ;;  %s7398_s26 = smov 12  }
   0xb   :  { %s7500_s19 = sld [smem:[%s9018_s0 + %s7396_s15]]   ;;  %s7399_s1 = smov 13  }
   0xc   :  { %s7505_s24 = sld [smem:[%s9018_s0 + %s7397_s20]]   ;;  %s7400_s7 = smov 14  }
   0xd   :  { %s7510_s30 = sld [smem:[%s9018_s0 + %s7398_s26]]   ;;  %s7401_s15 = smov 15  }
   0xe   :  { %s7515_s6 = sld [smem:[%s9018_s0 + %s7399_s1]]   ;;  %s7402_s22 = smov 16  }
   0xf   :  { %s7520_s12 = sld [smem:[%s9018_s0 + %s7400_s7]]   ;;  %s7403_s28 = smov 17  }
  0x10   :  { %9148 = sst [smem:[#allocation27_spill]] %s7495_s14  ;;  %s7404_s7 = smov 18  }
  0x11   :  { %s7525_s20 = sld [smem:[%s9018_s0 + %s7401_s15]]   ;;  %s7405_s15 = smov 19  }
  0x12   :  { %9149 = sst [smem:[#allocation28_spill]] %s7505_s24 }
  0x13   :  { %9150 = sst [smem:[#allocation29_spill]] %s7510_s30 }
  0x14   :  { %s7530_s27 = sld [smem:[%s9018_s0 + %s7402_s22]]   ;;  %s7406_s22 = smov 20  }
  0x15   :  { %s7535_s4 = sld [smem:[%s9018_s0 + %s7403_s28]]   ;;  %s7407_s28 = smov 21  }
  0x16   :  { %s7540_s14 = sld [smem:[%s9018_s0 + %s7404_s7]]   ;;  %s7408_s7 = smov 22  }
  0x17   :  { %9151 = sst [smem:[#allocation30_spill]] %s7525_s20 }
  0x18   :  { %s7545_s20 = sld [smem:[%s9018_s0 + %s7405_s15]]   ;;  %s7409_s15 = smov 23  }
  0x1a   :  { %9152 = sst [smem:[#allocation31_spill]] %s7530_s27 }
  0x1b   :  { %9153 = sst [smem:[#allocation32_spill]] %s7535_s4 }
  0x1c   :  { %9154 = sst [smem:[#allocation33_spill]] %s7540_s14 }
  0x1d   :  { %s7550_s27 = sld [smem:[%s9018_s0 + %s7406_s22]]   ;;  %s7410_s22 = smov 24  }
  0x1e   :  { %9155 = sst [smem:[#allocation34_spill]] %s7545_s20 }
  0x1f   :  { %s7555_s4 = sld [smem:[%s9018_s0 + %s7407_s28]]   ;;  %s7411_s28 = smov 25  }
  0x20   :  { %s7560_s14 = sld [smem:[%s9018_s0 + %s7408_s7]]   ;;  %s7412_s7 = smov 26  }
  0x21   :  { %s7565_s20 = sld [smem:[%s9018_s0 + %s7409_s15]]   ;;  %s7413_s15 = smov 27  }
  0x23   :  { %9156 = sst [smem:[#allocation35_spill]] %s7550_s27 }
  0x24   :  { %s7570_s27 = sld [smem:[%s9018_s0 + %s7410_s22]]   ;;  %s7414_s22 = smov 28  }
  0x25   :  { %9157 = sst [smem:[#allocation36_spill]] %s7555_s4 }
  0x26   :  { %9158 = sst [smem:[#allocation37_spill]] %s7560_s14 }
  0x27   :  { %9159 = sst [smem:[#allocation38_spill]] %s7565_s20 }
  0x28   :  { %s7575_s4 = sld [smem:[%s9018_s0 + %s7411_s28]]   ;;  %s7415_s28 = smov 29  }
  0x29   :  { %s7580_s14 = sld [smem:[%s9018_s0 + %s7412_s7]]   ;;  %s7416_s7 = smov 30  }
  0x2a   :  { %9160 = sst [smem:[#allocation39_spill]] %s7570_s27 }
  0x2b   :  { %s7585_s20 = sld [smem:[%s9018_s0 + %s7413_s15]]   ;;  %s7417_s15 = smov 31  }
  0x2c   :  { %s7590_s27 = sld [smem:[%s9018_s0 + %s7414_s22]]   ;;  %s7418_s22 = smov 32  }
  0x2e   :  { %9161 = sst [smem:[#allocation40_spill]] %s7575_s4 }
  0x2f   :  { %9162 = sst [smem:[#allocation41_spill]] %s7580_s14 }
  0x30   :  { %s7595_s4 = sld [smem:[%s9018_s0 + %s7415_s28]]   ;;  %s7419_s28 = smov 33  }
  0x31   :  { %9163 = sst [smem:[#allocation42_spill]] %s7585_s20 }
  0x32   :  { %9164 = sst [smem:[#allocation43_spill]] %s7590_s27 }
  0x33   :  { %s7600_s14 = sld [smem:[%s9018_s0 + %s7416_s7]]   ;;  %s7420_s7 = smov 34  }
  0x34   :  { %s7605_s20 = sld [smem:[%s9018_s0 + %s7417_s15]]   ;;  %s7421_s15 = smov 35  }
  0x35   :  { %s7610_s27 = sld [smem:[%s9018_s0 + %s7418_s22]]   ;;  %s7422_s22 = smov 36  }
  0x36   :  { %9165 = sst [smem:[#allocation44_spill]] %s7595_s4 }
  0x37   :  { %s7615_s4 = sld [smem:[%s9018_s0 + %s7419_s28]]   ;;  %s7423_s28 = smov 37  }
  0x39   :  { %9166 = sst [smem:[#allocation45_spill]] %s7600_s14 }
  0x3a   :  { %9167 = sst [smem:[#allocation46_spill]] %s7605_s20 }
  0x3b   :  { %9168 = sst [smem:[#allocation47_spill]] %s7610_s27 }
  0x3c   :  { %s7620_s14 = sld [smem:[%s9018_s0 + %s7420_s7]]   ;;  %s7424_s7 = smov 38  }
  0x3d   :  { %9169 = sst [smem:[#allocation48_spill]] %s7615_s4 }
  0x3e   :  { %s7625_s20 = sld [smem:[%s9018_s0 + %s7421_s15]]  }
  0x3f   :  { %s7630_s27 = sld [smem:[%s9018_s0 + %s7422_s22]]  }
  0x40   :  { %s7635_s4 = sld [smem:[%s9018_s0 + %s7423_s28]]  }
  0x42   :  { %9170 = sst [smem:[#allocation49_spill]] %s7620_s14 }
  0x43   :  { %s7640_s14 = sld [smem:[%s9018_s0 + %s7424_s7]]  }
  0x44   :  { %9171 = sst [smem:[#allocation50_spill]] %s7625_s20 }
  0x45   :  { %9172 = sst [smem:[#allocation51_spill]] %s7630_s27 }
  0x46   :  { %9173 = sst [smem:[#allocation52_spill]] %s7635_s4 }
  0x49   :  { %9174 = sst [smem:[#allocation53_spill]] %s7640_s14 }
  0x4a   :  { %83 = vsyncpa [#allocation4], 0 }
  0x4b   :  { %84 = vsyncpa [#allocation6], 0 }
  0x4c   :  { %85 = vsyncpa [#allocation9], 0 }
  0x4d   :  { %86 = vsyncpa [#allocation12], 0 }
  0x4e   :  { %87 = vsyncpa [#allocation15], 0 }
  0x4f   :  { %88 = vsyncpa [#allocation3], 0  ;;  %s106_s15 = sshll.u32 %s7455_s9, 4  ;;  %s107_s15 = int_to_ptr.vmem [resolvable:$true] %s106_s15 }
  0x50   :  { %89 = vsyncpa [#allocation18], 0  ;;  %s126_s16 = sshll.u32 %s7465_s17, 4  ;;  %s7211_s18 = scalar_lea.vmem %s107_s15, 16  ;;  %s127_s16 = int_to_ptr.vmem [resolvable:$true] %s126_s16 }
  0x51   :  { %p7212_p0 = scmp.ne.s32.totalorder %s107_s15, %s7211_s18  ;;  %p7216_p1 = scmp.lt.s32.totalorder %s107_s15, %s107_s15 }
  0x52   :  { %p7217_p2 = scmp.lt.s32.totalorder %s7211_s18, %s7211_s18 }
  0x54   :  { %p7218_p3 = por %p7217_p2, %p7216_p1 }
  0x56   :  { %p7219_p4 = pnand %p7218_p3, %p7212_p0 }
  0x58   :  { %7222 = shalt.err (!%p7219_p4)
}
  0x59   :  { %s7425_s0 = smov [#allocation5]   ;;  %s7223_s22 = scalar_lea.vmem %s127_s16, 16 }
  0x5a   :  { %109 = dma.vmem_to_smem %s107_s15, 16, %s7425_s0, [#allocation6]  }
  0x5b   :  { %p7224_p5 = scmp.ne.s32.totalorder %s127_s16, %s7223_s22  ;;  %p7228_p6 = scmp.lt.s32.totalorder %s127_s16, %s127_s16 }
  0x5c   :  { %p7229_p7 = scmp.lt.s32.totalorder %s7223_s22, %s7223_s22 }
  0x5e   :  { %p7230_p8 = por %p7229_p7, %p7228_p6 }
  0x60   :  { %p7231_p9 = pnand %p7230_p8, %p7224_p5 }
  0x62   :  { %7234 = shalt.err (!%p7231_p9)
}
  0x63   :  { %s7426_s9 = smov [#allocation8]   ;;  %s146_s17 = sshll.u32 %s7475_s25, 4  ;;  %s147_s17 = int_to_ptr.vmem [resolvable:$true] %s146_s17 }
  0x64   :  { %129 = dma.vmem_to_smem %s127_s16, 16, %s7426_s9, [#allocation9]  }
  0x65   :  { %s96_s23 = sshll.u32 %s7450_s5, 4  ;;  %s7235_s26 = scalar_lea.vmem %s147_s17, 16  ;;  %s97_s23 = int_to_ptr.vmem [resolvable:$true] %s96_s23 }
  0x66   :  { %p7236_p10 = scmp.ne.s32.totalorder %s147_s17, %s7235_s26  ;;  %p7240_p11 = scmp.lt.s32.totalorder %s147_s17, %s147_s17 }
  0x67   :  { %p7241_p12 = scmp.lt.s32.totalorder %s7235_s26, %s7235_s26 }
  0x69   :  { %p7242_p13 = por %p7241_p12, %p7240_p11 }
  0x6b   :  { %p7243_p0 = pnand %p7242_p13, %p7236_p10 }
  0x6d   :  { %7246 = shalt.err (!%p7243_p0)
}
  0x6e   :  { %s7427_s28 = smov [#allocation11]   ;;  %s7247_s1 = scalar_lea.vmem %s97_s23, 128 }
  0x6f   :  { %149 = dma.vmem_to_smem %s147_s17, 16, %s7427_s28, [#allocation12]  }
  0x70   :  { %p7248_p1 = scmp.ne.s32.totalorder %s97_s23, %s7247_s1  ;;  %p7252_p2 = scmp.lt.s32.totalorder %s97_s23, %s97_s23 }
  0x71   :  { %p7253_p3 = scmp.lt.s32.totalorder %s7247_s1, %s7247_s1 }
  0x73   :  { %p7254_p4 = por %p7253_p3, %p7252_p2 }
  0x75   :  { %p7255_p5 = pnand %p7254_p4, %p7248_p1 }
  0x77   :  { %7258 = shalt.err (!%p7255_p5)
}
  0x78   :  { %s7428_s25 = smov [#allocation2]   ;;  %s116_s5 = sshll.u32 %s7460_s13, 4  ;;  %s117_s5 = int_to_ptr.vmem [resolvable:$true] %s116_s5 }
  0x79   :  { %99 = dma.vmem_to_smem %s97_s23, 128, %s7428_s25, [#allocation4]  }
  0x7a   :  { %s136_s2 = sshll.u32 %s7470_s21, 4  ;;  %s7259_s7 = scalar_lea.vmem %s117_s5, 64  ;;  %s137_s2 = int_to_ptr.vmem [resolvable:$true] %s136_s2 }
  0x7b   :  { %p7260_p6 = scmp.ne.s32.totalorder %s117_s5, %s7259_s7  ;;  %p7264_p7 = scmp.lt.s32.totalorder %s117_s5, %s117_s5 }
  0x7c   :  { %p7265_p8 = scmp.lt.s32.totalorder %s7259_s7, %s7259_s7 }
  0x7e   :  { %p7266_p9 = por %p7265_p8, %p7264_p7 }
  0x80   :  { %p7267_p10 = pnand %p7266_p9, %p7260_p6 }
  0x82   :  { %7270 = shalt.err (!%p7267_p10)
}
  0x83   :  { %s7429_s10 = smov [#allocation7]   ;;  %s7271_s11 = scalar_lea.vmem %s137_s2, 64 }
  0x84   :  { %119 = dma.vmem_to_smem %s117_s5, 64, %s7429_s10, [#allocation6]  }
  0x85   :  { %p7272_p11 = scmp.ne.s32.totalorder %s137_s2, %s7271_s11  ;;  %p7276_p12 = scmp.lt.s32.totalorder %s137_s2, %s137_s2 }
  0x86   :  { %p7277_p13 = scmp.lt.s32.totalorder %s7271_s11, %s7271_s11 }
  0x88   :  { %p7278_p0 = por %p7277_p13, %p7276_p12 }
  0x8a   :  { %p7279_p1 = pnand %p7278_p0, %p7272_p11 }
  0x8c   :  { %7282 = shalt.err (!%p7279_p1)
}
  0x8d   :  { %s7430_s13 = smov [#allocation10]   ;;  %s156_s21 = sshll.u32 %s7480_s29, 4  ;;  %s157_s21 = int_to_ptr.vmem [resolvable:$true] %s156_s21 }
  0x8e   :  { %139 = dma.vmem_to_smem %s137_s2, 64, %s7430_s13, [#allocation9]  }
  0x8f   :  { %s166_s15 = sshll.u32 %s7485_s3, 4  ;;  %s7283_s16 = scalar_lea.vmem %s157_s21, 128  ;;  %s167_s15 = int_to_ptr.vmem [resolvable:$true] %s166_s15 }
  0x90   :  { %p7284_p2 = scmp.ne.s32.totalorder %s157_s21, %s7283_s16  ;;  %p7288_p3 = scmp.lt.s32.totalorder %s157_s21, %s157_s21 }
  0x91   :  { %p7289_p4 = scmp.lt.s32.totalorder %s7283_s16, %s7283_s16 }
  0x93   :  { %p7290_p5 = por %p7289_p4, %p7288_p3 }
  0x95   :  { %p7291_p6 = pnand %p7290_p5, %p7284_p2 }
  0x97   :  { %7294 = shalt.err (!%p7291_p6)
}
  0x98   :  { %s7431_s18 = smov [#allocation13]   ;;  %s7295_s0 = scalar_lea.vmem %s167_s15, 16 }
  0x99   :  { %159 = dma.vmem_to_smem %s157_s21, 128, %s7431_s18, [#allocation12]  }
  0x9a   :  { %p7296_p7 = scmp.ne.s32.totalorder %s167_s15, %s7295_s0  ;;  %p7300_p8 = scmp.lt.s32.totalorder %s167_s15, %s167_s15 }
  0x9b   :  { %p7301_p9 = scmp.lt.s32.totalorder %s7295_s0, %s7295_s0 }
  0x9d   :  { %p7302_p10 = por %p7301_p9, %p7300_p8 }
  0x9f   :  { %p7303_p11 = pnand %p7302_p10, %p7296_p7 }
  0xa1   :  { %7306 = shalt.err (!%p7303_p11)
}
  0xa2   :  { %s7432_s29 = smov [#allocation14]  }
  0xa3   :  { %169 = dma.vmem_to_smem %s167_s15, 16, %s7432_s29, [#allocation15]  }
  0xa4   :  { %7373 = dma.done.wait [#allocation4], 128  }
  0xa5   :  { %7374 = vsyncadd [#allocation4], 4294967168 }
  0xa6   :  { %7375 = dma.done.wait [#allocation6], 80  }
  0xa7   :  { %7376 = vsyncadd [#allocation6], 4294967216 }
  0xa8   :  { %7377 = dma.done.wait [#allocation9], 80  }
  0xa9   :  { %7378 = vsyncadd [#allocation9], 4294967216 }
  0xaa   :  { %7379 = dma.done.wait [#allocation12], 144  }
  0xab   :  { %7380 = vsyncadd [#allocation12], 4294967152 }
  0xac   :  { %7381 = dma.done.wait [#allocation15], 16  }
  0xad   :  { %7382 = vsyncadd [#allocation15], 4294967280 }
  0xae   :  { %248 = sfence }
  0xaf   :  { %v301_v0 = vld [vmem:[%s7500_s19] sm:$0xff]  ;;  %v302_v1 = vld [vmem:[%s7500_s19 + $0x8] sm:$0xff]  ;;  %v303_v2 = vld [vmem:[%s7500_s19 + $0x10] sm:$0xff]  ;;  %v7433_v3 = vmov 0.0|0.0   ;;  %vm7434_vm0 = vmmov 0   ;;  %v7435_v6 = vmov 0.0  }
  0xb0   :  { %6884 = vmatprep.subr.bf16.mxu0 %v7433_v3  ;;  %v6885_v4 = vpack.c.bf16 %v302_v1, %v301_v0  ;;  %v304_v5 = vld [vmem:[%s7500_s19 + $0x18] sm:$0xff]  ;;  %6448 = vmatprep.mubr.msk.f32.mxu0 %vm7434_vm0, %v7435_v6  ;;  %s264_s3 = sld [smem:[#allocation2]]  ;;  %v7662_v8 = vld [vmem:[%s7490_s8] sm:$0xff]  ;;  %v7665_v9 = vld [vmem:[%s7490_s8 + $0x8] sm:$0xff]  ;;  %vm312_vm2 = vcmask 261120   ;;  %vm403_vm3 = vcmask 1044480  }
  0xb1   :  { %s5782_s22 = sld [smem:[#allocation2 + $0x80]]  ;;  %6890 = vmatprep.subr.bf16.mxu1 %v7433_v3  ;;  %6457 = vmatprep.mubr.msk.f32.mxu1 %vm7434_vm0, %v7435_v6  ;;  %v6888_v7 = vpack.c.bf16 %v304_v5, %v303_v2  ;;  %v7668_v10 = vld [vmem:[%s7490_s8 + $0x10] sm:$0xff]  ;;  %v7671_v12 = vld [vmem:[%s7490_s8 + $0x18] sm:$0xff]  ;;  %v7677_v17 = vld [vmem:[%s7490_s8 + $0x20] sm:$0xff]  ;;  %vm399_vm5 = vcmask 171008   ;;  %vm493_vm6 = vcmask 1046528  }
  0xb2   :  { %6886 = vmatpush3.bf16.msra.mxu0 %v6885_v4  ;;  %s5783_s9 = sld [smem:[#allocation2 + $0x100]]  ;;  %v7682_v23 = vld [vmem:[%s7490_s8 + $0x28] sm:$0xff]  ;;  %v7686_v27 = vld [vmem:[%s7490_s8 + $0x30] sm:$0xff]  ;;  %v7690_v31 = vld [vmem:[%s7490_s8 + $0x38] sm:$0xff]  ;;  %s9175_s5 = sld [smem:[#allocation31_spill]]  ;;  %vm7436_vm7 = vmmov 1  }
  0xb3   :  { %6887 = vmatprep.subr.bf16.mxu0 %v7433_v3  ;;  %s5784_s17 = sld [smem:[#allocation2 + $0x180]]  ;;  %v389_v43 = vld [vmem:[%s7510_s30] sm:$0xff]  ;;  %v390_v44 = vld [vmem:[%s7510_s30 + $0x8] sm:$0xff]  ;;  %v391_v46 = vld [vmem:[%s7510_s30 + $0x10] sm:$0x1f]  ;;  %s9176_s2 = sld [smem:[#allocation33_spill]] }
  0xb4   :  { %s5785_s23 = sld [smem:[#allocation2 + $0x200]]  ;;  %v6891_v45 = vpack.c.bf16 %v390_v44, %v389_v43  ;;  %v5789_v47 = vld [vmem:[%s7505_s24] ss:$0 sm:$0xff]  ;;  %v481_v54 = vld [vmem:[%s7520_s12 + $0x8] sm:$0x7f]  ;;  %vm7711_vm8 = vmpackc.low %vm493_vm6, %vm7436_vm7  ;;  %vm489_vm10 = vcmask 121856  }
  0xb5   :  { %s5786_s26 = sld [smem:[#allocation2 + $0x280]]  ;;  %v480_v53 = vld [vmem:[%s7520_s12] sm:$0xff]  ;;  %s9180_s10 = sld [smem:[#allocation35_spill]]  ;;  %vm856_vm12 = vcmask 1041408   ;;  %vm834_vm14 = vcmask 80896  }
  0xb6   :  { %s5787_s28 = sld [smem:[#allocation2 + $0x300]]  ;;  %6889 = vmatpush3.bf16.msra.mxu0 %v6888_v7  ;;  %v265_v11 = vstv %s264_s3  ;;  %6892 = vmatpush3.bf16.msra.mxu1 %v6891_v45  ;;  %v6894_v55 = vpack.c.bf16 %v481_v54, %v480_v53  ;;  %v5791_v57 = vld [vmem:[%s7515_s6] ss:$0 sm:$0xff]  ;;  %s9182_s13 = sld [smem:[#allocation32_spill]]  ;;  %vm7750_vm13 = vmpackc.low %vm856_vm12, %vm7436_vm7  ;;  %vm1031_vm7 = vcmask 1043456  }
  0xb7   :  { %v266_v13 = vmul.f32 %v265_v11, %v7662_v8  ;;  %v268_v14 = vstv %s5782_s22  ;;  %s5788_s1 = sld [smem:[#allocation2 + $0x380]]  ;;  %6897 = vmatprep.subr.bf16.mxu0 %v7433_v3  ;;  %6455 = vmatprep.subr.mxu1 %v7435_v6  ;;  %s9183_s21 = sld [smem:[#allocation34_spill]] }
  0xb8   :  { %v269_v15 = vmul.f32 %v7665_v9, %v268_v14  ;;  %v272_v16 = vstv %s5783_s9  ;;  %s295_s25 = sld [smem:[#allocation5]]  ;;  %v570_v63 = vld [vmem:[%s9175_s5] sm:$0xff]  ;;  %v571_v0 = vld [vmem:[%s9175_s5 + $0x8] sm:$0x7f]  ;;  %s9184_s15 = sld [smem:[#allocation36_spill]] }
  0xb9   :  { %v273_v18 = vmul.f32 %v7668_v10, %v272_v16  ;;  %v276_v19 = vstv %s5784_s17  ;;  %s9179_s7 = sld [smem:[#allocation30_spill]]  ;;  %v658_v1 = vld [vmem:[%s9176_s2] sm:$0xff]  ;;  %v6898_v2 = vpack.c.bf16 %v571_v0, %v570_v63  ;;  %v659_v4 = vld [vmem:[%s9176_s2 + $0x8] sm:$0x7f]  ;;  %s9187_s16 = sld [smem:[#allocation27_spill]] }
  0xba   :  { %v280_v20 = vstv %s5785_s23  ;;  %v270_v21 = vadd.f32 %v269_v15, %v266_v13  ;;  %v277_v22 = vmul.f32 %v7671_v12, %v276_v19  ;;  %6456 = vmatpush3.msk.msra.mxu1 %vm403_vm3, %v391_v46  ;;  %v6902_v5 = vpack.c.bf16 %v659_v4, %v658_v1  ;;  %s9181_s11 = sld [smem:[#allocation38_spill]]  ;;  %s9188_s18 = sld [smem:[#allocation37_spill]] }
  0xbb   :  { %v284_v24 = vstv %s5786_s26  ;;  %v281_v26 = vmul.f32 %v7677_v17, %v280_v20  ;;  %6893 = vmatprep.subr.bf16.mxu1 %v7433_v3  ;;  %v743_v13 = vld [vmem:[%s9180_s10] sm:$0xff]  ;;  %v744_v14 = vld [vmem:[%s9180_s10 + $0x8] sm:$0x7f]  ;;  %s9189_s0 = sld [smem:[#allocation40_spill]]  ;;  %s9190_s29 = sld [smem:[#allocation39_spill]] }
  0xbc   :  { %v274_v25 = vadd.f32 %v273_v18, %v270_v21  ;;  %v288_v28 = vstv %s5787_s28  ;;  %v285_v30 = vmul.f32 %v7682_v23, %v284_v24  ;;  %v6906_v19 = vpack.c.bf16 %v744_v14, %v743_v13  ;;  %s9191_s3 = sld [smem:[#allocation42_spill]]  ;;  %s9192_s22 = sld [smem:[#allocation41_spill]]  ;;  %v6048_v56 = vld [vmem:[%s9182_s13 + $0x3] ss:$0 sm:$0xff] }
  0xbd   :  { %v292_v32 = vstv %s5788_s1  ;;  %v289_v34 = vmul.f32 %v7686_v27, %v288_v28  ;;  %v5800_v28 = vld [vmem:[%s9183_s21] ss:$0 sm:$0xff]  ;;  %s9193_s9 = sld [smem:[#allocation44_spill]]  ;;  %s9194_s17 = sld [smem:[#allocation46_spill]] }
  0xbe   :  { %v278_v29 = vadd.f32 %v277_v22, %v274_v25  ;;  %v293_v36 = vmul.f32 %v7690_v31, %v292_v32  ;;  %v296_v38 = vstv %s295_s25  ;;  %s9195_s23 = sld [smem:[#allocation43_spill]]  ;;  %s9196_s26 = sld [smem:[#allocation48_spill]] }
  0xbf   :  { %v5794_v7 = vld [vmem:[%s9179_s7] ss:$0 sm:$0xff]  ;;  %s5826_s28 = sld [smem:[#allocation2 + $0x1]]  ;;  %s9197_s4 = sld [smem:[#allocation45_spill]] }
  0xc0   :  { %v282_v33 = vadd.f32 %v281_v26, %v278_v29  ;;  %v851_v21 = vld [vmem:[%s9181_s11] sm:$0xff]  ;;  %v852_v22 = vld [vmem:[%s9181_s11 + $0x8] sm:$0x3]  ;;  %s5827_s1 = sld [smem:[#allocation2 + $0x81]] }
  0xc1   :  { %v6910_v24 = vpack.c.bf16 %v852_v22, %v851_v21  ;;  %v5797_v26 = vld [vmem:[%s9182_s13] ss:$0 sm:$0xff]  ;;  %s5828_s25 = sld [smem:[#allocation2 + $0x101]] }
  0xc2   :  { %v286_v35 = vadd.f32 %v285_v30, %v282_v33  ;;  %v1017_v4 = vld [vmem:[%s9189_s0] sm:$0xff]  ;;  %v1109_v22 = vld [vmem:[%s9191_s3 + $0x8] sm:$0xff]  ;;  %s5829_s20 = sld [smem:[#allocation2 + $0x181]] }
  0xc3   :  { %v5810_v14 = vld [vmem:[%s9190_s29] ss:$0 sm:$0xff]  ;;  %s5830_s14 = sld [smem:[#allocation2 + $0x201]] }
  0xc4   :  { %v290_v37 = vadd.f32 %v289_v34, %v286_v35  ;;  %v1108_v21 = vld [vmem:[%s9191_s3] sm:$0xff]  ;;  %s5831_s27 = sld [smem:[#allocation2 + $0x281]] }
  0xc6   :  { %v294_v39 = vadd.f32 %v293_v36, %v290_v37  ;;  %v5803_v36 = vld [vmem:[%s9184_s15] ss:$0 sm:$0xff] }
  0xc8   :  { %v297_v40 = vadd.f32 %v296_v38, %v294_v39 }
  0xca   :  { %vm298_vm1 = vcmp.gt.f32.partialorder %v297_v40, 0.0  ;;  %v299_v41 = vmul.f32 0.01, %v297_v40 }
  0xcc   :  { %v300_v42 = vsel %vm298_vm1, %v297_v40, %v299_v41 }
  0xcd   :  { %6449 = vmatmul.mubr.msk.f32.vlgmr.msra.gmra.mrb[0].mxu0 %vm312_vm2, %v300_v42 }
  0xce   :  { %6471 = vmatprep.mubr.msk.f32.mxu0 %vm7434_vm0, %v7435_v6  ;;  %6900 = vmatpush3.bf16.msk.msra.mxu0 %vm7711_vm8, %v6898_v2 }
  0xcf   :  { %6905 = vmatprep.subr.bf16.mxu0 %v7433_v3 }
 0x1a0   :  { %v382_v48 = vpop.f32.mrb[0].mxu0 }
 0x1a1   :  { %v383_v49 = vadd.f32 %v5789_v47, %v382_v48  ;;  %v6450_v50 = vpop.f32.mrb[1].mxu0 }
 0x1a3   :  { %vm386_vm4 = vcmp.gt.f32.partialorder %v383_v49, 0.0  ;;  %v387_v51 = vmul.f32 0.01, %v383_v49 }
 0x1a5   :  { %v388_v52 = vsel %vm386_vm4, %v383_v49, %v387_v51  ;;  %v828_v49 = vld [vmem:[%s9187_s16] sm:$0xff] }
 0x1a6   :  { %6458 = vmatmul.mubr.msk.f32.vlgmr.msra.gmra.mrb[0].mxu1 %vm399_vm5, %v388_v52 }
 0x1a7   :  { %6464 = vmatprep.mubr.msk.f32.mxu1 %vm7434_vm0, %v7435_v6  ;;  %6896 = vmatpush3.bf16.msk.msra.mxu1 %vm7711_vm8, %v6894_v55 }
 0x1a8   :  { %6901 = vmatprep.subr.bf16.mxu1 %v7433_v3 }
 0x279   :  { %v473_v58 = vpop.f32.mrb[0].mxu1 }
 0x27a   :  { %v474_v59 = vadd.f32 %v5791_v57, %v473_v58  ;;  %v6459_v60 = vpop.f32.mrb[1].mxu1 }
 0x27b   :  { %v850_v60 = vld [vmem:[%s9188_s18 + $0x8] sm:$0x3] }
 0x27c   :  { %vm477_vm9 = vcmp.gt.f32.partialorder %v474_v59, 0.0  ;;  %v478_v61 = vmul.f32 0.01, %v474_v59 }
 0x27e   :  { %v479_v62 = vsel %vm477_vm9, %v474_v59, %v478_v61  ;;  %v849_v59 = vld [vmem:[%s9188_s18] sm:$0xff] }
 0x27f   :  { %6465 = vmatmul.mubr.msk.f32.vlgmr.msra.gmra.mrb[2].mxu1 %vm489_vm10, %v479_v62  ;;  %v6914_v61 = vpack.c.bf16 %v850_v60, %v849_v59  ;;  %v1476_v59 = vstv %s5828_s25  ;;  %s5922_s25 = sld [smem:[#allocation2 + $0x82]] }
 0x280   :  { %6478 = vmatprep.mubr.msk.f32.mxu1 %vm7434_vm0, %v7435_v6  ;;  %6904 = vmatpush3.bf16.msk.msra.mxu1 %vm7711_vm8, %v6902_v5  ;;  %v1018_v5 = vld [vmem:[%s9189_s0 + $0x8] sm:$0xff] }
 0x281   :  { %6909 = vmatprep.subr.bf16.mxu1 %v7433_v3 }
 0x352   :  { %v563_v11 = vpop.f32.mrb[2].mxu1 }
 0x353   :  { %v564_v15 = vadd.f32 %v5794_v7, %v563_v11  ;;  %v6466_v16 = vpop.f32.mrb[3].mxu1  ;;  %v6918_v7 = vpack.c.bf16 %v1018_v5, %v1017_v4  ;;  %v1019_v11 = vld [vmem:[%s9189_s0 + $0x10] sm:$0xf]  ;;  %v1488_v5 = vstv %s5831_s27  ;;  %s5921_s27 = sld [smem:[#allocation2 + $0x2]] }
 0x355   :  { %vm567_vm11 = vcmp.gt.f32.partialorder %v564_v15, 0.0  ;;  %v568_v18 = vmul.f32 0.01, %v564_v15 }
 0x357   :  { %v569_v20 = vsel %vm567_vm11, %v564_v15, %v568_v18  ;;  %vm1027_vm11 = vcmask 162816  }
 0x358   :  { %6472 = vmatmul.mubr.msk.f32.vlgmr.msra.gmra.mrb[2].mxu0 %vm489_vm10, %v569_v20  ;;  %6479 = vmatmul.mubr.msk.f32.vlgmr.msra.gmra.mrb[4].mxu1 %vm489_vm10, %v569_v20 }
 0x359   :  { %6908 = vmatpush3.bf16.msk.msra.mxu0 %vm7711_vm8, %v6906_v19  ;;  %6485 = vmatprep.mubr.msk.f32.mxu0 %vm7434_vm0, %v7435_v6 }
 0x35a   :  { %6492 = vmatprep.mubr.msk.f32.mxu1 %vm7434_vm0, %v7435_v6  ;;  %6913 = vmatprep.subr.bf16.mxu0 %v7433_v3 }
 0x35b   :  { %6912 = vmatpush3.bf16.msk.msra.mxu1 %vm7750_vm13, %v6910_v24  ;;  %v6921_v24 = vpack.c.bf16 %v1109_v22, %v1108_v21  ;;  %v5836_v21 = vld [vmem:[%s7500_s19 + $0x28] sm:$0xff] }
 0x35c   :  { %6486 = vmatmul.mubr.msk.f32.vlgmr.msra.gmra.mrb[4].mxu0 %vm489_vm10, %v569_v20  ;;  %6917 = vmatprep.subr.bf16.mxu1 %v7433_v3 }
 0x35d   :  { %6499 = vmatprep.mubr.msk.f32.mxu0 %vm7434_vm0, %v7435_v6  ;;  %6916 = vmatpush3.bf16.msk.msra.mxu0 %vm7750_vm13, %v6914_v61  ;;  %v1477_v61 = vmul.f32 %v7668_v10, %v1476_v59 }
 0x35e   :  { %6920 = vmatprep.subr.bf16.mxu0 %v7433_v3 }
 0x42b   :  { %v651_v29 = vpop.f32.mrb[2].mxu0  ;;  %v736_v30 = vpop.f32.mrb[4].mxu1 }
 0x42c   :  { %v652_v32 = vadd.f32 %v5797_v26, %v651_v29  ;;  %v737_v33 = vadd.f32 %v5800_v28, %v736_v30  ;;  %v6473_v34 = vpop.f32.mrb[3].mxu0  ;;  %v6480_v35 = vpop.f32.mrb[5].mxu1  ;;  %v1110_v26 = vld [vmem:[%s9191_s3 + $0x10] sm:$0x7f]  ;;  %v5811_v28 = vld [vmem:[%s9192_s22] ss:$0 sm:$0xff] }
 0x42d   :  { %v1198_v35 = vld [vmem:[%s9193_s9] sm:$0xff] }
 0x42e   :  { %v656_v37 = vmul.f32 0.01, %v652_v32  ;;  %vm740_vm15 = vcmp.gt.f32.partialorder %v737_v33, 0.0  ;;  %v741_v38 = vmul.f32 0.01, %v737_v33  ;;  %vm655_vm1 = vcmp.gt.f32.partialorder %v652_v32, 0.0 }
 0x42f   :  { %v821_v39 = vpop.f32.mrb[4].mxu0 }
 0x430   :  { %v742_v40 = vsel %vm740_vm15, %v737_v33, %v741_v38  ;;  %v822_v41 = vadd.f32 %v5803_v36, %v821_v39  ;;  %v6487_v42 = vpop.f32.mrb[5].mxu0  ;;  %v657_v43 = vsel %vm655_vm1, %v652_v32, %v656_v37  ;;  %vm1118_vm15 = vcmask 187392   ;;  %v1199_v36 = vld [vmem:[%s9193_s9 + $0x8] sm:$0xff]  ;;  %v1200_v38 = vld [vmem:[%s9193_s9 + $0x10] sm:$0x7f]  ;;  %v1287_v39 = vld [vmem:[%s9194_s17] sm:$0xff] }
 0x431   :  { %846 = vst.msk [vmem:[#allocation16] sm:$0xff] %vm834_vm14, %v742_v40  ;;  %v835_v44 = vsel %vm834_vm14, %v657_v43, -inf  ;;  %v6924_v37 = vpack.c.bf16 %v1199_v36, %v1198_v35  ;;  %v5814_v42 = vld [vmem:[%s9195_s23] ss:$0 sm:$0xff]  ;;  %v5838_v35 = vld [vmem:[%s7500_s19 + $0x38] sm:$0xff] }
 0x432   :  { %vm825_vm4 = vcmp.gt.f32.partialorder %v822_v41, 0.0  ;;  %v826_v45 = vmul.f32 0.01, %v822_v41  ;;  %836 = vmax.xlane.f32.xlu0 %v835_v44 }
 0x434   :  { %v827_v46 = vsel %vm825_vm4, %v822_v41, %v826_v45 }
 0x435   :  { %v829_v47 = vmul.f32 0.5, %v827_v46  ;;  %847 = vst.msk [vmem:[#allocation17] sm:$0xff] %vm834_vm14, %v827_v46 }
 0x437   :  { %v830_v48 = vmul.f32 1.442695, %v829_v47 }
 0x439   :  { %7163 = vpow2.f32 %v830_v48  ;;  %v1289_v48 = vld [vmem:[%s9194_s17 + $0x10] sm:$0xff] }
 0x443   :  { %v7164_v50 = vpop.eup %7163 }
 0x444   :  { %v832_v51 = vmul.f32 %v7164_v50, %v828_v49  ;;  %v1290_v49 = vld [vmem:[%s9194_s17 + $0x18] sm:$0x3] }
 0x445   :  { %v6930_v50 = vpack.c.bf16 %v1290_v49, %v1289_v48 }
 0x446   :  { %v833_v52 = vadd.f32 %v832_v51, %v742_v40  ;;  %v1288_v40 = vld [vmem:[%s9194_s17 + $0x8] sm:$0xff]  ;;  %v1378_v51 = vld [vmem:[%s9196_s26] sm:$0xff] }
 0x447   :  { %v6927_v41 = vpack.c.bf16 %v1288_v40, %v1287_v39  ;;  %v1380_v40 = vld [vmem:[%s9196_s26 + $0x10] sm:$0xff] }
 0x448   :  { %6493 = vmatmul.mubr.msk.f32.vlgmr.msra.gmra.mrb[6].mxu1 %vm834_vm14, %v833_v52  ;;  %v1379_v52 = vld [vmem:[%s9196_s26 + $0x8] sm:$0xff] }
 0x449   :  { %6508 = vmatprep.mubr.msk.f32.mxu1 %vm7434_vm0, %v7435_v6  ;;  %6919 = vmatpush3.bf16.msra.mxu1 %v6918_v7 }
 0x44a   :  { %6506 = vmatprep.subr.mxu1 %v7435_v6 }
 0x44d   :  { %6507 = vmatpush3.msk.msra.mxu1 %vm1031_vm7, %v1019_v11  ;;  %v1489_v11 = vmul.f32 %v7682_v23, %v1488_v5 }
 0x44e   :  { %6923 = vmatprep.subr.bf16.mxu1 %v7433_v3 }
 0x4bf   :  { %v837_v53 = vpop.xlane.xlu0 %836 }
 0x4c0   :  { %v838_v54 = vsub.f32 %v657_v43, %v837_v53  ;;  %v6934_v53 = vpack.c.bf16 %v1379_v52, %v1378_v51  ;;  %v5840_v52 = vld [vmem:[%s7505_s24 + $0x1] ss:$0 sm:$0xff] }
 0x4c2   :  { %v839_v55 = vmul.f32 1.442695, %v838_v54  ;;  %v1469_v54 = vstv %s5826_s28  ;;  %s5832_s28 = sld [smem:[#allocation2 + $0x301]] }
 0x4c4   :  { %7165 = vpow2.f32 %v839_v55  ;;  %v1472_v55 = vstv %s5827_s1  ;;  %s5833_s1 = sld [smem:[#allocation2 + $0x381]] }
 0x4ce   :  { %v7166_v57 = vpop.eup %7165 }
 0x4cf   :  { %v841_v58 = vsel %vm834_vm14, %v7166_v57, 0.0 }
 0x4d0   :  { %842 = vadd.xlane.f32.xlu0 %v841_v58  ;;  %v1473_v58 = vmul.f32 %v7665_v9, %v1472_v55 }
 0x51b   :  { %v926_v62 = vpop.f32.mrb[6].mxu1 }
 0x51c   :  { %v6494_v63 = vpop.f32.mrb[7].mxu1 }
 0x55d   :  { %v843_v0 = vpop.xlane.xlu0 %842 }
 0x55e   :  { %7167 = vrcp.f32 %v843_v0 }
 0x568   :  { %v7168_v1 = vpop.eup %7167 }
 0x569   :  { %v845_v2 = vmul.f32 %v7168_v1, %v7166_v57  ;;  %v1470_v57 = vmul.f32 %v1469_v54, %v7662_v8  ;;  %v1484_v1 = vstv %s5830_s14  ;;  %s9198_s14 = sld [smem:[#allocation47_spill]]  ;;  %v5844_v54 = vld [vmem:[%s7510_s30 + $0x28] sm:$0x1f] }
 0x56a   :  { %v1485_v4 = vmul.f32 %v7677_v17, %v1484_v1  ;;  %v5846_v1 = vld [vmem:[%s7515_s6 + $0x1] ss:$0 sm:$0xff] }
 0x56b   :  { %848 = vst.msk [vmem:[#allocation19] sm:$0xff] %vm834_vm14, %v845_v2  ;;  %6500 = vmatmul.mubr.msk.f32.vlgmr.msra.gmra.mrb[6].mxu0 %vm834_vm14, %v845_v2  ;;  %v1474_v60 = vadd.f32 %v1473_v58, %v1470_v57 }
 0x56c   :  { %6517 = vmatprep.mubr.msk.f32.mxu0 %vm7434_vm0, %v7435_v6  ;;  %6922 = vmatpush3.bf16.msra.mxu0 %v6921_v24 }
 0x56d   :  { %6515 = vmatprep.subr.mxu0 %v7435_v6  ;;  %v1478_v63 = vadd.f32 %v1477_v61, %v1474_v60  ;;  %v5849_v60 = vld [vmem:[%s7520_s12 + $0x10] sm:$0xff]  ;;  %v5850_v61 = vld [vmem:[%s7520_s12 + $0x18] sm:$0x7f] }
 0x570   :  { %6516 = vmatpush3.msk.msra.mxu0 %vm493_vm6, %v1110_v26 }
 0x571   :  { %6926 = vmatprep.subr.bf16.mxu0 %v7433_v3 }
 0x63e   :  { %v1002_v13 = vpop.f32.mrb[6].mxu0 }
 0x63f   :  { %v1003_v15 = vadd.f32 %v1002_v13, %v926_v62  ;;  %v6501_v16 = vpop.f32.mrb[7].mxu0  ;;  %v1480_v62 = vstv %s5829_s20  ;;  %v1492_v13 = vstv %s5832_s28  ;;  %s5834_s20 = sld [smem:[#allocation5 + $0x1]]  ;;  %s5923_s28 = sld [smem:[#allocation2 + $0x102]] }
 0x640   :  { %v1481_v0 = vmul.f32 %v7671_v12, %v1480_v62  ;;  %v1496_v16 = vstv %s5833_s1  ;;  %v6950_v62 = vpack.c.bf16 %v5850_v61, %v5849_v60  ;;  %s5924_s1 = sld [smem:[#allocation2 + $0x182]] }
 0x641   :  { %v1013_v18 = vadd.f32 %v5810_v14, %v1003_v15  ;;  %v1493_v15 = vmul.f32 %v7686_v27, %v1492_v13  ;;  %v5855_v13 = vld [vmem:[%s9175_s5 + $0x10] sm:$0xff] }
 0x642   :  { %v1482_v2 = vadd.f32 %v1481_v0, %v1478_v63 }
 0x643   :  { %vm1014_vm9 = vcmp.gt.f32.partialorder %v1013_v18, 0.0  ;;  %v1015_v19 = vmul.f32 0.01, %v1013_v18 }
 0x644   :  { %v1486_v7 = vadd.f32 %v1485_v4, %v1482_v2 }
 0x645   :  { %v1016_v20 = vsel %vm1014_vm9, %v1013_v18, %v1015_v19  ;;  %v1497_v18 = vmul.f32 %v7690_v31, %v1496_v16  ;;  %v5817_v19 = vld [vmem:[%s9197_s4] ss:$0 sm:$0xff]  ;;  %v1500_v26 = vstv %s5834_s20  ;;  %vm1298_vm9 = vcmask 211968   ;;  %s5925_s20 = sld [smem:[#allocation2 + $0x202]] }
 0x646   :  { %6509 = vmatmul.mubr.msk.f32.vlgmr.msra.gmra.mrb[8].mxu1 %vm1027_vm11, %v1016_v20  ;;  %v1490_v14 = vadd.f32 %v1489_v11, %v1486_v7  ;;  %v5835_v20 = vld [vmem:[%s7500_s19 + $0x20] sm:$0xff] }
 0x647   :  { %6526 = vmatprep.mubr.msk.f32.mxu1 %vm7434_vm0, %v7435_v6  ;;  %6925 = vmatpush3.bf16.msra.mxu1 %v6924_v37 }
 0x648   :  { %6524 = vmatprep.subr.mxu1 %v7435_v6  ;;  %v1494_v12 = vadd.f32 %v1493_v15, %v1490_v14  ;;  %v5856_v14 = vld [vmem:[%s9175_s5 + $0x18] sm:$0x7f]  ;;  %v5861_v15 = vld [vmem:[%s9176_s2 + $0x10] sm:$0xff] }
 0x649   :  { %v6954_v16 = vpack.c.bf16 %v5856_v14, %v5855_v13 }
 0x64a   :  { %v1498_v22 = vadd.f32 %v1497_v18, %v1494_v12  ;;  %v5862_v12 = vld [vmem:[%s9176_s2 + $0x18] sm:$0x7f] }
 0x64b   :  { %6525 = vmatpush3.msk.msra.mxu1 %vm493_vm6, %v1200_v38  ;;  %v6958_v18 = vpack.c.bf16 %v5862_v12, %v5861_v15  ;;  %v5884_v12 = vld [vmem:[%s9189_s0 + $0x18] sm:$0xff] }
 0x64c   :  { %6933 = vmatprep.subr.bf16.mxu1 %v7433_v3 }
 0x719   :  { %v1101_v29 = vpop.f32.mrb[8].mxu1 }
 0x71a   :  { %v1102_v30 = vadd.f32 %v5811_v28, %v1101_v29  ;;  %v6510_v32 = vpop.f32.mrb[9].mxu1 }
 0x71c   :  { %vm1105_vm12 = vcmp.gt.f32.partialorder %v1102_v30, 0.0  ;;  %v1106_v33 = vmul.f32 0.01, %v1102_v30 }
 0x71e   :  { %v1107_v34 = vsel %vm1105_vm12, %v1102_v30, %v1106_v33  ;;  %v6941_v30 = vpack.c.bf16 %v5836_v21, %v5835_v20  ;;  %v1501_v33 = vadd.f32 %v1500_v26, %v1498_v22  ;;  %v5867_v21 = vld [vmem:[%s9180_s10 + $0x10] sm:$0xff]  ;;  %v5868_v22 = vld [vmem:[%s9180_s10 + $0x18] sm:$0x7f] }
 0x71f   :  { %6518 = vmatmul.mubr.msk.f32.vlgmr.msra.gmra.mrb[8].mxu0 %vm1118_vm15, %v1107_v34  ;;  %v5837_v34 = vld [vmem:[%s7500_s19 + $0x30] sm:$0xff] }
 0x720   :  { %6537 = vmatprep.mubr.msk.f32.mxu0 %vm7434_vm0, %v7435_v6  ;;  %6928 = vmatpush3.bf16.msra.mxu0 %v6927_v41  ;;  %v6944_v37 = vpack.c.bf16 %v5838_v35, %v5837_v34  ;;  %v1503_v38 = vmul.f32 0.01, %v1501_v33  ;;  %vm1502_vm12 = vcmp.gt.f32.partialorder %v1501_v33, 0.0  ;;  %v1381_v41 = vld [vmem:[%s9196_s26 + $0x18] sm:$0x3] }
 0x721   :  { %6929 = vmatprep.subr.bf16.mxu0 %v7433_v3  ;;  %v5858_v35 = vld [vmem:[%s9182_s13 + $0x1] ss:$0 sm:$0xff] }
 0x722   :  { %v1504_v39 = vsel %vm1502_vm12, %v1501_v33, %v1503_v38  ;;  %v5877_v33 = vld [vmem:[%s9181_s11 + $0x18] sm:$0x3] }
 0x724   :  { %6932 = vmatpush3.bf16.msk.msra.mxu0 %vm7750_vm13, %v6930_v50 }
 0x725   :  { %6940 = vmatprep.subr.bf16.mxu0 %v7433_v3 }
 0x7f2   :  { %v1191_v43 = vpop.f32.mrb[8].mxu0 }
 0x7f3   :  { %v1192_v44 = vadd.f32 %v5814_v42, %v1191_v43  ;;  %v6519_v45 = vpop.f32.mrb[9].mxu0  ;;  %v6937_v42 = vpack.c.bf16 %v1381_v41, %v1380_v40  ;;  %v5820_v43 = vld [vmem:[%s9198_s14] ss:$0 sm:$0xff] }
 0x7f4   :  { %v5842_v45 = vld [vmem:[%s7510_s30 + $0x18] sm:$0xff] }
 0x7f5   :  { %vm1195_vm1 = vcmp.gt.f32.partialorder %v1192_v44, 0.0  ;;  %v1196_v46 = vmul.f32 0.01, %v1192_v44 }
 0x7f7   :  { %v1197_v47 = vsel %vm1195_vm1, %v1192_v44, %v1196_v46  ;;  %v5843_v46 = vld [vmem:[%s7510_s30 + $0x20] sm:$0xff] }
 0x7f8   :  { %6527 = vmatmul.mubr.msk.f32.vlgmr.msra.gmra.mrb[10].mxu1 %vm1118_vm15, %v1197_v47  ;;  %v6947_v50 = vpack.c.bf16 %v5843_v46, %v5842_v45 }
 0x7f9   :  { %6548 = vmatprep.mubr.msk.f32.mxu1 %vm7434_vm0, %v7435_v6  ;;  %6935 = vmatpush3.bf16.msra.mxu1 %v6934_v53 }
 0x7fa   :  { %6936 = vmatprep.subr.bf16.mxu1 %v7433_v3 }
 0x7fd   :  { %6939 = vmatpush3.bf16.msk.msra.mxu1 %vm7750_vm13, %v6937_v42 }
 0x7fe   :  { %6946 = vmatprep.subr.bf16.mxu1 %v7433_v3 }
 0x8cb   :  { %v1280_v24 = vpop.f32.mrb[10].mxu1 }
 0x8cc   :  { %v1281_v28 = vadd.f32 %v5817_v19, %v1280_v24  ;;  %v6528_v29 = vpop.f32.mrb[11].mxu1  ;;  %v5852_v19 = vld [vmem:[%s9179_s7 + $0x1] ss:$0 sm:$0xff] }
 0x8cd   :  { %v6962_v29 = vpack.c.bf16 %v5868_v22, %v5867_v21  ;;  %v5883_v22 = vld [vmem:[%s9190_s29 + $0x1] ss:$0 sm:$0xff] }
 0x8ce   :  { %vm1284_vm4 = vcmp.gt.f32.partialorder %v1281_v28, 0.0  ;;  %v1285_v32 = vmul.f32 0.01, %v1281_v28 }
 0x8d0   :  { %v1286_v36 = vsel %vm1284_vm4, %v1281_v28, %v1285_v32  ;;  %v5876_v32 = vld [vmem:[%s9181_s11 + $0x10] sm:$0xff] }
 0x8d1   :  { %6538 = vmatmul.mubr.msk.f32.vlgmr.msra.gmra.mrb[10].mxu0 %vm1298_vm9, %v1286_v36  ;;  %v6966_v34 = vpack.c.bf16 %v5877_v33, %v5876_v32  ;;  %v5864_v36 = vld [vmem:[%s9183_s21 + $0x1] ss:$0 sm:$0xff]  ;;  %v5891_v32 = vld [vmem:[%s9191_s3 + $0x18] sm:$0xff] }
 0x8d2   :  { %6942 = vmatpush3.bf16.msra.mxu0 %v6941_v30  ;;  %6559 = vmatprep.mubr.msk.f32.mxu0 %vm7434_vm0, %v7435_v6  ;;  %v5892_v33 = vld [vmem:[%s9191_s3 + $0x20] sm:$0xff] }
 0x8d3   :  { %6943 = vmatprep.subr.bf16.mxu0 %v7433_v3 }
 0x8d6   :  { %6945 = vmatpush3.bf16.msra.mxu0 %v6944_v37 }
 0x8d7   :  { %6949 = vmatprep.subr.bf16.mxu0 %v7433_v3 }
 0x8d9   :  { %6560 = vmatmul.mubr.msk.f32.vlgmr.msra.gmra.mrb[12].mxu0 %vm312_vm2, %v1504_v39 }
 0x8da   :  { %6575 = vmatprep.mubr.msk.f32.mxu0 %vm7434_vm0, %v7435_v6  ;;  %6952 = vmatpush3.bf16.msk.msra.mxu0 %vm7711_vm8, %v6950_v62 }
 0x8db   :  { %6957 = vmatprep.subr.bf16.mxu0 %v7433_v3 }
 0x9a4   :  { %v1371_v44 = vpop.f32.mrb[10].mxu0 }
 0x9a5   :  { %v1372_v47 = vadd.f32 %v5820_v43, %v1371_v44  ;;  %v6539_v48 = vpop.f32.mrb[11].mxu0  ;;  %v5870_v43 = vld [vmem:[%s9184_s15 + $0x1] ss:$0 sm:$0xff] }
 0x9a7   :  { %vm1375_vm1 = vcmp.gt.f32.partialorder %v1372_v47, 0.0  ;;  %v1376_v49 = vmul.f32 0.01, %v1372_v47 }
 0x9a9   :  { %v1377_v51 = vsel %vm1375_vm1, %v1372_v47, %v1376_v49 }
 0x9aa   :  { %6549 = vmatmul.mubr.msk.f32.vlgmr.msra.gmra.mrb[12].mxu1 %vm1298_vm9, %v1377_v51 }
 0x9ab   :  { %6948 = vmatpush3.bf16.msra.mxu1 %v6947_v50  ;;  %6568 = vmatprep.mubr.msk.f32.mxu1 %vm7434_vm0, %v7435_v6 }
 0x9ac   :  { %v1587_v53 = vpop.f32.mrb[12].mxu0  ;;  %6566 = vmatprep.subr.mxu1 %v7435_v6 }
 0x9ad   :  { %v1588_v55 = vadd.f32 %v5840_v52, %v1587_v53  ;;  %v6561_v57 = vpop.f32.mrb[13].mxu0 }
 0x9ae   :  { %v5873_v57 = vld [vmem:[%s9187_s16 + $0x8] sm:$0xff] }
 0x9af   :  { %vm1591_vm4 = vcmp.gt.f32.partialorder %v1588_v55, 0.0  ;;  %v1592_v58 = vmul.f32 0.01, %v1588_v55  ;;  %6567 = vmatpush3.msk.msra.mxu1 %vm403_vm3, %v5844_v54 }
 0x9b0   :  { %6953 = vmatprep.subr.bf16.mxu1 %v7433_v3 }
 0x9b1   :  { %v1593_v59 = vsel %vm1591_vm4, %v1588_v55, %v1592_v58 }
 0x9b2   :  { %6569 = vmatmul.mubr.msk.f32.vlgmr.msra.gmra.mrb[14].mxu1 %vm399_vm5, %v1593_v59 }
 0x9b3   :  { %6582 = vmatprep.mubr.msk.f32.mxu1 %vm7434_vm0, %v7435_v6  ;;  %6956 = vmatpush3.bf16.msk.msra.mxu1 %vm7711_vm8, %v6954_v16 }
 0x9b4   :  { %6961 = vmatprep.subr.bf16.mxu1 %v7433_v3 }
 0xa7d   :  { %v7863_v63 = vpop.f32.mrb[12].mxu1 }
 0xa7e   :  { %v6550_v0 = vpop.f32.mrb[13].mxu1 }
 0xa85   :  { %v1678_v2 = vpop.f32.mrb[14].mxu1 }
 0xa86   :  { %v1679_v4 = vadd.f32 %v5846_v1, %v1678_v2  ;;  %v6570_v5 = vpop.f32.mrb[15].mxu1 }
 0xa87   :  { %v5875_v5 = vld [vmem:[%s9188_s18 + $0x18] sm:$0x3] }
 0xa88   :  { %vm1682_vm12 = vcmp.gt.f32.partialorder %v1679_v4, 0.0  ;;  %v1683_v7 = vmul.f32 0.01, %v1679_v4 }
 0xa8a   :  { %v1684_v11 = vsel %vm1682_vm12, %v1679_v4, %v1683_v7  ;;  %v5874_v4 = vld [vmem:[%s9188_s18 + $0x10] sm:$0xff] }
 0xa8b   :  { %6576 = vmatmul.mubr.msk.f32.vlgmr.msra.gmra.mrb[14].mxu0 %vm489_vm10, %v1684_v11  ;;  %v6970_v7 = vpack.c.bf16 %v5875_v5, %v5874_v4  ;;  %v2698_v4 = vstv %s5923_s28  ;;  %s5929_s28 = sld [smem:[#allocation5 + $0x2]] }
 0xa8c   :  { %6589 = vmatprep.mubr.msk.f32.mxu0 %vm7434_vm0, %v7435_v6  ;;  %6960 = vmatpush3.bf16.msk.msra.mxu0 %vm7711_vm8, %v6958_v18  ;;  %v5885_v18 = vld [vmem:[%s9189_s0 + $0x20] sm:$0xff] }
 0xa8d   :  { %6965 = vmatprep.subr.bf16.mxu0 %v7433_v3 }
 0xb5e   :  { %v1768_v20 = vpop.f32.mrb[14].mxu0 }
 0xb5f   :  { %v1769_v24 = vadd.f32 %v5852_v19, %v1768_v20  ;;  %v6577_v26 = vpop.f32.mrb[15].mxu0  ;;  %v6974_v19 = vpack.c.bf16 %v5885_v18, %v5884_v12  ;;  %v5886_v20 = vld [vmem:[%s9189_s0 + $0x28] sm:$0xf] }
 0xb61   :  { %vm1772_vm1 = vcmp.gt.f32.partialorder %v1769_v24, 0.0  ;;  %v1773_v28 = vmul.f32 0.01, %v1769_v24 }
 0xb63   :  { %v1774_v30 = vsel %vm1772_vm1, %v1769_v24, %v1773_v28 }
 0xb64   :  { %6583 = vmatmul.mubr.msk.f32.vlgmr.msra.gmra.mrb[16].mxu1 %vm489_vm10, %v1774_v30  ;;  %6590 = vmatmul.mubr.msk.f32.vlgmr.msra.gmra.mrb[16].mxu0 %vm489_vm10, %v1774_v30 }
 0xb65   :  { %6964 = vmatpush3.bf16.msk.msra.mxu1 %vm7711_vm8, %v6962_v29  ;;  %6596 = vmatprep.mubr.msk.f32.mxu1 %vm7434_vm0, %v7435_v6 }
 0xb66   :  { %6603 = vmatprep.mubr.msk.f32.mxu0 %vm7434_vm0, %v7435_v6  ;;  %6969 = vmatprep.subr.bf16.mxu1 %v7433_v3 }
 0xb67   :  { %6968 = vmatpush3.bf16.msk.msra.mxu0 %vm7750_vm13, %v6966_v34  ;;  %v6977_v34 = vpack.c.bf16 %v5892_v33, %v5891_v32  ;;  %v5931_v32 = vld [vmem:[%s7500_s19 + $0x48] sm:$0xff]  ;;  %v2722_v33 = vstv %s5929_s28  ;;  %s6111_s28 = sld [smem:[#allocation7 + $0x80]] }
 0xb68   :  { %6597 = vmatmul.mubr.msk.f32.vlgmr.msra.gmra.mrb[18].mxu1 %vm489_vm10, %v1774_v30  ;;  %6973 = vmatprep.subr.bf16.mxu0 %v7433_v3 }
 0xb69   :  { %6610 = vmatprep.mubr.msk.f32.mxu1 %vm7434_vm0, %v7435_v6  ;;  %6972 = vmatpush3.bf16.msk.msra.mxu1 %vm7750_vm13, %v6970_v7  ;;  %v2699_v7 = vmul.f32 %v7668_v10, %v2698_v4 }
 0xb6a   :  { %6976 = vmatprep.subr.bf16.mxu1 %v7433_v3 }
 0xc37   :  { %v1858_v37 = vpop.f32.mrb[16].mxu1  ;;  %v1945_v38 = vpop.f32.mrb[16].mxu0 }
 0xc38   :  { %v1859_v39 = vadd.f32 %v5858_v35, %v1858_v37  ;;  %v1946_v40 = vadd.f32 %v5864_v36, %v1945_v38  ;;  %v6584_v41 = vpop.f32.mrb[17].mxu1  ;;  %v6591_v42 = vpop.f32.mrb[17].mxu0  ;;  %v5893_v35 = vld [vmem:[%s9191_s3 + $0x28] sm:$0x7f]  ;;  %v5888_v36 = vld [vmem:[%s9192_s22 + $0x1] ss:$0 sm:$0xff] }
 0xc39   :  { %v5898_v42 = vld [vmem:[%s9193_s9 + $0x18] sm:$0xff] }
 0xc3a   :  { %v1863_v44 = vmul.f32 0.01, %v1859_v39  ;;  %vm1949_vm4 = vcmp.gt.f32.partialorder %v1946_v40, 0.0  ;;  %v1950_v45 = vmul.f32 0.01, %v1946_v40  ;;  %vm1862_vm12 = vcmp.gt.f32.partialorder %v1859_v39, 0.0 }
 0xc3b   :  { %v2032_v46 = vpop.f32.mrb[18].mxu1 }
 0xc3c   :  { %v1951_v47 = vsel %vm1949_vm4, %v1946_v40, %v1950_v45  ;;  %v2033_v48 = vadd.f32 %v5870_v43, %v2032_v46  ;;  %v6598_v49 = vpop.f32.mrb[19].mxu1  ;;  %v1864_v50 = vsel %vm1862_vm12, %v1859_v39, %v1863_v44  ;;  %v5899_v43 = vld [vmem:[%s9193_s9 + $0x20] sm:$0xff]  ;;  %v5900_v45 = vld [vmem:[%s9193_s9 + $0x28] sm:$0x7f] }
 0xc3d   :  { %2058 = vst.msk [vmem:[#allocation16 + $0x8] sm:$0xff] %vm834_vm14, %v1951_v47  ;;  %v2046_v51 = vsel %vm834_vm14, %v1864_v50, -inf  ;;  %v6980_v44 = vpack.c.bf16 %v5899_v43, %v5898_v42  ;;  %v5905_v46 = vld [vmem:[%s9194_s17 + $0x20] sm:$0xff]  ;;  %v5915_v42 = vld [vmem:[%s9196_s26 + $0x30] sm:$0xff]  ;;  %v5916_v43 = vld [vmem:[%s9196_s26 + $0x38] sm:$0x3] }
 0xc3e   :  { %vm2036_vm1 = vcmp.gt.f32.partialorder %v2033_v48, 0.0  ;;  %v2037_v52 = vmul.f32 0.01, %v2033_v48  ;;  %2047 = vmax.xlane.f32.xlu1 %v2046_v51  ;;  %v5895_v49 = vld [vmem:[%s9195_s23 + $0x1] ss:$0 sm:$0xff]  ;;  %s5926_s23 = sld [smem:[#allocation2 + $0x282]] }
 0xc40   :  { %v2038_v53 = vsel %vm2036_vm1, %v2033_v48, %v2037_v52 }
 0xc41   :  { %v2041_v54 = vmul.f32 0.5, %v2038_v53  ;;  %2060 = vst.msk [vmem:[#allocation17 + $0x8] sm:$0xff] %vm834_vm14, %v2038_v53 }
 0xc43   :  { %v2042_v55 = vmul.f32 1.442695, %v2041_v54 }
 0xc45   :  { %7169 = vpow2.f32 %v2042_v55  ;;  %v5907_v55 = vld [vmem:[%s9194_s17 + $0x30] sm:$0xff] }
 0xc4f   :  { %v7170_v58 = vpop.eup %7169 }
 0xc50   :  { %v2044_v59 = vmul.f32 %v7170_v58, %v5873_v57  ;;  %v5908_v57 = vld [vmem:[%s9194_s17 + $0x38] sm:$0x3] }
 0xc51   :  { %v6986_v58 = vpack.c.bf16 %v5908_v57, %v5907_v55  ;;  %v5939_v57 = vld [vmem:[%s7510_s30 + $0x40] sm:$0x1f] }
 0xc52   :  { %v2045_v60 = vadd.f32 %v2044_v59, %v1951_v47  ;;  %v5906_v47 = vld [vmem:[%s9194_s17 + $0x28] sm:$0xff]  ;;  %v5913_v59 = vld [vmem:[%s9196_s26 + $0x20] sm:$0xff] }
 0xc53   :  { %v6983_v48 = vpack.c.bf16 %v5906_v47, %v5905_v46  ;;  %v5937_v47 = vld [vmem:[%s7510_s30 + $0x30] sm:$0xff] }
 0xc54   :  { %6604 = vmatmul.mubr.msk.f32.vlgmr.msra.gmra.mrb[18].mxu0 %vm834_vm14, %v2045_v60  ;;  %v5914_v60 = vld [vmem:[%s9196_s26 + $0x28] sm:$0xff] }
 0xc55   :  { %6619 = vmatprep.mubr.msk.f32.mxu0 %vm7434_vm0, %v7435_v6  ;;  %6975 = vmatpush3.bf16.msra.mxu0 %v6974_v19 }
 0xc56   :  { %6617 = vmatprep.subr.mxu0 %v7435_v6 }
 0xc59   :  { %6618 = vmatpush3.msk.msra.mxu0 %vm1031_vm7, %v5886_v20 }
 0xc5a   :  { %6979 = vmatprep.subr.bf16.mxu0 %v7433_v3 }
 0xccb   :  { %v2048_v61 = vpop.xlane.xlu1 %2047 }
 0xccc   :  { %v2049_v62 = vsub.f32 %v1864_v50, %v2048_v61  ;;  %v6990_v61 = vpack.c.bf16 %v5914_v60, %v5913_v59 }
 0xcce   :  { %v2050_v0 = vmul.f32 1.442695, %v2049_v62  ;;  %v2691_v62 = vstv %s5921_s27  ;;  %s5927_s27 = sld [smem:[#allocation2 + $0x302]] }
 0xcd0   :  { %7171 = vpow2.f32 %v2050_v0  ;;  %v2694_v0 = vstv %s5922_s25  ;;  %s5928_s25 = sld [smem:[#allocation2 + $0x382]] }
 0xcd4   :  { %v2714_v19 = vstv %s5927_s27  ;;  %s6119_s27 = sld [smem:[#allocation7 + $0x2]] }
 0xcda   :  { %v7172_v1 = vpop.eup %7171 }
 0xcdb   :  { %v2052_v2 = vsel %vm834_vm14, %v7172_v1, 0.0 }
 0xcdc   :  { %2053 = vadd.xlane.f32.xlu1 %v2052_v2  ;;  %v2695_v2 = vmul.f32 %v7665_v9, %v2694_v0  ;;  %v2710_v9 = vstv %s5926_s23  ;;  %s9199_s23 = sld [smem:[#allocation49_spill]]  ;;  %v5945_v0 = vld [vmem:[%s7520_s12 + $0x28] sm:$0x7f] }
 0xcdd   :  { %v2711_v10 = vmul.f32 %v7682_v23, %v2710_v9  ;;  %v5177_v9 = vstv %s6119_s27  ;;  %s6020_s27 = sld [smem:[#allocation2 + $0x203]] }
 0xd27   :  { %v2141_v11 = vpop.f32.mrb[18].mxu0 }
 0xd28   :  { %v6605_v13 = vpop.f32.mrb[19].mxu0 }
 0xd69   :  { %v2054_v14 = vpop.xlane.xlu1 %2053 }
 0xd6a   :  { %7173 = vrcp.f32 %v2054_v14  ;;  %v7964_v14 = vld [vmem:[%s7490_s8 + $0x18] sm:$0xff] }
 0xd74   :  { %v7174_v15 = vpop.eup %7173 }
 0xd75   :  { %v2056_v16 = vmul.f32 %v7174_v15, %v7172_v1  ;;  %v2692_v1 = vmul.f32 %v2691_v62, %v7662_v8  ;;  %v5944_v62 = vld [vmem:[%s7520_s12 + $0x20] sm:$0xff] }
 0xd77   :  { %2062 = vst.msk [vmem:[#allocation19 + $0x8] sm:$0xff] %vm834_vm14, %v2056_v16  ;;  %6611 = vmatmul.mubr.msk.f32.vlgmr.msra.gmra.mrb[20].mxu1 %vm834_vm14, %v2056_v16  ;;  %v2696_v5 = vadd.f32 %v2695_v2, %v2692_v1  ;;  %v2706_v16 = vstv %s5925_s20  ;;  %v7006_v1 = vpack.c.bf16 %v5945_v0, %v5944_v62  ;;  %v5823_v2 = vld [vmem:[%s9199_s23] ss:$0 sm:$0xff]  ;;  %s6114_s20 = sld [smem:[#allocation7 + $0x1]] }
 0xd78   :  { %6628 = vmatprep.mubr.msk.f32.mxu1 %vm7434_vm0, %v7435_v6  ;;  %6978 = vmatpush3.bf16.msra.mxu1 %v6977_v34  ;;  %v2707_v8 = vmul.f32 %v7677_v17, %v2706_v16  ;;  %v1462_v4 = vadd.f32 %v5823_v2, %v7863_v63 }
 0xd79   :  { %6626 = vmatprep.subr.mxu1 %v7435_v6  ;;  %v2700_v13 = vadd.f32 %v2699_v7, %v2696_v5  ;;  %v5918_v7 = vld [vmem:[%s9199_s23 + $0x1] ss:$0 sm:$0xff] }
 0xd7a   :  { %v1466_v5 = vmul.f32 0.01, %v1462_v4 }
 0xd7c   :  { %6627 = vmatpush3.msk.msra.mxu1 %vm493_vm6, %v5893_v35 }
 0xd7d   :  { %6982 = vmatprep.subr.bf16.mxu1 %v7433_v3  ;;  %v5156_v16 = vstv %s6114_s20  ;;  %s6019_s20 = sld [smem:[#allocation2 + $0x183]] }
 0xe4a   :  { %v2217_v21 = vpop.f32.mrb[20].mxu1 }
 0xe4b   :  { %v2218_v24 = vadd.f32 %v2217_v21, %v2141_v11  ;;  %v6612_v26 = vpop.f32.mrb[21].mxu1  ;;  %v2702_v11 = vstv %s5924_s1  ;;  %v2715_v21 = vmul.f32 %v7686_v27, %v2714_v19  ;;  %v5932_v27 = vld [vmem:[%s7500_s19 + $0x50] sm:$0xff]  ;;  %s5134_s1 = sld [smem:[#allocation7]] }
 0xe4c   :  { %v2703_v15 = vmul.f32 %v7964_v14, %v2702_v11 }
 0xe4d   :  { %v2229_v28 = vadd.f32 %v5883_v22, %v2218_v24  ;;  %v2718_v22 = vstv %s5928_s25  ;;  %s6124_s25 = sld [smem:[#allocation7 + $0x3]] }
 0xe4e   :  { %v2704_v12 = vadd.f32 %v2703_v15, %v2700_v13  ;;  %v2719_v26 = vmul.f32 %v7690_v31, %v2718_v22 }
 0xe4f   :  { %vm2230_vm4 = vcmp.gt.f32.partialorder %v2229_v28, 0.0  ;;  %v2231_v29 = vmul.f32 0.01, %v2229_v28 }
 0xe50   :  { %v2708_v18 = vadd.f32 %v2707_v8, %v2704_v12 }
 0xe51   :  { %v2232_v30 = vsel %vm2230_vm4, %v2229_v28, %v2231_v29  ;;  %v5902_v28 = vld [vmem:[%s9197_s4 + $0x1] ss:$0 sm:$0xff]  ;;  %v5135_v15 = vstv %s5134_s1  ;;  %s6018_s1 = sld [smem:[#allocation2 + $0x103]] }
 0xe52   :  { %6620 = vmatmul.mubr.msk.f32.vlgmr.msra.gmra.mrb[20].mxu0 %vm1027_vm11, %v2232_v30  ;;  %v2712_v20 = vadd.f32 %v2711_v10, %v2708_v18  ;;  %v5930_v30 = vld [vmem:[%s7500_s19 + $0x40] sm:$0xff]  ;;  %v5138_v10 = vstv %s6111_s28  ;;  %s6022_s28 = sld [smem:[#allocation2 + $0x303]] }
 0xe53   :  { %6637 = vmatprep.mubr.msk.f32.mxu0 %vm7434_vm0, %v7435_v6  ;;  %6981 = vmatpush3.bf16.msra.mxu0 %v6980_v44  ;;  %v6993_v44 = vpack.c.bf16 %v5916_v43, %v5915_v42  ;;  %v5198_v18 = vstv %s6124_s25  ;;  %v5951_v42 = vld [vmem:[%s9175_s5 + $0x28] sm:$0x7f]  ;;  %v5956_v43 = vld [vmem:[%s9176_s2 + $0x20] sm:$0xff]  ;;  %s6021_s25 = sld [smem:[#allocation2 + $0x283]] }
 0xe54   :  { %6635 = vmatprep.subr.mxu0 %v7435_v6  ;;  %v2716_v24 = vadd.f32 %v2715_v21, %v2712_v20 }
 0xe56   :  { %v2720_v29 = vadd.f32 %v2719_v26, %v2716_v24 }
 0xe57   :  { %6636 = vmatpush3.msk.msra.mxu0 %vm493_vm6, %v5900_v45  ;;  %v5910_v45 = vld [vmem:[%s9198_s14 + $0x1] ss:$0 sm:$0xff]  ;;  %s6125_s14 = sld [smem:[#allocation7 + $0x83]] }
 0xe58   :  { %6989 = vmatprep.subr.bf16.mxu0 %v7433_v3 }
 0xe5d   :  { %v5201_v21 = vstv %s6125_s14  ;;  %s6017_s14 = sld [smem:[#allocation2 + $0x83]] }
 0xf25   :  { %v2317_v37 = vpop.f32.mrb[20].mxu0 }
 0xf26   :  { %v2318_v38 = vadd.f32 %v5888_v36, %v2317_v37  ;;  %v6621_v39 = vpop.f32.mrb[21].mxu0  ;;  %v6997_v36 = vpack.c.bf16 %v5931_v32, %v5930_v30  ;;  %v2723_v37 = vadd.f32 %v2722_v33, %v2720_v29 }
 0xf28   :  { %vm2321_vm12 = vcmp.gt.f32.partialorder %v2318_v38, 0.0  ;;  %v2322_v40 = vmul.f32 0.01, %v2318_v38 }
 0xf2a   :  { %v2323_v41 = vsel %vm2321_vm12, %v2318_v38, %v2322_v40  ;;  %v5933_v38 = vld [vmem:[%s7500_s19 + $0x58] sm:$0xff]  ;;  %v2725_v40 = vmul.f32 0.01, %v2723_v37  ;;  %vm2724_vm12 = vcmp.gt.f32.partialorder %v2723_v37, 0.0 }
 0xf2b   :  { %6629 = vmatmul.mubr.msk.f32.vlgmr.msra.gmra.mrb[22].mxu1 %vm1118_vm15, %v2323_v41  ;;  %v7000_v31 = vpack.c.bf16 %v5933_v38, %v5932_v27 }
 0xf2c   :  { %6648 = vmatprep.mubr.msk.f32.mxu1 %vm7434_vm0, %v7435_v6  ;;  %6984 = vmatpush3.bf16.msra.mxu1 %v6983_v48  ;;  %v2726_v41 = vsel %vm2724_vm12, %v2723_v37, %v2725_v40  ;;  %v5938_v48 = vld [vmem:[%s7510_s30 + $0x38] sm:$0xff]  ;;  %s6120_s30 = sld [smem:[#allocation7 + $0x82]]  ;;  %vm1465_vm12 = vcmp.gt.f32.partialorder %v1462_v4, 0.0 }
 0xf2d   :  { %6985 = vmatprep.subr.bf16.mxu1 %v7433_v3  ;;  %v1467_v13 = vsel %vm1465_vm12, %v1462_v4, %v1466_v5 }
 0xf2e   :  { %v5136_v22 = vmul.f32 %v5135_v15, %v1467_v13  ;;  %v5157_v24 = vmul.f32 %v5156_v16, %v1467_v13  ;;  %v5178_v26 = vmul.f32 %v5177_v9, %v1467_v13 }
 0xf30   :  { %6988 = vmatpush3.bf16.msk.msra.mxu1 %vm7750_vm13, %v6986_v58 }
 0xf31   :  { %6996 = vmatprep.subr.bf16.mxu1 %v7433_v3 }
 0xf32   :  { %v5180_v20 = vstv %s6120_s30  ;;  %s6016_s30 = sld [smem:[#allocation2 + $0x3]] }
 0xffe   :  { %v2408_v50 = vpop.f32.mrb[22].mxu1 }
 0xfff   :  { %v2409_v51 = vadd.f32 %v5895_v49, %v2408_v50  ;;  %v6630_v52 = vpop.f32.mrb[23].mxu1 }
0x1000   :  { %v7003_v52 = vpack.c.bf16 %v5938_v48, %v5937_v47  ;;  %v5947_v47 = vld [vmem:[%s9179_s7 + $0x2] ss:$0 sm:$0xff] }
0x1001   :  { %vm2412_vm1 = vcmp.gt.f32.partialorder %v2409_v51, 0.0  ;;  %v2413_v53 = vmul.f32 0.01, %v2409_v51 }
0x1003   :  { %v2414_v54 = vsel %vm2412_vm1, %v2409_v51, %v2413_v53 }
0x1004   :  { %6638 = vmatmul.mubr.msk.f32.vlgmr.msra.gmra.mrb[22].mxu0 %vm1118_vm15, %v2414_v54  ;;  %v5935_v54 = vld [vmem:[%s7505_s24 + $0x2] ss:$0 sm:$0xff]  ;;  %s6115_s24 = sld [smem:[#allocation7 + $0x81]] }
0x1005   :  { %6659 = vmatprep.mubr.msk.f32.mxu0 %vm7434_vm0, %v7435_v6  ;;  %6991 = vmatpush3.bf16.msra.mxu0 %v6990_v61 }
0x1006   :  { %6992 = vmatprep.subr.bf16.mxu0 %v7433_v3 }
0x1009   :  { %6995 = vmatpush3.bf16.msk.msra.mxu0 %vm7750_vm13, %v6993_v44 }
0x100a   :  { %7002 = vmatprep.subr.bf16.mxu0 %v7433_v3  ;;  %v5159_v63 = vstv %s6115_s24  ;;  %s9200_s24 = sld [smem:[#allocation43_spill]] }
0x10d7   :  { %v2499_v17 = vpop.f32.mrb[22].mxu0 }
0x10d8   :  { %v2500_v34 = vadd.f32 %v5902_v28, %v2499_v17  ;;  %v6639_v35 = vpop.f32.mrb[23].mxu0  ;;  %v5199_v28 = vmul.f32 %v5198_v18, %v1467_v13 }
0x10da   :  { %vm2503_vm4 = vcmp.gt.f32.partialorder %v2500_v34, 0.0  ;;  %v2504_v23 = vmul.f32 0.01, %v2500_v34 }
0x10dc   :  { %v2505_v39 = vsel %vm2503_vm4, %v2500_v34, %v2504_v23  ;;  %v5941_v34 = vld [vmem:[%s7515_s6 + $0x2] ss:$0 sm:$0xff] }
0x10dd   :  { %6649 = vmatmul.mubr.msk.f32.vlgmr.msra.gmra.mrb[24].mxu1 %vm1298_vm9, %v2505_v39 }
0x10de   :  { %6998 = vmatpush3.bf16.msra.mxu1 %v6997_v36  ;;  %6670 = vmatprep.mubr.msk.f32.mxu1 %vm7434_vm0, %v7435_v6 }
0x10df   :  { %6999 = vmatprep.subr.bf16.mxu1 %v7433_v3 }
0x10e2   :  { %7001 = vmatpush3.bf16.msra.mxu1 %v7000_v31 }
0x10e3   :  { %7005 = vmatprep.subr.bf16.mxu1 %v7433_v3 }
0x10e5   :  { %6671 = vmatmul.mubr.msk.f32.vlgmr.msra.gmra.mrb[26].mxu1 %vm312_vm2, %v2726_v41  ;;  %v5950_v41 = vld [vmem:[%s9175_s5 + $0x20] sm:$0xff] }
0x10e6   :  { %6686 = vmatprep.mubr.msk.f32.mxu1 %vm7434_vm0, %v7435_v6  ;;  %7008 = vmatpush3.bf16.msk.msra.mxu1 %vm7711_vm8, %v7006_v1  ;;  %v7010_v44 = vpack.c.bf16 %v5951_v42, %v5950_v41  ;;  %v5979_v42 = vld [vmem:[%s9189_s0 + $0x30] sm:$0xff] }
0x10e7   :  { %7013 = vmatprep.subr.bf16.mxu1 %v7433_v3 }
0x11b0   :  { %v2591_v46 = vpop.f32.mrb[24].mxu1 }
0x11b1   :  { %v2592_v49 = vadd.f32 %v5910_v45, %v2591_v46  ;;  %v6650_v50 = vpop.f32.mrb[25].mxu1  ;;  %v5957_v45 = vld [vmem:[%s9176_s2 + $0x28] sm:$0x7f] }
0x11b2   :  { %v7014_v46 = vpack.c.bf16 %v5957_v45, %v5956_v43  ;;  %v5963_v50 = vld [vmem:[%s9180_s10 + $0x28] sm:$0x7f]  ;;  %v5980_v43 = vld [vmem:[%s9189_s0 + $0x38] sm:$0xff]  ;;  %v5981_v45 = vld [vmem:[%s9189_s0 + $0x40] sm:$0xf] }
0x11b3   :  { %vm2595_vm1 = vcmp.gt.f32.partialorder %v2592_v49, 0.0  ;;  %v2596_v51 = vmul.f32 0.01, %v2592_v49 }
0x11b5   :  { %v2597_v53 = vsel %vm2595_vm1, %v2592_v49, %v2596_v51  ;;  %v5962_v49 = vld [vmem:[%s9180_s10 + $0x20] sm:$0xff] }
0x11b6   :  { %6660 = vmatmul.mubr.msk.f32.vlgmr.msra.gmra.mrb[24].mxu0 %vm1298_vm9, %v2597_v53 }
0x11b7   :  { %7004 = vmatpush3.bf16.msra.mxu0 %v7003_v52  ;;  %6679 = vmatprep.mubr.msk.f32.mxu0 %vm7434_vm0, %v7435_v6 }
0x11b8   :  { %v2809_v55 = vpop.f32.mrb[26].mxu1  ;;  %6677 = vmatprep.subr.mxu0 %v7435_v6 }
0x11b9   :  { %v2810_v58 = vadd.f32 %v5935_v54, %v2809_v55  ;;  %v6672_v59 = vpop.f32.mrb[27].mxu1  ;;  %v7018_v54 = vpack.c.bf16 %v5963_v50, %v5962_v49 }
0x11bb   :  { %vm2813_vm4 = vcmp.gt.f32.partialorder %v2810_v58, 0.0  ;;  %v2814_v60 = vmul.f32 0.01, %v2810_v58  ;;  %6678 = vmatpush3.msk.msra.mxu0 %vm403_vm3, %v5939_v57  ;;  %v5971_v57 = vld [vmem:[%s9181_s11 + $0x20] sm:$0xff] }
0x11bc   :  { %7009 = vmatprep.subr.bf16.mxu0 %v7433_v3 }
0x11bd   :  { %v2815_v61 = vsel %vm2813_vm4, %v2810_v58, %v2814_v60  ;;  %v5972_v58 = vld [vmem:[%s9181_s11 + $0x28] sm:$0x3]  ;;  %v5953_v60 = vld [vmem:[%s9182_s13 + $0x2] ss:$0 sm:$0xff]  ;;  %s8290_s13 = sld [smem:[#allocation10]] }
0x11be   :  { %6680 = vmatmul.mubr.msk.f32.vlgmr.msra.gmra.mrb[26].mxu0 %vm399_vm5, %v2815_v61  ;;  %v7022_v59 = vpack.c.bf16 %v5972_v58, %v5971_v57  ;;  %v5959_v61 = vld [vmem:[%s9183_s21 + $0x2] ss:$0 sm:$0xff] }
0x11bf   :  { %6693 = vmatprep.mubr.msk.f32.mxu0 %vm7434_vm0, %v7435_v6  ;;  %7012 = vmatpush3.bf16.msk.msra.mxu0 %vm7711_vm8, %v7010_v44  ;;  %v7030_v44 = vpack.c.bf16 %v5980_v43, %v5979_v42  ;;  %v5988_v57 = vld [vmem:[%s9191_s3 + $0x40] sm:$0x7f] }
0x11c0   :  { %7017 = vmatprep.subr.bf16.mxu0 %v7433_v3  ;;  %v5983_v58 = vld [vmem:[%s9192_s22 + $0x2] ss:$0 sm:$0xff] }
0x11c1   :  { %v7207_v42 = vld [vmem:[%s7490_s8 + $0x20] sm:$0xff] }
0x11c3   :  { %9212 = sst [smem:[#allocation62_spill]] %s8290_s13 }
0x1289   :  { %v2683_v11 = vpop.f32.mrb[24].mxu0 }
0x128a   :  { %v2684_v12 = vadd.f32 %v5918_v7, %v2683_v11  ;;  %v6661_v8 = vpop.f32.mrb[25].mxu0  ;;  %v5965_v7 = vld [vmem:[%s9184_s15 + $0x2] ss:$0 sm:$0xff] }
0x128c   :  { %vm2687_vm1 = vcmp.gt.f32.partialorder %v2684_v12, 0.0  ;;  %v2688_v19 = vmul.f32 0.01, %v2684_v12 }
0x128e   :  { %v2689_v29 = vsel %vm2687_vm1, %v2684_v12, %v2688_v19 }
0x128f   :  { %v5139_v17 = vmul.f32 %v5138_v10, %v2689_v29  ;;  %v5160_v30 = vmul.f32 %v5159_v63, %v2689_v29  ;;  %v5181_v32 = vmul.f32 %v5180_v20, %v2689_v29  ;;  %v5202_v33 = vmul.f32 %v5201_v21, %v2689_v29  ;;  %v5968_v21 = vld [vmem:[%s9187_s16 + $0x10] sm:$0xff] }
0x1291   :  { %v8012_v35 = vadd.f32 %v5139_v17, %v5136_v22  ;;  %v8014_v23 = vadd.f32 %v5160_v30, %v5157_v24  ;;  %v8016_v36 = vadd.f32 %v5181_v32, %v5178_v26  ;;  %v8018_v37 = vadd.f32 %v5202_v33, %v5199_v28  ;;  %v2900_v27 = vpop.f32.mrb[26].mxu0  ;;  %v5969_v33 = vld [vmem:[%s9188_s18 + $0x20] sm:$0xff] }
0x1292   :  { %v2901_v38 = vadd.f32 %v5941_v34, %v2900_v27  ;;  %v6681_v39 = vpop.f32.mrb[27].mxu0  ;;  %v5970_v34 = vld [vmem:[%s9188_s18 + $0x28] sm:$0x3] }
0x1293   :  { %v7026_v27 = vpack.c.bf16 %v5970_v34, %v5969_v33  ;;  %v7206_v34 = vld [vmem:[%s7490_s8 + $0x10] sm:$0xff] }
0x1294   :  { %vm2904_vm4 = vcmp.gt.f32.partialorder %v2901_v38, 0.0  ;;  %v2905_v31 = vmul.f32 0.01, %v2901_v38 }
0x1296   :  { %v2906_v40 = vsel %vm2904_vm4, %v2901_v38, %v2905_v31 }
0x1297   :  { %6687 = vmatmul.mubr.msk.f32.vlgmr.msra.gmra.mrb[28].mxu1 %vm489_vm10, %v2906_v40 }
0x1298   :  { %6700 = vmatprep.mubr.msk.f32.mxu1 %vm7434_vm0, %v7435_v6  ;;  %7016 = vmatpush3.bf16.msk.msra.mxu1 %vm7711_vm8, %v7014_v46 }
0x1299   :  { %7021 = vmatprep.subr.bf16.mxu1 %v7433_v3 }
0x136a   :  { %v2990_v48 = vpop.f32.mrb[28].mxu1 }
0x136b   :  { %v2991_v51 = vadd.f32 %v5947_v47, %v2990_v48  ;;  %v6688_v52 = vpop.f32.mrb[29].mxu1  ;;  %v5978_v47 = vld [vmem:[%s9190_s29 + $0x2] ss:$0 sm:$0xff] }
0x136d   :  { %vm2994_vm12 = vcmp.gt.f32.partialorder %v2991_v51, 0.0  ;;  %v2995_v53 = vmul.f32 0.01, %v2991_v51 }
0x136f   :  { %v2996_v55 = vsel %vm2994_vm12, %v2991_v51, %v2995_v53  ;;  %v5986_v53 = vld [vmem:[%s9191_s3 + $0x30] sm:$0xff] }
0x1370   :  { %6694 = vmatmul.mubr.msk.f32.vlgmr.msra.gmra.mrb[28].mxu0 %vm489_vm10, %v2996_v55  ;;  %6701 = vmatmul.mubr.msk.f32.vlgmr.msra.gmra.mrb[30].mxu1 %vm489_vm10, %v2996_v55 }
0x1371   :  { %7020 = vmatpush3.bf16.msk.msra.mxu0 %vm7711_vm8, %v7018_v54  ;;  %6707 = vmatprep.mubr.msk.f32.mxu0 %vm7434_vm0, %v7435_v6  ;;  %v5987_v54 = vld [vmem:[%s9191_s3 + $0x38] sm:$0xff] }
0x1372   :  { %6714 = vmatprep.mubr.msk.f32.mxu1 %vm7434_vm0, %v7435_v6  ;;  %7025 = vmatprep.subr.bf16.mxu0 %v7433_v3 }
0x1373   :  { %7024 = vmatpush3.bf16.msk.msra.mxu1 %vm7750_vm13, %v7022_v59 }
0x1374   :  { %6708 = vmatmul.mubr.msk.f32.vlgmr.msra.gmra.mrb[30].mxu0 %vm489_vm10, %v2996_v55  ;;  %7029 = vmatprep.subr.bf16.mxu1 %v7433_v3  ;;  %v7033_v55 = vpack.c.bf16 %v5987_v54, %v5986_v53  ;;  %v7210_v53 = vld [vmem:[%s7490_s8 + $0x38] sm:$0xff] }
0x1375   :  { %6721 = vmatprep.mubr.msk.f32.mxu0 %vm7434_vm0, %v7435_v6  ;;  %7028 = vmatpush3.bf16.msk.msra.mxu0 %vm7750_vm13, %v7026_v27 }
0x1376   :  { %7032 = vmatprep.subr.bf16.mxu0 %v7433_v3 }
0x1443   :  { %v3080_v62 = vpop.f32.mrb[28].mxu0  ;;  %v3167_v0 = vpop.f32.mrb[30].mxu1 }
0x1444   :  { %v3081_v1 = vadd.f32 %v5953_v60, %v3080_v62  ;;  %v3168_v2 = vadd.f32 %v5959_v61, %v3167_v0  ;;  %v6695_v4 = vpop.f32.mrb[29].mxu0  ;;  %v6702_v5 = vpop.f32.mrb[31].mxu1 }
0x1445   :  { %v5995_v5 = vld [vmem:[%s9193_s9 + $0x40] sm:$0x7f] }
0x1446   :  { %v3085_v11 = vmul.f32 0.01, %v3081_v1  ;;  %vm3171_vm1 = vcmp.gt.f32.partialorder %v3168_v2, 0.0  ;;  %v3172_v13 = vmul.f32 0.01, %v3168_v2  ;;  %vm3084_vm4 = vcmp.gt.f32.partialorder %v3081_v1, 0.0 }
0x1447   :  { %v3254_v15 = vpop.f32.mrb[30].mxu0 }
0x1448   :  { %v3173_v16 = vsel %vm3171_vm1, %v3168_v2, %v3172_v13  ;;  %v3255_v12 = vadd.f32 %v5965_v7, %v3254_v15  ;;  %v6709_v8 = vpop.f32.mrb[31].mxu0  ;;  %v3086_v9 = vsel %vm3084_vm4, %v3081_v1, %v3085_v11  ;;  %v5993_v1 = vld [vmem:[%s9193_s9 + $0x30] sm:$0xff]  ;;  %v5994_v2 = vld [vmem:[%s9193_s9 + $0x38] sm:$0xff]  ;;  %v6000_v7 = vld [vmem:[%s9194_s17 + $0x40] sm:$0xff] }
0x1449   :  { %3280 = vst.msk [vmem:[#allocation16 + $0x10] sm:$0xff] %vm834_vm14, %v3173_v16  ;;  %v3268_v18 = vsel %vm834_vm14, %v3086_v9, -inf  ;;  %v7036_v4 = vpack.c.bf16 %v5994_v2, %v5993_v1  ;;  %v6001_v11 = vld [vmem:[%s9194_s17 + $0x48] sm:$0xff]  ;;  %v5990_v15 = vld [vmem:[%s9200_s24 + $0x2] ss:$0 sm:$0xff] }
0x144a   :  { %vm3258_vm12 = vcmp.gt.f32.partialorder %v3255_v12, 0.0  ;;  %v3259_v10 = vmul.f32 0.01, %v3255_v12  ;;  %3269 = vmax.xlane.f32.xlu0 %v3268_v18  ;;  %v7039_v13 = vpack.c.bf16 %v6001_v11, %v6000_v7  ;;  %v6028_v7 = vld [vmem:[%s7500_s19 + $0x78] sm:$0xff] }
0x144c   :  { %v3260_v63 = vsel %vm3258_vm12, %v3255_v12, %v3259_v10  ;;  %v6002_v10 = vld [vmem:[%s9194_s17 + $0x50] sm:$0xff] }
0x144d   :  { %v3263_v19 = vmul.f32 0.5, %v3260_v63  ;;  %3282 = vst.msk [vmem:[#allocation17 + $0x10] sm:$0xff] %vm834_vm14, %v3260_v63  ;;  %v6003_v63 = vld [vmem:[%s9194_s17 + $0x58] sm:$0x3] }
0x144f   :  { %v3264_v20 = vmul.f32 1.442695, %v3263_v19  ;;  %v7042_v19 = vpack.c.bf16 %v6003_v63, %v6002_v10 }
0x1451   :  { %7175 = vpow2.f32 %v3264_v20  ;;  %v6008_v20 = vld [vmem:[%s9196_s26 + $0x40] sm:$0xff] }
0x145b   :  { %v7176_v22 = vpop.eup %7175 }
0x145c   :  { %v3266_v24 = vmul.f32 %v7176_v22, %v5968_v21  ;;  %v6009_v21 = vld [vmem:[%s9196_s26 + $0x48] sm:$0xff] }
0x145d   :  { %v7046_v22 = vpack.c.bf16 %v6009_v21, %v6008_v20 }
0x145e   :  { %v3267_v26 = vadd.f32 %v3266_v24, %v3173_v16  ;;  %v3913_v24 = vstv %s6016_s30  ;;  %s6023_s30 = sld [smem:[#allocation2 + $0x383]] }
0x1460   :  { %6715 = vmatmul.mubr.msk.f32.vlgmr.msra.gmra.mrb[32].mxu1 %vm834_vm14, %v3267_v26  ;;  %v3916_v26 = vstv %s6017_s14  ;;  %s6024_s14 = sld [smem:[#allocation5 + $0x3]] }
0x1461   :  { %6730 = vmatprep.mubr.msk.f32.mxu1 %vm7434_vm0, %v7435_v6  ;;  %7031 = vmatpush3.bf16.msra.mxu1 %v7030_v44  ;;  %v3932_v44 = vstv %s6021_s25  ;;  %s6121_s25 = sld [smem:[#allocation7 + $0x102]] }
0x1462   :  { %6728 = vmatprep.subr.mxu1 %v7435_v6 }
0x1465   :  { %6729 = vmatpush3.msk.msra.mxu1 %vm1031_vm7, %v5981_v45 }
0x1466   :  { %7035 = vmatprep.subr.bf16.mxu1 %v7433_v3 }
0x14d7   :  { %v3270_v28 = vpop.xlane.xlu0 %3269 }
0x14d8   :  { %v3271_v29 = vsub.f32 %v3086_v9, %v3270_v28  ;;  %v7204_v28 = vld [vmem:[%s7490_s8] sm:$0xff] }
0x14da   :  { %v3272_v17 = vmul.f32 1.442695, %v3271_v29  ;;  %v3914_v29 = vmul.f32 %v7204_v28, %v3913_v24 }
0x14dc   :  { %7177 = vpow2.f32 %v3272_v17  ;;  %v7205_v17 = vld [vmem:[%s7490_s8 + $0x8] sm:$0xff] }
0x14e6   :  { %v7178_v30 = vpop.eup %7177 }
0x14e7   :  { %v3274_v32 = vsel %vm834_vm14, %v7178_v30, 0.0 }
0x14e8   :  { %3275 = vadd.xlane.f32.xlu1 %v3274_v32  ;;  %v3920_v32 = vstv %s6018_s1  ;;  %s9202_s1 = sld [smem:[#allocation29_spill]] }
0x14e9   :  { %v3921_v27 = vmul.f32 %v7206_v34, %v3920_v32 }
0x14ee   :  { %v6032_v63 = vld [vmem:[%s9202_s1 + $0x48] sm:$0xff] }
0x1533   :  { %v3363_v38 = vpop.f32.mrb[32].mxu1 }
0x1534   :  { %v6716_v39 = vpop.f32.mrb[33].mxu1 }
0x1575   :  { %v3276_v31 = vpop.xlane.xlu1 %3275 }
0x1576   :  { %7179 = vrcp.f32 %v3276_v31 }
0x1580   :  { %v7180_v40 = vpop.eup %7179 }
0x1581   :  { %v3278_v41 = vmul.f32 %v7180_v40, %v7178_v30  ;;  %v3917_v30 = vmul.f32 %v7205_v17, %v3916_v26  ;;  %v3928_v40 = vstv %s6020_s27  ;;  %v6034_v17 = vld [vmem:[%s9202_s1 + $0x58] sm:$0x1f]  ;;  %s6116_s27 = sld [smem:[#allocation7 + $0x101]] }
0x1582   :  { %v3929_v43 = vmul.f32 %v7207_v42, %v3928_v40 }
0x1583   :  { %3284 = vst.msk [vmem:[#allocation19 + $0x10] sm:$0xff] %vm834_vm14, %v3278_v41  ;;  %6722 = vmatmul.mubr.msk.f32.vlgmr.msra.gmra.mrb[32].mxu0 %vm834_vm14, %v3278_v41  ;;  %v3918_v33 = vadd.f32 %v3917_v30, %v3914_v29 }
0x1584   :  { %6739 = vmatprep.mubr.msk.f32.mxu0 %vm7434_vm0, %v7435_v6  ;;  %7034 = vmatpush3.bf16.msra.mxu0 %v7033_v55  ;;  %v5997_v55 = vld [vmem:[%s9197_s4 + $0x2] ss:$0 sm:$0xff] }
0x1585   :  { %6737 = vmatprep.subr.mxu0 %v7435_v6  ;;  %v3922_v39 = vadd.f32 %v3921_v27, %v3918_v33  ;;  %v6039_v27 = vld [vmem:[%s7520_s12 + $0x30] sm:$0xff] }
0x1588   :  { %6738 = vmatpush3.msk.msra.mxu0 %vm493_vm6, %v5988_v57 }
0x1589   :  { %7038 = vmatprep.subr.bf16.mxu0 %v7433_v3 }
0x1656   :  { %v3439_v46 = vpop.f32.mrb[32].mxu0 }
0x1657   :  { %v3440_v48 = vadd.f32 %v3439_v46, %v3363_v38  ;;  %v6723_v49 = vpop.f32.mrb[33].mxu0  ;;  %v3924_v38 = vstv %s6019_s20  ;;  %v7208_v46 = vld [vmem:[%s7490_s8 + $0x28] sm:$0xff]  ;;  %s6112_s20 = sld [smem:[#allocation7 + $0x100]] }
0x1658   :  { %v3925_v31 = vmul.f32 %v7964_v14, %v3924_v38  ;;  %v6040_v38 = vld [vmem:[%s7520_s12 + $0x38] sm:$0x7f]  ;;  %s8276_s12 = sld [smem:[#allocation7 + $0x181]] }
0x1659   :  { %v3451_v50 = vadd.f32 %v5978_v47, %v3440_v48  ;;  %v3933_v47 = vmul.f32 %v7208_v46, %v3932_v44  ;;  %v3936_v48 = vstv %s6022_s28  ;;  %s6126_s28 = sld [smem:[#allocation7 + $0x103]]  ;;  %v5163_v44 = vstv %s6116_s27  ;;  %s8328_s27 = sld [smem:[#allocation10 + $0x84]] }
0x165a   :  { %v3926_v41 = vadd.f32 %v3925_v31, %v3922_v39  ;;  %v7062_v39 = vpack.c.bf16 %v6040_v38, %v6039_v27  ;;  %v6013_v31 = vld [vmem:[%s9199_s23 + $0x2] ss:$0 sm:$0xff]  ;;  %v5184_v46 = vstv %s6121_s25  ;;  %s8330_s25 = sld [smem:[#allocation11 + $0x2]]  ;;  %s8334_s23 = sld [smem:[#allocation10 + $0x184]] }
0x165b   :  { %vm3452_vm1 = vcmp.gt.f32.partialorder %v3451_v50, 0.0  ;;  %v3453_v51 = vmul.f32 0.01, %v3451_v50 }
0x165c   :  { %v3930_v45 = vadd.f32 %v3929_v43, %v3926_v41 }
0x165d   :  { %v3454_v52 = vsel %vm3452_vm1, %v3451_v50, %v3453_v51  ;;  %v7209_v50 = vld [vmem:[%s7490_s8 + $0x30] sm:$0xff]  ;;  %s9201_s8 = sld [smem:[#allocation47_spill]]  ;;  %v5142_v43 = vstv %s6112_s20 }
0x165e   :  { %6731 = vmatmul.mubr.msk.f32.vlgmr.msra.gmra.mrb[34].mxu1 %vm1027_vm11, %v3454_v52  ;;  %v3934_v49 = vadd.f32 %v3933_v47, %v3930_v45  ;;  %v3937_v51 = vmul.f32 %v7209_v50, %v3936_v48  ;;  %v3940_v52 = vstv %s6023_s30  ;;  %9205 = sst [smem:[#allocation55_spill]] %s8276_s12  ;;  %s8316_s30 = sld [smem:[#allocation10 + $0x83]] }
0x165f   :  { %6748 = vmatprep.mubr.msk.f32.mxu1 %vm7434_vm0, %v7435_v6  ;;  %7037 = vmatpush3.bf16.msra.mxu1 %v7036_v4  ;;  %v3941_v54 = vmul.f32 %v7210_v53, %v3940_v52  ;;  %v5205_v47 = vstv %s6126_s28  ;;  %s8326_s20 = sld [smem:[#allocation11 + $0x1]]  ;;  %9231 = sst [smem:[#allocation81_spill]] %s8328_s27 }
0x1660   :  { %6746 = vmatprep.subr.mxu1 %v7435_v6  ;;  %v3938_v14 = vadd.f32 %v3937_v51, %v3934_v49  ;;  %9232 = sst [smem:[#allocation82_spill]] %s8330_s25  ;;  %s8350_s27 = sld [smem:[#allocation10 + $0x86]] }
0x1661   :  { %s8332_s28 = sld [smem:[#allocation10 + $0x104]]  ;;  %9234 = sst [smem:[#allocation84_spill]] %s8334_s23 }
0x1662   :  { %v3942_v57 = vadd.f32 %v3941_v54, %v3938_v14  ;;  %v6036_v14 = vld [vmem:[%s7515_s6 + $0x3] ss:$0 sm:$0xff]  ;;  %s8274_s6 = sld [smem:[#allocation7 + $0x180]]  ;;  %s8352_s25 = sld [smem:[#allocation10 + $0x106]] }
0x1663   :  { %6747 = vmatpush3.msk.msra.mxu1 %vm493_vm6, %v5995_v5  ;;  %v6027_v5 = vld [vmem:[%s7500_s19 + $0x70] sm:$0xff]  ;;  %s7437_s23 = smov [#allocation17]  }
0x1664   :  { %7045 = vmatprep.subr.bf16.mxu1 %v7433_v3  ;;  %9225 = sst [smem:[#allocation75_spill]] %s8316_s30  ;;  %s8338_s30 = sld [smem:[#allocation11 + $0x3]] }
0x1665   :  { %9230 = sst [smem:[#allocation80_spill]] %s8326_s20  ;;  %s8348_s20 = sld [smem:[#allocation10 + $0x6]] }
0x1666   :  { %9242 = sst [smem:[#allocation92_spill]] %s8350_s27 }
0x1667   :  { %9233 = sst [smem:[#allocation83_spill]] %s8332_s28 }
0x1668   :  { %9204 = sst [smem:[#allocation54_spill]] %s8274_s6  ;;  %s8354_s28 = sld [smem:[#allocation11 + $0x5]] }
0x1669   :  { %9243 = sst [smem:[#allocation93_spill]] %s8352_s25 }
0x166a   :  { %9236 = sst [smem:[#allocation86_spill]] %s8338_s30  ;;  %s7438_s30 = smov [#allocation16]  }
0x166b   :  { %9241 = sst [smem:[#allocation91_spill]] %s8348_s20 }
0x166e   :  { %9244 = sst [smem:[#allocation94_spill]] %s8354_s28 }
0x1731   :  { %v3539_v59 = vpop.f32.mrb[34].mxu1 }
0x1732   :  { %v3540_v60 = vadd.f32 %v5983_v58, %v3539_v59  ;;  %v6732_v61 = vpop.f32.mrb[35].mxu1  ;;  %v6025_v59 = vld [vmem:[%s7500_s19 + $0x60] sm:$0xff] }
0x1733   :  { %v3944_v61 = vstv %s6024_s14  ;;  %s8318_s14 = sld [smem:[#allocation10 + $0x103]] }
0x1734   :  { %vm3543_vm4 = vcmp.gt.f32.partialorder %v3540_v60, 0.0  ;;  %v3544_v62 = vmul.f32 0.01, %v3540_v60  ;;  %v3945_v4 = vadd.f32 %v3944_v61, %v3942_v57 }
0x1736   :  { %v3545_v0 = vsel %vm3543_vm4, %v3540_v60, %v3544_v62  ;;  %v6026_v60 = vld [vmem:[%s7500_s19 + $0x68] sm:$0xff]  ;;  %vm3946_vm4 = vcmp.gt.f32.partialorder %v3945_v4, 0.0  ;;  %s9203_s19 = sld [smem:[#allocation28_spill]] }
0x1737   :  { %6740 = vmatmul.mubr.msk.f32.vlgmr.msra.gmra.mrb[34].mxu0 %vm1118_vm15, %v3545_v0  ;;  %v7053_v2 = vpack.c.bf16 %v6026_v60, %v6025_v59 }
0x1738   :  { %6759 = vmatprep.mubr.msk.f32.mxu0 %vm7434_vm0, %v7435_v6  ;;  %7040 = vmatpush3.bf16.msra.mxu0 %v7039_v13  ;;  %v7056_v13 = vpack.c.bf16 %v6028_v7, %v6027_v5  ;;  %v6057_v5 = vld [vmem:[%s9180_s10 + $0x30] sm:$0xff]  ;;  %v6058_v7 = vld [vmem:[%s9180_s10 + $0x38] sm:$0x7f]  ;;  %s8286_s10 = sld [smem:[#allocation8 + $0x2]] }
0x1739   :  { %7041 = vmatprep.subr.bf16.mxu0 %v7433_v3  ;;  %9226 = sst [smem:[#allocation76_spill]] %s8318_s14  ;;  %s8340_s14 = sld [smem:[#allocation10 + $0x85]] }
0x173c   :  { %7044 = vmatpush3.bf16.msk.msra.mxu0 %vm7750_vm13, %v7042_v19  ;;  %v6033_v19 = vld [vmem:[%s9202_s1 + $0x50] sm:$0xff]  ;;  %v6030_v28 = vld [vmem:[%s9203_s19 + $0x3] ss:$0 sm:$0xff]  ;;  %s8322_s1 = sld [smem:[#allocation11]]  ;;  %s8324_s19 = sld [smem:[#allocation10 + $0x4]] }
0x173d   :  { %7052 = vmatprep.subr.bf16.mxu0 %v7433_v3  ;;  %v7059_v24 = vpack.c.bf16 %v6033_v19, %v6032_v63 }
0x173e   :  { %9210 = sst [smem:[#allocation60_spill]] %s8286_s10 }
0x173f   :  { %9237 = sst [smem:[#allocation87_spill]] %s8340_s14 }
0x1742   :  { %9228 = sst [smem:[#allocation78_spill]] %s8322_s1  ;;  %s8344_s1 = sld [smem:[#allocation10 + $0x185]] }
0x1743   :  { %9229 = sst [smem:[#allocation79_spill]] %s8324_s19  ;;  %s8346_s19 = sld [smem:[#allocation11 + $0x4]] }
0x1748   :  { %9239 = sst [smem:[#allocation89_spill]] %s8344_s1 }
0x1749   :  { %9240 = sst [smem:[#allocation90_spill]] %s8346_s19 }
0x180a   :  { %v3630_v16 = vpop.f32.mrb[34].mxu0 }
0x180b   :  { %v3631_v12 = vadd.f32 %v5990_v15, %v3630_v16  ;;  %v6741_v8 = vpop.f32.mrb[35].mxu0  ;;  %v3947_v15 = vmul.f32 0.01, %v3945_v4 }
0x180c   :  { %v6011_v8 = vld [vmem:[%s9196_s26 + $0x58] sm:$0x3] }
0x180d   :  { %vm3634_vm12 = vcmp.gt.f32.partialorder %v3631_v12, 0.0  ;;  %v3635_v9 = vmul.f32 0.01, %v3631_v12  ;;  %v3948_v16 = vsel %vm3946_vm4, %v3945_v4, %v3947_v15 }
0x180f   :  { %v3636_v18 = vsel %vm3634_vm12, %v3631_v12, %v3635_v9  ;;  %v6010_v12 = vld [vmem:[%s9196_s26 + $0x50] sm:$0xff] }
0x1810   :  { %6749 = vmatmul.mubr.msk.f32.vlgmr.msra.gmra.mrb[36].mxu1 %vm1118_vm15, %v3636_v18  ;;  %v7049_v9 = vpack.c.bf16 %v6011_v8, %v6010_v12  ;;  %v6005_v18 = vld [vmem:[%s9201_s8 + $0x2] ss:$0 sm:$0xff]  ;;  %v6066_v8 = vld [vmem:[%s9181_s11 + $0x30] sm:$0xff] }
0x1811   :  { %6770 = vmatprep.mubr.msk.f32.mxu1 %vm7434_vm0, %v7435_v6  ;;  %7047 = vmatpush3.bf16.msra.mxu1 %v7046_v22 }
0x1812   :  { %7048 = vmatprep.subr.bf16.mxu1 %v7433_v3 }
0x1815   :  { %7051 = vmatpush3.bf16.msk.msra.mxu1 %vm7750_vm13, %v7049_v9  ;;  %v6067_v9 = vld [vmem:[%s9181_s11 + $0x38] sm:$0x3]  ;;  %s8288_s11 = sld [smem:[#allocation8 + $0x3]] }
0x1816   :  { %7058 = vmatprep.subr.bf16.mxu1 %v7433_v3 }
0x181b   :  { %9211 = sst [smem:[#allocation61_spill]] %s8288_s11 }
0x18e3   :  { %v3721_v58 = vpop.f32.mrb[36].mxu1 }
0x18e4   :  { %v3722_v62 = vadd.f32 %v5997_v55, %v3721_v58  ;;  %v6750_v0 = vpop.f32.mrb[37].mxu1 }
0x18e6   :  { %vm3725_vm1 = vcmp.gt.f32.partialorder %v3722_v62, 0.0  ;;  %v3726_v1 = vmul.f32 0.01, %v3722_v62 }
0x18e8   :  { %v3727_v11 = vsel %vm3725_vm1, %v3722_v62, %v3726_v1 }
0x18e9   :  { %6760 = vmatmul.mubr.msk.f32.vlgmr.msra.gmra.mrb[36].mxu0 %vm1298_vm9, %v3727_v11 }
0x18ea   :  { %7054 = vmatpush3.bf16.msra.mxu0 %v7053_v2  ;;  %6781 = vmatprep.mubr.msk.f32.mxu0 %vm7434_vm0, %v7435_v6  ;;  %v6042_v2 = vld [vmem:[%s9179_s7 + $0x3] ss:$0 sm:$0xff]  ;;  %s8284_s7 = sld [smem:[#allocation8 + $0x1]] }
0x18eb   :  { %7055 = vmatprep.subr.bf16.mxu0 %v7433_v3 }
0x18ee   :  { %7057 = vmatpush3.bf16.msra.mxu0 %v7056_v13 }
0x18ef   :  { %7061 = vmatprep.subr.bf16.mxu0 %v7433_v3 }
0x18f0   :  { %9209 = sst [smem:[#allocation59_spill]] %s8284_s7 }
0x18f1   :  { %6782 = vmatmul.mubr.msk.f32.vlgmr.msra.gmra.mrb[38].mxu0 %vm312_vm2, %v3948_v16  ;;  %v7074_v16 = vpack.c.bf16 %v6058_v7, %v6057_v5 }
0x18f2   :  { %6797 = vmatprep.mubr.msk.f32.mxu0 %vm7434_vm0, %v7435_v6  ;;  %7064 = vmatpush3.bf16.msk.msra.mxu0 %vm7711_vm8, %v7062_v39 }
0x18f3   :  { %7069 = vmatprep.subr.bf16.mxu0 %v7433_v3 }
0x19bc   :  { %v3813_v10 = vpop.f32.mrb[36].mxu0 }
0x19bd   :  { %v3814_v20 = vadd.f32 %v6005_v18, %v3813_v10  ;;  %v6761_v21 = vpop.f32.mrb[37].mxu0  ;;  %v7078_v18 = vpack.c.bf16 %v6067_v9, %v6066_v8  ;;  %v6054_v10 = vld [vmem:[%s9183_s21 + $0x3] ss:$0 sm:$0xff]  ;;  %s8292_s21 = sld [smem:[#allocation10 + $0x80]] }
0x19bf   :  { %vm3817_vm12 = vcmp.gt.f32.partialorder %v3814_v20, 0.0  ;;  %v3818_v22 = vmul.f32 0.01, %v3814_v20 }
0x19c1   :  { %v3819_v26 = vsel %vm3817_vm12, %v3814_v20, %v3818_v22 }
0x19c2   :  { %6771 = vmatmul.mubr.msk.f32.vlgmr.msra.gmra.mrb[38].mxu1 %vm1298_vm9, %v3819_v26  ;;  %v6060_v26 = vld [vmem:[%s9184_s15 + $0x3] ss:$0 sm:$0xff]  ;;  %s8294_s15 = sld [smem:[#allocation10 + $0x100]] }
0x19c3   :  { %7060 = vmatpush3.bf16.msra.mxu1 %v7059_v24  ;;  %6790 = vmatprep.mubr.msk.f32.mxu1 %vm7434_vm0, %v7435_v6  ;;  %9213 = sst [smem:[#allocation63_spill]] %s8292_s21 }
0x19c4   :  { %v4031_v29 = vpop.f32.mrb[38].mxu0  ;;  %6788 = vmatprep.subr.mxu1 %v7435_v6 }
0x19c5   :  { %v4032_v30 = vadd.f32 %v6030_v28, %v4031_v29  ;;  %v6783_v32 = vpop.f32.mrb[39].mxu0 }
0x19c7   :  { %vm4035_vm1 = vcmp.gt.f32.partialorder %v4032_v30, 0.0  ;;  %v4036_v33 = vmul.f32 0.01, %v4032_v30  ;;  %6789 = vmatpush3.msk.msra.mxu1 %vm403_vm3, %v6034_v17 }
0x19c8   :  { %7065 = vmatprep.subr.bf16.mxu1 %v7433_v3  ;;  %9214 = sst [smem:[#allocation64_spill]] %s8294_s15 }
0x19c9   :  { %v4037_v34 = vsel %vm4035_vm1, %v4032_v30, %v4036_v33 }
0x19ca   :  { %6791 = vmatmul.mubr.msk.f32.vlgmr.msra.gmra.mrb[40].mxu1 %vm399_vm5, %v4037_v34 }
0x19cb   :  { %6804 = vmatprep.mubr.msk.f32.mxu1 %vm7434_vm0, %v7435_v6 }
0x1a95   :  { %v3905_v40 = vpop.f32.mrb[38].mxu1 }
0x1a96   :  { %v3906_v41 = vadd.f32 %v6013_v31, %v3905_v40  ;;  %v6772_v42 = vpop.f32.mrb[39].mxu1 }
0x1a98   :  { %vm3909_vm3 = vcmp.gt.f32.partialorder %v3906_v41, 0.0  ;;  %v3910_v45 = vmul.f32 0.01, %v3906_v41 }
0x1a9a   :  { %v3911_v48 = vsel %vm3909_vm3, %v3906_v41, %v3910_v45  ;;  %v6063_v41 = vld [vmem:[%s9187_s16 + $0x18] sm:$0xff]  ;;  %s8296_s16 = sld [smem:[#allocation10 + $0x180]] }
0x1a9b   :  { %v5143_v49 = vmul.f32 %v5142_v43, %v3911_v48  ;;  %v5164_v50 = vmul.f32 %v5163_v44, %v3911_v48  ;;  %v5185_v51 = vmul.f32 %v5184_v46, %v3911_v48  ;;  %v5206_v52 = vmul.f32 %v5205_v47, %v3911_v48 }
0x1a9d   :  { %v8162_v53 = vadd.f32 %v5143_v49, %v8012_v35  ;;  %v8165_v54 = vadd.f32 %v5164_v50, %v8014_v23  ;;  %v8168_v55 = vadd.f32 %v5185_v51, %v8016_v36  ;;  %v8171_v57 = vadd.f32 %v5206_v52, %v8018_v37  ;;  %v4122_v58 = vpop.f32.mrb[40].mxu1  ;;  %v6045_v35 = vld [vmem:[%s9175_s5 + $0x30] sm:$0xff]  ;;  %v6046_v23 = vld [vmem:[%s9175_s5 + $0x38] sm:$0x7f]  ;;  %s8280_s5 = sld [smem:[#allocation7 + $0x183]] }
0x1a9e   :  { %v4123_v59 = vadd.f32 %v6036_v14, %v4122_v58  ;;  %v6792_v60 = vpop.f32.mrb[41].mxu1  ;;  %v6051_v36 = vld [vmem:[%s9176_s2 + $0x30] sm:$0xff]  ;;  %v7066_v0 = vpack.c.bf16 %v6046_v23, %v6045_v35  ;;  %v6052_v37 = vld [vmem:[%s9176_s2 + $0x38] sm:$0x7f]  ;;  %s8282_s2 = sld [smem:[#allocation8]] }
0x1a9f   :  { %v7070_v1 = vpack.c.bf16 %v6052_v37, %v6051_v36  ;;  %v6064_v50 = vld [vmem:[%s9188_s18 + $0x30] sm:$0xff]  ;;  %v6065_v51 = vld [vmem:[%s9188_s18 + $0x38] sm:$0x3]  ;;  %v6073_v37 = vld [vmem:[%s9190_s29 + $0x3] ss:$0 sm:$0xff]  ;;  %s8298_s18 = sld [smem:[#allocation10 + $0x1]] }
0x1aa0   :  { %vm4126_vm5 = vcmp.gt.f32.partialorder %v4123_v59, 0.0  ;;  %v4127_v61 = vmul.f32 0.01, %v4123_v59  ;;  %7068 = vmatpush3.bf16.msk.msra.mxu1 %vm7711_vm8, %v7066_v0  ;;  %v7082_v52 = vpack.c.bf16 %v6065_v51, %v6064_v50  ;;  %v6075_v35 = vld [vmem:[%s9189_s0 + $0x50] sm:$0xff]  ;;  %v6076_v36 = vld [vmem:[%s9189_s0 + $0x58] sm:$0xf] }
0x1aa1   :  { %7073 = vmatprep.subr.bf16.mxu1 %v7433_v3  ;;  %9215 = sst [smem:[#allocation65_spill]] %s8296_s16  ;;  %s8302_s29 = sld [smem:[#allocation10 + $0x101]] }
0x1aa2   :  { %v4128_v62 = vsel %vm4126_vm5, %v4123_v59, %v4127_v61 }
0x1aa3   :  { %6798 = vmatmul.mubr.msk.f32.vlgmr.msra.gmra.mrb[40].mxu0 %vm489_vm10, %v4128_v62  ;;  %v6074_v62 = vld [vmem:[%s9189_s0 + $0x48] sm:$0xff]  ;;  %9207 = sst [smem:[#allocation57_spill]] %s8280_s5  ;;  %s8300_s0 = sld [smem:[#allocation10 + $0x81]] }
0x1aa4   :  { %6811 = vmatprep.mubr.msk.f32.mxu0 %vm7434_vm0, %v7435_v6  ;;  %7072 = vmatpush3.bf16.msk.msra.mxu0 %vm7711_vm8, %v7070_v1  ;;  %v7086_v23 = vpack.c.bf16 %v6075_v35, %v6074_v62  ;;  %9208 = sst [smem:[#allocation58_spill]] %s8282_s2 }
0x1aa5   :  { %7077 = vmatprep.subr.bf16.mxu0 %v7433_v3  ;;  %9216 = sst [smem:[#allocation66_spill]] %s8298_s18 }
0x1aa7   :  { %9218 = sst [smem:[#allocation68_spill]] %s8302_s29 }
0x1aa9   :  { %9217 = sst [smem:[#allocation67_spill]] %s8300_s0 }
0x1b76   :  { %v4212_v4 = vpop.f32.mrb[40].mxu0 }
0x1b77   :  { %v4213_v11 = vadd.f32 %v6042_v2, %v4212_v4  ;;  %v6799_v13 = vpop.f32.mrb[41].mxu0 }
0x1b78   :  { %v6082_v13 = vld [vmem:[%s9191_s3 + $0x50] sm:$0xff] }
0x1b79   :  { %vm4216_vm4 = vcmp.gt.f32.partialorder %v4213_v11, 0.0  ;;  %v4217_v15 = vmul.f32 0.01, %v4213_v11 }
0x1b7b   :  { %v4218_v12 = vsel %vm4216_vm4, %v4213_v11, %v4217_v15  ;;  %v6081_v11 = vld [vmem:[%s9191_s3 + $0x48] sm:$0xff] }
0x1b7c   :  { %6805 = vmatmul.mubr.msk.f32.vlgmr.msra.gmra.mrb[42].mxu1 %vm489_vm10, %v4218_v12  ;;  %6812 = vmatmul.mubr.msk.f32.vlgmr.msra.gmra.mrb[42].mxu0 %vm489_vm10, %v4218_v12  ;;  %v7089_v15 = vpack.c.bf16 %v6082_v13, %v6081_v11 }
0x1b7d   :  { %7076 = vmatpush3.bf16.msk.msra.mxu1 %vm7711_vm8, %v7074_v16  ;;  %6818 = vmatprep.mubr.msk.f32.mxu1 %vm7434_vm0, %v7435_v6  ;;  %v6083_v16 = vld [vmem:[%s9191_s3 + $0x58] sm:$0x7f]  ;;  %s8304_s3 = sld [smem:[#allocation10 + $0x181]] }
0x1b7e   :  { %6825 = vmatprep.mubr.msk.f32.mxu0 %vm7434_vm0, %v7435_v6  ;;  %7081 = vmatprep.subr.bf16.mxu1 %v7433_v3 }
0x1b7f   :  { %7080 = vmatpush3.bf16.msk.msra.mxu0 %vm7750_vm13, %v7078_v18 }
0x1b80   :  { %6819 = vmatmul.mubr.msk.f32.vlgmr.msra.gmra.mrb[44].mxu1 %vm489_vm10, %v4218_v12  ;;  %7085 = vmatprep.subr.bf16.mxu0 %v7433_v3  ;;  %v6078_v12 = vld [vmem:[%s9192_s22 + $0x3] ss:$0 sm:$0xff]  ;;  %s8306_s22 = sld [smem:[#allocation10 + $0x2]] }
0x1b81   :  { %6832 = vmatprep.mubr.msk.f32.mxu1 %vm7434_vm0, %v7435_v6  ;;  %7084 = vmatpush3.bf16.msk.msra.mxu1 %vm7750_vm13, %v7082_v52 }
0x1b82   :  { %7088 = vmatprep.subr.bf16.mxu1 %v7433_v3 }
0x1b83   :  { %9219 = sst [smem:[#allocation69_spill]] %s8304_s3 }
0x1b86   :  { %9220 = sst [smem:[#allocation70_spill]] %s8306_s22 }
0x1c4f   :  { %v4302_v63 = vpop.f32.mrb[42].mxu1  ;;  %v4389_v19 = vpop.f32.mrb[42].mxu0 }
0x1c50   :  { %v4303_v20 = vadd.f32 %v6048_v56, %v4302_v63  ;;  %v4390_v21 = vadd.f32 %v6054_v10, %v4389_v19  ;;  %v6806_v22 = vpop.f32.mrb[43].mxu1  ;;  %v6813_v24 = vpop.f32.mrb[43].mxu0  ;;  %v6088_v63 = vld [vmem:[%s9193_s9 + $0x48] sm:$0xff]  ;;  %v6089_v19 = vld [vmem:[%s9193_s9 + $0x50] sm:$0xff] }
0x1c51   :  { %v6095_v22 = vld [vmem:[%s9194_s17 + $0x60] sm:$0xff]  ;;  %v6096_v24 = vld [vmem:[%s9194_s17 + $0x68] sm:$0xff] }
0x1c52   :  { %v4307_v28 = vmul.f32 0.01, %v4303_v20  ;;  %vm4393_vm8 = vcmp.gt.f32.partialorder %v4390_v21, 0.0  ;;  %v4394_v29 = vmul.f32 0.01, %v4390_v21  ;;  %vm4306_vm10 = vcmp.gt.f32.partialorder %v4303_v20, 0.0 }
0x1c53   :  { %v4476_v17 = vpop.f32.mrb[44].mxu1 }
0x1c54   :  { %v4395_v30 = vsel %vm4393_vm8, %v4390_v21, %v4394_v29  ;;  %v4477_v32 = vadd.f32 %v6060_v26, %v4476_v17  ;;  %v6820_v33 = vpop.f32.mrb[45].mxu1  ;;  %v4308_v34 = vsel %vm4306_vm10, %v4303_v20, %v4307_v28  ;;  %v7092_v20 = vpack.c.bf16 %v6089_v19, %v6088_v63  ;;  %v6090_v21 = vld [vmem:[%s9193_s9 + $0x58] sm:$0x7f]  ;;  %v6085_v28 = vld [vmem:[%s9200_s24 + $0x3] ss:$0 sm:$0xff]  ;;  %s8308_s9 = sld [smem:[#allocation10 + $0x82]] }
0x1c55   :  { %4502 = vst.msk [vmem:[#allocation16 + $0x18] sm:$0xff] %vm834_vm14, %v4395_v30  ;;  %v4490_v27 = vsel %vm834_vm14, %v4308_v34, -inf  ;;  %v7095_v26 = vpack.c.bf16 %v6096_v24, %v6095_v22  ;;  %s8314_s24 = sld [smem:[#allocation10 + $0x3]] }
0x1c56   :  { %vm4480_vm12 = vcmp.gt.f32.partialorder %v4477_v32, 0.0  ;;  %v4481_v38 = vmul.f32 0.01, %v4477_v32  ;;  %4491 = vmax.xlane.f32.xlu0 %v4490_v27  ;;  %v6098_v27 = vld [vmem:[%s9194_s17 + $0x78] sm:$0x3] }
0x1c58   :  { %v4482_v39 = vsel %vm4480_vm12, %v4477_v32, %v4481_v38 }
0x1c59   :  { %v4485_v31 = vmul.f32 0.5, %v4482_v39  ;;  %4504 = vst.msk [vmem:[#allocation17 + $0x18] sm:$0xff] %vm834_vm14, %v4482_v39  ;;  %v6103_v39 = vld [vmem:[%s9196_s26 + $0x60] sm:$0xff] }
0x1c5a   :  { %9221 = sst [smem:[#allocation71_spill]] %s8308_s9 }
0x1c5b   :  { %v4486_v40 = vmul.f32 1.442695, %v4485_v31  ;;  %v6104_v31 = vld [vmem:[%s9196_s26 + $0x68] sm:$0xff]  ;;  %9224 = sst [smem:[#allocation74_spill]] %s8314_s24  ;;  %s8336_s24 = sld [smem:[#allocation10 + $0x5]] }
0x1c5d   :  { %7181 = vpow2.f32 %v4486_v40  ;;  %v7102_v40 = vpack.c.bf16 %v6104_v31, %v6103_v39 }
0x1c61   :  { %9235 = sst [smem:[#allocation85_spill]] %s8336_s24  ;;  %s5700_s24 = sshll.u32 %s7437_s23, 4  ;;  %s5701_s24 = int_to_ptr.vmem [resolvable:$true] %s5700_s24 }
0x1c62   :  { %s7307_s14 = scalar_lea.vmem %s5701_s24, 512  ;;  %p7312_p13 = scmp.lt.s32.totalorder %s5701_s24, %s5701_s24 }
0x1c63   :  { %p7308_p12 = scmp.ne.s32.totalorder %s5701_s24, %s7307_s14  ;;  %p7313_p0 = scmp.lt.s32.totalorder %s7307_s14, %s7307_s14 }
0x1c65   :  { %p7314_p1 = por %p7313_p0, %p7312_p13 }
0x1c67   :  { %v7182_v42 = vpop.eup %7181  ;;  %p7315_p2 = pnand %p7314_p1, %p7308_p12 }
0x1c68   :  { %v4488_v43 = vmul.f32 %v7182_v42, %v6063_v41  ;;  %v6092_v41 = vld [vmem:[%s9197_s4 + $0x3] ss:$0 sm:$0xff]  ;;  %s8278_s4 = sld [smem:[#allocation7 + $0x182]] }
0x1c6a   :  { %v4489_v44 = vadd.f32 %v4488_v43, %v4395_v30 }
0x1c6c   :  { %6826 = vmatmul.mubr.msk.f32.vlgmr.msra.gmra.mrb[44].mxu0 %vm834_vm14, %v4489_v44 }
0x1c6d   :  { %6841 = vmatprep.mubr.msk.f32.mxu0 %vm7434_vm0, %v7435_v6  ;;  %7087 = vmatpush3.bf16.msra.mxu0 %v7086_v23 }
0x1c6e   :  { %6839 = vmatprep.subr.mxu0 %v7435_v6  ;;  %9206 = sst [smem:[#allocation56_spill]] %s8278_s4 }
0x1c71   :  { %6840 = vmatpush3.msk.msra.mxu0 %vm1031_vm7, %v6076_v36 }
0x1c72   :  { %7091 = vmatprep.subr.bf16.mxu0 %v7433_v3 }
0x1ce3   :  { %v4492_v45 = vpop.xlane.xlu0 %4491 }
0x1ce4   :  { %v4493_v46 = vsub.f32 %v4308_v34, %v4492_v45  ;;  %v6097_v34 = vld [vmem:[%s9194_s17 + $0x70] sm:$0xff]  ;;  %s8310_s17 = sld [smem:[#allocation10 + $0x102]] }
0x1ce5   :  { %v7098_v38 = vpack.c.bf16 %v6098_v27, %v6097_v34 }
0x1ce6   :  { %v4494_v47 = vmul.f32 1.442695, %v4493_v46  ;;  %v6105_v46 = vld [vmem:[%s9196_s26 + $0x70] sm:$0xff] }
0x1ce8   :  { %7183 = vpow2.f32 %v4494_v47  ;;  %v6106_v47 = vld [vmem:[%s9196_s26 + $0x78] sm:$0x3]  ;;  %s8312_s26 = sld [smem:[#allocation10 + $0x182]] }
0x1cea   :  { %9222 = sst [smem:[#allocation72_spill]] %s8310_s17 }
0x1cee   :  { %9223 = sst [smem:[#allocation73_spill]] %s8312_s26  ;;  %s5688_s26 = sshll.u32 %s7438_s30, 4  ;;  %s5689_s26 = int_to_ptr.vmem [resolvable:$true] %s5688_s26 }
0x1cf2   :  { %v7184_v48 = vpop.eup %7183 }
0x1cf3   :  { %v4496_v49 = vsel %vm834_vm14, %v7184_v48, 0.0 }
0x1cf4   :  { %4497 = vadd.xlane.f32.xlu1 %v4496_v49  ;;  %v6100_v49 = vld [vmem:[%s9201_s8 + $0x3] ss:$0 sm:$0xff]  ;;  %s8320_s8 = sld [smem:[#allocation10 + $0x183]] }
0x1cfa   :  { %9227 = sst [smem:[#allocation77_spill]] %s8320_s8  ;;  %s8342_s8 = sld [smem:[#allocation10 + $0x105]] }
0x1d00   :  { %9238 = sst [smem:[#allocation88_spill]] %s8342_s8 }
0x1d3f   :  { %v4585_v14 = vpop.f32.mrb[44].mxu0 }
0x1d40   :  { %v6827_v58 = vpop.f32.mrb[45].mxu0 }
0x1d81   :  { %v4498_v59 = vpop.xlane.xlu1 %4497 }
0x1d82   :  { %7185 = vrcp.f32 %v4498_v59 }
0x1d8c   :  { %v7186_v60 = vpop.eup %7185 }
0x1d8d   :  { %v4500_v61 = vmul.f32 %v7186_v60, %v7184_v48  ;;  %v7105_v48 = vpack.c.bf16 %v6106_v47, %v6105_v46 }
0x1d8f   :  { %4506 = vst.msk [vmem:[#allocation19 + $0x18] sm:$0xff] %vm834_vm14, %v4500_v61  ;;  %6833 = vmatmul.mubr.msk.f32.vlgmr.msra.gmra.mrb[46].mxu1 %vm834_vm14, %v4500_v61 }
0x1d90   :  { %6850 = vmatprep.mubr.msk.f32.mxu1 %vm7434_vm0, %v7435_v6  ;;  %7090 = vmatpush3.bf16.msra.mxu1 %v7089_v15 }
0x1d91   :  { %6848 = vmatprep.subr.mxu1 %v7435_v6 }
0x1d94   :  { %6849 = vmatpush3.msk.msra.mxu1 %vm493_vm6, %v6083_v16 }
0x1d95   :  { %7094 = vmatprep.subr.bf16.mxu1 %v7433_v3 }
0x1e62   :  { %v4661_v0 = vpop.f32.mrb[46].mxu1 }
0x1e63   :  { %v4662_v1 = vadd.f32 %v4661_v0, %v4585_v14  ;;  %v6834_v2 = vpop.f32.mrb[47].mxu1 }
0x1e65   :  { %v4673_v4 = vadd.f32 %v6073_v37, %v4662_v1 }
0x1e67   :  { %vm4674_vm14 = vcmp.gt.f32.partialorder %v4673_v4, 0.0  ;;  %v4675_v5 = vmul.f32 0.01, %v4673_v4 }
0x1e69   :  { %v4676_v7 = vsel %vm4674_vm14, %v4673_v4, %v4675_v5 }
0x1e6a   :  { %6842 = vmatmul.mubr.msk.f32.vlgmr.msra.gmra.mrb[46].mxu0 %vm1027_vm11, %v4676_v7 }
0x1e6b   :  { %6859 = vmatprep.mubr.msk.f32.mxu0 %vm7434_vm0, %v7435_v6  ;;  %7093 = vmatpush3.bf16.msra.mxu0 %v7092_v20 }
0x1e6c   :  { %6857 = vmatprep.subr.mxu0 %v7435_v6 }
0x1e6f   :  { %6858 = vmatpush3.msk.msra.mxu0 %vm493_vm6, %v6090_v21 }
0x1e70   :  { %7101 = vmatprep.subr.bf16.mxu0 %v7433_v3 }
0x1f3d   :  { %v4761_v8 = vpop.f32.mrb[46].mxu0 }
0x1f3e   :  { %v4762_v9 = vadd.f32 %v6078_v12, %v4761_v8  ;;  %v6843_v18 = vpop.f32.mrb[47].mxu0 }
0x1f40   :  { %vm4765_vm7 = vcmp.gt.f32.partialorder %v4762_v9, 0.0  ;;  %v4766_v56 = vmul.f32 0.01, %v4762_v9 }
0x1f42   :  { %v4767_v10 = vsel %vm4765_vm7, %v4762_v9, %v4766_v56 }
0x1f43   :  { %6851 = vmatmul.mubr.msk.f32.vlgmr.msra.gmra.mrb[48].mxu1 %vm1118_vm15, %v4767_v10 }
0x1f44   :  { %6870 = vmatprep.mubr.msk.f32.mxu1 %vm7434_vm0, %v7435_v6  ;;  %7096 = vmatpush3.bf16.msra.mxu1 %v7095_v26 }
0x1f45   :  { %7097 = vmatprep.subr.bf16.mxu1 %v7433_v3 }
0x1f48   :  { %7100 = vmatpush3.bf16.msk.msra.mxu1 %vm7750_vm13, %v7098_v38 }
0x2016   :  { %v4852_v29 = vpop.f32.mrb[48].mxu1 }
0x2017   :  { %v4853_v17 = vadd.f32 %v6085_v28, %v4852_v29  ;;  %v6852_v30 = vpop.f32.mrb[49].mxu1 }
0x2019   :  { %vm4856_vm11 = vcmp.gt.f32.partialorder %v4853_v17, 0.0  ;;  %v4857_v32 = vmul.f32 0.01, %v4853_v17 }
0x201b   :  { %v4858_v33 = vsel %vm4856_vm11, %v4853_v17, %v4857_v32 }
0x201c   :  { %6860 = vmatmul.mubr.msk.f32.vlgmr.msra.gmra.mrb[48].mxu0 %vm1118_vm15, %v4858_v33 }
0x201d   :  { %6881 = vmatprep.mubr.msk.f32.mxu0 %vm7434_vm0, %v7435_v6  ;;  %7103 = vmatpush3.bf16.msra.mxu0 %v7102_v40 }
0x201e   :  { %7104 = vmatprep.subr.bf16.mxu0 %v7433_v3 }
0x2021   :  { %7107 = vmatpush3.bf16.msk.msra.mxu0 %vm7750_vm13, %v7105_v48 }
0x20ef   :  { %v4943_v42 = vpop.f32.mrb[48].mxu0 }
0x20f0   :  { %v4944_v43 = vadd.f32 %v6092_v41, %v4943_v42  ;;  %v6861_v44 = vpop.f32.mrb[49].mxu0 }
0x20f2   :  { %vm4947_vm0 = vcmp.gt.f32.partialorder %v4944_v43, 0.0  ;;  %v4948_v6 = vmul.f32 0.01, %v4944_v43 }
0x20f4   :  { %v4949_v45 = vsel %vm4947_vm0, %v4944_v43, %v4948_v6 }
0x20f5   :  { %6871 = vmatmul.mubr.msk.f32.vlgmr.msra.gmra.mrb[50].mxu1 %vm1298_vm9, %v4949_v45 }
0x21c8   :  { %v5035_v50 = vpop.f32.mrb[50].mxu1 }
0x21c9   :  { %v5036_v51 = vadd.f32 %v6100_v49, %v5035_v50  ;;  %v6872_v52 = vpop.f32.mrb[51].mxu1 }
0x21cb   :  { %vm5039_vm6 = vcmp.gt.f32.partialorder %v5036_v51, 0.0  ;;  %v5040_v3 = vmul.f32 0.01, %v5036_v51 }
0x21cd   :  { %v5041_v14 = vsel %vm5039_vm6, %v5036_v51, %v5040_v3 }
0x21ce   :  { %6882 = vmatmul.mubr.msk.f32.vlgmr.msra.gmra.mrb[50].mxu0 %vm1298_vm9, %v5041_v14 }
0x21cf   :  { %7318 = shalt.err (!%p7315_p2)
}
0x21d0   :  { %s9245_s19 = sld [smem:[#allocation52_spill]] }
0x21d6   :  { %s7319_s27 = scalar_lea.hbm %s9245_s19, 512 }
0x21d7   :  { %p7320_p3 = scmp.ne.s32.totalorder %s9245_s19, %s7319_s27  ;;  %p7323_p4 = scmp.lt.u32.totalorder %s7319_s27, %s9245_s19 }
0x21d9   :  { %p7325_p5 = pnand %p7323_p4, %p7320_p3 }
0x21db   :  { %7328 = shalt.err (!%p7325_p5)
}
0x21dc   :  { %s7439_s28 = smov 128   ;;  %s7440_s23 = smov 8  }
0x21dd   :  { %5706 = dma.vmem_to_hbm [thread:$0]  %s5701_s24, 512, %s9245_s19, [#allocation18], %s7439_s28, %s7439_s28, %s7440_s23  }
0x21de   :  { %s7329_s30 = scalar_lea.vmem %s5689_s26, 512  ;;  %p7334_p7 = scmp.lt.s32.totalorder %s5689_s26, %s5689_s26 }
0x21df   :  { %p7330_p6 = scmp.ne.s32.totalorder %s5689_s26, %s7329_s30  ;;  %p7335_p8 = scmp.lt.s32.totalorder %s7329_s30, %s7329_s30 }
0x21e1   :  { %p7336_p9 = por %p7335_p8, %p7334_p7 }
0x21e3   :  { %p7337_p10 = pnand %p7336_p9, %p7330_p6 }
0x21e5   :  { %7340 = shalt.err (!%p7337_p10)
}
0x21e6   :  { %s9246_s14 = sld [smem:[#allocation51_spill]] }
0x21ec   :  { %s7341_s27 = scalar_lea.hbm %s9246_s14, 512 }
0x21ed   :  { %p7342_p11 = scmp.ne.s32.totalorder %s9246_s14, %s7341_s27  ;;  %p7345_p12 = scmp.lt.u32.totalorder %s7341_s27, %s9246_s14 }
0x21ef   :  { %p7347_p13 = pnand %p7345_p12, %p7342_p11 }
0x21f1   :  { %7350 = shalt.err (!%p7347_p13)
}
0x21f2   :  { %5694 = dma.vmem_to_hbm [thread:$0]  %s5689_s26, 512, %s9246_s14, [#allocation3], %s7439_s28, %s7439_s28, %s7440_s23  }
0x21f3   :  { %s8370_s24 = sld [smem:[#allocation10 + $0x186]]  ;;  %s7441_s19 = smov [#allocation19]  }
0x21f4   :  { %s5712_s30 = sshll.u32 %s7441_s19, 4  ;;  %s8372_s25 = sld [smem:[#allocation10 + $0x7]]  ;;  %s5713_s30 = int_to_ptr.vmem [resolvable:$true] %s5712_s30 }
0x21f5   :  { %s7351_s20 = scalar_lea.vmem %s5713_s30, 512  ;;  %p7356_p1 = scmp.lt.s32.totalorder %s5713_s30, %s5713_s30 }
0x21f6   :  { %p7352_p0 = scmp.ne.s32.totalorder %s5713_s30, %s7351_s20  ;;  %p7357_p2 = scmp.lt.s32.totalorder %s7351_s20, %s7351_s20 }
0x21f8   :  { %p7358_p3 = por %p7357_p2, %p7356_p1 }
0x21f9   :  { %9247 = sst [smem:[#allocation95_spill]] %s8370_s24 }
0x21fa   :  { %9248 = sst [smem:[#allocation96_spill]] %s8372_s25  ;;  %p7359_p4 = pnand %p7358_p3, %p7352_p0 }
0x21fc   :  { %7362 = shalt.err (!%p7359_p4)
}
0x21fd   :  { %s9249_s27 = sld [smem:[#allocation53_spill]] }
0x2203   :  { %s7363_s1 = scalar_lea.hbm %s9249_s27, 512 }
0x2204   :  { %p7364_p5 = scmp.ne.s32.totalorder %s9249_s27, %s7363_s1  ;;  %p7367_p6 = scmp.lt.u32.totalorder %s7363_s1, %s9249_s27 }
0x2206   :  { %p7369_p7 = pnand %p7367_p6, %p7364_p5 }
0x2208   :  { %7372 = shalt.err (!%p7369_p7)
}
0x2209   :  { %5718 = dma.vmem_to_hbm [thread:$0]  %s5713_s30, 512, %s9249_s27, [#allocation18], %s7439_s28, %s7439_s28, %s7440_s23  }
0x220a   :  { %s8381_s26 = sld [smem:[#allocation10 + $0x87]]  ;;  %s8385_s20 = sld [smem:[#allocation11 + $0x6]]  ;;  %v5146_v25 = vstv %s8274_s6  ;;  %v5167_v58 = vstv %s8276_s12  ;;  %v5188_v59 = vstv %s8278_s4  ;;  %v5209_v60 = vstv %s8280_s5 }
0x220b   :  { %s8383_s14 = sld [smem:[#allocation10 + $0x107]]  ;;  %s8391_s1 = sld [smem:[#allocation13]]  ;;  %v5150_v61 = vstv %s8282_s2  ;;  %v5171_v62 = vstv %s8284_s7  ;;  %v5192_v35 = vstv %s8286_s10  ;;  %v5213_v23 = vstv %s8288_s11 }
0x220c   :  { %s8387_s19 = sld [smem:[#allocation10 + $0x187]]  ;;  %s8393_s24 = sld [smem:[#allocation13 + $0x80]]  ;;  %v5219_v36 = vstv %s8290_s13  ;;  %v5222_v0 = vstv %s8292_s21  ;;  %v5226_v37 = vstv %s8294_s15  ;;  %v5230_v1 = vstv %s8296_s16 }
0x220d   :  { %s8389_s25 = sld [smem:[#allocation11 + $0x7]]  ;;  %s8395_s8 = sld [smem:[#allocation13 + $0x100]]  ;;  %v5240_v2 = vstv %s8298_s18  ;;  %v5243_v4 = vstv %s8300_s0  ;;  %v5247_v5 = vstv %s8302_s29  ;;  %v5251_v7 = vstv %s8304_s3 }
0x220e   :  { %s8397_s28 = sld [smem:[#allocation13 + $0x180]]  ;;  %s8431_s12 = sld [smem:[#allocation13 + $0x2]]  ;;  %v5261_v11 = vstv %s8306_s22  ;;  %v5264_v13 = vstv %s8308_s9  ;;  %v5268_v15 = vstv %s8310_s17 }
0x220f   :  { %s8399_s23 = sld [smem:[#allocation13 + $0x200]]  ;;  %s9271_s4 = sld [smem:[#allocation73_spill]] }
0x2210   :  { %9250 = sst [smem:[#allocation97_spill]] %s8381_s26  ;;  %s8401_s30 = sld [smem:[#allocation13 + $0x280]]  ;;  %v5369_v31 = vstv %s8381_s26 }
0x2211   :  { %9251 = sst [smem:[#allocation98_spill]] %s8383_s14  ;;  %s8403_s27 = sld [smem:[#allocation13 + $0x300]]  ;;  %v5373_v41 = vstv %s8383_s14 }
0x2212   :  { %9252 = sst [smem:[#allocation99_spill]] %s8385_s20  ;;  %s9272_s5 = sld [smem:[#allocation74_spill]]  ;;  %v5390_v6 = vstv %s8393_s24 }
0x2213   :  { %9253 = sst [smem:[#allocation100_spill]] %s8387_s19  ;;  %s8409_s19 = sld [smem:[#allocation13 + $0x81]] }
0x2214   :  { %9254 = sst [smem:[#allocation101_spill]] %s8389_s25  ;;  %s8405_s25 = sld [smem:[#allocation13 + $0x380]] }
0x2215   :  { %9255 = sst [smem:[#allocation102_spill]] %s8391_s1  ;;  %s8407_s1 = sld [smem:[#allocation13 + $0x1]]  ;;  %v5272_v16 = vstv %s9271_s4 }
0x2216   :  { %9256 = sst [smem:[#allocation103_spill]] %s8393_s24  ;;  %s9273_s6 = sld [smem:[#allocation75_spill]] }
0x2217   :  { %9257 = sst [smem:[#allocation104_spill]] %s8395_s8  ;;  %s8411_s8 = sld [smem:[#allocation13 + $0x101]] }
0x2218   :  { %9258 = sst [smem:[#allocation105_spill]] %s8397_s28  ;;  %s8413_s28 = sld [smem:[#allocation13 + $0x181]]  ;;  %v5282_v12 = vstv %s9272_s5 }
0x2219   :  { %9259 = sst [smem:[#allocation106_spill]] %s8399_s23  ;;  %s8415_s23 = sld [smem:[#allocation13 + $0x201]] }
0x221a   :  { %9260 = sst [smem:[#allocation107_spill]] %s8401_s30  ;;  %s9275_s2 = sld [smem:[#allocation76_spill]] }
0x221b   :  { %9261 = sst [smem:[#allocation108_spill]] %s8403_s27  ;;  %s8439_s7 = sld [smem:[#allocation13 + $0x82]] }
0x221c   :  { %9262 = sst [smem:[#allocation109_spill]] %s8405_s25  ;;  %s8421_s25 = sld [smem:[#allocation13 + $0x281]]  ;;  %v5285_v8 = vstv %s9273_s6 }
0x221d   :  { %9263 = sst [smem:[#allocation110_spill]] %s8409_s19  ;;  %s8423_s19 = sld [smem:[#allocation13 + $0x301]] }
0x221e   :  { %9264 = sst [smem:[#allocation111_spill]] %s8411_s8  ;;  %s9277_s10 = sld [smem:[#allocation77_spill]] }
0x221f   :  { %9265 = sst [smem:[#allocation112_spill]] %s8413_s28  ;;  %s9278_s11 = sld [smem:[#allocation78_spill]] }
0x2220   :  { %9266 = sst [smem:[#allocation113_spill]] %s8415_s23  ;;  %s8429_s23 = sld [smem:[#allocation13 + $0x381]]  ;;  %v5289_v9 = vstv %s9275_s2 }
0x2221   :  { %9270 = sst [smem:[#allocation117_spill]] %s8431_s12  ;;  %s8445_s12 = sld [smem:[#allocation13 + $0x102]] }
0x2222   :  { %9267 = sst [smem:[#allocation114_spill]] %s8421_s25  ;;  %s9281_s13 = sld [smem:[#allocation79_spill]] }
0x2223   :  { %9268 = sst [smem:[#allocation115_spill]] %s8423_s19  ;;  %s8437_s19 = sld [smem:[#allocation14]] }
0x2224   :  { %9276 = sst [smem:[#allocation119_spill]] %s8439_s7  ;;  %s8447_s21 = sld [smem:[#allocation13 + $0x182]]  ;;  %v5293_v18 = vstv %s9277_s10 }
0x2225   :  { %s9283_s15 = sld [smem:[#allocation81_spill]]  ;;  %s9284_s16 = sld [smem:[#allocation82_spill]]  ;;  %v5234_v56 = vstv %s9278_s11 }
0x2226   :  { %9269 = sst [smem:[#allocation116_spill]] %s8429_s23  ;;  %s9279_s23 = sld [smem:[#allocation80_spill]] }
0x2227   :  { %9280 = sst [smem:[#allocation120_spill]] %s8445_s12  ;;  %s9287_s18 = sld [smem:[#allocation84_spill]] }
0x2228   :  { %s8453_s7 = sld [smem:[#allocation13 + $0x202]]  ;;  %s9289_s29 = sld [smem:[#allocation85_spill]]  ;;  %v5303_v63 = vstv %s9281_s13 }
0x2229   :  { %9274 = sst [smem:[#allocation118_spill]] %s8437_s19  ;;  %s9285_s19 = sld [smem:[#allocation83_spill]] }
0x222a   :  { %9282 = sst [smem:[#allocation121_spill]] %s8447_s21  ;;  %s8455_s0 = sld [smem:[#allocation13 + $0x282]] }
0x222b   :  { %s9290_s3 = sld [smem:[#allocation86_spill]]  ;;  %s9291_s12 = sld [smem:[#allocation87_spill]]  ;;  %v5306_v19 = vstv %s9283_s15  ;;  %v5276_v20 = vstv %s9284_s16 }
0x222c   :  { %s8461_s21 = sld [smem:[#allocation13 + $0x302]]  ;;  %s9295_s17 = sld [smem:[#allocation89_spill]]  ;;  %v5255_v10 = vstv %s9279_s23 }
0x222d   :  { %s9293_s22 = sld [smem:[#allocation88_spill]]  ;;  %s9296_s4 = sld [smem:[#allocation90_spill]]  ;;  %v5314_v22 = vstv %s9287_s18 }
0x222e   :  { %9286 = sst [smem:[#allocation122_spill]] %s8453_s7  ;;  %s8463_s9 = sld [smem:[#allocation13 + $0x382]]  ;;  %v5324_v24 = vstv %s9289_s29 }
0x222f   :  { %s9297_s7 = sld [smem:[#allocation91_spill]]  ;;  %s9299_s5 = sld [smem:[#allocation92_spill]]  ;;  %v5310_v21 = vstv %s9285_s19 }
0x2230   :  { %9288 = sst [smem:[#allocation123_spill]] %s8455_s0  ;;  %s8469_s0 = sld [smem:[#allocation13 + $0x3]] }
0x2231   :  { %s8471_s6 = sld [smem:[#allocation13 + $0x83]]  ;;  %s9301_s2 = sld [smem:[#allocation93_spill]]  ;;  %v5297_v26 = vstv %s9290_s3  ;;  %v5327_v28 = vstv %s9291_s12 }
0x2232   :  { %9292 = sst [smem:[#allocation124_spill]] %s8461_s21  ;;  %s9302_s10 = sld [smem:[#allocation94_spill]]  ;;  %v5335_v17 = vstv %s9295_s17 }
0x2233   :  { %s9303_s21 = sld [smem:[#allocation95_spill]]  ;;  %s9305_s11 = sld [smem:[#allocation96_spill]]  ;;  %v5331_v29 = vstv %s9293_s22  ;;  %v5318_v30 = vstv %s9296_s4 }
0x2234   :  { %9294 = sst [smem:[#allocation125_spill]] %s8463_s9  ;;  %s8477_s9 = sld [smem:[#allocation13 + $0x103]] }
0x2235   :  { %s8479_s23 = sld [smem:[#allocation13 + $0x183]]  ;;  %v5345_v32 = vstv %s9297_s7  ;;  %v5348_v33 = vstv %s9299_s5  ;;  %s9311_s29 = sld [smem:[#allocation102_spill]] }
0x2236   :  { %9298 = sst [smem:[#allocation126_spill]] %s8469_s0  ;;  %s8485_s15 = sld [smem:[#allocation13 + $0x203]] }
0x2237   :  { %9300 = sst [smem:[#allocation127_spill]] %s8471_s6  ;;  %s8487_s19 = sld [smem:[#allocation13 + $0x283]]  ;;  %v5352_v34 = vstv %s9301_s2 }
0x2238   :  { %s8493_s13 = sld [smem:[#allocation14 + $0x1]]  ;;  %s8495_s12 = sld [smem:[#allocation13 + $0x303]]  ;;  %v5339_v27 = vstv %s9302_s10 }
0x2239   :  { %v5356_v38 = vstv %s9303_s21  ;;  %v5366_v39 = vstv %s9305_s11  ;;  %s8503_s4 = sld [smem:[#allocation13 + $0x383]]  ;;  %s8509_s7 = sld [smem:[#allocation13 + $0x4]] }
0x223a   :  { %9304 = sst [smem:[#allocation128_spill]] %s8477_s9  ;;  %s9319_s2 = sld [smem:[#allocation49_spill]] }
0x223b   :  { %9306 = sst [smem:[#allocation129_spill]] %s8479_s23  ;;  %s9321_s10 = sld [smem:[#allocation110_spill]]  ;;  %v5387_v44 = vstv %s9311_s29 }
0x223c   :  { %9307 = sst [smem:[#allocation130_spill]] %s8485_s15  ;;  %s8517_s11 = sld [smem:[#allocation14 + $0x3]] }
0x223d   :  { %9309 = sst [smem:[#allocation131_spill]] %s8487_s19  ;;  %s8501_s19 = sld [smem:[#allocation14 + $0x2]] }
0x223e   :  { %9312 = sst [smem:[#allocation132_spill]] %s8493_s13  ;;  %s8511_s21 = sld [smem:[#allocation13 + $0x84]] }
0x223f   :  { %9317 = sst [smem:[#allocation134_spill]] %s8503_s4  ;;  %s8519_s20 = sld [smem:[#allocation13 + $0x104]] }
0x2240   :  { %9320 = sst [smem:[#allocation135_spill]] %s8509_s7  ;;  %s9330_s29 = sld [smem:[#allocation117_spill]]  ;;  %v6108_v51 = vld [vmem:[%s9319_s2 + $0x3] ss:$0 sm:$0xff] }
0x2241   :  { %s8527_s7 = sld [smem:[#allocation13 + $0x204]]  ;;  %s8544_s2 = sld [smem:[#allocation13 + $0x5]] }
0x2242   :  { %9324 = sst [smem:[#allocation136_spill]] %s8517_s11  ;;  %s8534_s17 = sld [smem:[#allocation13 + $0x284]] }
0x2243   :  { %9316 = sst [smem:[#allocation133_spill]] %s8501_s19  ;;  %s8536_s27 = sld [smem:[#allocation13 + $0x304]] }
0x2244   :  { %9322 = sst [smem:[#allocation110_spill]] %s8511_s21  ;;  %s8525_s21 = sld [smem:[#allocation13 + $0x184]] }
0x2245   :  { %9325 = sst [smem:[#allocation137_spill]] %s8519_s20  ;;  %s8550_s28 = sld [smem:[#allocation13 + $0x85]] }
0x2246   :  { %s8552_s8 = sld [smem:[#allocation13 + $0x105]]  ;;  %s8558_s16 = sld [smem:[#allocation14 + $0x4]] }
0x2247   :  { %9331 = sst [smem:[#allocation117_spill]] %s8527_s7  ;;  %s8560_s25 = sld [smem:[#allocation13 + $0x185]] }
0x2248   :  { %s8566_s14 = sld [smem:[#allocation13 + $0x205]]  ;;  %s9345_s20 = sld [smem:[#allocation135_spill]] }
0x2249   :  { %9337 = sst [smem:[#allocation139_spill]] %s8536_s27  ;;  %s9346_s5 = sld [smem:[#allocation110_spill]] }
0x224a   :  { %9329 = sst [smem:[#allocation138_spill]] %s8525_s21  ;;  %s8568_s24 = sld [smem:[#allocation13 + $0x285]] }
0x224b   :  { %s8542_s21 = sld [smem:[#allocation13 + $0x384]]  ;;  %s9347_s30 = sld [smem:[#allocation137_spill]] }
0x224c   :  { %9342 = sst [smem:[#allocation141_spill]] %s8558_s16  ;;  %s8573_s22 = sld [smem:[#allocation13 + $0x305]]  ;;  %v5565_v52 = vstv %s8558_s16 }
0x224d   :  { %s9349_s26 = sld [smem:[#allocation138_spill]]  ;;  %s8575_s7 = sld [smem:[#allocation13 + $0x385]] }
0x224e   :  { %9343 = sst [smem:[#allocation142_spill]] %s8566_s14  ;;  %s8581_s23 = sld [smem:[#allocation13 + $0x6]]  ;;  %v5586_v50 = vstv %s8566_s14 }
0x224f   :  { %s8583_s18 = sld [smem:[#allocation13 + $0x86]]  ;;  %s9404_s27 = sld [smem:[#allocation104_spill]] }
0x2250   :  { %9344 = sst [smem:[#allocation143_spill]] %s8568_s24  ;;  %s8587_s13 = sld [smem:[#allocation13 + $0x106]]  ;;  %v5590_v3 = vstv %s8568_s24 }
0x2251   :  { %9340 = sst [smem:[#allocation140_spill]] %s8542_s21  ;;  %v5541_v43 = vstv %s9347_s30  ;;  %s9405_s9 = sld [smem:[#allocation99_spill]] }
0x2252   :  { %9348 = sst [smem:[#allocation135_spill]] %s8573_s22  ;;  %s8604_s4 = sld [smem:[#allocation13 + $0x186]] }
0x2253   :  { %9350 = sst [smem:[#allocation110_spill]] %s8575_s7  ;;  %s8606_s0 = sld [smem:[#allocation13 + $0x206]] }
0x2254   :  { %s8616_s6 = sld [smem:[#allocation13 + $0x286]]  ;;  %s9406_s15 = sld [smem:[#allocation105_spill]] }
0x2255   :  { %9354 = sst [smem:[#allocation137_spill]] %s8583_s18  ;;  %s8701_s21 = sld [smem:[#allocation13 + $0x386]] }
0x2256   :  { %9357 = sst [smem:[#allocation138_spill]] %s8587_s13  ;;  %s9403_s14 = sld [smem:[#allocation100_spill]] }
0x2257   :  { %s8767_s16 = sld [smem:[#allocation13 + $0x87]]  ;;  %s9409_s3 = sld [smem:[#allocation111_spill]] }
0x2258   :  { %9359 = sst [smem:[#allocation54_spill]] %s8604_s4  ;;  %s9411_s11 = sld [smem:[#allocation101_spill]] }
0x2259   :  { %9361 = sst [smem:[#allocation55_spill]] %s8606_s0  ;;  %s8786_s19 = sld [smem:[#allocation13 + $0x107]] }
0x225a   :  { %s9417_s24 = sld [smem:[#allocation112_spill]] }
0x22a1   :  { %v5127_v14 = vpop.f32.mrb[50].mxu0 }
0x22a2   :  { %v5128_v49 = vadd.f32 %v6108_v51, %v5127_v14  ;;  %v6883_v46 = vpop.f32.mrb[51].mxu0  ;;  %v5545_v51 = vstv %s9349_s26  ;;  %s9477_s26 = sld [smem:[#allocation139_spill]] }
0x22a4   :  { %vm5131_vm13 = vcmp.gt.f32.partialorder %v5128_v49, 0.0  ;;  %v5132_v14 = vmul.f32 0.01, %v5128_v49 }
0x22a6   :  { %v5133_v40 = vsel %vm5131_vm13, %v5128_v49, %v5132_v14  ;;  %v5594_v14 = vstv %s8573_s22  ;;  %s9407_s22 = sld [smem:[#allocation106_spill]] }
0x22a7   :  { %v5147_v42 = vmul.f32 %v5146_v25, %v5133_v40  ;;  %v5168_v47 = vmul.f32 %v5167_v58, %v5133_v40  ;;  %v5189_v48 = vmul.f32 %v5188_v59, %v5133_v40  ;;  %v5210_v46 = vmul.f32 %v5209_v60, %v5133_v40 }
0x22a9   :  { %v5148_v59 = vadd.f32 %v5147_v42, %v8162_v53  ;;  %v5169_v60 = vadd.f32 %v5168_v47, %v8165_v54  ;;  %v5190_v40 = vadd.f32 %v5189_v48, %v8168_v55  ;;  %v5211_v45 = vadd.f32 %v5210_v46, %v8171_v57 }
0x22aa   :  { %v5598_v54 = vstv %s8575_s7  ;;  %v5608_v55 = vstv %s8581_s23  ;;  %v5611_v42 = vstv %s8583_s18  ;;  %v5615_v57 = vstv %s8587_s13  ;;  %s8660_s18 = sld [smem:[#allocation13 + $0x306]]  ;;  %s8739_s13 = sld [smem:[#allocation13 + $0x7]] }
0x22ab   :  { %v5151_v25 = vadd.f32 %v5150_v61, %v5148_v59  ;;  %v5172_v58 = vadd.f32 %v5171_v62, %v5169_v60  ;;  %v5193_v49 = vadd.f32 %v5192_v35, %v5190_v40  ;;  %v5214_v53 = vadd.f32 %v5213_v23, %v5211_v45  ;;  %s9414_s7 = sld [smem:[#allocation119_spill]]  ;;  %s8938_s23 = sld [smem:[#allocation14 + $0x5]] }
0x22ac   :  { %v5619_v48 = vstv %s8604_s4  ;;  %v5623_v46 = vstv %s8606_s0  ;;  %s9420_s0 = sld [smem:[#allocation113_spill]]  ;;  %s9426_s4 = sld [smem:[#allocation108_spill]] }
0x22ad   :  { %vm5152_vm15 = vcmp.gt.f32.partialorder %v5151_v25, 0.0  ;;  %v5153_v47 = vmul.f32 0.01, %v5151_v25  ;;  %vm5173_vm9 = vcmp.gt.f32.partialorder %v5172_v58, 0.0  ;;  %v5174_v61 = vmul.f32 0.01, %v5172_v58 }
0x22ae   :  { %vm5194_vm1 = vcmp.gt.f32.partialorder %v5193_v49, 0.0  ;;  %v5195_v62 = vmul.f32 0.01, %v5193_v49  ;;  %vm5215_vm3 = vcmp.gt.f32.partialorder %v5214_v53, 0.0  ;;  %v5216_v35 = vmul.f32 0.01, %v5214_v53 }
0x22af   :  { %v8634_v23 = vsel %vm5152_vm15, %v5151_v25, %v5153_v47  ;;  %v8636_v45 = vsel %vm5173_vm9, %v5172_v58, %v5174_v61 }
0x22b0   :  { %v8640_v59 = vsel %vm5194_vm1, %v5193_v49, %v5195_v62  ;;  %v8642_v60 = vsel %vm5215_vm3, %v5214_v53, %v5216_v35  ;;  %v5220_v40 = vmul.f32 %v5219_v36, %v8634_v23  ;;  %v5223_v25 = vmul.f32 %v5222_v0, %v8636_v45 }
0x22b1   :  { %v5227_v58 = vmul.f32 %v5226_v37, %v8640_v59  ;;  %v5241_v47 = vmul.f32 %v5240_v2, %v8634_v23  ;;  %v5244_v49 = vmul.f32 %v5243_v4, %v8636_v45  ;;  %v5627_v53 = vstv %s8616_s6 }
0x22b2   :  { %v5224_v36 = vadd.f32 %v5223_v25, %v5220_v40  ;;  %v5231_v0 = vmul.f32 %v5230_v1, %v8642_v60  ;;  %v5248_v61 = vmul.f32 %v5247_v5, %v8640_v59  ;;  %v5262_v37 = vmul.f32 %v5261_v11, %v8634_v23 }
0x22b3   :  { %v5245_v2 = vadd.f32 %v5244_v49, %v5241_v47  ;;  %v5252_v4 = vmul.f32 %v5251_v7, %v8642_v60  ;;  %v5265_v62 = vmul.f32 %v5264_v13, %v8636_v45  ;;  %v5269_v35 = vmul.f32 %v5268_v15, %v8640_v59 }
0x22b4   :  { %v5228_v1 = vadd.f32 %v5227_v58, %v5224_v36  ;;  %v5273_v5 = vmul.f32 %v5272_v16, %v8642_v60  ;;  %v5283_v11 = vmul.f32 %v5282_v12, %v8634_v23  ;;  %v5286_v40 = vmul.f32 %v5285_v8, %v8636_v45 }
0x22b5   :  { %v5249_v7 = vadd.f32 %v5248_v61, %v5245_v2  ;;  %v5266_v25 = vadd.f32 %v5265_v62, %v5262_v37  ;;  %v5290_v13 = vmul.f32 %v5289_v9, %v8640_v59  ;;  %v5304_v15 = vmul.f32 %v5303_v63, %v8634_v23 }
0x22b6   :  { %v5232_v58 = vadd.f32 %v5231_v0, %v5228_v1  ;;  %v5287_v16 = vadd.f32 %v5286_v40, %v5283_v11  ;;  %v5294_v12 = vmul.f32 %v5293_v18, %v8642_v60  ;;  %v5307_v8 = vmul.f32 %v5306_v19, %v8636_v45 }
0x22b7   :  { %v5253_v47 = vadd.f32 %v5252_v4, %v5249_v7  ;;  %v5270_v49 = vadd.f32 %v5269_v35, %v5266_v25  ;;  %v5311_v9 = vmul.f32 %v5310_v21, %v8640_v59  ;;  %v5325_v63 = vmul.f32 %v5324_v24, %v8634_v23 }
0x22b8   :  { %v5235_v36 = vadd.f32 %v5234_v56, %v5232_v58  ;;  %v5291_v0 = vadd.f32 %v5290_v13, %v5287_v16  ;;  %v5308_v18 = vadd.f32 %v5307_v8, %v5304_v15  ;;  %v5328_v19 = vmul.f32 %v5327_v28, %v8636_v45 }
0x22b9   :  { %v5256_v61 = vadd.f32 %v5255_v10, %v5253_v47  ;;  %v5274_v37 = vadd.f32 %v5273_v5, %v5270_v49  ;;  %v5315_v2 = vmul.f32 %v5314_v22, %v8642_v60  ;;  %v5631_v21 = vstv %s8660_s18 }
0x22ba   :  { %vm5236_vm5 = vcmp.gt.f32.partialorder %v5235_v36, 0.0  ;;  %v5295_v4 = vadd.f32 %v5294_v12, %v5291_v0  ;;  %v5312_v24 = vadd.f32 %v5311_v9, %v5308_v18  ;;  %v5332_v56 = vmul.f32 %v5331_v29, %v8640_v59 }
0x22bb   :  { %v5237_v62 = vmul.f32 0.01, %v5235_v36  ;;  %v5258_v28 = vmul.f32 0.01, %v5256_v61  ;;  %v5277_v35 = vadd.f32 %v5276_v20, %v5274_v37  ;;  %v5329_v10 = vadd.f32 %v5328_v19, %v5325_v63 }
0x22bc   :  { %vm5257_vm4 = vcmp.gt.f32.partialorder %v5256_v61, 0.0  ;;  %v5298_v1 = vadd.f32 %v5297_v26, %v5295_v4  ;;  %v5316_v22 = vadd.f32 %v5315_v2, %v5312_v24  ;;  %v5346_v5 = vmul.f32 %v5345_v32, %v8634_v23 }
0x22bd   :  { %vm5278_vm8 = vcmp.gt.f32.partialorder %v5277_v35, 0.0  ;;  %v5279_v11 = vmul.f32 0.01, %v5277_v35  ;;  %v5333_v40 = vadd.f32 %v5332_v56, %v5329_v10  ;;  %v5336_v29 = vmul.f32 %v5335_v17, %v8642_v60 }
0x22be   :  { %v5300_v7 = vmul.f32 0.01, %v5298_v1  ;;  %v5319_v20 = vadd.f32 %v5318_v30, %v5316_v22  ;;  %v5349_v26 = vmul.f32 %v5348_v33, %v8636_v45  ;;  %v5635_v25 = vstv %s8701_s21 }
0x22bf   :  { %v8742_v32 = vsel %vm5236_vm5, %v5235_v36, %v5237_v62  ;;  %v8744_v13 = vsel %vm5257_vm4, %v5256_v61, %v5258_v28  ;;  %vm5299_vm10 = vcmp.gt.f32.partialorder %v5298_v1, 0.0  ;;  %v5337_v17 = vadd.f32 %v5336_v29, %v5333_v40 }
0x22c0   :  { %v8746_v15 = vsel %vm5278_vm8, %v5277_v35, %v5279_v11  ;;  %v5321_v30 = vmul.f32 0.01, %v5319_v20  ;;  %v5350_v58 = vadd.f32 %v5349_v26, %v5346_v5  ;;  %v5353_v33 = vmul.f32 %v5352_v34, %v8640_v59 }
0x22c1   :  { %vm5320_vm12 = vcmp.gt.f32.partialorder %v5319_v20, 0.0  ;;  %v5340_v16 = vadd.f32 %v5339_v27, %v5337_v17  ;;  %v5367_v12 = vmul.f32 %v5366_v39, %v8634_v23  ;;  %v5370_v8 = vmul.f32 %v5369_v31, %v8636_v45 }
0x22c2   :  { %v8759_v47 = vsel %vm5299_vm10, %v5298_v1, %v5300_v7  ;;  %v5354_v49 = vadd.f32 %v5353_v33, %v5350_v58  ;;  %v5357_v9 = vmul.f32 %v5356_v38, %v8642_v60  ;;  %v5388_v34 = vmul.f32 %v5387_v44, %v8742_v32 }
0x22c3   :  { %v5342_v27 = vmul.f32 0.01, %v5340_v16  ;;  %v5371_v39 = vadd.f32 %v5370_v8, %v5367_v12  ;;  %v5374_v31 = vmul.f32 %v5373_v41, %v8640_v59  ;;  %v5391_v23 = vmul.f32 %v5390_v6, %v8744_v13 }
0x22c4   :  { %v8775_v45 = vsel %vm5320_vm12, %v5319_v20, %v5321_v30  ;;  %vm5341_vm14 = vcmp.gt.f32.partialorder %v5340_v16, 0.0  ;;  %v5358_v38 = vadd.f32 %v5357_v9, %v5354_v49  ;;  %v9408_v44 = vstv %s9403_s14  ;;  %s9428_s14 = sld [smem:[#allocation114_spill]] }
0x22c5   :  { %v5378_v63 = vmul.f32 %v9408_v44, %v8642_v60  ;;  %v5375_v36 = vadd.f32 %v5374_v31, %v5371_v39  ;;  %v5392_v0 = vadd.f32 %v5391_v23, %v5388_v34  ;;  %v9410_v18 = vstv %s9404_s27  ;;  %s9429_s27 = sld [smem:[#allocation121_spill]] }
0x22c6   :  { %v5395_v19 = vmul.f32 %v9410_v18, %v8746_v15  ;;  %v9412_v41 = vstv %s8407_s1  ;;  %v9413_v6 = vstv %s9405_s9  ;;  %v9415_v37 = vstv %s9406_s15  ;;  %s9419_s1 = sld [smem:[#allocation107_spill]]  ;;  %s9430_s9 = sld [smem:[#allocation109_spill]] }
0x22c7   :  { %v5424_v59 = vmul.f32 %v9412_v41, %v8742_v32  ;;  %v5361_v61 = vadd.f32 %v9413_v6, %v5358_v38  ;;  %v5399_v2 = vmul.f32 %v9415_v37, %v8759_v47  ;;  %v9416_v60 = vstv %s9321_s10  ;;  %s9423_s10 = sld [smem:[#allocation120_spill]]  ;;  %s9433_s15 = sld [smem:[#allocation127_spill]] }
0x22c8   :  { %v5427_v4 = vmul.f32 %v9416_v60, %v8744_v13  ;;  %v5645_v24 = vstv %s8739_s13  ;;  %v8797_v56 = vsel %vm5341_vm14, %v5340_v16, %v5342_v27  ;;  %v5379_v62 = vadd.f32 %v5378_v63, %v5375_v36  ;;  %s8972_s13 = sld [smem:[#allocation14 + $0x6]] }
0x22c9   :  { %v5396_v28 = vadd.f32 %v5395_v19, %v5392_v0  ;;  %v9418_v35 = vstv %s9407_s22  ;;  %vm5362_vm7 = vcmp.gt.f32.partialorder %v5361_v61, 0.0  ;;  %v5363_v1 = vmul.f32 0.01, %v5361_v61  ;;  %s9435_s22 = sld [smem:[#allocation115_spill]] }
0x22ca   :  { %v5403_v10 = vmul.f32 %v9418_v35, %v8775_v45  ;;  %v5428_v22 = vadd.f32 %v5427_v4, %v5424_v59  ;;  %v9421_v5 = vstv %s9409_s3  ;;  %v9422_v40 = vstv %s9411_s11  ;;  %s9437_s3 = sld [smem:[#allocation122_spill]]  ;;  %s9439_s11 = sld [smem:[#allocation123_spill]] }
0x22cb   :  { %v5431_v11 = vmul.f32 %v9421_v5, %v8746_v15  ;;  %v5382_v29 = vadd.f32 %v9422_v40, %v5379_v62  ;;  %v5400_v7 = vadd.f32 %v5399_v2, %v5396_v28  ;;  %v9424_v20 = vstv %s9330_s29  ;;  %s9432_s29 = sld [smem:[#allocation126_spill]] }
0x22cc   :  { %v5461_v26 = vmul.f32 %v9424_v20, %v8742_v32  ;;  %v9425_v17 = vstv %s9414_s7  ;;  %v8813_v58 = vsel %vm5362_vm7, %v5361_v61, %v5363_v1  ;;  %v9427_v16 = vstv %s9417_s24  ;;  %s9441_s7 = sld [smem:[#allocation128_spill]]  ;;  %s9443_s24 = sld [smem:[#allocation116_spill]] }
0x22cd   :  { %v5464_v30 = vmul.f32 %v9425_v17, %v8744_v13  ;;  %v5432_v33 = vadd.f32 %v5431_v11, %v5428_v22  ;;  %v5435_v12 = vmul.f32 %v9427_v16, %v8759_v47  ;;  %v5648_v8 = vstv %s8767_s16  ;;  %s6242_s16 = sld [smem:[#allocation14 + $0x7]] }
0x22ce   :  { %vm5383_vm11 = vcmp.gt.f32.partialorder %v5382_v29, 0.0  ;;  %v5384_v49 = vmul.f32 0.01, %v5382_v29  ;;  %v5404_v9 = vadd.f32 %v5403_v10, %v5400_v7  ;;  %v9431_v34 = vstv %s9419_s1  ;;  %s9445_s1 = sld [smem:[#allocation129_spill]] }
0x22cf   :  { %v5407_v27 = vmul.f32 %v9431_v34, %v8797_v56  ;;  %v5436_v39 = vadd.f32 %v5435_v12, %v5432_v33  ;;  %v9434_v31 = vstv %s9420_s0  ;;  %v5465_v38 = vadd.f32 %v5464_v30, %v5461_v26  ;;  %s9447_s0 = sld [smem:[#allocation118_spill]] }
0x22d0   :  { %v5439_v23 = vmul.f32 %v9434_v31, %v8775_v45  ;;  %v9436_v44 = vstv %s9423_s10  ;;  %v8828_v36 = vsel %vm5383_vm11, %v5382_v29, %v5384_v49  ;;  %v9438_v18 = vstv %s9426_s4  ;;  %s9451_s10 = sld [smem:[#allocation124_spill]]  ;;  %s8855_s4 = sld [smem:[#allocation13 + $0x187]] }
0x22d1   :  { %v5468_v63 = vmul.f32 %v9436_v44, %v8746_v15  ;;  %v5408_v0 = vadd.f32 %v5407_v27, %v5404_v9  ;;  %v5411_v19 = vmul.f32 %v9438_v18, %v8813_v58  ;;  %v5652_v41 = vstv %s8786_s19 }
0x22d2   :  { %v5440_v59 = vadd.f32 %v5439_v23, %v5436_v39  ;;  %v9440_v6 = vstv %s9428_s14  ;;  %v9442_v2 = vstv %s9429_s27  ;;  %v9444_v62 = vstv %s9430_s9  ;;  %s9452_s14 = sld [smem:[#allocation130_spill]]  ;;  %s9456_s27 = sld [smem:[#allocation132_spill]] }
0x22d3   :  { %v5443_v61 = vmul.f32 %v9440_v6, %v8797_v56  ;;  %v5469_v37 = vadd.f32 %v5468_v63, %v5465_v38  ;;  %v5472_v60 = vmul.f32 %v9442_v2, %v8759_v47  ;;  %v5412_v4 = vadd.f32 %v5411_v19, %v5408_v0  ;;  %s9458_s9 = sld [smem:[#allocation125_spill]] }
0x22d4   :  { %v5415_v28 = vmul.f32 %v9444_v62, %v8828_v36  ;;  %v9446_v35 = vstv %s9432_s29  ;;  %v9448_v1 = vstv %s9433_s15  ;;  %v9449_v11 = vstv %s9435_s22  ;;  %s9460_s29 = sld [smem:[#allocation131_spill]]  ;;  %s9469_s15 = sld [smem:[#allocation134_spill]] }
0x22d5   :  { %v5498_v10 = vmul.f32 %v9446_v35, %v8742_v32  ;;  %v5501_v22 = vmul.f32 %v9448_v1, %v8744_v13  ;;  %v5444_v5 = vadd.f32 %v5443_v61, %v5440_v59  ;;  %v5447_v40 = vmul.f32 %v9449_v11, %v8813_v58  ;;  %s8924_s22 = sld [smem:[#allocation13 + $0x207]] }
0x22d6   :  { %v5473_v29 = vadd.f32 %v5472_v60, %v5469_v37  ;;  %v9450_v7 = vstv %s9437_s3  ;;  %v5416_v26 = vadd.f32 %v5415_v28, %v5412_v4  ;;  %v9453_v17 = vstv %s9439_s11  ;;  %s9484_s3 = sld [smem:[#allocation136_spill]] }
0x22d7   :  { %v5476_v20 = vmul.f32 %v9450_v7, %v8775_v45  ;;  %v5480_v30 = vmul.f32 %v9453_v17, %v8797_v56  ;;  %v5502_v33 = vadd.f32 %v5501_v22, %v5498_v10  ;;  %v9454_v16 = vstv %s9441_s7 }
0x22d8   :  { %v5505_v12 = vmul.f32 %v9454_v16, %v8746_v15  ;;  %v5448_v49 = vadd.f32 %v5447_v40, %v5444_v5  ;;  %v9455_v9 = vstv %s9443_s24  ;;  %v9457_v39 = vstv %s9445_s1  ;;  %s8956_s1 = sld [smem:[#allocation13 + $0x307]] }
0x22d9   :  { %v5451_v34 = vmul.f32 %v9455_v9, %v8828_v36  ;;  %v5477_v27 = vadd.f32 %v5476_v20, %v5473_v29  ;;  %v5509_v31 = vmul.f32 %v9457_v39, %v8759_v47  ;;  %v9459_v23 = vstv %s9447_s0 }
0x22da   :  { %v5419_v38 = vadd.f32 %v9459_v23, %v5416_v26  ;;  %v5506_v44 = vadd.f32 %v5505_v12, %v5502_v33  ;;  %v9461_v63 = vstv %s9345_s20  ;;  %v9462_v18 = vstv %s9346_s5  ;;  %s9466_s5 = sld [smem:[#allocation117_spill]] }
0x22db   :  { %v5535_v0 = vmul.f32 %v9461_v63, %v8742_v32  ;;  %v5538_v19 = vmul.f32 %v9462_v18, %v8744_v13  ;;  %v5452_v59 = vadd.f32 %v5451_v34, %v5448_v49  ;;  %v5481_v6 = vadd.f32 %v5480_v30, %v5477_v27  ;;  %s9467_s20 = sld [smem:[#allocation133_spill]] }
0x22dc   :  { %v9463_v61 = vstv %s9451_s10  ;;  %v9464_v2 = vstv %s9452_s14  ;;  %7187 = vtanh.f32 %v5419_v38  ;;  %v5510_v4 = vadd.f32 %v5509_v31, %v5506_v44 }
0x22dd   :  { %v5484_v37 = vmul.f32 %v9463_v61, %v8813_v58  ;;  %v5513_v60 = vmul.f32 %v9464_v2, %v8775_v45  ;;  %v5539_v62 = vadd.f32 %v5538_v19, %v5535_v0  ;;  %v5542_v28 = vmul.f32 %v5541_v43, %v8746_v15 }
0x22de   :  { %v9465_v35 = vstv %s9456_s27  ;;  %v9468_v22 = vstv %s9458_s9  ;;  %v9470_v11 = vstv %s9460_s29  ;;  %v5546_v20 = vmul.f32 %v5545_v51, %v8759_v47 }
0x22df   :  { %v5455_v10 = vadd.f32 %v9465_v35, %v5452_v59  ;;  %v5485_v1 = vadd.f32 %v5484_v37, %v5481_v6  ;;  %v5488_v5 = vmul.f32 %v9468_v22, %v8828_v36  ;;  %v5517_v40 = vmul.f32 %v9470_v11, %v8797_v56 }
0x22e0   :  { %v5514_v29 = vadd.f32 %v5513_v60, %v5510_v4  ;;  %v5543_v7 = vadd.f32 %v5542_v28, %v5539_v62  ;;  %v9471_v43 = vstv %s8544_s2  ;;  %v9472_v30 = vstv %s8550_s28  ;;  %s9479_s2 = sld [smem:[#allocation140_spill]] }
0x22e1   :  { %v5572_v26 = vmul.f32 %v9471_v43, %v8742_v32  ;;  %7189 = vtanh.f32 %v5455_v10  ;;  %v5489_v17 = vadd.f32 %v5488_v5, %v5485_v1  ;;  %v5575_v33 = vmul.f32 %v9472_v30, %v8744_v13 }
0x22e2   :  { %v5656_v16 = vstv %s8855_s4  ;;  %v5518_v12 = vadd.f32 %v5517_v40, %v5514_v29  ;;  %v9473_v49 = vstv %s8495_s12  ;;  %v5547_v34 = vadd.f32 %v5546_v20, %v5543_v7  ;;  %s8974_s4 = sld [smem:[#allocation13 + $0x387]] }
0x22e3   :  { %v5521_v9 = vmul.f32 %v9473_v49, %v8813_v58  ;;  %v9475_v51 = vstv %s9466_s5  ;;  %v9476_v39 = vstv %s9467_s20  ;;  %v9478_v23 = vstv %s9469_s15 }
0x22e4   :  { %v5550_v27 = vmul.f32 %v9475_v51, %v8775_v45  ;;  %v5492_v31 = vadd.f32 %v9476_v39, %v5489_v17  ;;  %v5525_v38 = vmul.f32 %v9478_v23, %v8828_v36  ;;  %v5576_v44 = vadd.f32 %v5575_v33, %v5572_v26 }
0x22e5   :  { %v9480_v63 = vstv %s8552_s8  ;;  %v5522_v18 = vadd.f32 %v5521_v9, %v5518_v12  ;;  %v9482_v59 = vstv %s8534_s17  ;;  %v5609_v61 = vmul.f32 %v5608_v55, %v8742_v32  ;;  %s9487_s17 = sld [smem:[#allocation50_spill]] }
0x22e6   :  { %v5579_v0 = vmul.f32 %v9480_v63, %v8746_v15  ;;  %v5551_v19 = vadd.f32 %v5550_v27, %v5547_v34  ;;  %v5554_v6 = vmul.f32 %v9482_v59, %v8797_v56  ;;  %7191 = vtanh.f32 %v5492_v31  ;;  %v7188_v40 = vpop.eup %7187 }
0x22e7   :  { %v9485_v2 = vstv %s8560_s25  ;;  %v5612_v4 = vmul.f32 %v5611_v42, %v8744_v13  ;;  %v5526_v62 = vadd.f32 %v5525_v38, %v5522_v18  ;;  %v9488_v35 = vstv %s9477_s26  ;;  %s8940_s25 = sld [smem:[#allocation13 + $0x287]] }
0x22e8   :  { %v5580_v37 = vadd.f32 %v5579_v0, %v5576_v44  ;;  %v5583_v60 = vmul.f32 %v9485_v2, %v8759_v47  ;;  %v5555_v28 = vadd.f32 %v5554_v6, %v5551_v19  ;;  %v5558_v10 = vmul.f32 %v9488_v35, %v8813_v58 }
0x22e9   :  { %v9489_v55 = vstv %s9479_s2  ;;  %v5587_v5 = vmul.f32 %v5586_v50, %v8775_v45  ;;  %v5613_v42 = vadd.f32 %v5612_v4, %v5609_v61  ;;  %v5616_v11 = vmul.f32 %v5615_v57, %v8746_v15 }
0x22ea   :  { %v5562_v1 = vmul.f32 %v9489_v55, %v8828_v36  ;;  %v5584_v22 = vadd.f32 %v5583_v60, %v5580_v37  ;;  %v9493_v29 = vstv %s9484_s3  ;;  %v5559_v20 = vadd.f32 %v5558_v10, %v5555_v28 }
0x22eb   :  { %v5529_v7 = vadd.f32 %v9493_v29, %v5526_v62  ;;  %v5591_v43 = vmul.f32 %v5590_v3, %v8797_v56  ;;  %v5646_v26 = vmul.f32 %v5645_v24, %v8742_v32  ;;  %5421 = vst.msk [vmem:[%s9487_s17] sm:$0xff] %vm312_vm2, %v7188_v40  ;;  %v5617_v17 = vadd.f32 %v5616_v11, %v5613_v42  ;;  %v7190_v33 = vpop.eup %7189 }
0x22ec   :  { %v5588_v50 = vadd.f32 %v5587_v5, %v5584_v22  ;;  %v5620_v57 = vmul.f32 %v5619_v48, %v8759_v47  ;;  %v5649_v3 = vmul.f32 %v5648_v8, %v8744_v13  ;;  %v5563_v32 = vadd.f32 %v5562_v1, %v5559_v20  ;;  %6183 = vst.msk [vmem:[%s9487_s17 + $0x8] sm:$0xff] %vm312_vm2, %v7190_v33 }
0x22ed   :  { %7193 = vtanh.f32 %v5529_v7  ;;  %v5595_v24 = vmul.f32 %v5594_v14, %v8813_v58  ;;  %v5624_v30 = vmul.f32 %v5623_v46, %v8775_v45  ;;  %v5653_v8 = vmul.f32 %v5652_v41, %v8746_v15 }
0x22ee   :  { %v5592_v48 = vadd.f32 %v5591_v43, %v5588_v50  ;;  %v5621_v12 = vadd.f32 %v5620_v57, %v5617_v17  ;;  %v5650_v13 = vadd.f32 %v5649_v3, %v5646_v26  ;;  %v5566_v14 = vadd.f32 %v5565_v52, %v5563_v32 }
0x22ef   :  { %v5599_v46 = vmul.f32 %v5598_v54, %v8828_v36  ;;  %v5628_v49 = vmul.f32 %v5627_v53, %v8797_v56  ;;  %v5660_v9 = vstv %s8924_s22  ;;  %v5657_v39 = vmul.f32 %v5656_v16, %v8759_v47 }
0x22f0   :  { %v5596_v34 = vadd.f32 %v5595_v24, %v5592_v48  ;;  %v5625_v51 = vadd.f32 %v5624_v30, %v5621_v12  ;;  %v5654_v27 = vadd.f32 %v5653_v8, %v5650_v13  ;;  %7195 = vtanh.f32 %v5566_v14  ;;  %v7192_v41 = vpop.eup %7191 }
0x22f1   :  { %v5602_v15 = vstv %s8938_s23  ;;  %v5632_v52 = vmul.f32 %v5631_v21, %v8813_v58  ;;  %v5664_v54 = vstv %s8940_s25  ;;  %v5661_v38 = vmul.f32 %v5660_v9, %v8775_v45  ;;  %6193 = vst.msk [vmem:[%s9487_s17 + $0x10] sm:$0xff] %vm312_vm2, %v7192_v41 }
0x22f2   :  { %v5600_v53 = vadd.f32 %v5599_v46, %v5596_v34  ;;  %v5629_v31 = vadd.f32 %v5628_v49, %v5625_v51  ;;  %v5658_v23 = vadd.f32 %v5657_v39, %v5654_v27  ;;  %v5636_v47 = vmul.f32 %v5635_v25, %v8828_v36 }
0x22f3   :  { %v5668_v16 = vstv %s8956_s1  ;;  %v5665_v21 = vmul.f32 %v5664_v54, %v8797_v56  ;;  %v5639_v18 = vstv %s8972_s13  ;;  %v5672_v19 = vstv %s8974_s4 }
0x22f4   :  { %v5603_v44 = vadd.f32 %v5602_v15, %v5600_v53  ;;  %v5633_v63 = vadd.f32 %v5632_v52, %v5629_v31  ;;  %v5662_v0 = vadd.f32 %v5661_v38, %v5658_v23  ;;  %v5669_v45 = vmul.f32 %v5668_v16, %v8813_v58 }
0x22f5   :  { %v5673_v2 = vmul.f32 %v5672_v19, %v8828_v36  ;;  %v5676_v60 = vstv %s6242_s16 }
0x22f6   :  { %7197 = vtanh.f32 %v5603_v44  ;;  %v5637_v59 = vadd.f32 %v5636_v47, %v5633_v63  ;;  %v5666_v6 = vadd.f32 %v5665_v21, %v5662_v0 }
0x22f7   :  { %v7194_v61 = vpop.eup %7193 }
0x22f8   :  { %6203 = vst.msk [vmem:[%s9487_s17 + $0x18] sm:$0xff] %vm312_vm2, %v7194_v61  ;;  %v5640_v25 = vadd.f32 %v5639_v18, %v5637_v59  ;;  %v5670_v37 = vadd.f32 %v5669_v45, %v5666_v6 }
0x22fa   :  { %7199 = vtanh.f32 %v5640_v25  ;;  %v5674_v56 = vadd.f32 %v5673_v2, %v5670_v37  ;;  %v7196_v4 = vpop.eup %7195 }
0x22fb   :  { %6213 = vst.msk [vmem:[%s9487_s17 + $0x20] sm:$0xff] %vm312_vm2, %v7196_v4 }
0x22fc   :  { %v5677_v62 = vadd.f32 %v5676_v60, %v5674_v56 }
0x22fe   :  { %7201 = vtanh.f32 %v5677_v62 }
0x2300   :  { %v7198_v28 = vpop.eup %7197 }
0x2301   :  { %6223 = vst.msk [vmem:[%s9487_s17 + $0x28] sm:$0xff] %vm312_vm2, %v7198_v28 }
0x2304   :  { %v7200_v58 = vpop.eup %7199 }
0x2305   :  { %6233 = vst.msk [vmem:[%s9487_s17 + $0x30] sm:$0xff] %vm312_vm2, %v7200_v58 }
0x2308   :  { %v7202_v35 = vpop.eup %7201 }
0x2309   :  { %6243 = vst.msk [vmem:[%s9487_s17 + $0x38] sm:$0xff] %vm312_vm2, %v7202_v35 }
0x230a   :  { %7383 = dma.done.wait [#allocation3], 512  }
0x230b   :  { %7384 = vsyncadd [#allocation3], 4294966784 }
0x230c   :  { %7385 = dma.done.wait [#allocation18], 1024  }
0x230d   :  { %7386 = vsyncadd [#allocation18], 4294966272 }
0x230e   :  { %5730 = vsyncpa [#allocation3], 1 }
0x230f   :  { %5731 = vsyncpa [#allocation18], 1 }
0x2310   :  { %5732 = vsyncpa [#allocation4], 1 }
0x2311   :  { %5733 = vsyncpa [#allocation6], 1 }
0x2312   :  { %5734 = vsyncpa [#allocation9], 1 }
0x2313   :  { %5735 = vsyncpa [#allocation12], 1 }
0x2314   :  { %5736 = vsyncpa [#allocation15], 1 }

</bundles_post_ra>
